<compile_context>
chip_gen: v5e
topology: v5e:2x2
jax: 0.10.0
libtpu: 0.0.40
codegen_flags: <defaults>
</compile_context>

<pallas_src>
import functools

import jax
import jax.numpy as jnp
from jax import lax
from jax.experimental import pallas as pl
from jax.experimental.pallas import tpu as pltpu

LATENT_DIM = 16


# ----------------------------- Pallas kernels -----------------------------

def _stage1_kernel(p1_ref, w1_ref, b1_ref, wqkv_ref, bqkv_ref, wp_ref, bp_ref,
                   o_ref, *, heads, head_dim):
    """Per-sample fused: conv1(matmul)+ReLU -> QKV -> multi-head attention ->
    proj_out (gamma folded into wp/bp) + residual.  All intermediates live in
    VMEM / vregs; only the [S, C] block result is stored.  Output is the
    attention-block result in NHWC-flat [S, C] layout."""
    C = heads * head_dim
    patches = p1_ref[0]                                             # [S, Cin*K*K]
    h = jnp.dot(patches, w1_ref[...], preferred_element_type=jnp.float32)
    h = jnp.maximum(h + b1_ref[...], 0.0)                           # [S, C]

    # Single MXU pass for Q|K|V (N = 3C = 96).
    qkv = jnp.dot(h, wqkv_ref[...], preferred_element_type=jnp.float32)
    qkv = qkv + bqkv_ref[...]                                       # [S, 3C]

    scale = 1.0 / float(head_dim) ** 0.5
    outs = []
    for hh in range(heads):                 # static unroll, all heads this step
        lo = hh * head_dim
        # Scale applied on q ([S,hd]) instead of on the [S,S] score matrix.
        q = qkv[:, lo:lo + head_dim] * scale
        k = qkv[:, C + lo:C + lo + head_dim]
        v = qkv[:, 2 * C + lo:2 * C + lo + head_dim]
        # q @ k^T without materializing a transpose: contract last dims.
        s = lax.dot_general(q, k, (((1,), (1,)), ((), ())),
                            preferred_element_type=jnp.float32)     # [S, S]
        s = s - jnp.max(s, axis=-1, keepdims=True)                  # XLU reduce
        p = jnp.exp(s)                                              # EUP
        p = p * pl.reciprocal(jnp.sum(p, axis=-1, keepdims=True), approx=True)
        outs.append(jnp.dot(p, v, preferred_element_type=jnp.float32))   # [S, hd]
    o = jnp.concatenate(outs, axis=1)                                # [S, C]

    proj = jnp.dot(o, wp_ref[...], preferred_element_type=jnp.float32)
    # gamma is already folded into wp/bp, so this is gamma*proj_out(o) + h.
    o_ref[0] = (proj + bp_ref[...] + h).astype(o_ref.dtype)


def _matmul_bias_relu3_kernel(x_ref, w_ref, b_ref, o_ref):
    """Per-sample conv2: relu(patches @ W + b)."""
    acc = jnp.dot(x_ref[0], w_ref[...], preferred_element_type=jnp.float32)
    o_ref[0] = jnp.maximum(acc + b_ref[...], 0.0).astype(o_ref.dtype)


def _matmul_bias_kernel(x_ref, w_ref, b_ref, o_ref):
    """Fused fc_mu|fc_logvar: x @ W + b (one K=3136 matmul for both heads)."""
    acc = jnp.dot(x_ref[...], w_ref[...], preferred_element_type=jnp.float32)
    o_ref[...] = (acc + b_ref[...]).astype(o_ref.dtype)


# ------------------------------- glue (JAX) -------------------------------

def im2col_nhwc(x, ksize, stride, pad):
    """NHWC -> patches [B, Ho*Wo, Cin*K*K]; columns ordered (cin, kh, kw) to
    match PyTorch OIHW weights reshaped to [Cout, Cin*K*K]."""
    B, H, W, C = x.shape
    xp = jnp.pad(x, ((0, 0), (pad, pad), (pad, pad), (0, 0)))
    Ho = (H + 2 * pad - ksize) // stride + 1
    Wo = (W + 2 * pad - ksize) // stride + 1
    cols = []
    for kh in range(ksize):
        for kw in range(ksize):
            cols.append(xp[:, kh:kh + stride * Ho:stride,
                           kw:kw + stride * Wo:stride, :])
    pat = jnp.stack(cols, axis=3)                       # [B, Ho, Wo, K*K, C]
    pat = pat.transpose(0, 1, 2, 4, 3)                  # [B, Ho, Wo, C, K*K]
    return pat.reshape(B, Ho * Wo, C * ksize * ksize), Ho, Wo


def prepare_params(p):
    """One-time weight re-layout (call once, outside the hot path): fold gamma
    into proj_out, fuse QKV weights into [C,3C], fuse fc_mu|fc_logvar into one
    [3136, 2L] matrix with rows permuted from PyTorch's NCHW flatten order
    (c,h,w) to the kernels' NHWC flatten order (h,w,c)."""
    C1 = p["conv1_w"].shape[0]
    C2 = p["conv2_w"].shape[0]
    L = p["fc_mu_w"].shape[0]
    S2 = p["fc_mu_w"].shape[1] // C2                    # 7*7
    g = jnp.asarray(p["gamma"], jnp.float32)
    wfc = jnp.concatenate([p["fc_mu_w"], p["fc_logvar_w"]], axis=0)   # [2L, C2*S2]
    wfc = wfc.reshape(2 * L, C2, S2).transpose(2, 1, 0).reshape(S2 * C2, 2 * L)
    return {
        "w1": p["conv1_w"].reshape(C1, -1).T,                         # [Cin*K*K, C1]
        "b1": p["conv1_b"].reshape(1, C1),
        "wqkv": jnp.concatenate([p["q_w"].T, p["k_w"].T, p["v_w"].T], axis=1),
        "bqkv": jnp.concatenate([p["q_b"], p["k_b"], p["v_b"]]).reshape(1, 3 * C1),
        "wp": p["p_w"].T * g,                                          # gamma folded
        "bp": (p["p_b"] * g).reshape(1, C1),
        "w2": p["conv2_w"].reshape(C2, -1).T,                          # [C1*K*K, C2]
        "b2": p["conv2_b"].reshape(1, C2),
        "wfc": wfc,                                                    # [S2*C2, 2L]
        "bfc": jnp.concatenate([p["fc_mu_b"], p["fc_logvar_b"]]).reshape(1, 2 * L),
    }


def encoder_pallas(x, pp, heads=4):
    """x: NCHW float32 [B,1,28,28]; pp: prepare_params(raw_params)."""
    B = x.shape[0]
    C1 = pp["w1"].shape[1]
    C2 = pp["w2"].shape[1]
    L2 = pp["wfc"].shape[1]
    hd = C1 // heads

    # ---- stage 1: conv1 + QKV + attention + proj/gamma/residual (1 kernel) ----
    x_nhwc = x.transpose(0, 2, 3, 1)                                  # [B,28,28,1]
    patches1, H1, W1 = im2col_nhwc(x_nhwc, 4, 2, 1)                   # [B,196,16]
    S1, P1 = H1 * W1, patches1.shape[-1]

    attn_out = pl.pallas_call(
        functools.partial(_stage1_kernel, heads=heads, head_dim=hd),
        out_shape=jax.ShapeDtypeStruct((B, S1, C1), jnp.float32),
        grid=(B,),
        in_specs=[
            pl.BlockSpec((1, S1, P1), lambda b: (b, 0, 0)),
            pl.BlockSpec((P1, C1), lambda b: (0, 0)),
            pl.BlockSpec((1, C1), lambda b: (0, 0)),
            pl.BlockSpec((C1, 3 * C1), lambda b: (0, 0)),
            pl.BlockSpec((1, 3 * C1), lambda b: (0, 0)),
            pl.BlockSpec((C1, C1), lambda b: (0, 0)),
            pl.BlockSpec((1, C1), lambda b: (0, 0)),
        ],
        out_specs=pl.BlockSpec((1, S1, C1), lambda b: (b, 0, 0)),
        compiler_params=pltpu.CompilerParams(dimension_semantics=("parallel",)),
    )(patches1, pp["w1"], pp["b1"], pp["wqkv"], pp["bqkv"], pp["wp"], pp["bp"])

    # ---- stage 2: conv2 + ReLU (NHWC patches, no NCHW relayout) ----
    h_nhwc = attn_out.reshape(B, H1, W1, C1)          # bitcast, row-major match
    patches2, H2, W2 = im2col_nhwc(h_nhwc, 4, 2, 1)                   # [B,49,512]
    S2, P2 = H2 * W2, patches2.shape[-1]

    conv2_out = pl.pallas_call(
        _matmul_bias_relu3_kernel,
        out_shape=jax.ShapeDtypeStruct((B, S2, C2), jnp.float32),
        grid=(B,),
        in_specs=[
            pl.BlockSpec((1, S2, P2), lambda b: (b, 0, 0)),
            pl.BlockSpec((P2, C2), lambda b: (0, 0)),
            pl.BlockSpec((1, C2), lambda b: (0, 0)),
        ],
        out_specs=pl.BlockSpec((1, S2, C2), lambda b: (b, 0, 0)),
        compiler_params=pltpu.CompilerParams(dimension_semantics=("parallel",)),
    )(patches2, pp["w2"], pp["b2"])

    # ---- stage 3: fused fc_mu|fc_logvar (one K=3136 matmul for the batch) ----
    # Row-major [B,S2,C2] -> [B, S2*C2] is a bitcast; wfc rows were permuted
    # host-side to this (h,w,c) order, so no transpose is needed here.
    flat = conv2_out.reshape(B, S2 * C2)
    mulv = pl.pallas_call(
        _matmul_bias_kernel,
        out_shape=jax.ShapeDtypeStruct((B, L2), jnp.float32),
        grid=(1,),
        in_specs=[
            pl.BlockSpec((B, S2 * C2), lambda i: (0, 0)),
            pl.BlockSpec((S2 * C2, L2), lambda i: (0, 0)),
            pl.BlockSpec((1, L2), lambda i: (0, 0)),
        ],
        out_specs=pl.BlockSpec((B, L2), lambda i: (0, 0)),
        compiler_params=pltpu.CompilerParams(dimension_semantics=("arbitrary",)),
    )(flat, pp["wfc"], pp["bfc"])

    L = L2 // 2
    return mulv[:, :L], mulv[:, L:]


# --------------------------- pure-JAX reference ---------------------------

def _conv_ref(x, w, b, stride, pad):
    out = lax.conv_general_dilated(
        x, w, window_strides=(stride, stride),
        padding=((pad, pad), (pad, pad)),
        dimension_numbers=("NCHW", "OIHW", "NCHW"),
        precision=lax.Precision.HIGHEST)
    return out + b[None, :, None, None]


def encoder_ref(x, p, heads=4):
    hp = lax.Precision.HIGHEST
    h = jax.nn.relu(_conv_ref(x, p["conv1_w"], p["conv1_b"], 2, 1))
    B, C, H, W = h.shape
    hd = C // heads

    def conv1x1(t, w, b):
        return jnp.einsum("bchw,oc->bohw", t, w, precision=hp) + b[None, :, None, None]

    q = conv1x1(h, p["q_w"], p["q_b"]).reshape(B, heads, hd, H * W).transpose(0, 1, 3, 2)
    k = conv1x1(h, p["k_w"], p["k_b"]).reshape(B, heads, hd, H * W)
    v = conv1x1(h, p["v_w"], p["v_b"]).reshape(B, heads, hd, H * W)
    attn = jax.nn.softmax(
        jnp.einsum("bhqd,bhdk->bhqk", q, k, precision=hp) / float(hd) ** 0.5, axis=-1)
    o = jnp.einsum("bhqk,bhdk->bhqd", attn, v, precision=hp)
    o = o.transpose(0, 1, 3, 2).reshape(B, C, H, W)
    o = conv1x1(o, p["p_w"], p["p_b"])
    h = p["gamma"] * o + h
    h = jax.nn.relu(_conv_ref(h, p["conv2_w"], p["conv2_b"], 2, 1))
    flat = h.reshape(B, -1)
    mu = flat @ p["fc_mu_w"].T + p["fc_mu_b"]
    lv = flat @ p["fc_logvar_w"].T + p["fc_logvar_b"]
    return mu, lv


# --------------------------------- main -----------------------------------

if __name__ == "__main__":
    key = jax.random.PRNGKey(0)
    ks = jax.random.split(key, 16)

    def nrm(k, shape, fan_in):
        return (jax.random.normal(k, shape, jnp.float32) / jnp.sqrt(fan_in)).astype(jnp.float32)

    params = {
        "conv1_w": nrm(ks[0], (32, 1, 4, 4), 1 * 4 * 4),
        "conv1_b": nrm(ks[1], (32,), 1 * 4 * 4),
        "q_w": nrm(ks[2], (32, 32), 32), "q_b": nrm(ks[3], (32,), 32),
        "k_w": nrm(ks[4], (32, 32), 32), "k_b": nrm(ks[5], (32,), 32),
        "v_w": nrm(ks[6], (32, 32), 32), "v_b": nrm(ks[7], (32,), 32),
        "p_w": nrm(ks[8], (32, 32), 32), "p_b": nrm(ks[9], (32,), 32),
        # nn.Parameter(torch.zeros(1)) in the module; set nonzero (deterministic)
        # so the attention path actually contributes to the output.
        "gamma": jnp.float32(0.5),
        "conv2_w": nrm(ks[10], (64, 32, 4, 4), 32 * 4 * 4),
        "conv2_b": nrm(ks[11], (64,), 32 * 4 * 4),
        "fc_mu_w": nrm(ks[12], (LATENT_DIM, 64 * 7 * 7), 64 * 7 * 7),
        "fc_mu_b": nrm(ks[13], (LATENT_DIM,), 64 * 7 * 7),
        "fc_logvar_w": nrm(ks[14], (LATENT_DIM, 64 * 7 * 7), 64 * 7 * 7),
        "fc_logvar_b": nrm(ks[15], (LATENT_DIM,), 64 * 7 * 7),
    }

    x = jax.random.normal(jax.random.PRNGKey(1), (2, 1, 28, 28), jnp.float32)

    # one-time weight re-layout outside the hot path
    pp = prepare_params(params)
    pp = jax.tree_util.tree_map(jnp.asarray, pp)

    fwd = jax.jit(encoder_pallas)
    mu, logvar = fwd(x, pp)
    jax.block_until_ready((mu, logvar))

    mu_ref, lv_ref = encoder_ref(x, params)
    assert mu.shape == (2, LATENT_DIM) and logvar.shape == (2, LATENT_DIM)
    assert jnp.allclose(mu, mu_ref, atol=2e-3, rtol=2e-3), "mu mismatch vs reference"
    assert jnp.allclose(logvar, lv_ref, atol=2e-3, rtol=2e-3), "logvar mismatch vs reference"

    print("KERNEL_OK")
</pallas_src>

<mosaic_0001>
module attributes {stable_mosaic.version = 11 : i64} {
  func.func @_stage1_kernel(%arg0: i32, %arg1: memref<1x196x16xf32, #tpu.memory_space<vmem>>, %arg2: memref<16x32xf32, #tpu.memory_space<vmem>>, %arg3: memref<1x32xf32, #tpu.memory_space<vmem>>, %arg4: memref<32x96xf32, #tpu.memory_space<vmem>>, %arg5: memref<1x96xf32, #tpu.memory_space<vmem>>, %arg6: memref<32x32xf32, #tpu.memory_space<vmem>>, %arg7: memref<1x32xf32, #tpu.memory_space<vmem>>, %arg8: memref<1x196x32xf32, #tpu.memory_space<vmem>>) attributes {dimension_semantics = [#tpu.dimension_semantics<parallel>], iteration_bounds = array<i64: 2>, scalar_prefetch = 0 : i64, scratch_operands = 0 : i64, tpu.core_type = #tpu.core_type<tc>, window_params = [{transform_indices = @transform_0, window_bounds = array<i64: 1, 196, 16>}, {pipeline_mode = #tpu.pipeline_mode<synchronous>, transform_indices = @transform_1, window_bounds = array<i64: 16, 32>}, {pipeline_mode = #tpu.pipeline_mode<synchronous>, transform_indices = @transform_2, window_bounds = array<i64: 1, 32>}, {pipeline_mode = #tpu.pipeline_mode<synchronous>, transform_indices = @transform_3, window_bounds = array<i64: 32, 96>}, {pipeline_mode = #tpu.pipeline_mode<synchronous>, transform_indices = @transform_4, window_bounds = array<i64: 1, 96>}, {pipeline_mode = #tpu.pipeline_mode<synchronous>, transform_indices = @transform_5, window_bounds = array<i64: 32, 32>}, {pipeline_mode = #tpu.pipeline_mode<synchronous>, transform_indices = @transform_6, window_bounds = array<i64: 1, 32>}, {transform_indices = @transform_7, window_bounds = array<i64: 1, 196, 32>}]} {
    %c0 = arith.constant 0 : index
    %c0_0 = arith.constant 0 : index
    %c0_1 = arith.constant 0 : index
    %0 = vector.load %arg1[%c0, %c0_0, %c0_1] : memref<1x196x16xf32, #tpu.memory_space<vmem>>, vector<1x196x16xf32>
    %1 = vector.shape_cast %0 : vector<1x196x16xf32> to vector<196x16xf32>
    %c0_2 = arith.constant 0 : index
    %c0_3 = arith.constant 0 : index
    %2 = vector.load %arg2[%c0_2, %c0_3] : memref<16x32xf32, #tpu.memory_space<vmem>>, vector<16x32xf32>
    %cst = arith.constant dense<0.000000e+00> : vector<196x32xf32>
    %3 = tpu.matmul %1, %2, %cst {dimension_numbers = #tpu.dot_dimension_numbers<[1], [0], [0], [1], [0, 0, 1, 1], [], []>} : vector<196x16xf32>, vector<16x32xf32>, vector<196x32xf32> -> vector<196x32xf32>
    %c0_4 = arith.constant 0 : index
    %c0_5 = arith.constant 0 : index
    %4 = vector.load %arg3[%c0_4, %c0_5] : memref<1x32xf32, #tpu.memory_space<vmem>>, vector<1x32xf32>
    %5 = vector.broadcast %4 : vector<1x32xf32> to vector<196x32xf32>
    %6 = arith.addf %3, %5 : vector<196x32xf32>
    %cst_6 = arith.constant 0.000000e+00 : f32
    %7 = vector.broadcast %cst_6 : f32 to vector<196x32xf32>
    %8 = arith.maximumf %6, %7 : vector<196x32xf32>
    %c0_7 = arith.constant 0 : index
    %c0_8 = arith.constant 0 : index
    %9 = vector.load %arg4[%c0_7, %c0_8] : memref<32x96xf32, #tpu.memory_space<vmem>>, vector<32x96xf32>
    %cst_9 = arith.constant dense<0.000000e+00> : vector<196x96xf32>
    %10 = tpu.matmul %8, %9, %cst_9 {dimension_numbers = #tpu.dot_dimension_numbers<[1], [0], [0], [1], [0, 0, 1, 1], [], []>} : vector<196x32xf32>, vector<32x96xf32>, vector<196x96xf32> -> vector<196x96xf32>
    %c0_10 = arith.constant 0 : index
    %c0_11 = arith.constant 0 : index
    %11 = vector.load %arg5[%c0_10, %c0_11] : memref<1x96xf32, #tpu.memory_space<vmem>>, vector<1x96xf32>
    %12 = vector.broadcast %11 : vector<1x96xf32> to vector<196x96xf32>
    %13 = arith.addf %10, %12 : vector<196x96xf32>
    %14 = vector.extract_strided_slice %13 {offsets = [0, 0], sizes = [196, 8], strides = [1, 1]} : vector<196x96xf32> to vector<196x8xf32>
    %cst_12 = arith.constant 0.353553385 : f32
    %15 = vector.broadcast %cst_12 : f32 to vector<196x8xf32>
    %16 = arith.mulf %14, %15 : vector<196x8xf32>
    %17 = vector.extract_strided_slice %13 {offsets = [0, 32], sizes = [196, 8], strides = [1, 1]} : vector<196x96xf32> to vector<196x8xf32>
    %18 = vector.extract_strided_slice %13 {offsets = [0, 64], sizes = [196, 8], strides = [1, 1]} : vector<196x96xf32> to vector<196x8xf32>
    %cst_13 = arith.constant dense<0.000000e+00> : vector<196x196xf32>
    %19 = tpu.matmul %16, %17, %cst_13 {dimension_numbers = #tpu.dot_dimension_numbers<[1], [1], [0], [0], [0, 0, 1, 0], [], []>} : vector<196x8xf32>, vector<196x8xf32>, vector<196x196xf32> -> vector<196x196xf32>
    %cst_14 = arith.constant dense<0xFF800000> : vector<196xf32>
    %20 = vector.multi_reduction <maximumf>, %19, %cst_14 [1] : vector<196x196xf32> to vector<196xf32>
    %21 = vector.shape_cast %20 : vector<196xf32> to vector<196x1xf32>
    %22 = vector.broadcast %21 : vector<196x1xf32> to vector<196x196xf32>
    %23 = arith.subf %19, %22 : vector<196x196xf32>
    %24 = math.exp %23 : vector<196x196xf32>
    %cst_15 = arith.constant dense<0.000000e+00> : vector<196xf32>
    %25 = vector.multi_reduction <add>, %24, %cst_15 [1] : vector<196x196xf32> to vector<196xf32>
    %26 = vector.shape_cast %25 : vector<196xf32> to vector<196x1xf32>
    %27 = tpu.reciprocal %26 {approx = true} : vector<196x1xf32> -> vector<196x1xf32>
    %28 = vector.broadcast %27 : vector<196x1xf32> to vector<196x196xf32>
    %29 = arith.mulf %24, %28 : vector<196x196xf32>
    %cst_16 = arith.constant dense<0.000000e+00> : vector<196x8xf32>
    %30 = tpu.matmul %29, %18, %cst_16 {dimension_numbers = #tpu.dot_dimension_numbers<[1], [0], [0], [1], [0, 0, 1, 1], [], []>} : vector<196x196xf32>, vector<196x8xf32>, vector<196x8xf32> -> vector<196x8xf32>
    %31 = vector.extract_strided_slice %13 {offsets = [0, 8], sizes = [196, 8], strides = [1, 1]} : vector<196x96xf32> to vector<196x8xf32>
    %cst_17 = arith.constant 0.353553385 : f32
    %32 = vector.broadcast %cst_17 : f32 to vector<196x8xf32>
    %33 = arith.mulf %31, %32 : vector<196x8xf32>
    %34 = vector.extract_strided_slice %13 {offsets = [0, 40], sizes = [196, 8], strides = [1, 1]} : vector<196x96xf32> to vector<196x8xf32>
    %35 = vector.extract_strided_slice %13 {offsets = [0, 72], sizes = [196, 8], strides = [1, 1]} : vector<196x96xf32> to vector<196x8xf32>
    %cst_18 = arith.constant dense<0.000000e+00> : vector<196x196xf32>
    %36 = tpu.matmul %33, %34, %cst_18 {dimension_numbers = #tpu.dot_dimension_numbers<[1], [1], [0], [0], [0, 0, 1, 0], [], []>} : vector<196x8xf32>, vector<196x8xf32>, vector<196x196xf32> -> vector<196x196xf32>
    %cst_19 = arith.constant dense<0xFF800000> : vector<196xf32>
    %37 = vector.multi_reduction <maximumf>, %36, %cst_19 [1] : vector<196x196xf32> to vector<196xf32>
    %38 = vector.shape_cast %37 : vector<196xf32> to vector<196x1xf32>
    %39 = vector.broadcast %38 : vector<196x1xf32> to vector<196x196xf32>
    %40 = arith.subf %36, %39 : vector<196x196xf32>
    %41 = math.exp %40 : vector<196x196xf32>
    %cst_20 = arith.constant dense<0.000000e+00> : vector<196xf32>
    %42 = vector.multi_reduction <add>, %41, %cst_20 [1] : vector<196x196xf32> to vector<196xf32>
    %43 = vector.shape_cast %42 : vector<196xf32> to vector<196x1xf32>
    %44 = tpu.reciprocal %43 {approx = true} : vector<196x1xf32> -> vector<196x1xf32>
    %45 = vector.broadcast %44 : vector<196x1xf32> to vector<196x196xf32>
    %46 = arith.mulf %41, %45 : vector<196x196xf32>
    %cst_21 = arith.constant dense<0.000000e+00> : vector<196x8xf32>
    %47 = tpu.matmul %46, %35, %cst_21 {dimension_numbers = #tpu.dot_dimension_numbers<[1], [0], [0], [1], [0, 0, 1, 1], [], []>} : vector<196x196xf32>, vector<196x8xf32>, vector<196x8xf32> -> vector<196x8xf32>
    %48 = vector.extract_strided_slice %13 {offsets = [0, 16], sizes = [196, 8], strides = [1, 1]} : vector<196x96xf32> to vector<196x8xf32>
    %cst_22 = arith.constant 0.353553385 : f32
    %49 = vector.broadcast %cst_22 : f32 to vector<196x8xf32>
    %50 = arith.mulf %48, %49 : vector<196x8xf32>
    %51 = vector.extract_strided_slice %13 {offsets = [0, 48], sizes = [196, 8], strides = [1, 1]} : vector<196x96xf32> to vector<196x8xf32>
    %52 = vector.extract_strided_slice %13 {offsets = [0, 80], sizes = [196, 8], strides = [1, 1]} : vector<196x96xf32> to vector<196x8xf32>
    %cst_23 = arith.constant dense<0.000000e+00> : vector<196x196xf32>
    %53 = tpu.matmul %50, %51, %cst_23 {dimension_numbers = #tpu.dot_dimension_numbers<[1], [1], [0], [0], [0, 0, 1, 0], [], []>} : vector<196x8xf32>, vector<196x8xf32>, vector<196x196xf32> -> vector<196x196xf32>
    %cst_24 = arith.constant dense<0xFF800000> : vector<196xf32>
    %54 = vector.multi_reduction <maximumf>, %53, %cst_24 [1] : vector<196x196xf32> to vector<196xf32>
    %55 = vector.shape_cast %54 : vector<196xf32> to vector<196x1xf32>
    %56 = vector.broadcast %55 : vector<196x1xf32> to vector<196x196xf32>
    %57 = arith.subf %53, %56 : vector<196x196xf32>
    %58 = math.exp %57 : vector<196x196xf32>
    %cst_25 = arith.constant dense<0.000000e+00> : vector<196xf32>
    %59 = vector.multi_reduction <add>, %58, %cst_25 [1] : vector<196x196xf32> to vector<196xf32>
    %60 = vector.shape_cast %59 : vector<196xf32> to vector<196x1xf32>
    %61 = tpu.reciprocal %60 {approx = true} : vector<196x1xf32> -> vector<196x1xf32>
    %62 = vector.broadcast %61 : vector<196x1xf32> to vector<196x196xf32>
    %63 = arith.mulf %58, %62 : vector<196x196xf32>
    %cst_26 = arith.constant dense<0.000000e+00> : vector<196x8xf32>
    %64 = tpu.matmul %63, %52, %cst_26 {dimension_numbers = #tpu.dot_dimension_numbers<[1], [0], [0], [1], [0, 0, 1, 1], [], []>} : vector<196x196xf32>, vector<196x8xf32>, vector<196x8xf32> -> vector<196x8xf32>
    %65 = vector.extract_strided_slice %13 {offsets = [0, 24], sizes = [196, 8], strides = [1, 1]} : vector<196x96xf32> to vector<196x8xf32>
    %cst_27 = arith.constant 0.353553385 : f32
    %66 = vector.broadcast %cst_27 : f32 to vector<196x8xf32>
    %67 = arith.mulf %65, %66 : vector<196x8xf32>
    %68 = vector.extract_strided_slice %13 {offsets = [0, 56], sizes = [196, 8], strides = [1, 1]} : vector<196x96xf32> to vector<196x8xf32>
    %69 = vector.extract_strided_slice %13 {offsets = [0, 88], sizes = [196, 8], strides = [1, 1]} : vector<196x96xf32> to vector<196x8xf32>
    %cst_28 = arith.constant dense<0.000000e+00> : vector<196x196xf32>
    %70 = tpu.matmul %67, %68, %cst_28 {dimension_numbers = #tpu.dot_dimension_numbers<[1], [1], [0], [0], [0, 0, 1, 0], [], []>} : vector<196x8xf32>, vector<196x8xf32>, vector<196x196xf32> -> vector<196x196xf32>
    %cst_29 = arith.constant dense<0xFF800000> : vector<196xf32>
    %71 = vector.multi_reduction <maximumf>, %70, %cst_29 [1] : vector<196x196xf32> to vector<196xf32>
    %72 = vector.shape_cast %71 : vector<196xf32> to vector<196x1xf32>
    %73 = vector.broadcast %72 : vector<196x1xf32> to vector<196x196xf32>
    %74 = arith.subf %70, %73 : vector<196x196xf32>
    %75 = math.exp %74 : vector<196x196xf32>
    %cst_30 = arith.constant dense<0.000000e+00> : vector<196xf32>
    %76 = vector.multi_reduction <add>, %75, %cst_30 [1] : vector<196x196xf32> to vector<196xf32>
    %77 = vector.shape_cast %76 : vector<196xf32> to vector<196x1xf32>
    %78 = tpu.reciprocal %77 {approx = true} : vector<196x1xf32> -> vector<196x1xf32>
    %79 = vector.broadcast %78 : vector<196x1xf32> to vector<196x196xf32>
    %80 = arith.mulf %75, %79 : vector<196x196xf32>
    %cst_31 = arith.constant dense<0.000000e+00> : vector<196x8xf32>
    %81 = tpu.matmul %80, %69, %cst_31 {dimension_numbers = #tpu.dot_dimension_numbers<[1], [0], [0], [1], [0, 0, 1, 1], [], []>} : vector<196x196xf32>, vector<196x8xf32>, vector<196x8xf32> -> vector<196x8xf32>
    %82 = tpu.concatenate %30, %47, %64, %81 in 1 : vector<196x8xf32>, vector<196x8xf32>, vector<196x8xf32>, vector<196x8xf32> -> vector<196x32xf32>
    %c0_32 = arith.constant 0 : index
    %c0_33 = arith.constant 0 : index
    %83 = vector.load %arg6[%c0_32, %c0_33] : memref<32x32xf32, #tpu.memory_space<vmem>>, vector<32x32xf32>
    %cst_34 = arith.constant dense<0.000000e+00> : vector<196x32xf32>
    %84 = tpu.matmul %82, %83, %cst_34 {dimension_numbers = #tpu.dot_dimension_numbers<[1], [0], [0], [1], [0, 0, 1, 1], [], []>} : vector<196x32xf32>, vector<32x32xf32>, vector<196x32xf32> -> vector<196x32xf32>
    %c0_35 = arith.constant 0 : index
    %c0_36 = arith.constant 0 : index
    %85 = vector.load %arg7[%c0_35, %c0_36] : memref<1x32xf32, #tpu.memory_space<vmem>>, vector<1x32xf32>
    %86 = vector.broadcast %85 : vector<1x32xf32> to vector<196x32xf32>
    %87 = arith.addf %84, %86 : vector<196x32xf32>
    %88 = arith.addf %87, %8 : vector<196x32xf32>
    %c0_37 = arith.constant 0 : index
    %c0_38 = arith.constant 0 : index
    %c0_39 = arith.constant 0 : index
    %89 = vector.load %arg8[%c0_37, %c0_38, %c0_39] : memref<1x196x32xf32, #tpu.memory_space<vmem>>, vector<1x196x32xf32>
    %90 = vector.shape_cast %89 : vector<1x196x32xf32> to vector<196x32xf32>
    %91 = vector.shape_cast %88 : vector<196x32xf32> to vector<1x196x32xf32>
    tpu.vector_store %arg8[%c0_37, %c0_38, %c0_39], %91 {strides = array<i32>} : memref<1x196x32xf32, #tpu.memory_space<vmem>>, vector<1x196x32xf32>,
    return
  }
  func.func @transform_0(%arg0: i32) -> (i32, i32, i32) {
    %c0_i32 = arith.constant 0 : i32
    %c0_i32_0 = arith.constant 0 : i32
    %c0_i32_1 = arith.constant 0 : i32
    return %arg0, %c0_i32, %c0_i32_0 : i32, i32, i32
  }
  func.func @transform_1(%arg0: i32) -> (i32, i32) {
    %c0_i32 = arith.constant 0 : i32
    %c0_i32_0 = arith.constant 0 : i32
    %c0_i32_1 = arith.constant 0 : i32
    return %c0_i32, %c0_i32_0 : i32, i32
  }
  func.func @transform_2(%arg0: i32) -> (i32, i32) {
    %c0_i32 = arith.constant 0 : i32
    %c0_i32_0 = arith.constant 0 : i32
    %c0_i32_1 = arith.constant 0 : i32
    return %c0_i32, %c0_i32_0 : i32, i32
  }
  func.func @transform_3(%arg0: i32) -> (i32, i32) {
    %c0_i32 = arith.constant 0 : i32
    %c0_i32_0 = arith.constant 0 : i32
    %c0_i32_1 = arith.constant 0 : i32
    return %c0_i32, %c0_i32_0 : i32, i32
  }
  func.func @transform_4(%arg0: i32) -> (i32, i32) {
    %c0_i32 = arith.constant 0 : i32
    %c0_i32_0 = arith.constant 0 : i32
    %c0_i32_1 = arith.constant 0 : i32
    return %c0_i32, %c0_i32_0 : i32, i32
  }
  func.func @transform_5(%arg0: i32) -> (i32, i32) {
    %c0_i32 = arith.constant 0 : i32
    %c0_i32_0 = arith.constant 0 : i32
    %c0_i32_1 = arith.constant 0 : i32
    return %c0_i32, %c0_i32_0 : i32, i32
  }
  func.func @transform_6(%arg0: i32) -> (i32, i32) {
    %c0_i32 = arith.constant 0 : i32
    %c0_i32_0 = arith.constant 0 : i32
    %c0_i32_1 = arith.constant 0 : i32
    return %c0_i32, %c0_i32_0 : i32, i32
  }
  func.func @transform_7(%arg0: i32) -> (i32, i32, i32) {
    %c0_i32 = arith.constant 0 : i32
    %c0_i32_0 = arith.constant 0 : i32
    %c0_i32_1 = arith.constant 0 : i32
    return %arg0, %c0_i32, %c0_i32_0 : i32, i32, i32
  }
}

module attributes {stable_mosaic.version = 11 : i64} {
  func.func @_matmul_bias_relu3_kernel(%arg0: i32, %arg1: memref<1x49x512xf32, #tpu.memory_space<vmem>>, %arg2: memref<512x64xf32, #tpu.memory_space<vmem>>, %arg3: memref<1x64xf32, #tpu.memory_space<vmem>>, %arg4: memref<1x49x64xf32, #tpu.memory_space<vmem>>) attributes {dimension_semantics = [#tpu.dimension_semantics<parallel>], iteration_bounds = array<i64: 2>, scalar_prefetch = 0 : i64, scratch_operands = 0 : i64, tpu.core_type = #tpu.core_type<tc>, window_params = [{transform_indices = @transform_0, window_bounds = array<i64: 1, 49, 512>}, {pipeline_mode = #tpu.pipeline_mode<synchronous>, transform_indices = @transform_1, window_bounds = array<i64: 512, 64>}, {pipeline_mode = #tpu.pipeline_mode<synchronous>, transform_indices = @transform_2, window_bounds = array<i64: 1, 64>}, {transform_indices = @transform_3, window_bounds = array<i64: 1, 49, 64>}]} {
    %c0 = arith.constant 0 : index
    %c0_0 = arith.constant 0 : index
    %c0_1 = arith.constant 0 : index
    %0 = vector.load %arg1[%c0, %c0_0, %c0_1] : memref<1x49x512xf32, #tpu.memory_space<vmem>>, vector<1x49x512xf32>
    %1 = vector.shape_cast %0 : vector<1x49x512xf32> to vector<49x512xf32>
    %c0_2 = arith.constant 0 : index
    %c0_3 = arith.constant 0 : index
    %2 = vector.load %arg2[%c0_2, %c0_3] : memref<512x64xf32, #tpu.memory_space<vmem>>, vector<512x64xf32>
    %cst = arith.constant dense<0.000000e+00> : vector<49x64xf32>
    %3 = tpu.matmul %1, %2, %cst {dimension_numbers = #tpu.dot_dimension_numbers<[1], [0], [0], [1], [0, 0, 1, 1], [], []>} : vector<49x512xf32>, vector<512x64xf32>, vector<49x64xf32> -> vector<49x64xf32>
    %c0_4 = arith.constant 0 : index
    %c0_5 = arith.constant 0 : index
    %4 = vector.load %arg3[%c0_4, %c0_5] : memref<1x64xf32, #tpu.memory_space<vmem>>, vector<1x64xf32>
    %5 = vector.broadcast %4 : vector<1x64xf32> to vector<49x64xf32>
    %6 = arith.addf %3, %5 : vector<49x64xf32>
    %cst_6 = arith.constant 0.000000e+00 : f32
    %7 = vector.broadcast %cst_6 : f32 to vector<49x64xf32>
    %8 = arith.maximumf %6, %7 : vector<49x64xf32>
    %c0_7 = arith.constant 0 : index
    %c0_8 = arith.constant 0 : index
    %c0_9 = arith.constant 0 : index
    %9 = vector.load %arg4[%c0_7, %c0_8, %c0_9] : memref<1x49x64xf32, #tpu.memory_space<vmem>>, vector<1x49x64xf32>
    %10 = vector.shape_cast %9 : vector<1x49x64xf32> to vector<49x64xf32>
    %11 = vector.shape_cast %8 : vector<49x64xf32> to vector<1x49x64xf32>
    tpu.vector_store %arg4[%c0_7, %c0_8, %c0_9], %11 {strides = array<i32>} : memref<1x49x64xf32, #tpu.memory_space<vmem>>, vector<1x49x64xf32>,
    return
  }
  func.func @transform_0(%arg0: i32) -> (i32, i32, i32) {
    %c0_i32 = arith.constant 0 : i32
    %c0_i32_0 = arith.constant 0 : i32
    %c0_i32_1 = arith.constant 0 : i32
    return %arg0, %c0_i32, %c0_i32_0 : i32, i32, i32
  }
  func.func @transform_1(%arg0: i32) -> (i32, i32) {
    %c0_i32 = arith.constant 0 : i32
    %c0_i32_0 = arith.constant 0 : i32
    %c0_i32_1 = arith.constant 0 : i32
    return %c0_i32, %c0_i32_0 : i32, i32
  }
  func.func @transform_2(%arg0: i32) -> (i32, i32) {
    %c0_i32 = arith.constant 0 : i32
    %c0_i32_0 = arith.constant 0 : i32
    %c0_i32_1 = arith.constant 0 : i32
    return %c0_i32, %c0_i32_0 : i32, i32
  }
  func.func @transform_3(%arg0: i32) -> (i32, i32, i32) {
    %c0_i32 = arith.constant 0 : i32
    %c0_i32_0 = arith.constant 0 : i32
    %c0_i32_1 = arith.constant 0 : i32
    return %arg0, %c0_i32, %c0_i32_0 : i32, i32, i32
  }
}

module attributes {stable_mosaic.version = 11 : i64} {
  func.func @_matmul_bias_kernel(%arg0: i32, %arg1: memref<2x3136xf32, #tpu.memory_space<vmem>>, %arg2: memref<3136x32xf32, #tpu.memory_space<vmem>>, %arg3: memref<1x32xf32, #tpu.memory_space<vmem>>, %arg4: memref<2x32xf32, #tpu.memory_space<vmem>>) attributes {dimension_semantics = [#tpu.dimension_semantics<arbitrary>], iteration_bounds = array<i64: 1>, scalar_prefetch = 0 : i64, scratch_operands = 0 : i64, tpu.core_type = #tpu.core_type<tc>, window_params = [{pipeline_mode = #tpu.pipeline_mode<synchronous>, transform_indices = @transform_0, window_bounds = array<i64: 2, 3136>}, {pipeline_mode = #tpu.pipeline_mode<synchronous>, transform_indices = @transform_1, window_bounds = array<i64: 3136, 32>}, {pipeline_mode = #tpu.pipeline_mode<synchronous>, transform_indices = @transform_2, window_bounds = array<i64: 1, 32>}, {pipeline_mode = #tpu.pipeline_mode<synchronous>, transform_indices = @transform_3, window_bounds = array<i64: 2, 32>}]} {
    %c0 = arith.constant 0 : index
    %c0_0 = arith.constant 0 : index
    %0 = vector.load %arg1[%c0, %c0_0] : memref<2x3136xf32, #tpu.memory_space<vmem>>, vector<2x3136xf32>
    %c0_1 = arith.constant 0 : index
    %c0_2 = arith.constant 0 : index
    %1 = vector.load %arg2[%c0_1, %c0_2] : memref<3136x32xf32, #tpu.memory_space<vmem>>, vector<3136x32xf32>
    %cst = arith.constant dense<0.000000e+00> : vector<2x32xf32>
    %2 = tpu.matmul %0, %1, %cst {dimension_numbers = #tpu.dot_dimension_numbers<[1], [0], [0], [1], [0, 0, 1, 1], [], []>} : vector<2x3136xf32>, vector<3136x32xf32>, vector<2x32xf32> -> vector<2x32xf32>
    %c0_3 = arith.constant 0 : index
    %c0_4 = arith.constant 0 : index
    %3 = vector.load %arg3[%c0_3, %c0_4] : memref<1x32xf32, #tpu.memory_space<vmem>>, vector<1x32xf32>
    %4 = vector.broadcast %3 : vector<1x32xf32> to vector<2x32xf32>
    %5 = arith.addf %2, %4 : vector<2x32xf32>
    %c0_5 = arith.constant 0 : index
    %c0_6 = arith.constant 0 : index
    %6 = vector.load %arg4[%c0_5, %c0_6] : memref<2x32xf32, #tpu.memory_space<vmem>>, vector<2x32xf32>
    tpu.vector_store %arg4[%c0_5, %c0_6], %5 {strides = array<i32>} : memref<2x32xf32, #tpu.memory_space<vmem>>, vector<2x32xf32>,
    return
  }
  func.func @transform_0(%arg0: i32) -> (i32, i32) {
    %c0_i32 = arith.constant 0 : i32
    %c0_i32_0 = arith.constant 0 : i32
    %c0_i32_1 = arith.constant 0 : i32
    return %c0_i32, %c0_i32_0 : i32, i32
  }
  func.func @transform_1(%arg0: i32) -> (i32, i32) {
    %c0_i32 = arith.constant 0 : i32
    %c0_i32_0 = arith.constant 0 : i32
    %c0_i32_1 = arith.constant 0 : i32
    return %c0_i32, %c0_i32_0 : i32, i32
  }
  func.func @transform_2(%arg0: i32) -> (i32, i32) {
    %c0_i32 = arith.constant 0 : i32
    %c0_i32_0 = arith.constant 0 : i32
    %c0_i32_1 = arith.constant 0 : i32
    return %c0_i32, %c0_i32_0 : i32, i32
  }
  func.func @transform_3(%arg0: i32) -> (i32, i32) {
    %c0_i32 = arith.constant 0 : i32
    %c0_i32_0 = arith.constant 0 : i32
    %c0_i32_1 = arith.constant 0 : i32
    return %c0_i32, %c0_i32_0 : i32, i32
  }
}

</mosaic_0001>

<bundles_post_ra>
// kernel: encoder_pallas.4
= control target key start
LH: loop header
LB: loop body
LE: loop exit
PB: predicated region body
PF: predicated region fallthrough
CT: control target
= control target key end

     0   :  { %s538_s12 = smov 0   ;;  %s818_s0 = inlined_call_operand.vmem [shape: f32[2,49,512], index: 0, kind: input, shape index: {}]   ;;  %s819_s1 = inlined_call_operand.vmem [shape: f32[512,64], index: 1, kind: input, shape index: {}]   ;;  %s820_s2 = inlined_call_operand.vmem [shape: f32[1,64], index: 2, kind: input, shape index: {}]   ;;  %s821_s3 = inlined_call_operand.vmem [shape: f32[2,49,64], index: 3, kind: output, shape index: {}]  }
   0x1 LB: > { %s490_s13 = sadd.s32 4294967295, %s516_s12   ;;  %p494_p0 = scmp.ge.s32.totalorder %s516_s12, 1  ;;  %s516_s12 = sphi %s538_s12, %s13_s12  }
   0x2   : > { %p137_p1 = scmp.lt.s32.totalorder %s516_s12, 3 }
   0x4   : > { %p138_p2 = pnand %p494_p0, %p137_p1 }
   0x5   : > { %p650_p3 = scmp.lt.s32.totalorder (!%p138_p2), %s490_s13, 1 }
   0x6   : > { %141 = sbr.rel (%p138_p2) target bundleno = 231 (0xe7), region = 32 }
   0xb   : > { %v246_v0 = vld [vmem:[%s819_s1 + $0x178] sm:$0xff]  ;;  %v245_v2 = vld [vmem:[%s819_s1 + $0x170] sm:$0xff]  ;;  %v244_v6 = vld [vmem:[%s819_s1 + $0x168] sm:$0xff]  ;;  %s824_s13 = smov (!%p650_p3, %s490_s13), 1  ;;  %vm426_vm0 = vcmask 523264   ;;  %vm433_vm1 = vcmask 516096  }
   0xc   : > { %v214_v1 = vld [vmem:[%s819_s1 + $0x78] sm:$0xff]  ;;  %343 = vmatpush.msra.mxu2 %v246_v0  ;;  %v213_v4 = vld [vmem:[%s819_s1 + $0x70] sm:$0xff]  ;;  %v212_v8 = vld [vmem:[%s819_s1 + $0x68] sm:$0xff]  ;;  %s499_s15 = smul.u32 224, %s824_s13 }
   0xd   : > { %267 = vmatpush.msra.mxu0 %v214_v1  ;;  %v262_v3 = vld [vmem:[%s819_s1 + $0x1f8] sm:$0xff]  ;;  %v261_v7 = vld [vmem:[%s819_s1 + $0x1f0] sm:$0xff]  ;;  %v260_v10 = vld [vmem:[%s819_s1 + $0x1e8] sm:$0xff]  ;;  %s500_s24 = smul.u32 56, %s824_s13 }
   0xe   : > { %v230_v5 = vld [vmem:[%s819_s1 + $0xf8] sm:$0xff]  ;;  %381 = vmatpush.msra.mxu3 %v262_v3  ;;  %344 = vmatpush.msra.mxu2 %v245_v2  ;;  %v229_v9 = vld [vmem:[%s819_s1 + $0xf0] sm:$0xff]  ;;  %v243_v11 = vld [vmem:[%s819_s1 + $0x160] sm:$0xff]  ;;  %s736_s7 = scalar_lea.vmem %s818_s0, %s499_s15 }
   0xf   : > { %305 = vmatpush.msra.mxu1 %v230_v5  ;;  %268 = vmatpush.msra.mxu0 %v213_v4  ;;  %v211_v12 = vld [vmem:[%s819_s1 + $0x60] sm:$0xff]  ;;  %v228_v13 = vld [vmem:[%s819_s1 + $0xe8] sm:$0xff]  ;;  %v242_v16 = vld [vmem:[%s819_s1 + $0x158] sm:$0xff]  ;;  %s794_s27 = scalar_lea.vmem %s821_s3, %s500_s24 }
  0x10   : > { %382 = vmatpush.msra.mxu3 %v261_v7  ;;  %345 = vmatpush.msra.mxu2 %v244_v6  ;;  %v259_v14 = vld [vmem:[%s819_s1 + $0x1e0] sm:$0xff]  ;;  %v210_v17 = vld [vmem:[%s819_s1 + $0x58] sm:$0xff]  ;;  %v241_v20 = vld [vmem:[%s819_s1 + $0x150] sm:$0xff] }
  0x11   : > { %306 = vmatpush.msra.mxu1 %v229_v9  ;;  %269 = vmatpush.msra.mxu0 %v212_v8  ;;  %v227_v15 = vld [vmem:[%s819_s1 + $0xe0] sm:$0xff]  ;;  %v258_v18 = vld [vmem:[%s819_s1 + $0x1d8] sm:$0xff]  ;;  %v209_v21 = vld [vmem:[%s819_s1 + $0x50] sm:$0xff] }
  0x12   : > { %383 = vmatpush.msra.mxu3 %v260_v10  ;;  %346 = vmatpush.msra.mxu2 %v243_v11  ;;  %v226_v19 = vld [vmem:[%s819_s1 + $0xd8] sm:$0xff]  ;;  %v257_v22 = vld [vmem:[%s819_s1 + $0x1d0] sm:$0xff]  ;;  %v240_v24 = vld [vmem:[%s819_s1 + $0x148] sm:$0xff] }
  0x13   : > { %307 = vmatpush.msra.mxu1 %v228_v13  ;;  %270 = vmatpush.msra.mxu0 %v211_v12  ;;  %v225_v23 = vld [vmem:[%s819_s1 + $0xd0] sm:$0xff]  ;;  %v208_v25 = vld [vmem:[%s819_s1 + $0x48] sm:$0xff]  ;;  %v239_v28 = vld [vmem:[%s819_s1 + $0x140] sm:$0xff] }
  0x14   : > { %384 = vmatpush.msra.mxu3 %v259_v14  ;;  %347 = vmatpush.msra.mxu2 %v242_v16  ;;  %v256_v26 = vld [vmem:[%s819_s1 + $0x1c8] sm:$0xff]  ;;  %v207_v29 = vld [vmem:[%s819_s1 + $0x40] sm:$0xff]  ;;  %v238_v32 = vld [vmem:[%s819_s1 + $0x138] sm:$0xff] }
  0x15   : > { %308 = vmatpush.msra.mxu1 %v227_v15  ;;  %271 = vmatpush.msra.mxu0 %v210_v17  ;;  %v224_v27 = vld [vmem:[%s819_s1 + $0xc8] sm:$0xff]  ;;  %v255_v30 = vld [vmem:[%s819_s1 + $0x1c0] sm:$0xff]  ;;  %v206_v33 = vld [vmem:[%s819_s1 + $0x38] sm:$0xff] }
  0x16   : > { %385 = vmatpush.msra.mxu3 %v258_v18  ;;  %348 = vmatpush.msra.mxu2 %v241_v20  ;;  %v223_v31 = vld [vmem:[%s819_s1 + $0xc0] sm:$0xff]  ;;  %v254_v34 = vld [vmem:[%s819_s1 + $0x1b8] sm:$0xff]  ;;  %v237_v36 = vld [vmem:[%s819_s1 + $0x130] sm:$0xff] }
  0x17   : > { %309 = vmatpush.msra.mxu1 %v226_v19  ;;  %272 = vmatpush.msra.mxu0 %v209_v21  ;;  %v222_v35 = vld [vmem:[%s819_s1 + $0xb8] sm:$0xff]  ;;  %v205_v37 = vld [vmem:[%s819_s1 + $0x30] sm:$0xff]  ;;  %v236_v40 = vld [vmem:[%s819_s1 + $0x128] sm:$0xff] }
  0x18   : > { %386 = vmatpush.msra.mxu3 %v257_v22  ;;  %349 = vmatpush.msra.mxu2 %v240_v24  ;;  %v253_v38 = vld [vmem:[%s819_s1 + $0x1b0] sm:$0xff]  ;;  %v204_v41 = vld [vmem:[%s819_s1 + $0x28] sm:$0xff]  ;;  %v235_v44 = vld [vmem:[%s819_s1 + $0x120] sm:$0xff] }
  0x19   : > { %310 = vmatpush.msra.mxu1 %v225_v23  ;;  %273 = vmatpush.msra.mxu0 %v208_v25  ;;  %v221_v39 = vld [vmem:[%s819_s1 + $0xb0] sm:$0xff]  ;;  %v252_v42 = vld [vmem:[%s819_s1 + $0x1a8] sm:$0xff]  ;;  %v203_v45 = vld [vmem:[%s819_s1 + $0x20] sm:$0xff] }
  0x1a   : > { %387 = vmatpush.msra.mxu3 %v256_v26  ;;  %350 = vmatpush.msra.mxu2 %v239_v28  ;;  %v220_v43 = vld [vmem:[%s819_s1 + $0xa8] sm:$0xff]  ;;  %v251_v46 = vld [vmem:[%s819_s1 + $0x1a0] sm:$0xff]  ;;  %v234_v48 = vld [vmem:[%s819_s1 + $0x118] sm:$0xff] }
  0x1b   : > { %311 = vmatpush.msra.mxu1 %v224_v27  ;;  %274 = vmatpush.msra.mxu0 %v207_v29  ;;  %v219_v47 = vld [vmem:[%s819_s1 + $0xa0] sm:$0xff]  ;;  %v202_v49 = vld [vmem:[%s819_s1 + $0x18] sm:$0xff]  ;;  %v233_v52 = vld [vmem:[%s819_s1 + $0x110] sm:$0xff] }
  0x1c   : > { %388 = vmatpush.msra.mxu3 %v255_v30  ;;  %351 = vmatpush.msra.mxu2 %v238_v32  ;;  %v250_v50 = vld [vmem:[%s819_s1 + $0x198] sm:$0xff]  ;;  %v201_v53 = vld [vmem:[%s819_s1 + $0x10] sm:$0xff]  ;;  %v232_v56 = vld [vmem:[%s819_s1 + $0x108] sm:$0xff] }
  0x1d   : > { %312 = vmatpush.msra.mxu1 %v223_v31  ;;  %275 = vmatpush.msra.mxu0 %v206_v33  ;;  %v218_v51 = vld [vmem:[%s819_s1 + $0x98] sm:$0xff]  ;;  %v249_v54 = vld [vmem:[%s819_s1 + $0x190] sm:$0xff]  ;;  %v200_v57 = vld [vmem:[%s819_s1 + $0x8] sm:$0xff] }
  0x1e   : > { %389 = vmatpush.msra.mxu3 %v254_v34  ;;  %352 = vmatpush.msra.mxu2 %v237_v36  ;;  %v217_v55 = vld [vmem:[%s819_s1 + $0x90] sm:$0xff]  ;;  %v248_v58 = vld [vmem:[%s819_s1 + $0x188] sm:$0xff]  ;;  %v231_v60 = vld [vmem:[%s819_s1 + $0x100] sm:$0xff] }
  0x1f   : > { %313 = vmatpush.msra.mxu1 %v222_v35  ;;  %276 = vmatpush.msra.mxu0 %v205_v37  ;;  %v216_v59 = vld [vmem:[%s819_s1 + $0x88] sm:$0xff]  ;;  %v199_v61 = vld [vmem:[%s819_s1] sm:$0xff]  ;;  %v173_v62 = vld [vmem:[%s736_s7 + $0x10] sm:$0xff] }
  0x20   : > { %390 = vmatpush.msra.mxu3 %v253_v38  ;;  %353 = vmatpush.msra.mxu2 %v236_v40  ;;  %v247_v63 = vld [vmem:[%s819_s1 + $0x180] sm:$0xff]  ;;  %v174_v1 = vld [vmem:[%s736_s7 + $0x18] sm:$0xff]  ;;  %v172_v3 = vld [vmem:[%s736_s7 + $0x8] sm:$0xff] }
  0x21   : > { %314 = vmatpush.msra.mxu1 %v221_v39  ;;  %277 = vmatpush.msra.mxu0 %v204_v41  ;;  %v171_v0 = vld [vmem:[%s736_s7] sm:$0xff]  ;;  %v177_v4 = vld [vmem:[%s736_s7 + $0x30] sm:$0xff]  ;;  %v178_v6 = vld [vmem:[%s736_s7 + $0x38] sm:$0xff] }
  0x22   : > { %391 = vmatpush.msra.mxu3 %v252_v42  ;;  %354 = vmatpush.msra.mxu2 %v235_v44  ;;  %v215_v2 = vld [vmem:[%s819_s1 + $0x80] sm:$0xff]  ;;  %v176_v7 = vld [vmem:[%s736_s7 + $0x28] sm:$0xff]  ;;  %v181_v8 = vld [vmem:[%s736_s7 + $0x50] sm:$0xff] }
  0x23   : > { %315 = vmatpush.msra.mxu1 %v220_v43  ;;  %278 = vmatpush.msra.mxu0 %v203_v45  ;;  %v175_v5 = vld [vmem:[%s736_s7 + $0x20] sm:$0xff]  ;;  %v182_v10 = vld [vmem:[%s736_s7 + $0x58] sm:$0xff]  ;;  %v180_v11 = vld [vmem:[%s736_s7 + $0x48] sm:$0xff] }
  0x24   : > { %392 = vmatpush.msra.mxu3 %v251_v46  ;;  %355 = vmatpush.msra.mxu2 %v234_v48  ;;  %v179_v9 = vld [vmem:[%s736_s7 + $0x40] sm:$0xff]  ;;  %v185_v12 = vld [vmem:[%s736_s7 + $0x70] sm:$0xff]  ;;  %v186_v14 = vld [vmem:[%s736_s7 + $0x78] sm:$0xff] }
  0x25   : > { %316 = vmatpush.msra.mxu1 %v219_v47  ;;  %279 = vmatpush.msra.mxu0 %v202_v49  ;;  %v183_v13 = vld [vmem:[%s736_s7 + $0x60] sm:$0xff]  ;;  %v184_v15 = vld [vmem:[%s736_s7 + $0x68] sm:$0xff]  ;;  %v189_v16 = vld [vmem:[%s736_s7 + $0x90] sm:$0xff] }
  0x26   : > { %393 = vmatpush.msra.mxu3 %v250_v50  ;;  %356 = vmatpush.msra.mxu2 %v233_v52  ;;  %v187_v17 = vld [vmem:[%s736_s7 + $0x80] sm:$0xff]  ;;  %v190_v18 = vld [vmem:[%s736_s7 + $0x98] sm:$0xff]  ;;  %v188_v19 = vld [vmem:[%s736_s7 + $0x88] sm:$0xff] }
  0x27   : > { %317 = vmatpush.msra.mxu1 %v218_v51  ;;  %280 = vmatpush.msra.mxu0 %v201_v53  ;;  %v193_v20 = vld [vmem:[%s736_s7 + $0xb0] sm:$0xff]  ;;  %v191_v21 = vld [vmem:[%s736_s7 + $0xa0] sm:$0xff]  ;;  %v194_v22 = vld [vmem:[%s736_s7 + $0xb8] sm:$0xff] }
  0x28   : > { %394 = vmatpush.msra.mxu3 %v249_v54  ;;  %357 = vmatpush.msra.mxu2 %v232_v56  ;;  %v192_v23 = vld [vmem:[%s736_s7 + $0xa8] sm:$0xff]  ;;  %v197_v24 = vld [vmem:[%s736_s7 + $0xd0] sm:$0x1]  ;;  %v195_v25 = vld [vmem:[%s736_s7 + $0xc0] sm:$0x1] }
  0x29   : > { %318 = vmatpush.msra.mxu1 %v217_v55  ;;  %281 = vmatpush.msra.mxu0 %v200_v57  ;;  %v198_v26 = vld [vmem:[%s736_s7 + $0xd8] sm:$0x1]  ;;  %v196_v27 = vld [vmem:[%s736_s7 + $0xc8] sm:$0x1]  ;;  %v787_v28 = vld [vmem:[%s820_s2] ss:$0 sm:$0xff] }
  0x2a   : > { %395 = vmatpush.msra.mxu3 %v248_v58  ;;  %358 = vmatpush.msra.mxu2 %v231_v60 }
  0x2b   : > { %319 = vmatpush.msra.mxu1 %v216_v59  ;;  %282 = vmatpush.msra.mxu0 %v199_v61 }
  0x2c   : > { %359 = vmatmul.f32.vlgmr.msra.gmra.mxu2 %v173_v62  ;;  %396 = vmatpush.msra.mxu3 %v247_v63 }
  0x2d   : > { %283 = vmatmul.f32.vlgmr.msra.gmra.mxu0 %v171_v0  ;;  %397 = vmatmul.f32.vlgmr.msra.gmra.mxu3 %v174_v1 }
  0x2e   : > { %320 = vmatpush.msra.mxu1 %v215_v2 }
  0x2f   : > { %321 = vmatmul.f32.vlgmr.msra.gmra.mxu1 %v172_v3 }
  0x34   : > { %362 = vmatmul.f32.gmra.mxu2 %v177_v4 }
  0x35   : > { %286 = vmatmul.f32.gmra.mxu0 %v175_v5  ;;  %400 = vmatmul.f32.gmra.mxu3 %v178_v6 }
  0x37   : > { %324 = vmatmul.f32.gmra.mxu1 %v176_v7 }
  0x3c   : > { %365 = vmatmul.f32.gmra.mxu2 %v181_v8 }
  0x3d   : > { %289 = vmatmul.f32.gmra.mxu0 %v179_v9  ;;  %403 = vmatmul.f32.gmra.mxu3 %v182_v10 }
  0x3f   : > { %327 = vmatmul.f32.gmra.mxu1 %v180_v11 }
  0x44   : > { %368 = vmatmul.f32.gmra.mxu2 %v185_v12 }
  0x45   : > { %292 = vmatmul.f32.gmra.mxu0 %v183_v13  ;;  %406 = vmatmul.f32.gmra.mxu3 %v186_v14 }
  0x47   : > { %330 = vmatmul.f32.gmra.mxu1 %v184_v15 }
  0x4c   : > { %371 = vmatmul.f32.gmra.mxu2 %v189_v16 }
  0x4d   : > { %295 = vmatmul.f32.gmra.mxu0 %v187_v17  ;;  %409 = vmatmul.f32.gmra.mxu3 %v190_v18 }
  0x4f   : > { %333 = vmatmul.f32.gmra.mxu1 %v188_v19 }
  0x54   : > { %374 = vmatmul.f32.gmra.mxu2 %v193_v20 }
  0x55   : > { %298 = vmatmul.f32.gmra.mxu0 %v191_v21  ;;  %412 = vmatmul.f32.gmra.mxu3 %v194_v22 }
  0x57   : > { %336 = vmatmul.f32.gmra.mxu1 %v192_v23 }
  0x5c   : > { %377 = vmatmul.f32.gmra.mxu2 %v197_v24 }
  0x5d   : > { %301 = vmatmul.f32.gmra.mxu0 %v195_v25  ;;  %415 = vmatmul.f32.gmra.mxu3 %v198_v26 }
  0x5f   : > { %339 = vmatmul.f32.gmra.mxu1 %v196_v27 }
  0xaa   : > { %v284_v29 = vpop.f32.mrf.mxu0 }
  0xab   : > { %v285_v30 = vadd.f32 %v787_v28, %v284_v29 }
  0xac   : > { %v322_v31 = vpop.f32.mrf.mxu1 }
  0xad   : > { %v323_v32 = vadd.f32 %v322_v31, %v285_v30 }
  0xaf   : > { %v360_v33 = vpop.f32.mrf.mxu2 }
  0xb0   : > { %v361_v34 = vadd.f32 %v360_v33, %v323_v32  ;;  %v398_v35 = vpop.f32.mrf.mxu3 }
  0xb2   : > { %v399_v36 = vadd.f32 %v398_v35, %v361_v34  ;;  %v287_v37 = vpop.f32.mrf.mxu0 }
  0xb3   : > { %v288_v38 = vadd.f32 %v787_v28, %v287_v37 }
  0xb4   : > { %v419_v39 = vmax.f32 %v399_v36, 0.0  ;;  %v325_v40 = vpop.f32.mrf.mxu1 }
  0xb5   : > { %v326_v41 = vadd.f32 %v325_v40, %v288_v38 }
  0xb6   : > { %427 = vst.msk [vmem:[%s794_s27] sm:$0xff] %vm426_vm0, %v419_v39 }
  0xb7   : > { %v363_v42 = vpop.f32.mrf.mxu2 }
  0xb8   : > { %v364_v43 = vadd.f32 %v363_v42, %v326_v41  ;;  %v401_v44 = vpop.f32.mrf.mxu3 }
  0xba   : > { %v402_v45 = vadd.f32 %v401_v44, %v364_v43  ;;  %v290_v46 = vpop.f32.mrf.mxu0 }
  0xbb   : > { %v291_v47 = vadd.f32 %v787_v28, %v290_v46 }
  0xbc   : > { %v420_v48 = vmax.f32 %v402_v45, 0.0  ;;  %v328_v49 = vpop.f32.mrf.mxu1 }
  0xbd   : > { %v329_v50 = vadd.f32 %v328_v49, %v291_v47 }
  0xbe   : > { %428 = vst.msk [vmem:[%s794_s27 + $0x8] sm:$0xff] %vm426_vm0, %v420_v48 }
  0xbf   : > { %v366_v51 = vpop.f32.mrf.mxu2 }
  0xc0   : > { %v367_v52 = vadd.f32 %v366_v51, %v329_v50  ;;  %v404_v53 = vpop.f32.mrf.mxu3 }
  0xc2   : > { %v405_v54 = vadd.f32 %v404_v53, %v367_v52  ;;  %v293_v55 = vpop.f32.mrf.mxu0 }
  0xc3   : > { %v294_v56 = vadd.f32 %v787_v28, %v293_v55 }
  0xc4   : > { %v421_v57 = vmax.f32 %v405_v54, 0.0  ;;  %v331_v58 = vpop.f32.mrf.mxu1 }
  0xc5   : > { %v332_v59 = vadd.f32 %v331_v58, %v294_v56 }
  0xc6   : > { %429 = vst.msk [vmem:[%s794_s27 + $0x10] sm:$0xff] %vm426_vm0, %v421_v57 }
  0xc7   : > { %v369_v60 = vpop.f32.mrf.mxu2 }
  0xc8   : > { %v370_v61 = vadd.f32 %v369_v60, %v332_v59  ;;  %v407_v62 = vpop.f32.mrf.mxu3 }
  0xca   : > { %v408_v63 = vadd.f32 %v407_v62, %v370_v61  ;;  %v296_v0 = vpop.f32.mrf.mxu0 }
  0xcb   : > { %v297_v1 = vadd.f32 %v787_v28, %v296_v0 }
  0xcc   : > { %v422_v2 = vmax.f32 %v408_v63, 0.0  ;;  %v334_v3 = vpop.f32.mrf.mxu1 }
  0xcd   : > { %v335_v4 = vadd.f32 %v334_v3, %v297_v1 }
  0xce   : > { %430 = vst.msk [vmem:[%s794_s27 + $0x18] sm:$0xff] %vm426_vm0, %v422_v2 }
  0xcf   : > { %v372_v5 = vpop.f32.mrf.mxu2 }
  0xd0   : > { %v373_v6 = vadd.f32 %v372_v5, %v335_v4  ;;  %v410_v7 = vpop.f32.mrf.mxu3 }
  0xd2   : > { %v411_v8 = vadd.f32 %v410_v7, %v373_v6  ;;  %v299_v9 = vpop.f32.mrf.mxu0 }
  0xd3   : > { %v300_v10 = vadd.f32 %v787_v28, %v299_v9 }
  0xd4   : > { %v423_v11 = vmax.f32 %v411_v8, 0.0  ;;  %v337_v12 = vpop.f32.mrf.mxu1 }
  0xd5   : > { %v338_v13 = vadd.f32 %v337_v12, %v300_v10 }
  0xd6   : > { %431 = vst.msk [vmem:[%s794_s27 + $0x20] sm:$0xff] %vm426_vm0, %v423_v11 }
  0xd7   : > { %v375_v14 = vpop.f32.mrf.mxu2 }
  0xd8   : > { %v376_v15 = vadd.f32 %v375_v14, %v338_v13  ;;  %v413_v16 = vpop.f32.mrf.mxu3 }
  0xda   : > { %v414_v17 = vadd.f32 %v413_v16, %v376_v15  ;;  %v302_v18 = vpop.f32.mrf.mxu0 }
  0xdb   : > { %v303_v19 = vadd.f32 %v787_v28, %v302_v18 }
  0xdc   : > { %v424_v20 = vmax.f32 %v414_v17, 0.0  ;;  %v340_v21 = vpop.f32.mrf.mxu1 }
  0xdd   : > { %v341_v22 = vadd.f32 %v340_v21, %v303_v19 }
  0xde   : > { %432 = vst.msk [vmem:[%s794_s27 + $0x28] sm:$0xff] %vm426_vm0, %v424_v20 }
  0xdf   : > { %v378_v23 = vpop.f32.mrf.mxu2 }
  0xe0   : > { %v379_v24 = vadd.f32 %v378_v23, %v341_v22  ;;  %v416_v25 = vpop.f32.mrf.mxu3 }
  0xe2   : > { %v417_v26 = vadd.f32 %v416_v25, %v379_v24 }
  0xe4   : > { %v425_v27 = vmax.f32 %v417_v26, 0.0 }
  0xe6   : > { %434 = vst.msk [vmem:[%s794_s27 + $0x30] sm:$0x1] %vm433_vm1, %v425_v27 }
  0xe7 PF: > { %s13_s12 = sadd.s32 1, %s516_s12  }
  0xe8   : > { %p10_p4 = scmp.ge.s32.totalorder %s13_s12, 4  }
  0xea   :  { %12 = sbr.rel (!%p10_p4) target bundleno = 1 (0x1), region = 62 }

// kernel: encoder_pallas.3
= control target key start
LH: loop header
LB: loop body
LE: loop exit
PB: predicated region body
PF: predicated region fallthrough
CT: control target
= control target key end

     0   :  { %s7399_s24 = smov 0   ;;  %s12179_s0 = inlined_call_operand.vmem [shape: f32[2,196,16], index: 0, kind: input, shape index: {}]   ;;  %s12180_s1 = inlined_call_operand.vmem [shape: f32[16,32], index: 1, kind: input, shape index: {}]   ;;  %s12181_s2 = inlined_call_operand.vmem [shape: f32[1,32], index: 2, kind: input, shape index: {}]   ;;  %s12182_s3 = inlined_call_operand.vmem [shape: f32[32,96], index: 3, kind: input, shape index: {}]   ;;  %s12183_s4 = inlined_call_operand.vmem [shape: f32[1,96], index: 4, kind: input, shape index: {}]   ;;  %s12184_s5 = inlined_call_operand.vmem [shape: f32[32,32], index: 5, kind: input, shape index: {}]   ;;  %s12185_s6 = inlined_call_operand.vmem [shape: f32[1,32], index: 6, kind: input, shape index: {}]   ;;  %s12186_s7 = inlined_call_operand.vmem [shape: f32[2,196,32], index: 7, kind: output, shape index: {}]  }
   0x1 LB: > { %s5949_s25 = sadd.s32 4294967295, %s7343_s24   ;;  %p5953_p0 = scmp.ge.s32.totalorder %s7343_s24, 1  ;;  %s7343_s24 = sphi %s7399_s24, %s17_s24  }
   0x2   : > { %p237_p1 = scmp.lt.s32.totalorder %s7343_s24, 3 }
   0x4   : > { %p238_p2 = pnand %p5953_p0, %p237_p1 }
   0x6   : > { %241 = sbr.rel (%p238_p2) target bundleno = 2976 (0xba0), region = 48 }
   0xb   : > { %v305_v0 = vld [vmem:[%s12180_s1 + $0x8] sm:$0xff]  ;;  %v304_v1 = vld [vmem:[%s12180_s1] sm:$0xff]  ;;  %p269_p3 = scmp.lt.s32.totalorder %s5949_s25, 1  ;;  %vm310_vm0 = vcmask 130048   ;;  %v506_v14 = vld [vmem:[%s12182_s3 + $0x18] sm:$0xff]  ;;  %vm511_vm1 = vcmask 261120  }
   0xc   : > { %400 = vmatpush.msra.mxu0 %v305_v0  ;;  %599 = vmatpush.msra.mxu1 %v506_v14  ;;  %v505_v15 = vld [vmem:[%s12182_s3 + $0x10] sm:$0xff]  ;;  %v504_v17 = vld [vmem:[%s12182_s3 + $0x8] sm:$0xff]  ;;  %v503_v18 = vld [vmem:[%s12182_s3] sm:$0xff]  ;;  %s7345_s23 = smov 88   ;;  %s7346_s26 = smov 96   ;;  %vm779_vm2 = vcmask 64512  }
   0xd   : > { %s13441_s25 = smov (!%p269_p3, %s5949_s25), 1  ;;  %v7470_v22 = vld [vmem:[%s12181_s2] ss:$0 sm:$0xff]  ;;  %s7347_s27 = smov 120   ;;  %vm1186_vm3 = vcmask 1043456   ;;  %vm1089_vm4 = vcmask 556032  }
   0xe   : > { %401 = vmatpush.msra.mxu0 %v304_v1  ;;  %s6471_s30 = smul.u32 200, %s13441_s25  ;;  %600 = vmatpush.msra.mxu1 %v505_v15  ;;  %v7603_v15 = vld [vmem:[%s12183_s4] ss:$0 sm:$0xff]  ;;  %s7348_s28 = smov 80   ;;  %vm1188_vm5 = vcmask 551936   ;;  %vm5642_vm6 = vcmask 195584  }
   0xf   : > { %s7349_s29 = smov 56   ;;  %s7350_s8 = smov 112   ;;  %vm5892_vm7 = vcmask 257024  }
  0x10   : > { %s7421_s10 = scalar_lea.vmem %s12179_s0, %s6471_s30  ;;  %601 = vmatpush.msra.mxu1 %v504_v17  ;;  %s7351_s9 = smov 64  }
  0x11   : > { %v279_v2 = vld [vmem:[%s7421_s10] sm:$0xff]  ;;  %v280_v3 = vld [vmem:[%s7421_s10 + $0x8] sm:$0xff]  ;;  %v281_v4 = vld [vmem:[%s7421_s10 + $0x10] sm:$0xff]  ;;  %s7353_s11 = smov 104   ;;  %s7354_s12 = smov 48  }
  0x12   : > { %5956 = vmatmul.msk.f32.vlgmr.msra.gmra.mxu0 %vm310_vm0, %v279_v2  ;;  %v282_v5 = vld [vmem:[%s7421_s10 + $0x18] sm:$0xff]  ;;  %v283_v6 = vld [vmem:[%s7421_s10 + $0x20] sm:$0xff]  ;;  %v284_v7 = vld [vmem:[%s7421_s10 + $0x28] sm:$0xff]  ;;  %602 = vmatpush.msra.mxu1 %v503_v18  ;;  %s7355_s13 = smov 40   ;;  %s7356_s14 = smov 8  }
  0x13   : > { %v285_v8 = vld [vmem:[%s7421_s10 + $0x30] sm:$0xff]  ;;  %v286_v9 = vld [vmem:[%s7421_s10 + $0x38] sm:$0xff]  ;;  %v287_v10 = vld [vmem:[%s7421_s10 + $0x40] sm:$0xff]  ;;  %s7357_s17 = smov 16   ;;  %s7358_s18 = smov 24  }
  0x14   : > { %v288_v11 = vld [vmem:[%s7421_s10 + $0x48] sm:$0xff]  ;;  %v289_v12 = vld [vmem:[%s7421_s10 + $0x50] sm:$0xff]  ;;  %v290_v13 = vld [vmem:[%s7421_s10 + $0x58] sm:$0xff] }
  0x15   : > { %v291_v16 = vld [vmem:[%s7421_s10 + $0x60] sm:$0xff]  ;;  %v292_v19 = vld [vmem:[%s7421_s10 + $0x68] sm:$0xff]  ;;  %v293_v20 = vld [vmem:[%s7421_s10 + $0x70] sm:$0xff] }
  0x16   : > { %v294_v21 = vld [vmem:[%s7421_s10 + $0x78] sm:$0xff]  ;;  %v295_v24 = vld [vmem:[%s7421_s10 + $0x80] sm:$0xff]  ;;  %v296_v28 = vld [vmem:[%s7421_s10 + $0x88] sm:$0xff] }
  0x17   : > { %v297_v32 = vld [vmem:[%s7421_s10 + $0x90] sm:$0xff]  ;;  %v298_v36 = vld [vmem:[%s7421_s10 + $0x98] sm:$0xff]  ;;  %v299_v40 = vld [vmem:[%s7421_s10 + $0xa0] sm:$0xff] }
  0x18   : > { %v300_v44 = vld [vmem:[%s7421_s10 + $0xa8] sm:$0xff]  ;;  %v301_v48 = vld [vmem:[%s7421_s10 + $0xb0] sm:$0xff]  ;;  %v302_v52 = vld [vmem:[%s7421_s10 + $0xb8] sm:$0xff] }
  0x1a   : > { %5957 = vmatmul.msk.f32.gmra.mxu0 %vm310_vm0, %v280_v3 }
  0x22   : > { %5958 = vmatmul.msk.f32.gmra.mxu0 %vm310_vm0, %v281_v4 }
  0x2a   : > { %5959 = vmatmul.msk.f32.gmra.mxu0 %vm310_vm0, %v282_v5 }
  0x32   : > { %5960 = vmatmul.msk.f32.gmra.mxu0 %vm310_vm0, %v283_v6 }
  0x3a   : > { %5961 = vmatmul.msk.f32.gmra.mxu0 %vm310_vm0, %v284_v7 }
  0x42   : > { %5962 = vmatmul.msk.f32.gmra.mxu0 %vm310_vm0, %v285_v8 }
  0x4a   : > { %5963 = vmatmul.msk.f32.gmra.mxu0 %vm310_vm0, %v286_v9 }
  0x52   : > { %5964 = vmatmul.msk.f32.gmra.mxu0 %vm310_vm0, %v287_v10 }
  0x5a   : > { %5965 = vmatmul.msk.f32.gmra.mxu0 %vm310_vm0, %v288_v11 }
  0x62   : > { %5966 = vmatmul.msk.f32.gmra.mxu0 %vm310_vm0, %v289_v12 }
  0x6a   : > { %5967 = vmatmul.msk.f32.gmra.mxu0 %vm310_vm0, %v290_v13 }
  0x72   : > { %5968 = vmatmul.msk.f32.gmra.mxu0 %vm310_vm0, %v291_v16 }
  0x7a   : > { %5969 = vmatmul.msk.f32.gmra.mxu0 %vm310_vm0, %v292_v19 }
  0x82   : > { %5970 = vmatmul.msk.f32.gmra.mxu0 %vm310_vm0, %v293_v20 }
  0x8a   : > { %5971 = vmatmul.msk.f32.gmra.mxu0 %vm310_vm0, %v294_v21 }
  0x8f   : > { %v403_v23 = vpop.f32.mrf.mxu0 }
  0x90   : > { %v7474_v25 = vadd.f32 %v7470_v22, %v403_v23 }
  0x92   : > { %12499 = vst [vmem:[#allocation2_spill] sm:$0xff] %v7474_v25  ;;  %v12210_v26 = vmax.f32 %v7474_v25, 0.0  ;;  %5972 = vmatmul.msk.f32.gmra.mxu0 %vm310_vm0, %v295_v24 }
  0x94   : > { %5981 = vmatmul.msk.f32.vlgmr.msra.gmra.mxu1 %vm511_vm1, %v12210_v26 }
  0x97   : > { %v406_v27 = vpop.f32.mrf.mxu0 }
  0x98   : > { %v7483_v29 = vadd.f32 %v7470_v22, %v406_v27 }
  0x9a   : > { %12500 = vst [vmem:[#allocation3_spill] sm:$0xff] %v7483_v29  ;;  %v12209_v30 = vmax.f32 %v7483_v29, 0.0  ;;  %5973 = vmatmul.msk.f32.gmra.mxu0 %vm310_vm0, %v296_v28 }
  0x9c   : > { %5982 = vmatmul.msk.f32.gmra.mxu1 %vm511_vm1, %v12209_v30 }
  0x9f   : > { %v409_v31 = vpop.f32.mrf.mxu0 }
  0xa0   : > { %v7492_v33 = vadd.f32 %v7470_v22, %v409_v31 }
  0xa2   : > { %12501 = vst [vmem:[#allocation4_spill] sm:$0xff] %v7492_v33  ;;  %v12208_v34 = vmax.f32 %v7492_v33, 0.0  ;;  %5974 = vmatmul.msk.f32.gmra.mxu0 %vm310_vm0, %v297_v32 }
  0xa4   : > { %5983 = vmatmul.msk.f32.gmra.mxu1 %vm511_vm1, %v12208_v34 }
  0xa7   : > { %v412_v35 = vpop.f32.mrf.mxu0 }
  0xa8   : > { %v7501_v37 = vadd.f32 %v7470_v22, %v412_v35 }
  0xaa   : > { %12502 = vst [vmem:[#allocation5_spill] sm:$0xff] %v7501_v37  ;;  %v12207_v38 = vmax.f32 %v7501_v37, 0.0  ;;  %5975 = vmatmul.msk.f32.gmra.mxu0 %vm310_vm0, %v298_v36 }
  0xac   : > { %5984 = vmatmul.msk.f32.gmra.mxu1 %vm511_vm1, %v12207_v38 }
  0xaf   : > { %v415_v39 = vpop.f32.mrf.mxu0 }
  0xb0   : > { %v7510_v41 = vadd.f32 %v7470_v22, %v415_v39 }
  0xb2   : > { %12503 = vst [vmem:[#allocation6_spill] sm:$0xff] %v7510_v41  ;;  %v12206_v42 = vmax.f32 %v7510_v41, 0.0  ;;  %5976 = vmatmul.msk.f32.gmra.mxu0 %vm310_vm0, %v299_v40 }
  0xb4   : > { %5985 = vmatmul.msk.f32.gmra.mxu1 %vm511_vm1, %v12206_v42 }
  0xb7   : > { %v418_v43 = vpop.f32.mrf.mxu0 }
  0xb8   : > { %v7519_v45 = vadd.f32 %v7470_v22, %v418_v43 }
  0xba   : > { %12504 = vst [vmem:[#allocation7_spill] sm:$0xff] %v7519_v45  ;;  %v12205_v46 = vmax.f32 %v7519_v45, 0.0  ;;  %5977 = vmatmul.msk.f32.gmra.mxu0 %vm310_vm0, %v300_v44 }
  0xbc   : > { %5986 = vmatmul.msk.f32.gmra.mxu1 %vm511_vm1, %v12205_v46 }
  0xbf   : > { %v421_v47 = vpop.f32.mrf.mxu0 }
  0xc0   : > { %v7528_v49 = vadd.f32 %v7470_v22, %v421_v47 }
  0xc2   : > { %12505 = vst [vmem:[#allocation8_spill] sm:$0xff] %v7528_v49  ;;  %v12204_v50 = vmax.f32 %v7528_v49, 0.0  ;;  %5978 = vmatmul.msk.f32.gmra.mxu0 %vm310_vm0, %v301_v48 }
  0xc4   : > { %5987 = vmatmul.msk.f32.gmra.mxu1 %vm511_vm1, %v12204_v50 }
  0xc7   : > { %v424_v51 = vpop.f32.mrf.mxu0 }
  0xc8   : > { %v7537_v53 = vadd.f32 %v7470_v22, %v424_v51 }
  0xca   : > { %12506 = vst [vmem:[#allocation9_spill] sm:$0xff] %v7537_v53  ;;  %v12203_v54 = vmax.f32 %v7537_v53, 0.0  ;;  %5979 = vmatmul.msk.f32.gmra.mxu0 %vm310_vm0, %v302_v52 }
  0xcc   : > { %5988 = vmatmul.msk.f32.gmra.mxu1 %vm511_vm1, %v12203_v54 }
  0xcf   : > { %v427_v55 = vpop.f32.mrf.mxu0 }
  0xd0   : > { %v7545_v56 = vadd.f32 %v7470_v22, %v427_v55 }
  0xd2   : > { %12507 = vst [vmem:[#allocation10_spill] sm:$0xff] %v7545_v56  ;;  %v12202_v57 = vmax.f32 %v7545_v56, 0.0 }
  0xd4   : > { %5989 = vmatmul.msk.f32.gmra.mxu1 %vm511_vm1, %v12202_v57 }
  0xd7   : > { %v430_v58 = vpop.f32.mrf.mxu0 }
  0xd8   : > { %v7552_v59 = vadd.f32 %v7470_v22, %v430_v58 }
  0xda   : > { %12508 = vst [vmem:[#allocation11_spill] sm:$0xff] %v7552_v59  ;;  %v12201_v60 = vmax.f32 %v7552_v59, 0.0 }
  0xdc   : > { %5990 = vmatmul.msk.f32.gmra.mxu1 %vm511_vm1, %v12201_v60 }
  0xdf   : > { %v433_v61 = vpop.f32.mrf.mxu0 }
  0xe0   : > { %v7559_v62 = vadd.f32 %v7470_v22, %v433_v61 }
  0xe2   : > { %12509 = vst [vmem:[#allocation12_spill] sm:$0xff] %v7559_v62  ;;  %v12200_v63 = vmax.f32 %v7559_v62, 0.0 }
  0xe4   : > { %5991 = vmatmul.msk.f32.gmra.mxu1 %vm511_vm1, %v12200_v63 }
  0xe7   : > { %v436_v0 = vpop.f32.mrf.mxu0 }
  0xe8   : > { %v7566_v1 = vadd.f32 %v7470_v22, %v436_v0 }
  0xea   : > { %12510 = vst [vmem:[#allocation13_spill] sm:$0xff] %v7566_v1  ;;  %v12199_v2 = vmax.f32 %v7566_v1, 0.0 }
  0xec   : > { %5992 = vmatmul.msk.f32.gmra.mxu1 %vm511_vm1, %v12199_v2 }
  0xef   : > { %v439_v3 = vpop.f32.mrf.mxu0 }
  0xf0   : > { %v7573_v4 = vadd.f32 %v7470_v22, %v439_v3 }
  0xf2   : > { %12511 = vst [vmem:[#allocation14_spill] sm:$0xff] %v7573_v4  ;;  %v12198_v5 = vmax.f32 %v7573_v4, 0.0 }
  0xf4   : > { %5993 = vmatmul.msk.f32.gmra.mxu1 %vm511_vm1, %v12198_v5 }
  0xf7   : > { %v442_v6 = vpop.f32.mrf.mxu0 }
  0xf8   : > { %v7580_v7 = vadd.f32 %v7470_v22, %v442_v6 }
  0xfa   : > { %12512 = vst [vmem:[#allocation15_spill] sm:$0xff] %v7580_v7  ;;  %v12197_v8 = vmax.f32 %v7580_v7, 0.0 }
  0xfc   : > { %5994 = vmatmul.msk.f32.gmra.mxu1 %vm511_vm1, %v12197_v8  ;;  %v303_v8 = vld [vmem:[%s7421_s10 + $0xc0] sm:$0xf]  ;;  %s7352_s10 = smov 72  }
  0xfd   : > { %5980 = vmatmul.msk.f32.gmra.mxu0 %vm310_vm0, %v303_v8 }
  0xff   : > { %v445_v9 = vpop.f32.mrf.mxu0 }
 0x100   : > { %v7587_v10 = vadd.f32 %v7470_v22, %v445_v9 }
 0x102   : > { %12513 = vst [vmem:[#allocation16_spill] sm:$0xff] %v7587_v10  ;;  %v12196_v11 = vmax.f32 %v7587_v10, 0.0 }
 0x104   : > { %5995 = vmatmul.msk.f32.gmra.mxu1 %vm511_vm1, %v12196_v11 }
 0x107   : > { %v448_v12 = vpop.f32.mrf.mxu0 }
 0x108   : > { %v7594_v13 = vadd.f32 %v7470_v22, %v448_v12 }
 0x10a   : > { %12514 = vst [vmem:[#allocation17_spill] sm:$0xff] %v7594_v13  ;;  %v12195_v14 = vmax.f32 %v7594_v13, 0.0 }
 0x10c   : > { %5996 = vmatmul.msk.f32.gmra.mxu1 %vm511_vm1, %v12195_v14 }
 0x10f   : > { %v451_v16 = vpop.f32.mrf.mxu0 }
 0x110   : > { %v7606_v17 = vadd.f32 %v7470_v22, %v451_v16 }
 0x111   : > { %v604_v18 = vpop.f32.mrf.mxu1 }
 0x112   : > { %12515 = vst [vmem:[#allocation18_spill] sm:$0xff] %v7606_v17  ;;  %v12194_v19 = vmax.f32 %v7606_v17, 0.0  ;;  %v7610_v20 = vadd.f32 %v7603_v15, %v604_v18 }
 0x114   : > { %12516 = vst [vmem:[#allocation19_spill] sm:$0xff] %v7610_v20  ;;  %5997 = vmatmul.msk.f32.gmra.mxu1 %vm511_vm1, %v12194_v19  ;;  %1904 = vrot.lane.b32.xlu1 %v7610_v20, %s7345_s23  ;;  %v7618_v21 = vmul.f32 0.35355338, %v7610_v20 }
 0x115   : > { %729 = vrot.lane.b32.xlu0 %v7610_v20, %s7346_s26 }
 0x116   : > { %1854 = vrot.lane.b32.xlu2 %v7618_v21, %s7347_s27 }
 0x117   : > { %v454_v23 = vpop.f32.mrf.mxu0 }
 0x118   : > { %v7625_v24 = vadd.f32 %v7470_v22, %v454_v23 }
 0x119   : > { %v607_v27 = vpop.f32.mrf.mxu1 }
 0x11a   : > { %12517 = vst [vmem:[#allocation20_spill] sm:$0xff] %v7625_v24  ;;  %v12193_v28 = vmax.f32 %v7625_v24, 0.0  ;;  %v7629_v31 = vadd.f32 %v7603_v15, %v607_v27 }
 0x11c   : > { %12518 = vst [vmem:[#allocation21_spill] sm:$0xff] %v7629_v31  ;;  %5998 = vmatmul.msk.f32.gmra.mxu1 %vm511_vm1, %v12193_v28  ;;  %v6499_v32 = vpack.i.bf16 %v7629_v31, %v7610_v20  ;;  %v7664_v51 = vmul.f32 0.35355338, %v7629_v31 }
 0x11d   : > { %3050 = vrot.lane.b32.xlu0 %v7610_v20, %s7348_s28 }
 0x11e   : > { %6500 = vrot.lane.b32.xlu1 %v6499_v32, %s7349_s29  ;;  %3000 = vrot.lane.b32.xlu2 %v7618_v21, %s7350_s8 }
 0x11f   : > { %v457_v35 = vpop.f32.mrf.mxu0 }
 0x120   : > { %v7642_v36 = vadd.f32 %v7470_v22, %v457_v35 }
 0x121   : > { %v610_v44 = vpop.f32.mrf.mxu1 }
 0x122   : > { %12519 = vst [vmem:[#allocation22_spill] sm:$0xff] %v7642_v36  ;;  %v12192_v39 = vmax.f32 %v7642_v36, 0.0  ;;  %v7657_v47 = vadd.f32 %v7603_v15, %v610_v44 }
 0x124   : > { %5999 = vmatmul.msk.f32.gmra.mxu1 %vm511_vm1, %v12192_v39  ;;  %12521 = vst [vmem:[#allocation24_spill] sm:$0xff] %v7657_v47  ;;  %v7692_v9 = vmul.f32 0.35355338, %v7657_v47 }
 0x125   : > { %731 = vrot.lane.b32.xlu0 %v7629_v31, %s7346_s26 }
 0x126   : > { %3052 = vrot.lane.b32.xlu1 %v7629_v31, %s7348_s28  ;;  %6495 = vrot.lane.b32.xlu2 %v6499_v32, %s7351_s9 }
 0x127   : > { %v460_v40 = vpop.f32.mrf.mxu0 }
 0x128   : > { %v7654_v43 = vadd.f32 %v7470_v22, %v460_v40 }
 0x129   : > { %v613_v61 = vpop.f32.mrf.mxu1 }
 0x12a   : > { %12520 = vst [vmem:[#allocation23_spill] sm:$0xff] %v7654_v43  ;;  %v12191_v48 = vmax.f32 %v7654_v43, 0.0  ;;  %v7686_v3 = vadd.f32 %v7603_v15, %v613_v61 }
 0x12c   : > { %6000 = vmatmul.msk.f32.gmra.mxu1 %vm511_vm1, %v12191_v48  ;;  %12523 = vst [vmem:[#allocation26_spill] sm:$0xff] %v7686_v3  ;;  %v7696_v16 = vmul.f32 0.35355338, %v7686_v3  ;;  %v6504_v40 = vpack.i.bf16 %v7686_v3, %v7657_v47 }
 0x12d   : > { %1906 = vrot.lane.b32.xlu0 %v7629_v31, %s7345_s23 }
 0x12e   : > { %1856 = vrot.lane.b32.xlu1 %v7664_v51, %s7347_s27  ;;  %1908 = vrot.lane.b32.xlu2 %v7657_v47, %s7345_s23  ;;  %12525 = vst [vmem:[#allocation28_spill] sm:$0xff] %v7696_v16 }
 0x12f   : > { %v463_v52 = vpop.f32.mrf.mxu0 }
 0x130   : > { %v7673_v55 = vadd.f32 %v7470_v22, %v463_v52 }
 0x131   : > { %v616_v18 = vpop.f32.mrf.mxu1 }
 0x132   : > { %12522 = vst [vmem:[#allocation25_spill] sm:$0xff] %v7673_v55  ;;  %v12190_v58 = vmax.f32 %v7673_v55, 0.0  ;;  %v7711_v32 = vadd.f32 %v7603_v15, %v616_v18 }
 0x134   : > { %6001 = vmatmul.msk.f32.gmra.mxu1 %vm511_vm1, %v12190_v58  ;;  %12527 = vst [vmem:[#allocation30_spill] sm:$0xff] %v7711_v32 }
 0x135   : > { %3002 = vrot.lane.b32.xlu0 %v7664_v51, %s7350_s8 }
 0x136   : > { %733 = vrot.lane.b32.xlu1 %v7657_v47, %s7346_s26  ;;  %3054 = vrot.lane.b32.xlu2 %v7657_v47, %s7348_s28 }
 0x137   : > { %v466_v0 = vpop.f32.mrf.mxu0 }
 0x138   : > { %v7689_v6 = vadd.f32 %v7470_v22, %v466_v0 }
 0x139   : > { %v619_v61 = vpop.f32.mrf.mxu1 }
 0x13a   : > { %12524 = vst [vmem:[#allocation27_spill] sm:$0xff] %v7689_v6  ;;  %v12189_v12 = vmax.f32 %v7689_v6, 0.0  ;;  %v7728_v0 = vadd.f32 %v7603_v15, %v619_v61 }
 0x13c   : > { %6002 = vmatmul.msk.f32.gmra.mxu1 %vm511_vm1, %v12189_v12  ;;  %12529 = vst [vmem:[#allocation32_spill] sm:$0xff] %v7728_v0 }
 0x13d   : > { %1858 = vrot.lane.b32.xlu0 %v7692_v9, %s7347_s27 }
 0x13e   : > { %3004 = vrot.lane.b32.xlu1 %v7692_v9, %s7350_s8  ;;  %1860 = vrot.lane.b32.xlu2 %v7696_v16, %s7347_s27 }
 0x13f   : > { %v469_v23 = vpop.f32.mrf.mxu0 }
 0x140   : > { %v7708_v27 = vadd.f32 %v7470_v22, %v469_v23  ;;  %v7746_v23 = vmul.f32 0.35355338, %v7711_v32 }
 0x141   : > { %v622_v61 = vpop.f32.mrf.mxu1 }
 0x142   : > { %12526 = vst [vmem:[#allocation29_spill] sm:$0xff] %v7708_v27  ;;  %v12188_v35 = vmax.f32 %v7708_v27, 0.0 }
 0x143   : > { %12530 = vst [vmem:[#allocation33_spill] sm:$0xff] %v7746_v23 }
 0x144   : > { %6003 = vmatmul.msk.f32.gmra.mxu1 %vm511_vm1, %v12188_v35 }
 0x145   : > { %6505 = vrot.lane.b32.xlu0 %v6504_v40, %s7351_s9 }
 0x146   : > { %735 = vrot.lane.b32.xlu1 %v7686_v3, %s7346_s26  ;;  %737 = vrot.lane.b32.xlu2 %v7711_v32, %s7346_s26 }
 0x147   : > { %v472_v44 = vpop.f32.mrf.mxu0 }
 0x148   : > { %v7725_v52 = vadd.f32 %v7470_v22, %v472_v44  ;;  %v7756_v44 = vmul.f32 0.35355338, %v7728_v0 }
 0x149   : > { %v625_v12 = vpop.f32.mrf.mxu1 }
 0x14a   : > { %12528 = vst [vmem:[#allocation31_spill] sm:$0xff] %v7725_v52  ;;  %v12187_v18 = vmax.f32 %v7725_v52, 0.0 }
 0x14b   : > { %12531 = vst [vmem:[#allocation34_spill] sm:$0xff] %v7756_v44 }
 0x14c   : > { %6004 = vmatmul.msk.f32.gmra.mxu1 %vm511_vm1, %v12187_v18  ;;  %v7761_v18 = vadd.f32 %v7603_v15, %v622_v61  ;;  %v7776_v61 = vadd.f32 %v7603_v15, %v625_v12 }
 0x14d   : > { %6510 = vrot.lane.b32.xlu0 %v6504_v40, %s7349_s29  ;;  %v6519_v40 = vpack.i.bf16 %v7728_v0, %v7711_v32 }
 0x14e   : > { %1910 = vrot.lane.b32.xlu1 %v7686_v3, %s7345_s23  ;;  %739 = vrot.lane.b32.xlu2 %v7728_v0, %s7346_s26  ;;  %12532 = vst [vmem:[#allocation35_spill] sm:$0xff] %v7761_v18  ;;  %v7767_v35 = vmul.f32 0.35355338, %v7761_v18  ;;  %v6529_v58 = vpack.i.bf16 %v7776_v61, %v7761_v18  ;;  %v7800_v19 = vmul.f32 0.35355338, %v7776_v61 }
 0x14f   : > { %12534 = vst [vmem:[#allocation37_spill] sm:$0xff] %v7776_v61 }
 0x150   : > { %12533 = vst [vmem:[#allocation36_spill] sm:$0xff] %v7767_v35 }
 0x151   : > { %v628_v39 = vpop.f32.mrf.mxu1  ;;  %12537 = vst [vmem:[#allocation40_spill] sm:$0xff] %v7800_v19 }
 0x152   : > { %v7790_v12 = vadd.f32 %v7603_v15, %v628_v39 }
 0x154   : > { %v7815_v11 = vmul.f32 0.35355338, %v7790_v12 }
 0x155   : > { %3056 = vrot.lane.b32.xlu0 %v7686_v3, %s7348_s28 }
 0x156   : > { %3058 = vrot.lane.b32.xlu1 %v7711_v32, %s7348_s28  ;;  %1914 = vrot.lane.b32.xlu2 %v7728_v0, %s7345_s23  ;;  %12540 = vst [vmem:[#allocation43_spill] sm:$0xff] %v7815_v11 }
 0x159   : > { %v631_v5 = vpop.f32.mrf.mxu1 }
 0x15a   : > { %v7820_v2 = vadd.f32 %v7603_v15, %v631_v5 }
 0x15c   : > { %v6534_v8 = vpack.i.bf16 %v7820_v2, %v7790_v12  ;;  %v7851_v38 = vmul.f32 0.35355338, %v7820_v2 }
 0x15d   : > { %1912 = vrot.lane.b32.xlu0 %v7711_v32, %s7345_s23 }
 0x15e   : > { %1862 = vrot.lane.b32.xlu1 %v7746_v23, %s7347_s27  ;;  %6520 = vrot.lane.b32.xlu2 %v6519_v40, %s7349_s29  ;;  %12545 = vst [vmem:[#allocation48_spill] sm:$0xff] %v7851_v38 }
 0x161   : > { %v634_v5 = vpop.f32.mrf.mxu1 }
 0x162   : > { %v7848_v42 = vadd.f32 %v7603_v15, %v634_v5 }
 0x164   : > { %v7869_v52 = vmul.f32 0.35355338, %v7848_v42 }
 0x165   : > { %1864 = vrot.lane.b32.xlu0 %v7756_v44, %s7347_s27 }
 0x166   : > { %6515 = vrot.lane.b32.xlu1 %v6519_v40, %s7351_s9  ;;  %3060 = vrot.lane.b32.xlu2 %v7728_v0, %s7348_s28  ;;  %12548 = vst [vmem:[#allocation51_spill] sm:$0xff] %v7869_v52 }
 0x169   : > { %v637_v5 = vpop.f32.mrf.mxu1 }
 0x16a   : > { %v7866_v26 = vadd.f32 %v7603_v15, %v637_v5 }
 0x16c   : > { %v7884_v5 = vmul.f32 0.35355338, %v7866_v26  ;;  %v6539_v43 = vpack.i.bf16 %v7866_v26, %v7848_v42  ;;  %v7951_v20 = vpack.i.bf16 %v7848_v42, %v7866_v26 }
 0x16d   : > { %741 = vrot.lane.b32.xlu0 %v7761_v18, %s7346_s26 }
 0x16e   : > { %1916 = vrot.lane.b32.xlu1 %v7761_v18, %s7345_s23  ;;  %1866 = vrot.lane.b32.xlu2 %v7767_v35, %s7347_s27  ;;  %12550 = vst [vmem:[#allocation53_spill] sm:$0xff] %v7884_v5 }
 0x16f   : > { %12563 = vst [vmem:[#allocation66_spill] sm:$0xff] %v7951_v20 }
 0x170   : > { %v7778_v40 = vpop.permute.xlu2 %1854 }
 0x171   : > { %12535 = vst [vmem:[#allocation38_spill] sm:$0xff] %v7778_v40  ;;  %v640_v36 = vpop.f32.mrf.mxu1 }
 0x172   : > { %v641_v24 = vadd.f32 %v7603_v15, %v640_v36 }
 0x174   : > { %v7900_v7 = vmul.f32 0.35355338, %v641_v24 }
 0x175   : > { %3062 = vrot.lane.b32.xlu0 %v7761_v18, %s7348_s28 }
 0x176   : > { %743 = vrot.lane.b32.xlu1 %v7776_v61, %s7346_s26  ;;  %6530 = vrot.lane.b32.xlu2 %v6529_v58, %s7349_s29  ;;  %12554 = vst [vmem:[#allocation57_spill] sm:$0xff] %v7900_v7 }
 0x178   : > { %v7787_v48 = vpop.permute.xlu2 %3000 }
 0x179   : > { %12536 = vst [vmem:[#allocation39_spill] sm:$0xff] %v7787_v48  ;;  %v643_v36 = vpop.f32.mrf.mxu1 }
 0x17a   : > { %v644_v62 = vadd.f32 %v7603_v15, %v643_v36 }
 0x17c   : > { %v6544_v41 = vpack.i.bf16 %v644_v62, %v641_v24  ;;  %v7936_v29 = vmul.f32 0.35355338, %v644_v62 }
 0x17d   : > { %6525 = vrot.lane.b32.xlu0 %v6529_v58, %s7351_s9 }
 0x17e   : > { %3064 = vrot.lane.b32.xlu1 %v7776_v61, %s7348_s28  ;;  %745 = vrot.lane.b32.xlu2 %v7790_v12, %s7346_s26  ;;  %12560 = vst [vmem:[#allocation63_spill] sm:$0xff] %v7936_v29 }
 0x180   : > { %v7797_v28 = vpop.permute.xlu2 %6495 }
 0x181   : > { %v646_v49 = vpop.f32.mrf.mxu1 }
 0x182   : > { %v7924_v45 = vadd.f32 %v7603_v15, %v646_v49 }
 0x185   : > { %1918 = vrot.lane.b32.xlu0 %v7776_v61, %s7345_s23 }
 0x186   : > { %1868 = vrot.lane.b32.xlu1 %v7800_v19, %s7347_s27  ;;  %1920 = vrot.lane.b32.xlu2 %v7790_v12, %s7345_s23  ;;  %v7810_v58 = vpop.permute.xlu1 %1904 }
 0x187   : > { %v7808_v39 = vpop.permute.xlu0 %729  ;;  %12538 = vst [vmem:[#allocation41_spill] sm:$0xff] %v7810_v58 }
 0x188   : > { %v7812_v14 = vpop.permute.xlu2 %1908 }
 0x189   : > { %12539 = vst [vmem:[#allocation42_spill] sm:$0xff] %v7812_v14 }
 0x18d   : > { %1870 = vrot.lane.b32.xlu0 %v7815_v11, %s7347_s27 }
 0x18e   : > { %1922 = vrot.lane.b32.xlu1 %v7820_v2, %s7345_s23  ;;  %3066 = vrot.lane.b32.xlu2 %v7790_v12, %s7348_s28 }
 0x18f   : > { %v7828_v63 = vpop.permute.xlu0 %3050 }
 0x190   : > { %12541 = vst [vmem:[#allocation44_spill] sm:$0xff] %v7828_v63  ;;  %v7830_v60 = vpop.permute.xlu1 %6500  ;;  %v7832_v57 = vpop.permute.xlu2 %3054 }
 0x191   : > { %12542 = vst [vmem:[#allocation45_spill] sm:$0xff] %v7832_v57 }
 0x195   : > { %747 = vrot.lane.b32.xlu0 %v7820_v2, %s7346_s26 }
 0x196   : > { %3068 = vrot.lane.b32.xlu1 %v7820_v2, %s7348_s28  ;;  %6535 = vrot.lane.b32.xlu2 %v6534_v8, %s7351_s9 }
 0x197   : > { %v7841_v54 = vpop.permute.xlu0 %731 }
 0x198   : > { %v7843_v50 = vpop.permute.xlu1 %3052  ;;  %v7845_v46 = vpop.permute.xlu2 %1860 }
 0x199   : > { %12543 = vst [vmem:[#allocation46_spill] sm:$0xff] %v7843_v50 }
 0x19a   : > { %12544 = vst [vmem:[#allocation47_spill] sm:$0xff] %v7845_v46  ;;  %v7981_v46 = vpack.i.bf16 %v7790_v12, %v7820_v2 }
 0x19c   : > { %12568 = vst [vmem:[#allocation71_spill] sm:$0xff] %v7981_v46 }
 0x19d   : > { %1924 = vrot.lane.b32.xlu0 %v7848_v42, %s7345_s23 }
 0x19e   : > { %749 = vrot.lane.b32.xlu1 %v7848_v42, %s7346_s26  ;;  %1872 = vrot.lane.b32.xlu2 %v7851_v38, %s7347_s27 }
 0x19f   : > { %v7859_v8 = vpop.permute.xlu0 %1906 }
 0x1a0   : > { %12546 = vst [vmem:[#allocation49_spill] sm:$0xff] %v7859_v8  ;;  %v7861_v34 = vpop.permute.xlu1 %1856  ;;  %v7863_v30 = vpop.permute.xlu2 %737 }
 0x1a1   : > { %12547 = vst [vmem:[#allocation50_spill] sm:$0xff] %v7861_v34 }
 0x1a5   : > { %3070 = vrot.lane.b32.xlu0 %v7848_v42, %s7348_s28 }
 0x1a6   : > { %1874 = vrot.lane.b32.xlu1 %v7869_v52, %s7347_s27  ;;  %751 = vrot.lane.b32.xlu2 %v7866_v26, %s7346_s26 }
 0x1a7   : > { %v7877_v27 = vpop.permute.xlu0 %3002 }
 0x1a8   : > { %12549 = vst [vmem:[#allocation52_spill] sm:$0xff] %v7877_v27  ;;  %v7879_v6 = vpop.permute.xlu1 %733  ;;  %v7881_v55 = vpop.permute.xlu2 %739 }
 0x1ad   : > { %1876 = vrot.lane.b32.xlu0 %v7884_v5, %s7347_s27 }
 0x1ae   : > { %6540 = vrot.lane.b32.xlu1 %v6539_v43, %s7351_s9  ;;  %1926 = vrot.lane.b32.xlu2 %v7866_v26, %s7345_s23 }
 0x1af   : > { %v7894_v17 = vpop.permute.xlu0 %1858 }
 0x1b0   : > { %12551 = vst [vmem:[#allocation54_spill] sm:$0xff] %v7894_v17  ;;  %v7896_v13 = vpop.permute.xlu1 %3004  ;;  %v7898_v10 = vpop.permute.xlu2 %1914 }
 0x1b1   : > { %12552 = vst [vmem:[#allocation55_spill] sm:$0xff] %v7896_v13 }
 0x1b2   : > { %12553 = vst [vmem:[#allocation56_spill] sm:$0xff] %v7898_v10 }
 0x1b5   : > { %753 = vrot.lane.b32.xlu0 %v641_v24, %s7346_s26 }
 0x1b6   : > { %3072 = vrot.lane.b32.xlu1 %v7866_v26, %s7348_s28  ;;  %1878 = vrot.lane.b32.xlu2 %v7900_v7, %s7347_s27 }
 0x1b7   : > { %v7907_v43 = vpop.permute.xlu0 %6505 }
 0x1b8   : > { %v7909_v4 = vpop.permute.xlu1 %735  ;;  %v7911_v1 = vpop.permute.xlu2 %6520 }
 0x1bd   : > { %3074 = vrot.lane.b32.xlu0 %v641_v24, %s7348_s28 }
 0x1be   : > { %1928 = vrot.lane.b32.xlu1 %v641_v24, %s7345_s23  ;;  %3076 = vrot.lane.b32.xlu2 %v644_v62, %s7348_s28 }
 0x1bf   : > { %v7917_v59 = vpop.permute.xlu0 %6510 }
 0x1c0   : > { %v7919_v56 = vpop.permute.xlu1 %1910  ;;  %v7921_v53 = vpop.permute.xlu2 %3060 }
 0x1c1   : > { %12555 = vst [vmem:[#allocation58_spill] sm:$0xff] %v7919_v56 }
 0x1c2   : > { %12556 = vst [vmem:[#allocation59_spill] sm:$0xff] %v7921_v53 }
 0x1c5   : > { %6545 = vrot.lane.b32.xlu0 %v6544_v41, %s7351_s9 }
 0x1c6   : > { %755 = vrot.lane.b32.xlu1 %v644_v62, %s7346_s26  ;;  %757 = vrot.lane.b32.xlu2 %v7924_v45, %s7346_s26 }
 0x1c7   : > { %v7930_v36 = vpop.permute.xlu0 %3056 }
 0x1c8   : > { %12557 = vst [vmem:[#allocation60_spill] sm:$0xff] %v7930_v36  ;;  %v7932_v37 = vpop.permute.xlu1 %3058  ;;  %v7934_v33 = vpop.permute.xlu2 %1866 }
 0x1c9   : > { %12558 = vst [vmem:[#allocation61_spill] sm:$0xff] %v7932_v37  ;;  %v8030_v37 = vmul.f32 0.35355338, %v7924_v45 }
 0x1ca   : > { %12559 = vst [vmem:[#allocation62_spill] sm:$0xff] %v7934_v33  ;;  %v7965_v33 = vpack.i.bf16 %v641_v24, %v644_v62 }
 0x1cb   : > { %12577 = vst [vmem:[#allocation80_spill] sm:$0xff] %v8030_v37 }
 0x1cc   : > { %12565 = vst [vmem:[#allocation68_spill] sm:$0xff] %v7965_v33 }
 0x1cd   : > { %1930 = vrot.lane.b32.xlu0 %v644_v62, %s7345_s23 }
 0x1ce   : > { %1880 = vrot.lane.b32.xlu1 %v7936_v29, %s7347_s27  ;;  %3006 = vrot.lane.b32.xlu2 %v7696_v16, %s7350_s8 }
 0x1cf   : > { %v7943_v41 = vpop.permute.xlu0 %1912 }
 0x1d0   : > { %12561 = vst [vmem:[#allocation64_spill] sm:$0xff] %v7943_v41  ;;  %v7945_v49 = vpop.permute.xlu1 %1862  ;;  %v7947_v25 = vpop.permute.xlu2 %6530 }
 0x1d1   : > { %12562 = vst [vmem:[#allocation65_spill] sm:$0xff] %v7945_v49 }
 0x1d5   : > { %3008 = vrot.lane.b32.xlu0 %v7746_v23, %s7350_s8 }
 0x1d6   : > { %6555 = vrot.lane.b32.xlu1 %v7951_v20, %s7349_s29  ;;  %3010 = vrot.lane.b32.xlu2 %v7756_v44, %s7350_s8 }
 0x1d7   : > { %v7959_v13 = vpop.permute.xlu0 %1864 }
 0x1d8   : > { %12564 = vst [vmem:[#allocation67_spill] sm:$0xff] %v7959_v13  ;;  %v7961_v27 = vpop.permute.xlu1 %6515  ;;  %v7963_v48 = vpop.permute.xlu2 %745 }
 0x1dd   : > { %6550 = vrot.lane.b32.xlu0 %v7965_v33, %s7349_s29 }
 0x1de   : > { %3022 = vrot.lane.b32.xlu1 %v7884_v5, %s7350_s8  ;;  %3012 = vrot.lane.b32.xlu2 %v7767_v35, %s7350_s8 }
 0x1df   : > { %v7973_v20 = vpop.permute.xlu0 %741 }
 0x1e0   : > { %v7975_v49 = vpop.permute.xlu1 %1916  ;;  %v7977_v13 = vpop.permute.xlu2 %1920 }
 0x1e1   : > { %12566 = vst [vmem:[#allocation69_spill] sm:$0xff] %v7975_v49 }
 0x1e2   : > { %12567 = vst [vmem:[#allocation70_spill] sm:$0xff] %v7977_v13 }
 0x1e5   : > { %6560 = vrot.lane.b32.xlu0 %v7981_v46, %s7349_s29 }
 0x1e6   : > { %4220 = vrot.lane.b32.xlu1 %v641_v24, %s7352_s10  ;;  %3018 = vrot.lane.b32.xlu2 %v7851_v38, %s7350_s8 }
 0x1e7   : > { %v7988_v33 = vpop.permute.xlu0 %3062 }
 0x1e8   : > { %12569 = vst [vmem:[#allocation72_spill] sm:$0xff] %v7988_v33  ;;  %v7990_v17 = vpop.permute.xlu1 %743  ;;  %v7992_v34 = vpop.permute.xlu2 %3066 }
 0x1e9   : > { %12570 = vst [vmem:[#allocation73_spill] sm:$0xff] %v7992_v34  ;;  %v649_v33 = vpop.f32.mrf.mxu1 }
 0x1ed   : > { %3014 = vrot.lane.b32.xlu0 %v7800_v19, %s7350_s8 }
 0x1ee   : > { %4208 = vrot.lane.b32.xlu1 %v7761_v18, %s7352_s10  ;;  %3024 = vrot.lane.b32.xlu2 %v7900_v7, %s7350_s8 }
 0x1ef   : > { %v8000_v46 = vpop.permute.xlu0 %6525 }
 0x1f0   : > { %v8002_v24 = vpop.permute.xlu1 %3064  ;;  %v8004_v40 = vpop.permute.xlu2 %6535 }
 0x1f1   : > { %12571 = vst [vmem:[#allocation74_spill] sm:$0xff] %v8002_v24  ;;  %v650_v24 = vadd.f32 %v7603_v15, %v649_v33 }
 0x1f3   : > { %v8064_v33 = vpack.i.bf16 %v7924_v45, %v650_v24 }
 0x1f5   : > { %3016 = vrot.lane.b32.xlu0 %v7815_v11, %s7350_s8  ;;  %12583 = vst [vmem:[#allocation86_spill] sm:$0xff] %v8064_v33 }
 0x1f6   : > { %3078 = vrot.lane.b32.xlu1 %v7924_v45, %s7348_s28  ;;  %4222 = vrot.lane.b32.xlu2 %v644_v62, %s7352_s10 }
 0x1f7   : > { %v8011_v63 = vpop.permute.xlu0 %1918 }
 0x1f8   : > { %12572 = vst [vmem:[#allocation75_spill] sm:$0xff] %v8011_v63  ;;  %v8013_v18 = vpop.permute.xlu1 %1868  ;;  %v8015_v50 = vpop.permute.xlu2 %1872 }
 0x1f9   : > { %12573 = vst [vmem:[#allocation76_spill] sm:$0xff] %v8013_v18  ;;  %v475_v18 = vpop.f32.mrf.mxu0 }
 0x1fa   : > { %12574 = vst [vmem:[#allocation77_spill] sm:$0xff] %v8015_v50  ;;  %v8045_v53 = vadd.f32 %v7470_v22, %v475_v18 }
 0x1fc   : > { %12580 = vst [vmem:[#allocation83_spill] sm:$0xff] %v8045_v53  ;;  %v12258_v34 = vmax.f32 %v8045_v53, 0.0 }
 0x1fd   : > { %3020 = vrot.lane.b32.xlu0 %v7869_v52, %s7350_s8 }
 0x1fe   : > { %4224 = vrot.lane.b32.xlu1 %v7924_v45, %s7352_s10  ;;  %4218 = vrot.lane.b32.xlu2 %v7866_v26, %s7352_s10 }
 0x1ff   : > { %v8023_v57 = vpop.permute.xlu0 %1870  ;;  %6005 = vmatmul.msk.f32.gmra.mxu1 %vm511_vm1, %v12258_v34 }
 0x200   : > { %12575 = vst [vmem:[#allocation78_spill] sm:$0xff] %v8023_v57  ;;  %v8025_v36 = vpop.permute.xlu1 %1922  ;;  %v8027_v62 = vpop.permute.xlu2 %751 }
 0x201   : > { %12576 = vst [vmem:[#allocation79_spill] sm:$0xff] %v8025_v36 }
 0x205   : > { %3026 = vrot.lane.b32.xlu0 %v7936_v29, %s7350_s8 }
 0x206   : > { %3028 = vrot.lane.b32.xlu1 %v8030_v37, %s7350_s8  ;;  %4214 = vrot.lane.b32.xlu2 %v7820_v2, %s7352_s10 }
 0x207   : > { %v8038_v50 = vpop.permute.xlu0 %747 }
 0x208   : > { %v8040_v26 = vpop.permute.xlu1 %3068  ;;  %v8042_v57 = vpop.permute.xlu2 %1926 }
 0x209   : > { %12578 = vst [vmem:[#allocation81_spill] sm:$0xff] %v8040_v26  ;;  %v6564_v26 = vpack.i.bf16 %v650_v24, %v7924_v45 }
 0x20a   : > { %12579 = vst [vmem:[#allocation82_spill] sm:$0xff] %v8042_v57 }
 0x20d   : > { %4216 = vrot.lane.b32.xlu0 %v7848_v42, %s7352_s10 }
 0x20e   : > { %1934 = vrot.lane.b32.xlu1 %v650_v24, %s7345_s23  ;;  %4210 = vrot.lane.b32.xlu2 %v7776_v61, %s7352_s10  ;;  %v652_v61 = vpop.f32.mrf.mxu1 }
 0x20f   : > { %v8054_v2 = vpop.permute.xlu0 %1924 }
 0x210   : > { %12581 = vst [vmem:[#allocation84_spill] sm:$0xff] %v8054_v2  ;;  %v8059_v22 = vpop.permute.xlu1 %749  ;;  %v8061_v18 = vpop.permute.xlu2 %1878 }
 0x211   : > { %12582 = vst [vmem:[#allocation85_spill] sm:$0xff] %v8061_v18  ;;  %v8079_v18 = vadd.f32 %v7603_v15, %v652_v61 }
 0x213   : > { %12587 = vst [vmem:[#allocation90_spill] sm:$0xff] %v8079_v18 }
 0x215   : > { %4212 = vrot.lane.b32.xlu0 %v7790_v12, %s7352_s10 }
 0x216   : > { %6570 = vrot.lane.b32.xlu1 %v8064_v33, %s7349_s29  ;;  %1932 = vrot.lane.b32.xlu2 %v7924_v45, %s7345_s23 }
 0x217   : > { %v8072_v42 = vpop.permute.xlu0 %3070 }
 0x218   : > { %12584 = vst [vmem:[#allocation87_spill] sm:$0xff] %v8072_v42  ;;  %v8074_v53 = vpop.permute.xlu1 %1874  ;;  %v8076_v34 = vpop.permute.xlu2 %3076  ;;  %v8093_v42 = vmul.f32 0.35355338, %v650_v24 }
 0x219   : > { %12585 = vst [vmem:[#allocation88_spill] sm:$0xff] %v8074_v53 }
 0x21a   : > { %12586 = vst [vmem:[#allocation89_spill] sm:$0xff] %v8076_v34  ;;  %v655_v34 = vpop.f32.mrf.mxu1 }
 0x21b   : > { %12589 = vst [vmem:[#allocation92_spill] sm:$0xff] %v8093_v42  ;;  %v8117_v8 = vadd.f32 %v7603_v15, %v655_v34 }
 0x21d   : > { %1882 = vrot.lane.b32.xlu0 %v8030_v37, %s7347_s27  ;;  %12594 = vst [vmem:[#allocation97_spill] sm:$0xff] %v8117_v8  ;;  %v6574_v14 = vpack.i.bf16 %v8117_v8, %v8079_v18  ;;  %v6579_v41 = vpack.i.bf16 %v8079_v18, %v8117_v8  ;;  %v8149_v10 = vmul.f32 0.35355338, %v8117_v8 }
 0x21e   : > { %761 = vrot.lane.b32.xlu1 %v8079_v18, %s7346_s26  ;;  %6565 = vrot.lane.b32.xlu2 %v6564_v26, %s7351_s9 }
 0x21f   : > { %v8087_v12 = vpop.permute.xlu0 %1876  ;;  %12601 = vst [vmem:[#allocation104_spill] sm:$0xff] %v8149_v10 }
 0x220   : > { %12588 = vst [vmem:[#allocation91_spill] sm:$0xff] %v8087_v12  ;;  %v8089_v33 = vpop.permute.xlu1 %6540  ;;  %v8091_v53 = vpop.permute.xlu2 %757  ;;  %v8107_v12 = vmul.f32 0.35355338, %v8079_v18 }
 0x221   : > { %v6543_v37 = vunpack.i.h.bf16 %v8089_v33 }
 0x222   : > { %12592 = vst [vmem:[#allocation95_spill] sm:$0xff] %v8107_v12 }
 0x225   : > { %759 = vrot.lane.b32.xlu0 %v650_v24, %s7346_s26 }
 0x226   : > { %3082 = vrot.lane.b32.xlu1 %v8079_v18, %s7348_s28  ;;  %1884 = vrot.lane.b32.xlu2 %v8093_v42, %s7347_s27 }
 0x227   : > { %v8100_v45 = vpop.permute.xlu0 %753 }
 0x228   : > { %v8102_v61 = vpop.permute.xlu1 %3072  ;;  %v8104_v26 = vpop.permute.xlu2 %3006 }
 0x229   : > { %12590 = vst [vmem:[#allocation93_spill] sm:$0xff] %v8102_v61 }
 0x22a   : > { %12591 = vst [vmem:[#allocation94_spill] sm:$0xff] %v8104_v26 }
 0x22d   : > { %3080 = vrot.lane.b32.xlu0 %v650_v24, %s7348_s28 }
 0x22e   : > { %1886 = vrot.lane.b32.xlu1 %v8107_v12, %s7347_s27  ;;  %3030 = vrot.lane.b32.xlu2 %v8093_v42, %s7350_s8 }
 0x22f   : > { %v8114_v58 = vpop.permute.xlu0 %3074 }
 0x230   : > { %12593 = vst [vmem:[#allocation96_spill] sm:$0xff] %v8114_v58  ;;  %v8119_v61 = vpop.permute.xlu1 %1928  ;;  %v8121_v26 = vpop.permute.xlu2 %3010 }
 0x231   : > { %12595 = vst [vmem:[#allocation98_spill] sm:$0xff] %v8119_v61 }
 0x232   : > { %12596 = vst [vmem:[#allocation99_spill] sm:$0xff] %v8121_v26 }
 0x235   : > { %4226 = vrot.lane.b32.xlu0 %v650_v24, %s7352_s10 }
 0x236   : > { %6575 = vrot.lane.b32.xlu1 %v6574_v14, %s7351_s9  ;;  %763 = vrot.lane.b32.xlu2 %v8117_v8, %s7346_s26 }
 0x237   : > { %v8129_v56 = vpop.permute.xlu0 %6545 }
 0x238   : > { %v8131_v58 = vpop.permute.xlu1 %755  ;;  %v8133_v34 = vpop.permute.xlu2 %3012 }
 0x239   : > { %12597 = vst [vmem:[#allocation100_spill] sm:$0xff] %v8133_v34  ;;  %v658_v34 = vpop.f32.mrf.mxu1 }
 0x23d   : > { %1936 = vrot.lane.b32.xlu0 %v8079_v18, %s7345_s23  ;;  %v8160_v18 = vadd.f32 %v7603_v15, %v658_v34 }
 0x23e   : > { %6580 = vrot.lane.b32.xlu1 %v6579_v41, %s7349_s29  ;;  %1938 = vrot.lane.b32.xlu2 %v8117_v8, %s7345_s23 }
 0x23f   : > { %v8142_v14 = vpop.permute.xlu0 %1930  ;;  %12603 = vst [vmem:[#allocation106_spill] sm:$0xff] %v8160_v18  ;;  %v8167_v49 = vmul.f32 0.35355338, %v8160_v18 }
 0x240   : > { %12598 = vst [vmem:[#allocation101_spill] sm:$0xff] %v8142_v14  ;;  %v8144_v24 = vpop.permute.xlu1 %1880  ;;  %v8146_v26 = vpop.permute.xlu2 %3018 }
 0x241   : > { %12599 = vst [vmem:[#allocation102_spill] sm:$0xff] %v8144_v24  ;;  %v661_v13 = vpop.f32.mrf.mxu1 }
 0x242   : > { %12600 = vst [vmem:[#allocation103_spill] sm:$0xff] %v8146_v26 }
 0x243   : > { %12605 = vst [vmem:[#allocation108_spill] sm:$0xff] %v8167_v49 }
 0x245   : > { %3032 = vrot.lane.b32.xlu0 %v8107_v12, %s7350_s8 }
 0x246   : > { %3034 = vrot.lane.b32.xlu1 %v8149_v10, %s7350_s8  ;;  %3084 = vrot.lane.b32.xlu2 %v8117_v8, %s7348_s28 }
 0x247   : > { %v8157_v41 = vpop.permute.xlu0 %3008 }
 0x248   : > { %12602 = vst [vmem:[#allocation105_spill] sm:$0xff] %v8157_v41  ;;  %v8162_v24 = vpop.permute.xlu1 %6555  ;;  %v8164_v26 = vpop.permute.xlu2 %3024 }
 0x249   : > { %12604 = vst [vmem:[#allocation107_spill] sm:$0xff] %v8164_v26  ;;  %v8182_v26 = vadd.f32 %v7603_v15, %v661_v13 }
 0x24b   : > { %12608 = vst [vmem:[#allocation111_spill] sm:$0xff] %v8182_v26  ;;  %v8215_v12 = vmul.f32 0.35355338, %v8182_v26 }
 0x24d   : > { %1888 = vrot.lane.b32.xlu0 %v8149_v10, %s7347_s27  ;;  %12615 = vst [vmem:[#allocation118_spill] sm:$0xff] %v8215_v12 }
 0x24e   : > { %1940 = vrot.lane.b32.xlu1 %v8160_v18, %s7345_s23  ;;  %1890 = vrot.lane.b32.xlu2 %v8167_v49, %s7347_s27 }
 0x24f   : > { %v8175_v41 = vpop.permute.xlu0 %6550 }
 0x250   : > { %v8177_v34 = vpop.permute.xlu1 %3022  ;;  %v8179_v63 = vpop.permute.xlu2 %4222 }
 0x251   : > { %12606 = vst [vmem:[#allocation109_spill] sm:$0xff] %v8177_v34 }
 0x252   : > { %12607 = vst [vmem:[#allocation110_spill] sm:$0xff] %v8179_v63  ;;  %v6589_v63 = vpack.i.bf16 %v8160_v18, %v8182_v26 }
 0x255   : > { %765 = vrot.lane.b32.xlu0 %v8160_v18, %s7346_s26 }
 0x256   : > { %767 = vrot.lane.b32.xlu1 %v8182_v26, %s7346_s26  ;;  %3036 = vrot.lane.b32.xlu2 %v8167_v49, %s7350_s8 }
 0x257   : > { %v8190_v36 = vpop.permute.xlu0 %6560 }
 0x258   : > { %v8192_v10 = vpop.permute.xlu1 %4220  ;;  %v8194_v34 = vpop.permute.xlu2 %4218 }
 0x259   : > { %12609 = vst [vmem:[#allocation112_spill] sm:$0xff] %v8192_v10  ;;  %v664_v10 = vpop.f32.mrf.mxu1 }
 0x25a   : > { %12610 = vst [vmem:[#allocation113_spill] sm:$0xff] %v8194_v34  ;;  %v6584_v34 = vpack.i.bf16 %v8182_v26, %v8160_v18  ;;  %v8212_v57 = vadd.f32 %v7603_v15, %v664_v10 }
 0x25c   : > { %12614 = vst [vmem:[#allocation117_spill] sm:$0xff] %v8212_v57  ;;  %v8229_v10 = vmul.f32 0.35355338, %v8212_v57 }
 0x25d   : > { %3086 = vrot.lane.b32.xlu0 %v8160_v18, %s7348_s28 }
 0x25e   : > { %3088 = vrot.lane.b32.xlu1 %v8182_v26, %s7348_s28  ;;  %6590 = vrot.lane.b32.xlu2 %v6589_v63, %s7349_s29  ;;  %12619 = vst [vmem:[#allocation122_spill] sm:$0xff] %v8229_v10 }
 0x25f   : > { %v8203_v13 = vpop.permute.xlu0 %3014 }
 0x260   : > { %12611 = vst [vmem:[#allocation114_spill] sm:$0xff] %v8203_v13  ;;  %v8205_v49 = vpop.permute.xlu1 %4208  ;;  %v8207_v2 = vpop.permute.xlu2 %4214 }
 0x261   : > { %12612 = vst [vmem:[#allocation115_spill] sm:$0xff] %v8205_v49 }
 0x262   : > { %12613 = vst [vmem:[#allocation116_spill] sm:$0xff] %v8207_v2 }
 0x265   : > { %6585 = vrot.lane.b32.xlu0 %v6584_v34, %s7351_s9 }
 0x266   : > { %1892 = vrot.lane.b32.xlu1 %v8215_v12, %s7347_s27  ;;  %769 = vrot.lane.b32.xlu2 %v8212_v57, %s7346_s26 }
 0x267   : > { %v8222_v63 = vpop.permute.xlu0 %3016 }
 0x268   : > { %12616 = vst [vmem:[#allocation119_spill] sm:$0xff] %v8222_v63  ;;  %v8224_v13 = vpop.permute.xlu1 %3078  ;;  %v8226_v49 = vpop.permute.xlu2 %4210 }
 0x269   : > { %12617 = vst [vmem:[#allocation120_spill] sm:$0xff] %v8224_v13  ;;  %v667_v13 = vpop.f32.mrf.mxu1 }
 0x26a   : > { %12618 = vst [vmem:[#allocation121_spill] sm:$0xff] %v8226_v49  ;;  %v8244_v49 = vadd.f32 %v7603_v15, %v667_v13 }
 0x26c   : > { %12623 = vst [vmem:[#allocation126_spill] sm:$0xff] %v8244_v49  ;;  %v6599_v13 = vpack.i.bf16 %v8212_v57, %v8244_v49 }
 0x26d   : > { %1942 = vrot.lane.b32.xlu0 %v8182_v26, %s7345_s23 }
 0x26e   : > { %3040 = vrot.lane.b32.xlu1 %v8229_v10, %s7350_s8  ;;  %1944 = vrot.lane.b32.xlu2 %v8212_v57, %s7345_s23 }
 0x26f   : > { %v8237_v34 = vpop.permute.xlu0 %3020 }
 0x270   : > { %12620 = vst [vmem:[#allocation123_spill] sm:$0xff] %v8237_v34  ;;  %v8239_v2 = vpop.permute.xlu1 %4224  ;;  %v8241_v63 = vpop.permute.xlu2 %1932 }
 0x271   : > { %12621 = vst [vmem:[#allocation124_spill] sm:$0xff] %v8239_v2 }
 0x272   : > { %12622 = vst [vmem:[#allocation125_spill] sm:$0xff] %v8241_v63  ;;  %v6548_v63 = vunpack.i.h.bf16 %v8129_v56 }
 0x275   : > { %3038 = vrot.lane.b32.xlu0 %v8215_v12, %s7350_s8  ;;  %v6594_v12 = vpack.i.bf16 %v8244_v49, %v8212_v57 }
 0x276   : > { %1946 = vrot.lane.b32.xlu1 %v8244_v49, %s7345_s23  ;;  %3090 = vrot.lane.b32.xlu2 %v8212_v57, %s7348_s28 }
 0x277   : > { %v8252_v61 = vpop.permute.xlu0 %3026 }
 0x278   : > { %12624 = vst [vmem:[#allocation127_spill] sm:$0xff] %v8252_v61  ;;  %v8254_v34 = vpop.permute.xlu1 %3028  ;;  %v6566_v2 = vpop.permute.xlu2 %6565 }
 0x279   : > { %12625 = vst [vmem:[#allocation128_spill] sm:$0xff] %v8254_v34  ;;  %v6568_v14 = vunpack.i.h.bf16 %v6566_v2  ;;  %v6567_v42 = vunpack.i.l.bf16 %v6566_v2  ;;  %v6547_v2 = vunpack.i.l.bf16 %v8129_v56  ;;  %v670_v61 = vpop.f32.mrf.mxu1  ;;  %v6538_v56 = vunpack.i.h.bf16 %v8004_v40 }
 0x27b   : > { %1670 = vmatpush.msrb.mxu0 %v6568_v14 }
 0x27d   : > { %1894 = vrot.lane.b32.xlu0 %v8229_v10, %s7347_s27  ;;  %1671 = vmatpush.msrb.mxu0 %v6567_v42  ;;  %v8272_v10 = vmul.f32 0.35355338, %v8244_v49  ;;  %v6542_v42 = vunpack.i.l.bf16 %v8089_v33 }
 0x27e   : > { %6600 = vrot.lane.b32.xlu1 %v6599_v13, %s7349_s29  ;;  %6595 = vrot.lane.b32.xlu2 %v6594_v12, %s7351_s9  ;;  %v8276_v13 = vadd.f32 %v7603_v15, %v670_v61  ;;  %v6528_v61 = vunpack.i.h.bf16 %v8000_v46 }
 0x27f   : > { %v8265_v34 = vpop.permute.xlu0 %4216  ;;  %1672 = vmatpush.msrb.mxu0 %v6548_v63  ;;  %12626 = vst [vmem:[#allocation129_spill] sm:$0xff] %v8272_v10 }
 0x280   : > { %v8268_v14 = vpop.permute.xlu1 %1934  ;;  %12627 = vst [vmem:[#allocation130_spill] sm:$0xff] %v8276_v13  ;;  %v8289_v63 = vpop.permute.xlu2 %1884 }
 0x281   : > { %1673 = vmatpush.msrb.mxu0 %v6547_v2  ;;  %12628 = vst [vmem:[#allocation131_spill] sm:$0xff] %v8289_v63  ;;  %v6527_v2 = vunpack.i.l.bf16 %v8000_v46  ;;  %v6508_v46 = vunpack.i.h.bf16 %v7907_v43 }
 0x283   : > { %1674 = vmatpush.msrb.mxu0 %v6543_v37  ;;  %v6537_v37 = vunpack.i.l.bf16 %v8004_v40 }
 0x285   : > { %771 = vrot.lane.b32.xlu0 %v8244_v49, %s7346_s26  ;;  %1675 = vmatpush.msrb.mxu0 %v6542_v42  ;;  %v6518_v42 = vunpack.i.h.bf16 %v7961_v27 }
 0x286   : > { %773 = vrot.lane.b32.xlu1 %v8276_v13, %s7346_s26  ;;  %1896 = vrot.lane.b32.xlu2 %v8272_v10, %s7347_s27 }
 0x287   : > { %v8285_v12 = vpop.permute.xlu0 %4212  ;;  %1676 = vmatpush.msrb.mxu0 %v6538_v56  ;;  %v6517_v56 = vunpack.i.l.bf16 %v7961_v27  ;;  %v6498_v27 = vunpack.i.h.bf16 %v7797_v28 }
 0x288   : > { %v6571_v33 = vpop.permute.xlu1 %6570  ;;  %v8309_v63 = vpop.permute.xlu2 %3030 }
 0x289   : > { %1677 = vmatpush.msrb.mxu0 %v6537_v37  ;;  %12631 = vst [vmem:[#allocation134_spill] sm:$0xff] %v8309_v63 }
 0x28b   : > { %1678 = vmatpush.msrb.mxu0 %v6528_v61  ;;  %v8306_v61 = vmul.f32 0.35355338, %v8276_v13 }
 0x28d   : > { %3092 = vrot.lane.b32.xlu0 %v8244_v49, %s7348_s28  ;;  %1679 = vmatpush.msrb.mxu0 %v6527_v2  ;;  %12630 = vst [vmem:[#allocation133_spill] sm:$0xff] %v8306_v61  ;;  %v6507_v2 = vunpack.i.l.bf16 %v7907_v43  ;;  %v6497_v43 = vunpack.i.l.bf16 %v7797_v28  ;;  %v6552_v28 = vunpack.i.l.bf16 %v8175_v41 }
 0x28e   : > { %3094 = vrot.lane.b32.xlu1 %v8276_v13, %s7348_s28  ;;  %3042 = vrot.lane.b32.xlu2 %v8272_v10, %s7350_s8 }
 0x28f   : > { %v8299_v40 = vpop.permute.xlu0 %1882  ;;  %1680 = vmatpush.msrb.mxu0 %v6518_v42  ;;  %v673_v42 = vpop.f32.mrf.mxu1 }
 0x290   : > { %12629 = vst [vmem:[#allocation132_spill] sm:$0xff] %v8299_v40  ;;  %v8302_v37 = vpop.permute.xlu1 %761  ;;  %v6573_v40 = vunpack.i.h.bf16 %v6571_v33 }
 0x291   : > { %1681 = vmatpush.msrb.mxu0 %v6517_v56 }
 0x293   : > { %1682 = vmatpush.msrb.mxu0 %v6508_v46  ;;  %v6572_v46 = vunpack.i.l.bf16 %v6571_v33  ;;  %v6553_v33 = vunpack.i.h.bf16 %v8175_v41  ;;  %v6562_v41 = vunpack.i.l.bf16 %v8190_v36 }
 0x295   : > { %1948 = vrot.lane.b32.xlu0 %v8276_v13, %s7345_s23  ;;  %1683 = vmatpush.msrb.mxu0 %v6507_v2  ;;  %v8323_v2 = vadd.f32 %v7603_v15, %v673_v42  ;;  %v8336_v42 = vpop.permute.xlu2 %763 }
 0x296   : > { %1898 = vrot.lane.b32.xlu1 %v8306_v61, %s7347_s27  ;;  %4240 = vrot.lane.b32.xlu2 %v8276_v13, %s7352_s10 }
 0x297   : > { %v760_v56 = vpop.permute.xlu0 %759  ;;  %1684 = vmatpush.msrb.mxu0 %v6498_v27  ;;  %12632 = vst [vmem:[#allocation135_spill] sm:$0xff] %v8323_v2  ;;  %v6604_v27 = vpack.i.bf16 %v8323_v2, %v8276_v13 }
 0x298   : > { %6006 = vmatpush.xpose.msk.msra.mxu2 %vm779_vm2, %v760_v56  ;;  %v8320_v63 = vpop.permute.xlu1 %3082 }
 0x299   : > { %1685 = vmatpush.msrb.mxu0 %v6497_v43  ;;  %v8346_v43 = vmul.f32 0.35355338, %v8323_v2 }
 0x29b   : > { %2816 = vmatpush.msra.mxu0 %v6572_v46  ;;  %12633 = vst [vmem:[#allocation136_spill] sm:$0xff] %v8346_v43  ;;  %v6558_v46 = vunpack.i.h.bf16 %v8162_v24 }
 0x29c   : > { %6007 = vmatpush.xpose.msk.msra.mxu2 %vm779_vm2, %v8091_v53 }
 0x29d   : > { %2817 = vmatpush.msra.mxu0 %v6573_v40  ;;  %3044 = vrot.lane.b32.xlu0 %v8306_v61, %s7350_s8  ;;  %v6557_v40 = vunpack.i.l.bf16 %v8162_v24  ;;  %v676_v24 = vpop.f32.mrf.mxu1 }
 0x29e   : > { %6605 = vrot.lane.b32.xlu1 %v6604_v27, %s7351_s9  ;;  %775 = vrot.lane.b32.xlu2 %v8323_v2, %s7346_s26 }
 0x29f   : > { %v8338_v56 = vpop.permute.xlu0 %3080  ;;  %2818 = vmatpush.msra.mxu0 %v6552_v28  ;;  %v6533_v28 = vunpack.i.h.bf16 %v7947_v25 }
 0x2a0   : > { %6008 = vmatpush.xpose.msk.msra.mxu2 %vm779_vm2, %v8131_v58  ;;  %v8342_v53 = vpop.permute.xlu1 %1886  ;;  %v6563_v58 = vunpack.i.h.bf16 %v8190_v36  ;;  %v6523_v36 = vunpack.i.h.bf16 %v7911_v1 }
 0x2a1   : > { %2819 = vmatpush.msra.mxu0 %v6553_v33  ;;  %v8366_v33 = vpop.permute.xlu2 %1938 }
 0x2a3   : > { %2820 = vmatpush.msra.mxu0 %v6557_v40  ;;  %v8369_v40 = vadd.f32 %v7603_v15, %v676_v24  ;;  %v6522_v15 = vunpack.i.l.bf16 %v7911_v1  ;;  %v6609_v1 = vpack.i.bf16 %v8276_v13, %v8323_v2  ;;  %v6503_v24 = vunpack.i.h.bf16 %v7830_v60 }
 0x2a4   : > { %6009 = vmatpush.xpose.msk.msra.mxu2 %vm779_vm2, %v8100_v45 }
 0x2a5   : > { %4242 = vrot.lane.b32.xlu0 %v8323_v2, %s7352_s10  ;;  %2821 = vmatpush.msra.mxu0 %v6558_v46  ;;  %12634 = vst [vmem:[#allocation137_spill] sm:$0xff] %v8369_v40  ;;  %v6532_v46 = vunpack.i.l.bf16 %v7947_v25 }
 0x2a6   : > { %3046 = vrot.lane.b32.xlu1 %v8346_v43, %s7350_s8  ;;  %1950 = vrot.lane.b32.xlu2 %v8323_v2, %s7345_s23 }
 0x2a7   : > { %v8359_v27 = vpop.permute.xlu0 %4226  ;;  %2822 = vmatpush.msra.mxu0 %v6562_v41  ;;  %v6512_v41 = vunpack.i.l.bf16 %v7917_v59 }
 0x2a8   : > { %6010 = vmatpush.xpose.msk.msra.mxu2 %vm779_vm2, %v8027_v62  ;;  %v8363_v45 = vpop.permute.xlu1 %6575 }
 0x2a9   : > { %2823 = vmatpush.msra.mxu0 %v6563_v58  ;;  %v8390_v58 = vpop.permute.xlu2 %3084 }
 0x2ab   : > { %2824 = vmatpush.msra.mxu0 %v6533_v28  ;;  %v8412_v28 = vmul.f32 0.35355338, %v8369_v40 }
 0x2ac   : > { %6011 = vmatpush.xpose.msk.msra.mxu2 %vm779_vm2, %v8059_v22  ;;  %v6513_v22 = vunpack.i.h.bf16 %v7917_v59 }
 0x2ad   : > { %1900 = vrot.lane.b32.xlu0 %v8346_v43, %s7347_s27  ;;  %2825 = vmatpush.msra.mxu0 %v6532_v46  ;;  %12637 = vst [vmem:[#allocation140_spill] sm:$0xff] %v8412_v28 }
 0x2ae   : > { %1952 = vrot.lane.b32.xlu1 %v8369_v40, %s7345_s23  ;;  %3096 = vrot.lane.b32.xlu2 %v8323_v2, %s7348_s28 }
 0x2af   : > { %v8382_v62 = vpop.permute.xlu0 %1936  ;;  %2826 = vmatpush.msra.mxu0 %v6523_v36 }
 0x2b0   : > { %6012 = vmatpush.xpose.msk.msra.mxu2 %vm779_vm2, %v8038_v50  ;;  %v8386_v25 = vpop.permute.xlu1 %6580  ;;  %v6502_v50 = vunpack.i.l.bf16 %v7830_v60 }
 0x2b1   : > { %2827 = vmatpush.msra.mxu0 %v6522_v15  ;;  %v8414_v46 = vpop.permute.xlu2 %1890 }
 0x2b3   : > { %2828 = vmatpush.msra.mxu0 %v6513_v22 }
 0x2b4   : > { %6013 = vmatpush.xpose.msk.msra.mxu2 %vm779_vm2, %v7963_v48 }
 0x2b5   : > { %777 = vrot.lane.b32.xlu0 %v8369_v40, %s7346_s26  ;;  %2829 = vmatpush.msra.mxu0 %v6512_v41 }
 0x2b6   : > { %2713 = vrot.lane.b32.xlu1 %v8369_v40, %s7349_s29  ;;  %6610 = vrot.lane.b32.xlu2 %v6609_v1, %s7349_s29 }
 0x2b7   : > { %v8403_v59 = vpop.permute.xlu0 %3032  ;;  %2830 = vmatpush.msra.mxu0 %v6503_v24 }
 0x2b8   : > { %12635 = vst [vmem:[#allocation138_spill] sm:$0xff] %v8403_v59  ;;  %6014 = vmatpush.xpose.msk.msra.mxu2 %vm779_vm2, %v7990_v17  ;;  %v8407_v48 = vpop.permute.xlu1 %3034 }
 0x2b9   : > { %12636 = vst [vmem:[#allocation139_spill] sm:$0xff] %v8407_v48  ;;  %2831 = vmatpush.msra.mxu0 %v6502_v50 }
 0x2bc   : > { %6015 = vmatpush.xpose.msk.msra.mxu2 %vm779_vm2, %v7973_v20  ;;  %v8436_v20 = vpop.permute.xlu2 %3036 }
 0x2bd   : > { %1567 = vrot.lane.b32.xlu0 %v8369_v40, %s7351_s9  ;;  %12638 = vst [vmem:[#allocation141_spill] sm:$0xff] %v8436_v20  ;;  %s12000_s9 = scalar_lea.vmem %s12186_s7, %s6471_s30 }
 0x2be   : > { %4244 = vrot.lane.b32.xlu1 %v8369_v40, %s7352_s10  ;;  %1902 = vrot.lane.b32.xlu2 %v8412_v28, %s7347_s27 }
 0x2bf   : > { %v8422_v60 = vpop.permute.xlu0 %1888 }
 0x2c0   : > { %6016 = vmatpush.xpose.msk.msra.mxu2 %vm779_vm2, %v7881_v55  ;;  %v8426_v17 = vpop.permute.xlu1 %1940 }
 0x2c4   : > { %6017 = vmatpush.xpose.msk.msra.mxu2 %vm779_vm2, %v7863_v30 }
 0x2c5   : > { %3098 = vrot.lane.b32.xlu0 %v8369_v40, %s7348_s28 }
 0x2c6   : > { %4238 = vrot.lane.b32.xlu1 %v8244_v49, %s7352_s10  ;;  %4204 = vrot.lane.b32.xlu2 %v7711_v32, %s7352_s10 }
 0x2c7   : > { %v8438_v36 = vpop.permute.xlu0 %765 }
 0x2c8   : > { %6018 = vmatpush.xpose.msk.msra.mxu2 %vm779_vm2, %v7909_v4  ;;  %v8442_v55 = vpop.permute.xlu1 %767  ;;  %v8456_v4 = vpop.permute.xlu2 %6590 }
 0x2cc   : > { %6019 = vmatpush.xpose.msk.msra.mxu2 %vm779_vm2, %v7879_v6 }
 0x2cd   : > { %4206 = vrot.lane.b32.xlu0 %v7728_v0, %s7352_s10 }
 0x2ce   : > { %4202 = vrot.lane.b32.xlu1 %v7686_v3, %s7352_s10  ;;  %4234 = vrot.lane.b32.xlu2 %v8182_v26, %s7352_s10 }
 0x2cf   : > { %v8452_v30 = vpop.permute.xlu0 %3086 }
 0x2d0   : > { %6020 = vmatpush.xpose.msk.msra.mxu2 %vm779_vm2, %v7841_v54  ;;  %v8458_v15 = vpop.permute.xlu1 %3088  ;;  %v8472_v54 = vpop.permute.xlu2 %769 }
 0x2d4   : > { %6021 = vmatpush.xpose.msk.msra.mxu2 %vm779_vm2, %v7808_v39 }
 0x2d5   : > { %4236 = vrot.lane.b32.xlu0 %v8212_v57, %s7352_s10 }
 0x2d6   : > { %4232 = vrot.lane.b32.xlu1 %v8160_v18, %s7352_s10  ;;  %3048 = vrot.lane.b32.xlu2 %v8412_v28, %s7350_s8 }
 0x2d7   : > { %v8468_v6 = vpop.permute.xlu0 %6585  ;;  %6022 = vmatmul.msk.f32.vlgmr.msra.gmra.mxu2 %vm779_vm2, %v7618_v21 }
 0x2d8   : > { %v8474_v22 = vpop.permute.xlu1 %1892  ;;  %v8484_v41 = vpop.permute.xlu2 %1944 }
 0x2d9   : > { %12639 = vst [vmem:[#allocation142_spill] sm:$0xff] %v8474_v22 }
 0x2dd   : > { %4200 = vrot.lane.b32.xlu0 %v7657_v47, %s7352_s10 }
 0x2de   : > { %4230 = vrot.lane.b32.xlu1 %v8117_v8, %s7352_s10 }
 0x2df   : > { %v8480_v39 = vpop.permute.xlu0 %1942  ;;  %6023 = vmatmul.msk.f32.gmra.mxu2 %vm779_vm2, %v7664_v51 }
 0x2e0   : > { %v8488_v1 = vpop.permute.xlu1 %3040  ;;  %v8494_v50 = vpop.permute.xlu2 %3090 }
 0x2e1   : > { %12640 = vst [vmem:[#allocation143_spill] sm:$0xff] %v8488_v1 }
 0x2e5   : > { %4198 = vrot.lane.b32.xlu0 %v7629_v31, %s7352_s10 }
 0x2e7   : > { %v8490_v24 = vpop.permute.xlu0 %3038  ;;  %6024 = vmatmul.msk.f32.gmra.mxu2 %vm779_vm2, %v7692_v9 }
 0x2e8   : > { %12641 = vst [vmem:[#allocation144_spill] sm:$0xff] %v8490_v24  ;;  %v8500_v18 = vpop.permute.xlu1 %1946  ;;  %v6596_v31 = vpop.permute.xlu2 %6595 }
 0x2e9   : > { %v6597_v22 = vunpack.i.l.bf16 %v6596_v31 }
 0x2ef   : > { %v8496_v8 = vpop.permute.xlu0 %1894  ;;  %6025 = vmatmul.msk.f32.gmra.mxu2 %vm779_vm2, %v7696_v16 }
 0x2f0   : > { %12642 = vst [vmem:[#allocation145_spill] sm:$0xff] %v8496_v8  ;;  %v8504_v26 = vpop.permute.xlu1 %6600  ;;  %v8510_v57 = vpop.permute.xlu2 %1896 }
 0x2f1   : > { %12643 = vst [vmem:[#allocation146_spill] sm:$0xff] %v8510_v57 }
 0x2f7   : > { %v772_v47 = vpop.permute.xlu0 %771  ;;  %6026 = vmatmul.msk.f32.gmra.mxu2 %vm779_vm2, %v7746_v23 }
 0x2f8   : > { %v774_v32 = vpop.permute.xlu1 %773  ;;  %v8516_v2 = vpop.permute.xlu2 %3042 }
 0x2f9   : > { %12644 = vst [vmem:[#allocation147_spill] sm:$0xff] %v8516_v2 }
 0x2ff   : > { %v8506_v3 = vpop.permute.xlu0 %3092  ;;  %6027 = vmatmul.msk.f32.gmra.mxu2 %vm779_vm2, %v7756_v44 }
 0x300   : > { %v8518_v40 = vpop.permute.xlu1 %3094  ;;  %v8524_v0 = vpop.permute.xlu2 %4240 }
 0x307   : > { %v8512_v13 = vpop.permute.xlu0 %1948  ;;  %6028 = vmatmul.msk.f32.gmra.mxu2 %vm779_vm2, %v7767_v35 }
 0x308   : > { %v8530_v24 = vpop.permute.xlu1 %1898  ;;  %v776_v2 = vpop.permute.xlu2 %775 }
 0x309   : > { %12646 = vst [vmem:[#allocation149_spill] sm:$0xff] %v8530_v24 }
 0x30f   : > { %v8520_v49 = vpop.permute.xlu0 %3044  ;;  %6029 = vmatmul.msk.f32.gmra.mxu2 %vm779_vm2, %v7800_v19 }
 0x310   : > { %12645 = vst [vmem:[#allocation148_spill] sm:$0xff] %v8520_v49  ;;  %v6606_v48 = vpop.permute.xlu1 %6605  ;;  %v1951_v59 = vpop.permute.xlu2 %1950 }
 0x311   : > { %v6608_v57 = vunpack.i.h.bf16 %v6606_v48 }
 0x317   : > { %v8526_v1 = vpop.permute.xlu0 %4242  ;;  %6030 = vmatmul.msk.f32.gmra.mxu2 %vm779_vm2, %v7815_v11 }
 0x318   : > { %v8542_v24 = vpop.permute.xlu1 %3046 }
 0x319   : > { %12648 = vst [vmem:[#allocation151_spill] sm:$0xff] %v8542_v24  ;;  %v6598_v24 = vunpack.i.h.bf16 %v6596_v31  ;;  %v6578_v31 = vunpack.i.h.bf16 %v8363_v45 }
 0x31f   : > { %v8532_v20 = vpop.permute.xlu0 %1900  ;;  %6031 = vmatmul.msk.f32.gmra.mxu2 %vm779_vm2, %v7851_v38 }
 0x320   : > { %12647 = vst [vmem:[#allocation150_spill] sm:$0xff] %v8532_v20  ;;  %v1953_v8 = vpop.permute.xlu1 %1952 }
 0x327   : > { %v778_v49 = vpop.permute.xlu0 %777  ;;  %6032 = vmatmul.msk.f32.gmra.mxu2 %vm779_vm2, %v7869_v52 }
 0x328   : > { %6047 = vmatpush.xpose.msk.msrb.mxu2 %vm779_vm2, %v778_v49  ;;  %6437 = vmatpush.xpose.msk.msra.mxu3 %vm779_vm2, %v778_v49  ;;  %v6607_v49 = vunpack.i.l.bf16 %v6606_v48  ;;  %v6577_v48 = vunpack.i.l.bf16 %v8363_v45  ;;  %v6602_v45 = vunpack.i.l.bf16 %v8504_v26 }
 0x32c   : > { %6048 = vmatpush.xpose.msk.msrb.mxu2 %vm779_vm2, %v776_v2  ;;  %6438 = vmatpush.xpose.msk.msra.mxu3 %vm779_vm2, %v776_v2  ;;  %v8551_v2 = vpop.permute.xlu2 %3096 }
 0x32f   : > { %v1568_v20 = vpop.permute.xlu0 %1567  ;;  %6033 = vmatmul.msk.f32.gmra.mxu2 %vm779_vm2, %v7884_v5 }
 0x330   : > { %6049 = vmatpush.xpose.msk.msrb.mxu2 %vm779_vm2, %v774_v32  ;;  %6439 = vmatpush.xpose.msk.msra.mxu3 %vm779_vm2, %v774_v32 }
 0x331   : > { %6081 = vmatpush.msk.msrb.mxu1 %vm1186_vm3, %v1568_v20  ;;  %v2714_v20 = vpop.permute.xlu1 %2713 }
 0x333   : > { %1770 = vmatpush.msrb.mxu1 %v6608_v57  ;;  %v6588_v57 = vunpack.i.h.bf16 %v8468_v6 }
 0x334   : > { %6050 = vmatpush.xpose.msk.msrb.mxu2 %vm779_vm2, %v772_v47  ;;  %6440 = vmatpush.xpose.msk.msra.mxu3 %vm779_vm2, %v772_v47  ;;  %v6587_v47 = vunpack.i.l.bf16 %v8468_v6  ;;  %v6611_v32 = vpop.permute.xlu2 %6610 }
 0x335   : > { %1771 = vmatpush.msrb.mxu1 %v6607_v49  ;;  %v6612_v6 = vunpack.i.l.bf16 %v6611_v32  ;;  %v12657_v49 = vld [vmem:[#allocation104_spill] sm:$0xff] }
 0x337   : > { %1772 = vmatpush.msrb.mxu1 %v6598_v24  ;;  %6034 = vmatmul.msk.f32.gmra.mxu2 %vm779_vm2, %v7900_v7  ;;  %v12650_v24 = vld [vmem:[#allocation125_spill] sm:$0xff] }
 0x338   : > { %6051 = vmatpush.xpose.msk.msrb.mxu2 %vm779_vm2, %v8472_v54  ;;  %6441 = vmatpush.xpose.msk.msra.mxu3 %vm779_vm2, %v8472_v54  ;;  %v12649_v54 = vld [vmem:[#allocation80_spill] sm:$0xff] }
 0x339   : > { %1773 = vmatpush.msrb.mxu1 %v6597_v22  ;;  %v6592_v22 = vunpack.i.l.bf16 %v8456_v4 }
 0x33b   : > { %1774 = vmatpush.msrb.mxu1 %v6588_v57 }
 0x33c   : > { %6052 = vmatpush.xpose.msk.msrb.mxu2 %vm779_vm2, %v8442_v55  ;;  %6442 = vmatpush.xpose.msk.msra.mxu3 %vm779_vm2, %v8442_v55  ;;  %v6613_v55 = vunpack.i.h.bf16 %v6611_v32  ;;  %v12662_v32 = vld [vmem:[#allocation69_spill] sm:$0xff] }
 0x33d   : > { %1775 = vmatpush.msrb.mxu1 %v6587_v47  ;;  %v12660_v47 = vld [vmem:[#allocation108_spill] sm:$0xff] }
 0x33f   : > { %1776 = vmatpush.msrb.mxu1 %v6578_v31  ;;  %6035 = vmatmul.msk.f32.gmra.mxu2 %vm779_vm2, %v7936_v29 }
 0x340   : > { %6053 = vmatpush.xpose.msk.msrb.mxu2 %vm779_vm2, %v8438_v36  ;;  %6443 = vmatpush.xpose.msk.msra.mxu3 %vm779_vm2, %v8438_v36  ;;  %v6603_v36 = vunpack.i.h.bf16 %v8504_v26  ;;  %v6582_v26 = vunpack.i.l.bf16 %v8386_v25 }
 0x341   : > { %1777 = vmatpush.msrb.mxu1 %v6577_v48  ;;  %v12664_v48 = vld [vmem:[#allocation56_spill] sm:$0xff] }
 0x343   : > { %6182 = vmatpush.msk.msra.mxu1 %vm1186_vm3, %v2714_v20 }
 0x344   : > { %6054 = vmatpush.xpose.msk.msrb.mxu2 %vm779_vm2, %v8336_v42  ;;  %6444 = vmatpush.xpose.msk.msra.mxu3 %vm779_vm2, %v8336_v42  ;;  %v6593_v42 = vunpack.i.h.bf16 %v8456_v4  ;;  %v12654_v4 = vld [vmem:[#allocation95_spill] sm:$0xff] }
 0x345   : > { %2916 = vmatpush.msra.mxu1 %v6612_v6  ;;  %v12666_v6 = vld [vmem:[#allocation122_spill] sm:$0xff] }
 0x347   : > { %2917 = vmatpush.msra.mxu1 %v6613_v55  ;;  %6036 = vmatmul.msk.f32.gmra.mxu2 %vm779_vm2, %v12649_v54  ;;  %v12667_v55 = vld [vmem:[#allocation58_spill] sm:$0xff] }
 0x348   : > { %6055 = vmatpush.xpose.msk.msrb.mxu2 %vm779_vm2, %v8302_v37  ;;  %6445 = vmatpush.xpose.msk.msra.mxu3 %vm779_vm2, %v8302_v37  ;;  %v12652_v37 = vld [vmem:[#allocation101_spill] sm:$0xff] }
 0x349   : > { %2918 = vmatpush.msra.mxu1 %v6602_v45 }
 0x34b   : > { %2919 = vmatpush.msra.mxu1 %v6603_v36  ;;  %6063 = vmatmul.msk.f32.vlgmr.msra.gmra.mxu3 %vm779_vm2, %v7800_v19  ;;  %v12668_v36 = vld [vmem:[#allocation42_spill] sm:$0xff] }
 0x34c   : > { %6148 = vmatpush.xpose.msk.msra.mxu2 %vm779_vm2, %v1953_v8  ;;  %6107 = vmatpush.xpose.msk.msrb.mxu3 %vm779_vm2, %v8268_v14  ;;  %v12651_v8 = vld [vmem:[#allocation92_spill] sm:$0xff]  ;;  %v6583_v14 = vunpack.i.h.bf16 %v8386_v25 }
 0x34d   : > { %2920 = vmatpush.msra.mxu1 %v6592_v22  ;;  %v12669_v22 = vld [vmem:[#allocation49_spill] sm:$0xff] }
 0x34f   : > { %2921 = vmatpush.msra.mxu1 %v6593_v42  ;;  %6037 = vmatmul.msk.f32.gmra.mxu2 %vm779_vm2, %v12651_v8 }
 0x350   : > { %6149 = vmatpush.xpose.msk.msra.mxu2 %vm779_vm2, %v1951_v59  ;;  %6108 = vmatpush.xpose.msk.msrb.mxu3 %vm779_vm2, %v12650_v24  ;;  %v12653_v59 = vld [vmem:[#allocation98_spill] sm:$0xff] }
 0x351   : > { %2922 = vmatpush.msra.mxu1 %v6582_v26  ;;  %v12670_v26 = vld [vmem:[#allocation41_spill] sm:$0xff] }
 0x353   : > { %2923 = vmatpush.msra.mxu1 %v6583_v14  ;;  %6064 = vmatmul.msk.f32.gmra.mxu3 %vm779_vm2, %v7815_v11  ;;  %v12671_v14 = vld [vmem:[#allocation120_spill] sm:$0xff] }
 0x354   : > { %6150 = vmatpush.xpose.msk.msra.mxu2 %vm779_vm2, %v8512_v13  ;;  %6109 = vmatpush.xpose.msk.msrb.mxu3 %vm779_vm2, %v12652_v37  ;;  %v12655_v13 = vld [vmem:[#allocation82_spill] sm:$0xff]  ;;  %v12672_v37 = vld [vmem:[#allocation89_spill] sm:$0xff] }
 0x357   : > { %6038 = vmatmul.msk.f32.gmra.mxu2 %vm779_vm2, %v12654_v4 }
 0x358   : > { %6151 = vmatpush.xpose.msk.msra.mxu2 %vm779_vm2, %v8500_v18  ;;  %6110 = vmatpush.xpose.msk.msrb.mxu3 %vm779_vm2, %v12653_v59  ;;  %v12656_v18 = vld [vmem:[#allocation84_spill] sm:$0xff] }
 0x35a   : > { %v8616_v25 = vpop.f32.mrf.mxu2 }
 0x35b   : > { %6065 = vmatmul.msk.f32.gmra.mxu3 %vm779_vm2, %v7851_v38  ;;  %v12708_v38 = vld [vmem:[#allocation132_spill] sm:$0xff] }
 0x35c   : > { %6152 = vmatpush.xpose.msk.msra.mxu2 %vm779_vm2, %v8484_v41  ;;  %6111 = vmatpush.xpose.msk.msrb.mxu3 %vm779_vm2, %v12655_v13  ;;  %v12658_v41 = vld [vmem:[#allocation79_spill] sm:$0xff]  ;;  %v12674_v13 = vld [vmem:[#allocation93_spill] sm:$0xff] }
 0x35f   : > { %6039 = vmatmul.msk.f32.gmra.mxu2 %vm779_vm2, %v12657_v49 }
 0x360   : > { %6153 = vmatpush.xpose.msk.msra.mxu2 %vm779_vm2, %v8480_v39  ;;  %6112 = vmatpush.xpose.msk.msrb.mxu3 %vm779_vm2, %v12656_v18  ;;  %v12659_v39 = vld [vmem:[#allocation70_spill] sm:$0xff] }
 0x362   : > { %v8630_v57 = vpop.f32.mrf.mxu2 }
 0x363   : > { %6066 = vmatmul.msk.f32.gmra.mxu3 %vm779_vm2, %v7869_v52 }
 0x364   : > { %6154 = vmatpush.xpose.msk.msra.mxu2 %vm779_vm2, %v8426_v17  ;;  %6113 = vmatpush.xpose.msk.msrb.mxu3 %vm779_vm2, %v12658_v41  ;;  %v12661_v17 = vld [vmem:[#allocation75_spill] sm:$0xff] }
 0x365   : > { %v12675_v41 = vld [vmem:[#allocation87_spill] sm:$0xff] }
 0x367   : > { %6040 = vmatmul.msk.f32.gmra.mxu2 %vm779_vm2, %v12660_v47 }
 0x368   : > { %6155 = vmatpush.xpose.msk.msra.mxu2 %vm779_vm2, %v8366_v33  ;;  %6114 = vmatpush.xpose.msk.msrb.mxu3 %vm779_vm2, %v12659_v39  ;;  %v12663_v33 = vld [vmem:[#allocation118_spill] sm:$0xff]  ;;  %v3099_v39 = vpop.permute.xlu0 %3098 }
 0x36a   : > { %v8644_v31 = vpop.f32.mrf.mxu2 }
 0x36b   : > { %6067 = vmatmul.msk.f32.gmra.mxu3 %vm779_vm2, %v7884_v5 }
 0x36c   : > { %6156 = vmatpush.xpose.msk.msra.mxu2 %vm779_vm2, %v8382_v62  ;;  %6115 = vmatpush.xpose.msk.msrb.mxu3 %vm779_vm2, %v12661_v17  ;;  %v12665_v62 = vld [vmem:[#allocation64_spill] sm:$0xff]  ;;  %v12676_v17 = vld [vmem:[#allocation81_spill] sm:$0xff] }
 0x36f   : > { %6041 = vmatmul.msk.f32.gmra.mxu2 %vm779_vm2, %v12663_v33 }
 0x370   : > { %6116 = vmatpush.xpose.msk.msrb.mxu3 %vm779_vm2, %v12662_v32 }
 0x372   : > { %v8654_v20 = vpop.f32.mrf.mxu2 }
 0x373   : > { %6068 = vmatmul.msk.f32.gmra.mxu3 %vm779_vm2, %v7900_v7 }
 0x374   : > { %6117 = vmatpush.xpose.msk.msrb.mxu3 %vm779_vm2, %v12664_v48  ;;  %v12677_v48 = vld [vmem:[#allocation73_spill] sm:$0xff] }
 0x377   : > { %6042 = vmatmul.msk.f32.gmra.mxu2 %vm779_vm2, %v12666_v6 }
 0x378   : > { %6118 = vmatpush.xpose.msk.msrb.mxu3 %vm779_vm2, %v12665_v62  ;;  %v12678_v62 = vld [vmem:[#allocation74_spill] sm:$0xff] }
 0x37a   : > { %v8664_v45 = vpop.f32.mrf.mxu2 }
 0x37b   : > { %6069 = vmatmul.msk.f32.gmra.mxu3 %vm779_vm2, %v7936_v29 }
 0x37c   : > { %6119 = vmatpush.xpose.msk.msrb.mxu3 %vm779_vm2, %v12667_v55 }
 0x37f   : > { %6043 = vmatmul.msk.f32.gmra.mxu2 %vm779_vm2, %v8272_v10 }
 0x380   : > { %6120 = vmatpush.xpose.msk.msrb.mxu3 %vm779_vm2, %v12668_v36  ;;  %v12679_v36 = vld [vmem:[#allocation72_spill] sm:$0xff] }
 0x382   : > { %v8674_v42 = vpop.f32.mrf.mxu2 }
 0x383   : > { %6070 = vmatmul.msk.f32.gmra.mxu3 %vm779_vm2, %v12649_v54 }
 0x384   : > { %6121 = vmatpush.xpose.msk.msrb.mxu3 %vm779_vm2, %v12669_v22  ;;  %v12681_v22 = vld [vmem:[#allocation61_spill] sm:$0xff] }
 0x387   : > { %6044 = vmatmul.msk.f32.gmra.mxu2 %vm779_vm2, %v8306_v61 }
 0x388   : > { %6122 = vmatpush.xpose.msk.msrb.mxu3 %vm779_vm2, %v12670_v26  ;;  %v12683_v26 = vld [vmem:[#allocation45_spill] sm:$0xff] }
 0x38a   : > { %v8684_v24 = vpop.f32.mrf.mxu2 }
 0x38b   : > { %6071 = vmatmul.msk.f32.gmra.mxu3 %vm779_vm2, %v12651_v8 }
 0x38c   : > { %6208 = vmatpush.xpose.msk.msra.mxu3 %vm779_vm2, %v8338_v56  ;;  %v12673_v56 = vld [vmem:[#allocation96_spill] sm:$0xff] }
 0x38f   : > { %6045 = vmatmul.msk.f32.gmra.mxu2 %vm779_vm2, %v8346_v43 }
 0x390   : > { %6209 = vmatpush.xpose.msk.msra.mxu3 %vm779_vm2, %v12671_v14  ;;  %v12685_v14 = vld [vmem:[#allocation44_spill] sm:$0xff] }
 0x392   : > { %v8694_v59 = vpop.f32.mrf.mxu2 }
 0x393   : > { %6072 = vmatmul.msk.f32.gmra.mxu3 %vm779_vm2, %v12654_v4  ;;  %v12706_v4 = vld [vmem:[#allocation102_spill] sm:$0xff] }
 0x394   : > { %6210 = vmatpush.xpose.msk.msra.mxu3 %vm779_vm2, %v12672_v37  ;;  %v4245_v37 = vpop.permute.xlu1 %4244 }
 0x397   : > { %6046 = vmatmul.msk.f32.gmra.mxu2 %vm779_vm2, %v8412_v28 }
 0x398   : > { %6211 = vmatpush.xpose.msk.msra.mxu3 %vm779_vm2, %v12673_v56 }
 0x39a   : > { %v8704_v18 = vpop.f32.mrf.mxu2 }
 0x39b   : > { %6073 = vmatmul.msk.f32.gmra.mxu3 %vm779_vm2, %v12657_v49 }
 0x39c   : > { %6212 = vmatpush.xpose.msk.msra.mxu3 %vm779_vm2, %v12674_v13 }
 0x39f   : > { %6056 = vmatmul.msk.f32.vlgmr.msrb.gmra.mxu2 %vm779_vm2, %v7618_v21 }
 0x3a0   : > { %6213 = vmatpush.xpose.msk.msra.mxu3 %vm779_vm2, %v12675_v41  ;;  %6249 = vmatpush.xpose.msk.msrb.mxu2 %vm779_vm2, %v3099_v39  ;;  %v4239_v39 = vpop.permute.xlu1 %4238 }
 0x3a2   : > { %v8715_v32 = vpop.f32.mrf.mxu2 }
 0x3a3   : > { %6074 = vmatmul.msk.f32.gmra.mxu3 %vm779_vm2, %v12660_v47 }
 0x3a4   : > { %6214 = vmatpush.xpose.msk.msra.mxu3 %vm779_vm2, %v12676_v17  ;;  %6250 = vmatpush.xpose.msk.msrb.mxu2 %vm779_vm2, %v8551_v2  ;;  %v12680_v2 = vld [vmem:[#allocation59_spill] sm:$0xff]  ;;  %v8794_v17 = vpop.permute.xlu2 %1902 }
 0x3a7   : > { %6057 = vmatmul.msk.f32.gmra.mxu2 %vm779_vm2, %v7664_v51 }
 0x3a8   : > { %6215 = vmatpush.xpose.msk.msra.mxu3 %vm779_vm2, %v12677_v48  ;;  %6251 = vmatpush.xpose.msk.msrb.mxu2 %vm779_vm2, %v8518_v40 }
 0x3aa   : > { %v8729_v55 = vpop.f32.mrf.mxu2 }
 0x3ab   : > { %6075 = vmatmul.msk.f32.gmra.mxu3 %vm779_vm2, %v12663_v33 }
 0x3ac   : > { %6216 = vmatpush.xpose.msk.msra.mxu3 %vm779_vm2, %v12678_v62  ;;  %6252 = vmatpush.xpose.msk.msrb.mxu2 %vm779_vm2, %v8506_v3  ;;  %v12682_v3 = vld [vmem:[#allocation60_spill] sm:$0xff]  ;;  %v12686_v62 = vld [vmem:[#allocation38_spill] sm:$0xff] }
 0x3af   : > { %6058 = vmatmul.msk.f32.gmra.mxu2 %vm779_vm2, %v7692_v9 }
 0x3b0   : > { %6217 = vmatpush.xpose.msk.msra.mxu3 %vm779_vm2, %v12679_v36  ;;  %6253 = vmatpush.xpose.msk.msrb.mxu2 %vm779_vm2, %v8494_v50 }
 0x3b2   : > { %v8743_v40 = vpop.f32.mrf.mxu2 }
 0x3b3   : > { %6076 = vmatmul.msk.f32.gmra.mxu3 %vm779_vm2, %v12666_v6 }
 0x3b4   : > { %6218 = vmatpush.xpose.msk.msra.mxu3 %vm779_vm2, %v12680_v2  ;;  %6254 = vmatpush.xpose.msk.msrb.mxu2 %vm779_vm2, %v8458_v15  ;;  %v12684_v15 = vld [vmem:[#allocation46_spill] sm:$0xff] }
 0x3b7   : > { %6059 = vmatmul.msk.f32.gmra.mxu2 %vm779_vm2, %v7696_v16 }
 0x3b8   : > { %6219 = vmatpush.xpose.msk.msra.mxu3 %vm779_vm2, %v12681_v22  ;;  %6255 = vmatpush.xpose.msk.msrb.mxu2 %vm779_vm2, %v8452_v30 }
 0x3ba   : > { %v8757_v50 = vpop.f32.mrf.mxu2 }
 0x3bb   : > { %6077 = vmatmul.msk.f32.gmra.mxu3 %vm779_vm2, %v8272_v10 }
 0x3bc   : > { %6220 = vmatpush.xpose.msk.msra.mxu3 %vm779_vm2, %v12682_v3  ;;  %6256 = vmatpush.xpose.msk.msrb.mxu2 %vm779_vm2, %v8390_v58  ;;  %v4207_v3 = vpop.permute.xlu0 %4206 }
 0x3bf   : > { %6060 = vmatmul.msk.f32.gmra.mxu2 %vm779_vm2, %v7746_v23 }
 0x3c0   : > { %6221 = vmatpush.xpose.msk.msra.mxu3 %vm779_vm2, %v12683_v26  ;;  %6257 = vmatpush.xpose.msk.msrb.mxu2 %vm779_vm2, %v8320_v63  ;;  %v8812_v26 = vpop.permute.xlu1 %4202 }
 0x3c2   : > { %v8771_v30 = vpop.f32.mrf.mxu2 }
 0x3c3   : > { %6078 = vmatmul.msk.f32.gmra.mxu3 %vm779_vm2, %v8306_v61 }
 0x3c4   : > { %6222 = vmatpush.xpose.msk.msra.mxu3 %vm779_vm2, %v12684_v15 }
 0x3c7   : > { %6061 = vmatmul.msk.f32.gmra.mxu2 %vm779_vm2, %v7756_v44 }
 0x3c8   : > { %6223 = vmatpush.xpose.msk.msra.mxu3 %vm779_vm2, %v12685_v14  ;;  %v12687_v14 = vld [vmem:[#allocation50_spill] sm:$0xff] }
 0x3ca   : > { %v8779_v58 = vpop.f32.mrf.mxu2 }
 0x3cb   : > { %6079 = vmatmul.msk.f32.gmra.mxu3 %vm779_vm2, %v8346_v43 }
 0x3ce   : > { %v8783_v56 = vpop.f32.mrf.mxu3 }
 0x3cf   : > { %6062 = vmatmul.msk.f32.gmra.mxu2 %vm779_vm2, %v7767_v35  ;;  %v1118_v63 = vsel %vm1089_vm4, %v8783_v56, -inf }
 0x3d0   : > { %v1119_v13 = vmax.f32 %v8694_v59, %v1118_v63  ;;  %v4205_v63 = vpop.permute.xlu2 %4204 }
 0x3d2   : > { %v8790_v41 = vpop.f32.mrf.mxu2  ;;  %1120 = vmax.xlane.f32.xlu1 %v1119_v13  ;;  %v12688_v13 = vld [vmem:[#allocation124_spill] sm:$0xff] }
 0x3d3   : > { %6080 = vmatmul.msk.f32.gmra.mxu3 %vm779_vm2, %v8412_v28  ;;  %v12692_v28 = vld [vmem:[#allocation113_spill] sm:$0xff] }
 0x3d6   : > { %v8796_v48 = vpop.f32.mrf.mxu3 }
 0x3d7   : > { %6157 = vmatmul.msk.f32.vlgmr.msra.gmra.mxu2 %vm779_vm2, %v12686_v62  ;;  %v1122_v36 = vsel %vm1089_vm4, %v8796_v48, -inf }
 0x3d8   : > { %6350 = vmatpush.xpose.msk.msra.mxu2 %vm779_vm2, %v4245_v37  ;;  %v1123_v2 = vmax.f32 %v8704_v18, %v1122_v36  ;;  %v4237_v36 = vpop.permute.xlu0 %4236 }
 0x3da   : > { %v8804_v22 = vpop.f32.mrf.mxu2  ;;  %1124 = vmax.xlane.f32.xlu2 %v1123_v2 }
 0x3db   : > { %6123 = vmatmul.msk.f32.vlgmr.msrb.gmra.mxu3 %vm779_vm2, %v12686_v62  ;;  %v12689_v62 = vld [vmem:[#allocation110_spill] sm:$0xff] }
 0x3dc   : > { %6351 = vmatpush.xpose.msk.msra.mxu2 %vm779_vm2, %v8526_v1  ;;  %6309 = vmatpush.xpose.msk.msrb.mxu3 %vm779_vm2, %v8359_v27 }
 0x3de   : > { %v8814_v15 = vpop.f32.mrf.mxu3 }
 0x3df   : > { %6158 = vmatmul.msk.f32.gmra.mxu2 %vm779_vm2, %v12687_v14  ;;  %v1126_v37 = vsel %vm1089_vm4, %v8814_v15, -inf }
 0x3e0   : > { %6352 = vmatpush.xpose.msk.msra.mxu2 %vm779_vm2, %v8524_v0  ;;  %6310 = vmatpush.xpose.msk.msrb.mxu3 %vm779_vm2, %v12688_v13  ;;  %v1127_v1 = vmax.f32 %v8715_v32, %v1126_v37  ;;  %v12690_v0 = vld [vmem:[#allocation54_spill] sm:$0xff]  ;;  %v4233_v13 = vpop.permute.xlu1 %4232 }
 0x3e2   : > { %v8825_v27 = vpop.f32.mrf.mxu2  ;;  %1128 = vmax.xlane.f32.xlu0 %v1127_v1  ;;  %v12691_v1 = vld [vmem:[#allocation112_spill] sm:$0xff] }
 0x3e3   : > { %6124 = vmatmul.msk.f32.gmra.mxu3 %vm779_vm2, %v12687_v14 }
 0x3e4   : > { %6353 = vmatpush.xpose.msk.msra.mxu2 %vm779_vm2, %v4239_v39  ;;  %6311 = vmatpush.xpose.msk.msrb.mxu3 %vm779_vm2, %v12689_v62  ;;  %v4235_v62 = vpop.permute.xlu2 %4234 }
 0x3e6   : > { %v8832_v2 = vpop.f32.mrf.mxu3 }
 0x3e7   : > { %6159 = vmatmul.msk.f32.gmra.mxu2 %vm779_vm2, %v12690_v0  ;;  %v1130_v37 = vsel %vm1089_vm4, %v8832_v2, -inf }
 0x3e8   : > { %6354 = vmatpush.xpose.msk.msra.mxu2 %vm779_vm2, %v4237_v36  ;;  %6312 = vmatpush.xpose.msk.msrb.mxu3 %vm779_vm2, %v12691_v1  ;;  %v1131_v39 = vmax.f32 %v8729_v55, %v1130_v37  ;;  %v12693_v36 = vld [vmem:[#allocation47_spill] sm:$0xff] }
 0x3ea   : > { %v8842_v14 = vpop.f32.mrf.mxu2  ;;  %1132 = vmax.xlane.f32.xlu1 %v1131_v39  ;;  %v4231_v39 = vpop.permute.xlu1 %4230 }
 0x3eb   : > { %6125 = vmatmul.msk.f32.gmra.mxu3 %vm779_vm2, %v12690_v0 }
 0x3ec   : > { %6355 = vmatpush.xpose.msk.msra.mxu2 %vm779_vm2, %v4235_v62  ;;  %6313 = vmatpush.xpose.msk.msrb.mxu3 %vm779_vm2, %v12692_v28  ;;  %v12694_v28 = vld [vmem:[#allocation116_spill] sm:$0xff] }
 0x3ee   : > { %v8849_v43 = vpop.f32.mrf.mxu3 }
 0x3ef   : > { %6160 = vmatmul.msk.f32.gmra.mxu2 %vm779_vm2, %v12693_v36  ;;  %v1134_v37 = vsel %vm1089_vm4, %v8849_v43, -inf }
 0x3f0   : > { %6356 = vmatpush.xpose.msk.msra.mxu2 %vm779_vm2, %v4233_v13  ;;  %6314 = vmatpush.xpose.msk.msrb.mxu3 %vm779_vm2, %v8265_v34  ;;  %v1135_v0 = vmax.f32 %v8743_v40, %v1134_v37  ;;  %v12695_v13 = vld [vmem:[#allocation65_spill] sm:$0xff] }
 0x3f2   : > { %v8859_v1 = vpop.f32.mrf.mxu2  ;;  %1136 = vmax.xlane.f32.xlu2 %v1135_v0 }
 0x3f3   : > { %6126 = vmatmul.msk.f32.gmra.mxu3 %vm779_vm2, %v12693_v36  ;;  %v12696_v36 = vld [vmem:[#allocation121_spill] sm:$0xff] }
 0x3f4   : > { %6357 = vmatpush.xpose.msk.msra.mxu2 %vm779_vm2, %v4231_v39  ;;  %6315 = vmatpush.xpose.msk.msrb.mxu3 %vm779_vm2, %v12694_v28  ;;  %v12697_v28 = vld [vmem:[#allocation67_spill] sm:$0xff] }
 0x3f6   : > { %v8866_v62 = vpop.f32.mrf.mxu3 }
 0x3f7   : > { %6161 = vmatmul.msk.f32.gmra.mxu2 %vm779_vm2, %v12695_v13  ;;  %v1138_v34 = vsel %vm1089_vm4, %v8866_v62, -inf }
 0x3f8   : > { %6316 = vmatpush.xpose.msk.msrb.mxu3 %vm779_vm2, %v8285_v12  ;;  %v1139_v37 = vmax.f32 %v8757_v50, %v1138_v34  ;;  %v12698_v12 = vld [vmem:[#allocation115_spill] sm:$0xff] }
 0x3fa   : > { %v8875_v0 = vpop.f32.mrf.mxu2  ;;  %1140 = vmax.xlane.f32.xlu0 %v1139_v37 }
 0x3fb   : > { %6127 = vmatmul.msk.f32.gmra.mxu3 %vm779_vm2, %v12695_v13 }
 0x3fc   : > { %6317 = vmatpush.xpose.msk.msrb.mxu3 %vm779_vm2, %v12696_v36  ;;  %v12699_v36 = vld [vmem:[#allocation62_spill] sm:$0xff] }
 0x3fe   : > { %v8881_v39 = vpop.f32.mrf.mxu3 }
 0x3ff   : > { %6162 = vmatmul.msk.f32.gmra.mxu2 %vm779_vm2, %v12697_v28  ;;  %v1142_v6 = vsel %vm1089_vm4, %v8881_v39, -inf }
 0x400   : > { %6318 = vmatpush.xpose.msk.msrb.mxu3 %vm779_vm2, %v12698_v12  ;;  %v1143_v34 = vmax.f32 %v8771_v30, %v1142_v6  ;;  %v4201_v12 = vpop.permute.xlu0 %4200 }
 0x402   : > { %v8890_v37 = vpop.f32.mrf.mxu2  ;;  %1144 = vmax.xlane.f32.xlu1 %v1143_v34 }
 0x403   : > { %6128 = vmatmul.msk.f32.gmra.mxu3 %vm779_vm2, %v12697_v28  ;;  %v12700_v28 = vld [vmem:[#allocation76_spill] sm:$0xff] }
 0x404   : > { %6319 = vmatpush.xpose.msk.msrb.mxu3 %vm779_vm2, %v4207_v3 }
 0x406   : > { %v8895_v13 = vpop.f32.mrf.mxu3 }
 0x407   : > { %6163 = vmatmul.msk.f32.gmra.mxu2 %vm779_vm2, %v12699_v36  ;;  %v1146_v33 = vsel %vm1089_vm4, %v8895_v13, -inf }
 0x408   : > { %6320 = vmatpush.xpose.msk.msrb.mxu3 %vm779_vm2, %v4205_v63  ;;  %v1147_v6 = vmax.f32 %v8779_v58, %v1146_v33 }
 0x40a   : > { %v8903_v8 = vpop.f32.mrf.mxu2  ;;  %1148 = vmax.xlane.f32.xlu2 %v1147_v6  ;;  %v4199_v6 = vpop.permute.xlu0 %4198 }
 0x40b   : > { %6129 = vmatmul.msk.f32.gmra.mxu3 %vm779_vm2, %v12699_v36  ;;  %v12701_v36 = vld [vmem:[#allocation78_spill] sm:$0xff] }
 0x40c   : > { %6321 = vmatpush.xpose.msk.msrb.mxu3 %vm779_vm2, %v8812_v26 }
 0x40e   : > { %v8909_v3 = vpop.f32.mrf.mxu3 }
 0x40f   : > { %6164 = vmatmul.msk.f32.gmra.mxu2 %vm779_vm2, %v12700_v28  ;;  %v1150_v63 = vsel %vm1089_vm4, %v8909_v3, -inf }
 0x410   : > { %6322 = vmatpush.xpose.msk.msrb.mxu3 %vm779_vm2, %v4201_v12  ;;  %v1151_v33 = vmax.f32 %v8790_v41, %v1150_v63 }
 0x412   : > { %v8917_v34 = vpop.f32.mrf.mxu2  ;;  %1152 = vmax.xlane.f32.xlu0 %v1151_v33 }
 0x413   : > { %6130 = vmatmul.msk.f32.gmra.mxu3 %vm779_vm2, %v12700_v28  ;;  %v12702_v28 = vld [vmem:[#allocation77_spill] sm:$0xff] }
 0x414   : > { %6323 = vmatpush.xpose.msk.msrb.mxu3 %vm779_vm2, %v4199_v6 }
 0x416   : > { %v8922_v26 = vpop.f32.mrf.mxu3 }
 0x417   : > { %6165 = vmatmul.msk.f32.gmra.mxu2 %vm779_vm2, %v12701_v36  ;;  %v1154_v54 = vsel %vm1089_vm4, %v8922_v26, -inf }
 0x418   : > { %v1155_v12 = vmax.f32 %v8804_v22, %v1154_v54 }
 0x41a   : > { %v8929_v63 = vpop.f32.mrf.mxu2  ;;  %1156 = vmax.xlane.f32.xlu1 %v1155_v12  ;;  %v12703_v12 = vld [vmem:[#allocation88_spill] sm:$0xff] }
 0x41b   : > { %6131 = vmatmul.msk.f32.gmra.mxu3 %vm779_vm2, %v12701_v36 }
 0x41e   : > { %v8933_v33 = vpop.f32.mrf.mxu3 }
 0x41f   : > { %6166 = vmatmul.msk.f32.gmra.mxu2 %vm779_vm2, %v12702_v28  ;;  %v1158_v6 = vsel %vm1089_vm4, %v8933_v33, -inf }
 0x420   : > { %v1159_v61 = vmax.f32 %v8825_v27, %v1158_v6  ;;  %v12704_v6 = vld [vmem:[#allocation91_spill] sm:$0xff] }
 0x422   : > { %v8940_v47 = vpop.f32.mrf.mxu2  ;;  %1160 = vmax.xlane.f32.xlu2 %v1159_v61 }
 0x423   : > { %6132 = vmatmul.msk.f32.gmra.mxu3 %vm779_vm2, %v12702_v28 }
 0x426   : > { %v8944_v54 = vpop.f32.mrf.mxu3 }
 0x427   : > { %6167 = vmatmul.msk.f32.gmra.mxu2 %vm779_vm2, %v12703_v12  ;;  %v1162_v36 = vsel %vm1089_vm4, %v8944_v54, -inf }
 0x428   : > { %v1163_v49 = vmax.f32 %v8842_v14, %v1162_v36  ;;  %v12705_v36 = vld [vmem:[#allocation85_spill] sm:$0xff] }
 0x42a   : > { %v8951_v52 = vpop.f32.mrf.mxu2  ;;  %1164 = vmax.xlane.f32.xlu0 %v1163_v49 }
 0x42b   : > { %6133 = vmatmul.msk.f32.gmra.mxu3 %vm779_vm2, %v12703_v12 }
 0x42e   : > { %v8955_v61 = vpop.f32.mrf.mxu3 }
 0x42f   : > { %6168 = vmatmul.msk.f32.gmra.mxu2 %vm779_vm2, %v12704_v6  ;;  %v1166_v28 = vsel %vm1089_vm4, %v8955_v61, -inf }
 0x430   : > { %v1167_v29 = vmax.f32 %v8859_v1, %v1166_v28 }
 0x432   : > { %1168 = vmax.xlane.f32.xlu1 %v1167_v29  ;;  %v8962_v7 = vpop.f32.mrf.mxu2 }
 0x433   : > { %6134 = vmatmul.msk.f32.gmra.mxu3 %vm779_vm2, %v12704_v6 }
 0x436   : > { %v8966_v49 = vpop.f32.mrf.mxu3 }
 0x437   : > { %6169 = vmatmul.msk.f32.gmra.mxu2 %vm779_vm2, %v12705_v36  ;;  %v1170_v12 = vsel %vm1089_vm4, %v8966_v49, -inf }
 0x438   : > { %v1171_v10 = vmax.f32 %v8875_v0, %v1170_v12 }
 0x43a   : > { %1172 = vmax.xlane.f32.xlu2 %v1171_v10  ;;  %v8975_v29 = vpop.f32.mrf.mxu2  ;;  %v8986_v10 = vpop.permute.xlu2 %3048 }
 0x43b   : > { %6135 = vmatmul.msk.f32.gmra.mxu3 %vm779_vm2, %v12705_v36  ;;  %12707 = vst [vmem:[#allocation125_spill] sm:$0xff] %v8986_v10 }
 0x43e   : > { %v8977_v28 = vpop.f32.mrf.mxu3 }
 0x43f   : > { %6170 = vmatmul.msk.f32.gmra.mxu2 %vm779_vm2, %v12706_v4  ;;  %v1174_v6 = vsel %vm1089_vm4, %v8977_v28, -inf }
 0x440   : > { %v1175_v5 = vmax.f32 %v8890_v37, %v1174_v6 }
 0x442   : > { %1176 = vmax.xlane.f32.xlu0 %v1175_v5  ;;  %v8988_v36 = vpop.f32.mrf.mxu2 }
 0x443   : > { %6136 = vmatmul.msk.f32.gmra.mxu3 %vm779_vm2, %v12706_v4 }
 0x445   : > { %v1121_v12 = vpop.xlane.xlu1 %1120 }
 0x446   : > { %v1208_v11 = vsub.f32 %v8783_v56, %v1121_v12  ;;  %v8991_v19 = vpop.f32.mrf.mxu3  ;;  %v1207_v35 = vsub.f32 %v8694_v59, %v1121_v12  ;;  %v1090_v56 = vsel %vm1089_vm4, %v8940_v47, -inf  ;;  %v12709_v59 = vld [vmem:[#allocation131_spill] sm:$0xff] }
 0x447   : > { %6171 = vmatmul.msk.f32.gmra.mxu2 %vm779_vm2, %v12708_v38  ;;  %v1178_v5 = vsel %vm1089_vm4, %v8991_v19, -inf }
 0x448   : > { %v1273_v6 = vmul.f32 1.442695, %v1208_v11  ;;  %v1179_v4 = vmax.f32 %v8903_v8, %v1178_v5  ;;  %v1271_v10 = vmul.f32 1.442695, %v1207_v35 }
 0x44a   : > { %1180 = vmax.xlane.f32.xlu1 %v1179_v4  ;;  %6737 = vpow2.f32 %v1273_v6  ;;  %v9011_v12 = vpop.f32.mrf.mxu2  ;;  %v1091_v6 = vmax.f32 %v8616_v25, %v1090_v56 }
 0x44b   : > { %6137 = vmatmul.msk.f32.gmra.mxu3 %vm779_vm2, %v12708_v38  ;;  %6739 = vpow2.f32 %v1271_v10 }
 0x44d   : > { %v1125_v23 = vpop.xlane.xlu2 %1124 }
 0x44e   : > { %v1210_v44 = vsub.f32 %v8796_v48, %v1125_v23  ;;  %v9004_v16 = vpop.f32.mrf.mxu3  ;;  %v1209_v11 = vsub.f32 %v8704_v18, %v1125_v23 }
 0x44f   : > { %6172 = vmatmul.msk.f32.gmra.mxu2 %vm779_vm2, %v12709_v59  ;;  %v1182_v35 = vsel %vm1089_vm4, %v9004_v16, -inf }
 0x450   : > { %v1277_v38 = vmul.f32 1.442695, %v1210_v44  ;;  %v1183_v5 = vmax.f32 %v8917_v34, %v1182_v35  ;;  %v9015_v4 = vpop.eup %6737  ;;  %v1275_v48 = vmul.f32 1.442695, %v1209_v11 }
 0x451   : > { %12710 = vst [vmem:[#allocation101_spill] sm:$0xff] %v9015_v4  ;;  %v9019_v23 = vpop.eup %6739  ;;  %v1371_v44 = vsel %vm1089_vm4, %v9015_v4, 0.0 }
 0x452   : > { %1184 = vmax.xlane.f32.xlu2 %v1183_v5  ;;  %1092 = vmax.xlane.f32.xlu1 %v1091_v6  ;;  %6741 = vpow2.f32 %v1277_v38  ;;  %12711 = vst [vmem:[#allocation98_spill] sm:$0xff] %v9019_v23  ;;  %v1372_v6 = vadd.f32 %v9019_v23, %v1371_v44 }
 0x453   : > { %6138 = vmatmul.msk.f32.gmra.mxu3 %vm779_vm2, %v12709_v59  ;;  %v1187_v59 = vsel %vm1186_vm3, %v8929_v63, -inf  ;;  %6743 = vpow2.f32 %v1275_v48 }
 0x455   : > { %v1129_v18 = vpop.xlane.xlu0 %1128 }
 0x456   : > { %v1211_v10 = vsub.f32 %v8715_v32, %v1129_v18  ;;  %v1212_v56 = vsub.f32 %v8814_v15, %v1129_v18  ;;  %v9025_v35 = vpop.f32.mrf.mxu3  ;;  %v9036_v15 = vpop.f32.mrf.mxu2  ;;  %v1094_v18 = vsel %vm1089_vm4, %v8951_v52, -inf }
 0x457   : > { %6173 = vmatmul.msk.f32.gmra.mxu2 %vm779_vm2, %v8342_v53  ;;  %v1189_v11 = vsel %vm1188_vm5, %v9025_v35, -inf }
 0x458   : > { %v1279_v38 = vmul.f32 1.442695, %v1211_v10  ;;  %v1281_v5 = vmul.f32 1.442695, %v1212_v56  ;;  %v1190_v4 = vmax.f32 %v1187_v59, %v1189_v11  ;;  %v9034_v32 = vpop.eup %6741 }
 0x459   : > { %12712 = vst [vmem:[#allocation82_spill] sm:$0xff] %v9034_v32  ;;  %v9040_v48 = vpop.eup %6743  ;;  %v1375_v44 = vsel %vm1089_vm4, %v9034_v32, 0.0 }
 0x45a   : > { %6745 = vpow2.f32 %v1279_v38  ;;  %1373 = vadd.xlane.f32.xlu2 %v1372_v6  ;;  %1191 = vmax.xlane.f32.xlu0 %v1190_v4  ;;  %12713 = vst [vmem:[#allocation84_spill] sm:$0xff] %v9040_v48  ;;  %v1095_v38 = vmax.f32 %v8630_v57, %v1094_v18  ;;  %v1098_v18 = vsel %vm1089_vm4, %v8962_v7, -inf }
 0x45b   : > { %6747 = vpow2.f32 %v1281_v5  ;;  %6139 = vmatmul.msk.f32.gmra.mxu3 %vm779_vm2, %v8342_v53  ;;  %v1376_v5 = vadd.f32 %v9040_v48, %v1375_v44 }
 0x45d   : > { %v1133_v10 = vpop.xlane.xlu1 %1132 }
 0x45e   : > { %v1213_v56 = vsub.f32 %v8729_v55, %v1133_v10  ;;  %v1214_v59 = vsub.f32 %v8832_v2, %v1133_v10  ;;  %v9061_v10 = vpop.f32.mrf.mxu2 }
 0x45f   : > { %6174 = vmatmul.msk.f32.gmra.mxu2 %vm779_vm2, %v8422_v60 }
 0x460   : > { %v9050_v4 = vpop.eup %6745  ;;  %v1283_v11 = vmul.f32 1.442695, %v1213_v56  ;;  %v1285_v53 = vmul.f32 1.442695, %v1214_v59 }
 0x461   : > { %12714 = vst [vmem:[#allocation79_spill] sm:$0xff] %v9050_v4  ;;  %v9054_v6 = vpop.eup %6747 }
 0x462   : > { %12715 = vst [vmem:[#allocation70_spill] sm:$0xff] %v9054_v6  ;;  %6749 = vpow2.f32 %v1283_v11  ;;  %1096 = vmax.xlane.f32.xlu2 %v1095_v38  ;;  %1377 = vadd.xlane.f32.xlu0 %v1376_v5  ;;  %v1379_v55 = vsel %vm1089_vm4, %v9054_v6, 0.0  ;;  %v1099_v5 = vmax.f32 %v8644_v31, %v1098_v18 }
 0x463   : > { %6751 = vpow2.f32 %v1285_v53  ;;  %6140 = vmatmul.msk.f32.gmra.mxu3 %vm779_vm2, %v8422_v60  ;;  %v1380_v2 = vadd.f32 %v9050_v4, %v1379_v55  ;;  %v9071_v53 = vpop.f32.mrf.mxu3  ;;  %v12789_v4 = vld [vmem:[#allocation128_spill] sm:$0xff] }
 0x465   : > { %1381 = vadd.xlane.f32.xlu1 %v1380_v2  ;;  %v1137_v44 = vpop.xlane.xlu2 %1136 }
 0x466   : > { %v1215_v56 = vsub.f32 %v8743_v40, %v1137_v44  ;;  %v1216_v59 = vsub.f32 %v8849_v43, %v1137_v44  ;;  %v9081_v44 = vpop.f32.mrf.mxu2 }
 0x467   : > { %6175 = vmatmul.msk.f32.gmra.mxu2 %vm779_vm2, %v8414_v46 }
 0x468   : > { %v9069_v11 = vpop.eup %6749  ;;  %v1287_v60 = vmul.f32 1.442695, %v1215_v56  ;;  %v1289_v38 = vmul.f32 1.442695, %v1216_v59  ;;  %v12718_v59 = vld [vmem:[#allocation142_spill] sm:$0xff] }
 0x469   : > { %12716 = vst [vmem:[#allocation75_spill] sm:$0xff] %v9069_v11  ;;  %v9074_v55 = vpop.eup %6751 }
 0x46a   : > { %12717 = vst [vmem:[#allocation69_spill] sm:$0xff] %v9074_v55  ;;  %6753 = vpow2.f32 %v1287_v60  ;;  %1100 = vmax.xlane.f32.xlu0 %v1099_v5  ;;  %v1383_v40 = vsel %vm1089_vm4, %v9074_v55, 0.0 }
 0x46b   : > { %6755 = vpow2.f32 %v1289_v38  ;;  %6141 = vmatmul.msk.f32.gmra.mxu3 %vm779_vm2, %v8414_v46  ;;  %v1384_v43 = vadd.f32 %v9069_v11, %v1383_v40  ;;  %v1102_v38 = vsel %vm1089_vm4, %v8975_v29, -inf  ;;  %v9093_v40 = vpop.f32.mrf.mxu3  ;;  %v12721_v11 = vld [vmem:[#allocation145_spill] sm:$0xff] }
 0x46d   : > { %1385 = vadd.xlane.f32.xlu2 %v1384_v43  ;;  %v1141_v2 = vpop.xlane.xlu0 %1140 }
 0x46e   : > { %v1217_v56 = vsub.f32 %v8757_v50, %v1141_v2  ;;  %v1218_v18 = vsub.f32 %v8866_v62, %v1141_v2  ;;  %v1103_v62 = vmax.f32 %v8654_v20, %v1102_v38 }
 0x46f   : > { %6176 = vmatmul.msk.f32.gmra.mxu2 %vm779_vm2, %v12718_v59 }
 0x470   : > { %v9087_v60 = vpop.eup %6753  ;;  %v1291_v5 = vmul.f32 1.442695, %v1217_v56  ;;  %v1293_v46 = vmul.f32 1.442695, %v1218_v18 }
 0x471   : > { %12719 = vst [vmem:[#allocation56_spill] sm:$0xff] %v9087_v60  ;;  %v9091_v55 = vpop.eup %6755 }
 0x472   : > { %12720 = vst [vmem:[#allocation64_spill] sm:$0xff] %v9091_v55  ;;  %6757 = vpow2.f32 %v1291_v5  ;;  %v1387_v50 = vsel %vm1089_vm4, %v9091_v55, 0.0 }
 0x473   : > { %6759 = vpow2.f32 %v1293_v46  ;;  %6142 = vmatmul.msk.f32.gmra.mxu3 %vm779_vm2, %v12718_v59  ;;  %v1388_v43 = vadd.f32 %v9087_v60, %v1387_v50  ;;  %v9107_v46 = vpop.f32.mrf.mxu2 }
 0x474   : > { %12723 = vst [vmem:[#allocation42_spill] sm:$0xff] %v9107_v46 }
 0x475   : > { %1104 = vmax.xlane.f32.xlu2 %v1103_v62  ;;  %1389 = vadd.xlane.f32.xlu0 %v1388_v43  ;;  %v1145_v2 = vpop.xlane.xlu1 %1144 }
 0x476   : > { %v1219_v56 = vsub.f32 %v8771_v30, %v1145_v2  ;;  %v1220_v18 = vsub.f32 %v8881_v39, %v1145_v2  ;;  %v9116_v39 = vpop.f32.mrf.mxu3  ;;  %v12726_v2 = vld [vmem:[#allocation146_spill] sm:$0xff] }
 0x477   : > { %6177 = vmatmul.msk.f32.gmra.mxu2 %vm779_vm2, %v12721_v11  ;;  %12725 = vst [vmem:[#allocation41_spill] sm:$0xff] %v9116_v39 }
 0x478   : > { %v9105_v5 = vpop.eup %6757  ;;  %v1295_v55 = vmul.f32 1.442695, %v1219_v56  ;;  %v1297_v59 = vmul.f32 1.442695, %v1220_v18  ;;  %v1106_v56 = vsel %vm1089_vm4, %v8988_v36, -inf }
 0x479   : > { %12722 = vst [vmem:[#allocation58_spill] sm:$0xff] %v9105_v5  ;;  %v9109_v6 = vpop.eup %6759 }
 0x47a   : > { %12724 = vst [vmem:[#allocation49_spill] sm:$0xff] %v9109_v6  ;;  %6761 = vpow2.f32 %v1295_v55  ;;  %v1391_v38 = vsel %vm1089_vm4, %v9109_v6, 0.0  ;;  %v12729_v6 = vld [vmem:[#allocation149_spill] sm:$0xff] }
 0x47b   : > { %6763 = vpow2.f32 %v1297_v59  ;;  %6143 = vmatmul.msk.f32.gmra.mxu3 %vm779_vm2, %v12721_v11  ;;  %v1392_v30 = vadd.f32 %v9105_v5, %v1391_v38  ;;  %v9128_v38 = vpop.f32.mrf.mxu2 }
 0x47d   : > { %1393 = vadd.xlane.f32.xlu1 %v1392_v30  ;;  %v1149_v50 = vpop.xlane.xlu2 %1148  ;;  %v1107_v30 = vmax.f32 %v8664_v45, %v1106_v56 }
 0x47e   : > { %v1221_v62 = vsub.f32 %v8779_v58, %v1149_v50  ;;  %v1222_v43 = vsub.f32 %v8895_v13, %v1149_v50 }
 0x47f   : > { %6178 = vmatmul.msk.f32.gmra.mxu2 %vm779_vm2, %v12726_v2 }
 0x480   : > { %v9122_v55 = vpop.eup %6761  ;;  %v1299_v18 = vmul.f32 1.442695, %v1221_v62  ;;  %v1301_v11 = vmul.f32 1.442695, %v1222_v43  ;;  %v9136_v62 = vpop.f32.mrf.mxu3 }
 0x481   : > { %12727 = vst [vmem:[#allocation120_spill] sm:$0xff] %v9122_v55  ;;  %v9126_v59 = vpop.eup %6763 }
 0x482   : > { %12728 = vst [vmem:[#allocation89_spill] sm:$0xff] %v9126_v59  ;;  %6765 = vpow2.f32 %v1299_v18  ;;  %v1395_v58 = vsel %vm1089_vm4, %v9126_v59, 0.0 }
 0x483   : > { %6767 = vpow2.f32 %v1301_v11  ;;  %6144 = vmatmul.msk.f32.gmra.mxu3 %vm779_vm2, %v12726_v2  ;;  %v1396_v13 = vadd.f32 %v9122_v55, %v1395_v58  ;;  %v1110_v2 = vsel %vm1089_vm4, %v9011_v12, -inf }
 0x485   : > { %1397 = vadd.xlane.f32.xlu2 %v1396_v13  ;;  %1108 = vmax.xlane.f32.xlu1 %v1107_v30  ;;  %v1153_v50 = vpop.xlane.xlu0 %1152  ;;  %v9154_v30 = vpop.f32.mrf.mxu2 }
 0x486   : > { %v1223_v43 = vsub.f32 %v8790_v41, %v1153_v50  ;;  %v1224_v18 = vsub.f32 %v8909_v3, %v1153_v50  ;;  %v1111_v41 = vmax.f32 %v8674_v42, %v1110_v2 }
 0x487   : > { %6179 = vmatmul.msk.f32.gmra.mxu2 %vm779_vm2, %v12729_v6 }
 0x488   : > { %v9142_v11 = vpop.eup %6765  ;;  %v1303_v58 = vmul.f32 1.442695, %v1223_v43  ;;  %v1305_v59 = vmul.f32 1.442695, %v1224_v18  ;;  %v9164_v2 = vpop.f32.mrf.mxu3 }
 0x489   : > { %12730 = vst [vmem:[#allocation96_spill] sm:$0xff] %v9142_v11  ;;  %v9146_v56 = vpop.eup %6767 }
 0x48a   : > { %12731 = vst [vmem:[#allocation93_spill] sm:$0xff] %v9146_v56  ;;  %6769 = vpow2.f32 %v1303_v58  ;;  %v1399_v13 = vsel %vm1089_vm4, %v9146_v56, 0.0  ;;  %v12732_v58 = vld [vmem:[#allocation150_spill] sm:$0xff] }
 0x48b   : > { %6771 = vpow2.f32 %v1305_v59  ;;  %6145 = vmatmul.msk.f32.gmra.mxu3 %vm779_vm2, %v12729_v6  ;;  %v1400_v3 = vadd.f32 %v9142_v11, %v1399_v13  ;;  %v1114_v6 = vsel %vm1089_vm4, %v9036_v15, -inf }
 0x48d   : > { %1112 = vmax.xlane.f32.xlu2 %v1111_v41  ;;  %1401 = vadd.xlane.f32.xlu0 %v1400_v3  ;;  %v1157_v50 = vpop.xlane.xlu1 %1156  ;;  %v1115_v41 = vmax.f32 %v8684_v24, %v1114_v6  ;;  %v2246_v6 = vsel %vm1089_vm4, %v9107_v46, -inf }
 0x48e   : > { %v1225_v43 = vsub.f32 %v8804_v22, %v1157_v50  ;;  %v1226_v18 = vsub.f32 %v8922_v26, %v1157_v50  ;;  %v9174_v50 = vpop.f32.mrf.mxu2 }
 0x48f   : > { %6180 = vmatmul.msk.f32.gmra.mxu2 %vm779_vm2, %v12732_v58  ;;  %12735 = vst [vmem:[#allocation73_spill] sm:$0xff] %v9174_v50 }
 0x490   : > { %v9160_v59 = vpop.eup %6769  ;;  %v1307_v13 = vmul.f32 1.442695, %v1225_v43  ;;  %v1309_v56 = vmul.f32 1.442695, %v1226_v18 }
 0x491   : > { %12733 = vst [vmem:[#allocation87_spill] sm:$0xff] %v9160_v59  ;;  %v9166_v11 = vpop.eup %6771 }
 0x492   : > { %12734 = vst [vmem:[#allocation81_spill] sm:$0xff] %v9166_v11  ;;  %6773 = vpow2.f32 %v1307_v13  ;;  %v1403_v22 = vsel %vm1089_vm4, %v9166_v11, 0.0 }
 0x493   : > { %6775 = vpow2.f32 %v1309_v56  ;;  %6146 = vmatmul.msk.f32.gmra.mxu3 %vm779_vm2, %v12732_v58  ;;  %v1404_v26 = vadd.f32 %v9160_v59, %v1403_v22  ;;  %v9186_v22 = vpop.f32.mrf.mxu3 }
 0x494   : > { %12738 = vst [vmem:[#allocation59_spill] sm:$0xff] %v9186_v22 }
 0x495   : > { %1405 = vadd.xlane.f32.xlu1 %v1404_v26  ;;  %1116 = vmax.xlane.f32.xlu0 %v1115_v41  ;;  %v1161_v3 = vpop.xlane.xlu2 %1160  ;;  %v2247_v26 = vmax.f32 %v9116_v39, %v2246_v6 }
 0x496   : > { %v1227_v43 = vsub.f32 %v8825_v27, %v1161_v3  ;;  %v1228_v18 = vsub.f32 %v8933_v33, %v1161_v3  ;;  %v2238_v33 = vsel %vm1089_vm4, %v9061_v10, -inf }
 0x497   : > { %6181 = vmatmul.msk.f32.gmra.mxu2 %vm779_vm2, %v8794_v17  ;;  %v2239_v3 = vmax.f32 %v9071_v53, %v2238_v33  ;;  %v2242_v33 = vsel %vm1089_vm4, %v9081_v44, -inf }
 0x498   : > { %v9180_v56 = vpop.eup %6773  ;;  %v1311_v13 = vmul.f32 1.442695, %v1227_v43  ;;  %v1313_v58 = vmul.f32 1.442695, %v1228_v18 }
 0x499   : > { %12736 = vst [vmem:[#allocation74_spill] sm:$0xff] %v9180_v56  ;;  %v9182_v11 = vpop.eup %6775 }
 0x49a   : > { %12737 = vst [vmem:[#allocation72_spill] sm:$0xff] %v9182_v11  ;;  %6777 = vpow2.f32 %v1311_v13  ;;  %v1407_v27 = vsel %vm1089_vm4, %v9182_v11, 0.0  ;;  %v12739_v11 = vld [vmem:[#allocation39_spill] sm:$0xff] }
 0x49b   : > { %6779 = vpow2.f32 %v1313_v58  ;;  %6147 = vmatmul.msk.f32.gmra.mxu3 %vm779_vm2, %v8794_v17  ;;  %v1408_v41 = vadd.f32 %v9180_v56, %v1407_v27  ;;  %v9203_v58 = vpop.f32.mrf.mxu2 }
 0x49d   : > { %1409 = vadd.xlane.f32.xlu2 %v1408_v41  ;;  %2248 = vmax.xlane.f32.xlu1 %v2247_v26  ;;  %v1165_v43 = vpop.xlane.xlu0 %1164  ;;  %v9215_v41 = vpop.f32.mrf.mxu3 }
 0x49e   : > { %2240 = vmax.xlane.f32.xlu0 %v2239_v3  ;;  %v1229_v18 = vsub.f32 %v8842_v14, %v1165_v43  ;;  %v1230_v13 = vsub.f32 %v8944_v54, %v1165_v43  ;;  %v2243_v54 = vmax.f32 %v9093_v40, %v2242_v33 }
 0x49f   : > { %6258 = vmatmul.msk.f32.vlgmr.msrb.gmra.mxu2 %vm779_vm2, %v12739_v11 }
 0x4a0   : > { %v9201_v6 = vpop.eup %6777  ;;  %v1315_v17 = vmul.f32 1.442695, %v1229_v18  ;;  %v1317_v59 = vmul.f32 1.442695, %v1230_v13  ;;  %v12742_v13 = vld [vmem:[#allocation52_spill] sm:$0xff] }
 0x4a1   : > { %12740 = vst [vmem:[#allocation61_spill] sm:$0xff] %v9201_v6  ;;  %v9205_v27 = vpop.eup %6779 }
 0x4a2   : > { %12741 = vst [vmem:[#allocation60_spill] sm:$0xff] %v9205_v27  ;;  %6781 = vpow2.f32 %v1315_v17  ;;  %v1411_v14 = vsel %vm1089_vm4, %v9205_v27, 0.0 }
 0x4a3   : > { %6783 = vpow2.f32 %v1317_v59  ;;  %6224 = vmatmul.msk.f32.vlgmr.msra.gmra.mxu3 %vm779_vm2, %v12739_v11  ;;  %v1412_v26 = vadd.f32 %v9201_v6, %v1411_v14  ;;  %v9225_v11 = vpop.f32.mrf.mxu2 }
 0x4a5   : > { %2244 = vmax.xlane.f32.xlu2 %v2243_v54  ;;  %v1169_v3 = vpop.xlane.xlu1 %1168 }
 0x4a6   : > { %1413 = vadd.xlane.f32.xlu0 %v1412_v26  ;;  %v1231_v43 = vsub.f32 %v8859_v1, %v1169_v3  ;;  %v1232_v18 = vsub.f32 %v8955_v61, %v1169_v3  ;;  %v2250_v1 = vsel %vm1089_vm4, %v9128_v38, -inf  ;;  %v9235_v3 = vpop.f32.mrf.mxu3 }
 0x4a7   : > { %6259 = vmatmul.msk.f32.gmra.mxu2 %vm779_vm2, %v12742_v13  ;;  %v2251_v54 = vmax.f32 %v9136_v62, %v2250_v1  ;;  %12745 = vst [vmem:[#allocation44_spill] sm:$0xff] %v9235_v3 }
 0x4a8   : > { %v9221_v17 = vpop.eup %6781  ;;  %v1319_v59 = vmul.f32 1.442695, %v1231_v43  ;;  %v1321_v33 = vmul.f32 1.442695, %v1232_v18 }
 0x4a9   : > { %12743 = vst [vmem:[#allocation45_spill] sm:$0xff] %v9221_v17  ;;  %v9223_v27 = vpop.eup %6783 }
 0x4aa   : > { %12744 = vst [vmem:[#allocation46_spill] sm:$0xff] %v9223_v27  ;;  %6785 = vpow2.f32 %v1319_v59  ;;  %v1415_v14 = vsel %vm1089_vm4, %v9223_v27, 0.0  ;;  %v12746_v59 = vld [vmem:[#allocation55_spill] sm:$0xff] }
 0x4ab   : > { %6787 = vpow2.f32 %v1321_v33  ;;  %6225 = vmatmul.msk.f32.gmra.mxu3 %vm779_vm2, %v12742_v13  ;;  %v1416_v61 = vadd.f32 %v9221_v17, %v1415_v14  ;;  %v2258_v14 = vsel %vm1089_vm4, %v9174_v50, -inf }
 0x4ad   : > { %1417 = vadd.xlane.f32.xlu1 %v1416_v61  ;;  %v1173_v26 = vpop.xlane.xlu2 %1172  ;;  %v9253_v61 = vpop.f32.mrf.mxu2 }
 0x4ae   : > { %2252 = vmax.xlane.f32.xlu0 %v2251_v54  ;;  %v1233_v43 = vsub.f32 %v8875_v0, %v1173_v26  ;;  %v1234_v18 = vsub.f32 %v8966_v49, %v1173_v26  ;;  %v2259_v0 = vmax.f32 %v9186_v22, %v2258_v14  ;;  %12749 = vst [vmem:[#allocation124_spill] sm:$0xff] %v9253_v61 }
 0x4af   : > { %6260 = vmatmul.msk.f32.gmra.mxu2 %vm779_vm2, %v12746_v59 }
 0x4b0   : > { %v9241_v33 = vpop.eup %6785  ;;  %v1323_v27 = vmul.f32 1.442695, %v1233_v43  ;;  %v1325_v13 = vmul.f32 1.442695, %v1234_v18  ;;  %v12750_v43 = vld [vmem:[#allocation94_spill] sm:$0xff] }
 0x4b1   : > { %12747 = vst [vmem:[#allocation38_spill] sm:$0xff] %v9241_v33  ;;  %v9243_v6 = vpop.eup %6787 }
 0x4b2   : > { %12748 = vst [vmem:[#allocation50_spill] sm:$0xff] %v9243_v6  ;;  %6789 = vpow2.f32 %v1323_v27  ;;  %v1419_v1 = vsel %vm1089_vm4, %v9243_v6, 0.0 }
 0x4b3   : > { %6791 = vpow2.f32 %v1325_v13  ;;  %6226 = vmatmul.msk.f32.gmra.mxu3 %vm779_vm2, %v12746_v59  ;;  %v1420_v49 = vadd.f32 %v9241_v33, %v1419_v1  ;;  %v9261_v13 = vpop.f32.mrf.mxu3  ;;  %v2254_v1 = vsel %vm1089_vm4, %v9154_v30, -inf }
 0x4b4   : > { %12752 = vst [vmem:[#allocation54_spill] sm:$0xff] %v9261_v13 }
 0x4b5   : > { %1421 = vadd.xlane.f32.xlu2 %v1420_v49  ;;  %2260 = vmax.xlane.f32.xlu1 %v2259_v0  ;;  %v1177_v54 = vpop.xlane.xlu0 %1176 }
 0x4b6   : > { %v1235_v26 = vsub.f32 %v8890_v37, %v1177_v54  ;;  %v1236_v27 = vsub.f32 %v8977_v28, %v1177_v54  ;;  %v2255_v28 = vmax.f32 %v9164_v2, %v2254_v1  ;;  %v9273_v54 = vpop.f32.mrf.mxu2 }
 0x4b7   : > { %6261 = vmatmul.msk.f32.gmra.mxu2 %vm779_vm2, %v12750_v43 }
 0x4b8   : > { %v9259_v18 = vpop.eup %6789  ;;  %v1327_v14 = vmul.f32 1.442695, %v1235_v26  ;;  %v1329_v59 = vmul.f32 1.442695, %v1236_v27 }
 0x4b9   : > { %12751 = vst [vmem:[#allocation110_spill] sm:$0xff] %v9259_v18  ;;  %v9263_v6 = vpop.eup %6791 }
 0x4ba   : > { %12753 = vst [vmem:[#allocation112_spill] sm:$0xff] %v9263_v6  ;;  %6793 = vpow2.f32 %v1327_v14  ;;  %v1423_v37 = vsel %vm1089_vm4, %v9263_v6, 0.0  ;;  %v12754_v14 = vld [vmem:[#allocation105_spill] sm:$0xff] }
 0x4bb   : > { %6795 = vpow2.f32 %v1329_v59  ;;  %6227 = vmatmul.msk.f32.gmra.mxu3 %vm779_vm2, %v12750_v43  ;;  %v1424_v0 = vadd.f32 %v9259_v18, %v1423_v37  ;;  %v2262_v43 = vsel %vm1089_vm4, %v9203_v58, -inf  ;;  %v9285_v37 = vpop.f32.mrf.mxu3 }
 0x4bd   : > { %2256 = vmax.xlane.f32.xlu2 %v2255_v28  ;;  %1425 = vadd.xlane.f32.xlu0 %v1424_v0  ;;  %v1181_v49 = vpop.xlane.xlu1 %1180 }
 0x4be   : > { %v1237_v26 = vsub.f32 %v8903_v8, %v1181_v49  ;;  %v1238_v27 = vsub.f32 %v8991_v19, %v1181_v49  ;;  %v2263_v19 = vmax.f32 %v9215_v41, %v2262_v43 }
 0x4bf   : > { %6262 = vmatmul.msk.f32.gmra.mxu2 %vm779_vm2, %v12754_v14 }
 0x4c0   : > { %v9279_v6 = vpop.eup %6793  ;;  %v1331_v59 = vmul.f32 1.442695, %v1237_v26  ;;  %v1333_v1 = vmul.f32 1.442695, %v1238_v27  ;;  %v12757_v27 = vld [vmem:[#allocation99_spill] sm:$0xff] }
 0x4c1   : > { %12755 = vst [vmem:[#allocation113_spill] sm:$0xff] %v9279_v6  ;;  %v9281_v33 = vpop.eup %6795 }
 0x4c2   : > { %12756 = vst [vmem:[#allocation47_spill] sm:$0xff] %v9281_v33  ;;  %6797 = vpow2.f32 %v1331_v59  ;;  %v1427_v8 = vsel %vm1089_vm4, %v9281_v33, 0.0  ;;  %v9299_v33 = vpop.f32.mrf.mxu2 }
 0x4c3   : > { %6799 = vpow2.f32 %v1333_v1  ;;  %6228 = vmatmul.msk.f32.gmra.mxu3 %vm779_vm2, %v12754_v14  ;;  %v1428_v28 = vadd.f32 %v9279_v6, %v1427_v8  ;;  %12759 = vst [vmem:[#allocation65_spill] sm:$0xff] %v9299_v33  ;;  %v2270_v8 = vsel %vm1089_vm4, %v9253_v61, -inf }
 0x4c5   : > { %1429 = vadd.xlane.f32.xlu1 %v1428_v28  ;;  %2264 = vmax.xlane.f32.xlu0 %v2263_v19  ;;  %v1185_v0 = vpop.xlane.xlu2 %1184  ;;  %v9311_v28 = vpop.f32.mrf.mxu3 }
 0x4c6   : > { %v1239_v49 = vsub.f32 %v8917_v34, %v1185_v0  ;;  %v1240_v26 = vsub.f32 %v9004_v16, %v1185_v0  ;;  %v2271_v34 = vmax.f32 %v9261_v13, %v2270_v8  ;;  %12761 = vst [vmem:[#allocation67_spill] sm:$0xff] %v9311_v28  ;;  %v1093_v0 = vpop.xlane.xlu1 %1092  ;;  %v12763_v8 = vld [vmem:[#allocation100_spill] sm:$0xff] }
 0x4c7   : > { %6263 = vmatmul.msk.f32.gmra.mxu2 %vm779_vm2, %v12757_v27  ;;  %v1193_v18 = vsub.f32 %v8616_v25, %v1093_v0 }
 0x4c8   : > { %v9297_v59 = vpop.eup %6797  ;;  %v1335_v1 = vmul.f32 1.442695, %v1239_v49  ;;  %v1337_v14 = vmul.f32 1.442695, %v1240_v26 }
 0x4c9   : > { %12758 = vst [vmem:[#allocation116_spill] sm:$0xff] %v9297_v59  ;;  %v9301_v43 = vpop.eup %6799 }
 0x4ca   : > { %12760 = vst [vmem:[#allocation121_spill] sm:$0xff] %v9301_v43  ;;  %v1431_v19 = vsel %vm1089_vm4, %v9301_v43, 0.0  ;;  %6801 = vpow2.f32 %v1335_v1 }
 0x4cb   : > { %6229 = vmatmul.msk.f32.gmra.mxu3 %vm779_vm2, %v12757_v27  ;;  %v1432_v16 = vadd.f32 %v9297_v59, %v1431_v19  ;;  %6803 = vpow2.f32 %v1337_v14  ;;  %v1194_v27 = vsub.f32 %v8940_v47, %v1093_v0  ;;  %v2266_v14 = vsel %vm1089_vm4, %v9225_v11, -inf }
 0x4cc   : > { %v1243_v47 = vmul.f32 1.442695, %v1193_v18 }
 0x4cd   : > { %1433 = vadd.xlane.f32.xlu2 %v1432_v16  ;;  %2272 = vmax.xlane.f32.xlu1 %v2271_v34  ;;  %v1192_v49 = vpop.xlane.xlu0 %1191  ;;  %v9313_v26 = vpop.xlane.xlu2 %1373  ;;  %v1245_v16 = vmul.f32 1.442695, %v1194_v27 }
 0x4ce   : > { %12762 = vst [vmem:[#allocation115_spill] sm:$0xff] %v9313_v26  ;;  %v1241_v6 = vsub.f32 %v8929_v63, %v1192_v49  ;;  %v1242_v43 = vsub.f32 %v9025_v35, %v1192_v49  ;;  %v9325_v34 = vpop.f32.mrf.mxu2  ;;  %v2267_v35 = vmax.f32 %v9235_v3, %v2266_v14  ;;  %v9339_v27 = vpop.f32.mrf.mxu3  ;;  %v12821_v26 = vld [vmem:[#allocation126_spill] sm:$0xff]  ;;  %v12838_v3 = vld [vmem:[#allocation48_spill] sm:$0xff] }
 0x4cf   : > { %6264 = vmatmul.msk.f32.gmra.mxu2 %vm779_vm2, %v12763_v8  ;;  %12765 = vst [vmem:[#allocation76_spill] sm:$0xff] %v9325_v34 }
 0x4d0   : > { %v1339_v19 = vmul.f32 1.442695, %v1241_v6  ;;  %v1341_v59 = vmul.f32 1.442695, %v1242_v43  ;;  %v9321_v1 = vpop.eup %6801  ;;  %12768 = vst [vmem:[#allocation77_spill] sm:$0xff] %v9339_v27 }
 0x4d1   : > { %12764 = vst [vmem:[#allocation62_spill] sm:$0xff] %v9321_v1  ;;  %v9327_v63 = vpop.eup %6803 }
 0x4d2   : > { %6805 = vpow2.f32 %v1339_v19  ;;  %12766 = vst [vmem:[#allocation78_spill] sm:$0xff] %v9327_v63  ;;  %v1435_v25 = vsel %vm1089_vm4, %v9327_v63, 0.0  ;;  %v12767_v19 = vld [vmem:[#allocation114_spill] sm:$0xff] }
 0x4d3   : > { %6807 = vpow2.f32 %v1341_v59  ;;  %6230 = vmatmul.msk.f32.gmra.mxu3 %vm779_vm2, %v12763_v8  ;;  %v1436_v6 = vadd.f32 %v9321_v1, %v1435_v25  ;;  %v12783_v1 = vld [vmem:[#allocation107_spill] sm:$0xff] }
 0x4d4   : > { %6809 = vpow2.f32 %v1245_v16 }
 0x4d5   : > { %2268 = vmax.xlane.f32.xlu2 %v2267_v35  ;;  %v1097_v43 = vpop.xlane.xlu2 %1096  ;;  %1437 = vadd.xlane.f32.xlu0 %v1436_v6  ;;  %6811 = vpow2.f32 %v1243_v47  ;;  %v2274_v47 = vsel %vm1089_vm4, %v9273_v54, -inf }
 0x4d6   : > { %v1195_v0 = vsub.f32 %v8630_v57, %v1097_v43  ;;  %v1196_v49 = vsub.f32 %v8951_v52, %v1097_v43  ;;  %v2278_v52 = vsel %vm1089_vm4, %v9299_v33, -inf  ;;  %v9356_v6 = vpop.f32.mrf.mxu2 }
 0x4d7   : > { %6265 = vmatmul.msk.f32.gmra.mxu2 %vm779_vm2, %v12767_v19  ;;  %v2279_v16 = vmax.f32 %v9311_v28, %v2278_v52  ;;  %v9371_v52 = vpop.f32.mrf.mxu3 }
 0x4d8   : > { %v9341_v59 = vpop.eup %6805  ;;  %v1247_v8 = vmul.f32 1.442695, %v1195_v0  ;;  %v1249_v14 = vmul.f32 1.442695, %v1196_v49  ;;  %v2275_v0 = vmax.f32 %v9285_v37, %v2274_v47  ;;  %v12771_v49 = vld [vmem:[#allocation119_spill] sm:$0xff]  ;;  %v9417_v56 = vpop.xlane.xlu1 %1381 }
 0x4d9   : > { %12769 = vst [vmem:[#allocation88_spill] sm:$0xff] %v9341_v59  ;;  %v9343_v18 = vpop.eup %6807  ;;  %v1439_v35 = vsel %vm1186_vm3, %v9341_v59, 0.0  ;;  %v12775_v59 = vld [vmem:[#allocation123_spill] sm:$0xff] }
 0x4da   : > { %12770 = vst [vmem:[#allocation91_spill] sm:$0xff] %v9343_v18  ;;  %6813 = vpow2.f32 %v1247_v8  ;;  %v1440_v57 = vsel %vm1188_vm5, %v9343_v18, 0.0  ;;  %v9358_v43 = vpop.eup %6809 }
 0x4db   : > { %6815 = vpow2.f32 %v1249_v14  ;;  %6231 = vmatmul.msk.f32.gmra.mxu3 %vm779_vm2, %v12767_v19  ;;  %v1441_v25 = vadd.f32 %v1440_v57, %v1439_v35  ;;  %v9363_v8 = vpop.eup %6811  ;;  %v1343_v19 = vsel %vm1089_vm4, %v9358_v43, 0.0  ;;  %12784 = vst [vmem:[#allocation146_spill] sm:$0xff] %v9417_v56 }
 0x4dd   : > { %1442 = vadd.xlane.f32.xlu1 %v1441_v25  ;;  %2280 = vmax.xlane.f32.xlu2 %v2279_v16  ;;  %v1344_v16 = vadd.f32 %v9363_v8, %v1343_v19  ;;  %v12777_v19 = vld [vmem:[#allocation90_spill] sm:$0xff] }
 0x4de   : > { %2276 = vmax.xlane.f32.xlu0 %v2275_v0  ;;  %v9379_v47 = vpop.f32.mrf.mxu2  ;;  %v12773_v0 = vld [vmem:[#allocation103_spill] sm:$0xff] }
 0x4df   : > { %6266 = vmatmul.msk.f32.gmra.mxu2 %vm779_vm2, %v12771_v49  ;;  %12772 = vst [vmem:[#allocation85_spill] sm:$0xff] %v9379_v47  ;;  %v9383_v18 = vpop.f32.mrf.mxu3 }
 0x4e0   : > { %v9365_v14 = vpop.eup %6813  ;;  %12774 = vst [vmem:[#allocation102_spill] sm:$0xff] %v9383_v18  ;;  %v9401_v63 = vpop.xlane.xlu2 %1385 }
 0x4e1   : > { %v9369_v35 = vpop.eup %6815  ;;  %12781 = vst [vmem:[#allocation145_spill] sm:$0xff] %v9401_v63 }
 0x4e2   : > { %v1347_v57 = vsel %vm1089_vm4, %v9369_v35, 0.0 }
 0x4e3   : > { %6232 = vmatmul.msk.f32.gmra.mxu3 %vm779_vm2, %v12771_v49  ;;  %v1348_v25 = vadd.f32 %v9365_v14, %v1347_v57 }
 0x4e5   : > { %1345 = vadd.xlane.f32.xlu1 %v1344_v16  ;;  %1349 = vadd.xlane.f32.xlu2 %v1348_v25  ;;  %v12779_v16 = vld [vmem:[#allocation109_spill] sm:$0xff]  ;;  %v9399_v25 = vpop.xlane.xlu0 %1377 }
 0x4e6   : > { %v9389_v49 = vpop.f32.mrf.mxu2  ;;  %12780 = vst [vmem:[#allocation142_spill] sm:$0xff] %v9399_v25 }
 0x4e7   : > { %6267 = vmatmul.msk.f32.gmra.mxu2 %vm779_vm2, %v12773_v0  ;;  %12776 = vst [vmem:[#allocation132_spill] sm:$0xff] %v9389_v49  ;;  %v9395_v57 = vpop.f32.mrf.mxu3 }
 0x4e8   : > { %12778 = vst [vmem:[#allocation131_spill] sm:$0xff] %v9395_v57  ;;  %v1105_v5 = vpop.xlane.xlu2 %1104 }
 0x4eb   : > { %6233 = vmatmul.msk.f32.gmra.mxu3 %vm779_vm2, %v12773_v0 }
 0x4ed   : > { %v1101_v55 = vpop.xlane.xlu0 %1100 }
 0x4ee   : > { %v9403_v0 = vpop.f32.mrf.mxu2  ;;  %v1197_v32 = vsub.f32 %v8644_v31, %v1101_v55 }
 0x4ef   : > { %6268 = vmatmul.msk.f32.gmra.mxu2 %vm779_vm2, %v12775_v59  ;;  %v9415_v17 = vpop.f32.mrf.mxu3 }
 0x4f2   : > { %4228 = vrot.lane.b32.xlu0 %v12777_v19, %s7352_s10 }
 0x4f3   : > { %6234 = vmatmul.msk.f32.gmra.mxu3 %vm779_vm2, %v12775_v59  ;;  %v12782_v59 = vld [vmem:[#allocation19_spill] sm:$0xff] }
 0x4f5   : > { %v9431_v13 = vpop.xlane.xlu0 %1389 }
 0x4f6   : > { %12787 = vst [vmem:[#allocation150_spill] sm:$0xff] %v9431_v13  ;;  %v12791_v13 = vld [vmem:[#allocation134_spill] sm:$0xff] }
 0x4f7   : > { %6269 = vmatmul.msk.f32.gmra.mxu2 %vm779_vm2, %v12779_v16  ;;  %v9429_v60 = vpop.f32.mrf.mxu3 }
 0x4f8   : > { %v9433_v61 = vpop.xlane.xlu2 %1397 }
 0x4f9   : > { %12788 = vst [vmem:[#allocation39_spill] sm:$0xff] %v9433_v61 }
 0x4fa   : > { %4148 = vrot.lane.b32.xlu0 %v7664_v51, %s7353_s11  ;;  %v9423_v51 = vpop.f32.mrf.mxu2 }
 0x4fb   : > { %6235 = vmatmul.msk.f32.gmra.mxu3 %vm779_vm2, %v12779_v16  ;;  %v12785_v16 = vld [vmem:[#allocation127_spill] sm:$0xff] }
 0x4fd   : > { %4196 = vrot.lane.b32.xlu2 %v12782_v59, %s7352_s10 }
 0x4fe   : > { %4146 = vrot.lane.b32.xlu1 %v7618_v21, %s7353_s11  ;;  %v9427_v21 = vpop.xlane.xlu1 %1393 }
 0x4ff   : > { %6270 = vmatmul.msk.f32.gmra.mxu2 %vm779_vm2, %v12783_v1  ;;  %12786 = vst [vmem:[#allocation149_spill] sm:$0xff] %v9427_v21  ;;  %v9443_v63 = vpop.f32.mrf.mxu3 }
 0x500   : > { %v9447_v21 = vpop.xlane.xlu2 %1112 }
 0x502   : > { %4150 = vrot.lane.b32.xlu0 %v7692_v9, %s7353_s11  ;;  %v9437_v9 = vpop.f32.mrf.mxu2 }
 0x503   : > { %6236 = vmatmul.msk.f32.gmra.mxu3 %vm779_vm2, %v12783_v1  ;;  %v9441_v1 = vpop.xlane.xlu0 %1401 }
 0x504   : > { %12790 = vst [vmem:[#allocation52_spill] sm:$0xff] %v9441_v1  ;;  %v1200_v1 = vsub.f32 %v8975_v29, %v1105_v5  ;;  %v12796_v29 = vld [vmem:[#allocation138_spill] sm:$0xff] }
 0x506   : > { %v1109_v22 = vpop.xlane.xlu1 %1108  ;;  %v1257_v31 = vmul.f32 1.442695, %v1200_v1 }
 0x507   : > { %6271 = vmatmul.msk.f32.gmra.mxu2 %vm779_vm2, %v12785_v16  ;;  %v1202_v50 = vsub.f32 %v8988_v36, %v1109_v22  ;;  %v1199_v36 = vsub.f32 %v8654_v20, %v1105_v5  ;;  %v9467_v25 = vpop.f32.mrf.mxu3 }
 0x508   : > { %12795 = vst [vmem:[#allocation99_spill] sm:$0xff] %v9467_v25 }
 0x509   : > { %v1261_v39 = vmul.f32 1.442695, %v1202_v50  ;;  %v2290_v50 = vsel %vm1089_vm4, %v9379_v47, -inf }
 0x50a   : > { %v9452_v61 = vpop.f32.mrf.mxu2  ;;  %v2291_v20 = vmax.f32 %v9383_v18, %v2290_v50  ;;  %v2286_v18 = vsel %vm1089_vm4, %v9356_v6, -inf }
 0x50b   : > { %6237 = vmatmul.msk.f32.gmra.mxu3 %vm779_vm2, %v12785_v16  ;;  %v1198_v16 = vsub.f32 %v8962_v7, %v1101_v55  ;;  %12792 = vst [vmem:[#allocation55_spill] sm:$0xff] %v9452_v61  ;;  %v9460_v23 = vpop.xlane.xlu0 %1116  ;;  %v1251_v61 = vmul.f32 1.442695, %v1197_v32 }
 0x50d   : > { %v1253_v56 = vmul.f32 1.442695, %v1198_v16  ;;  %v12798_v16 = vld [vmem:[#allocation139_spill] sm:$0xff] }
 0x50e   : > { %v9457_v48 = vpop.xlane.xlu1 %1405 }
 0x50f   : > { %6272 = vmatmul.msk.f32.gmra.mxu2 %vm779_vm2, %v12789_v4  ;;  %12793 = vst [vmem:[#allocation94_spill] sm:$0xff] %v9457_v48  ;;  %6817 = vpow2.f32 %v1253_v56  ;;  %v12801_v48 = vld [vmem:[#allocation141_spill] sm:$0xff] }
 0x510   : > { %v9464_v7 = vpop.xlane.xlu2 %1409  ;;  %6819 = vpow2.f32 %v1261_v39  ;;  %v2282_v39 = vsel %vm1089_vm4, %v9325_v34, -inf }
 0x511   : > { %12794 = vst [vmem:[#allocation105_spill] sm:$0xff] %v9464_v7  ;;  %6821 = vpow2.f32 %v1251_v61 }
 0x512   : > { %6823 = vpow2.f32 %v1257_v31 }
 0x513   : > { %6238 = vmatmul.msk.f32.gmra.mxu3 %vm779_vm2, %v12789_v4  ;;  %v1201_v4 = vsub.f32 %v8664_v45, %v1109_v22  ;;  %v1255_v45 = vmul.f32 1.442695, %v1199_v36  ;;  %v9471_v22 = vpop.f32.mrf.mxu2  ;;  %v9484_v56 = vpop.xlane.xlu0 %2240 }
 0x514   : > { %v9495_v36 = vpop.f32.mrf.mxu3 }
 0x515   : > { %v1259_v55 = vmul.f32 1.442695, %v1201_v4  ;;  %v9480_v5 = vpop.eup %6817 }
 0x516   : > { %v9478_v32 = vpop.xlane.xlu1 %2248  ;;  %v9486_v61 = vpop.eup %6819 }
 0x517   : > { %6273 = vmatmul.msk.f32.gmra.mxu2 %vm779_vm2, %v12791_v13  ;;  %6825 = vpow2.f32 %v1259_v55  ;;  %12797 = vst [vmem:[#allocation100_spill] sm:$0xff] %v9478_v32  ;;  %v9493_v4 = vpop.eup %6821  ;;  %v12814_v32 = vld [vmem:[#allocation34_spill] sm:$0xff] }
 0x518   : > { %6827 = vpow2.f32 %v1255_v45  ;;  %v9489_v1 = vpop.xlane.xlu2 %2244  ;;  %v9497_v31 = vpop.eup %6823  ;;  %v1359_v45 = vsel %vm1089_vm4, %v9486_v61, 0.0 }
 0x51b   : > { %6239 = vmatmul.msk.f32.gmra.mxu3 %vm779_vm2, %v12791_v13  ;;  %v2283_v13 = vmax.f32 %v9339_v27, %v2282_v39  ;;  %v1355_v39 = vsel %vm1089_vm4, %v9497_v31, 0.0  ;;  %v9512_v27 = vpop.f32.mrf.mxu2  ;;  %v9522_v25 = vpop.xlane.xlu0 %1413 }
 0x51c   : > { %12802 = vst [vmem:[#allocation103_spill] sm:$0xff] %v9522_v25 }
 0x51d   : > { %v9501_v55 = vpop.eup %6825 }
 0x51e   : > { %v9505_v50 = vpop.eup %6827  ;;  %v1360_v34 = vadd.f32 %v9501_v55, %v1359_v45 }
 0x51f   : > { %6274 = vmatmul.msk.f32.gmra.mxu2 %vm779_vm2, %v12796_v29 }
 0x523   : > { %6240 = vmatmul.msk.f32.gmra.mxu3 %vm779_vm2, %v12796_v29  ;;  %v1351_v29 = vsel %vm1089_vm4, %v9480_v5, 0.0 }
 0x526   : > { %2292 = vmax.xlane.f32.xlu2 %v2291_v20  ;;  %v1352_v20 = vadd.f32 %v9493_v4, %v1351_v29  ;;  %v1356_v29 = vadd.f32 %v9505_v50, %v1355_v39 }
 0x527   : > { %6275 = vmatmul.msk.f32.gmra.mxu2 %vm779_vm2, %v12798_v16 }
 0x528   : > { %2284 = vmax.xlane.f32.xlu1 %v2283_v13  ;;  %v9514_v13 = vpop.xlane.xlu1 %1417  ;;  %v9517_v7 = vpop.xlane.xlu2 %1421 }
 0x529   : > { %12799 = vst [vmem:[#allocation114_spill] sm:$0xff] %v9514_v13  ;;  %v2287_v13 = vmax.f32 %v9371_v52, %v2286_v18 }
 0x52a   : > { %12800 = vst [vmem:[#allocation119_spill] sm:$0xff] %v9517_v7 }
 0x52b   : > { %6241 = vmatmul.msk.f32.gmra.mxu3 %vm779_vm2, %v12798_v16  ;;  %v9524_v16 = vpop.f32.mrf.mxu3 }
 0x52c   : > { %1353 = vadd.xlane.f32.xlu0 %v1352_v20  ;;  %v12805_v20 = vld [vmem:[#allocation144_spill] sm:$0xff] }
 0x52e   : > { %1361 = vadd.xlane.f32.xlu2 %v1360_v34  ;;  %v9531_v34 = vpop.f32.mrf.mxu2 }
 0x52f   : > { %6276 = vmatmul.msk.f32.gmra.mxu2 %vm779_vm2, %v12801_v48  ;;  %12803 = vst [vmem:[#allocation123_spill] sm:$0xff] %v9531_v34 }
 0x530   : > { %1357 = vadd.xlane.f32.xlu1 %v1356_v29  ;;  %v9533_v45 = vpop.xlane.xlu1 %2260  ;;  %v9537_v39 = vpop.xlane.xlu2 %2256 }
 0x531   : > { %12804 = vst [vmem:[#allocation90_spill] sm:$0xff] %v9533_v45  ;;  %v9539_v29 = vpop.xlane.xlu0 %2252 }
 0x533   : > { %6242 = vmatmul.msk.f32.gmra.mxu3 %vm779_vm2, %v12801_v48  ;;  %v9541_v7 = vpop.f32.mrf.mxu3  ;;  %v12808_v48 = vld [vmem:[#allocation143_spill] sm:$0xff] }
 0x534   : > { %2288 = vmax.xlane.f32.xlu0 %v2287_v13  ;;  %12806 = vst [vmem:[#allocation109_spill] sm:$0xff] %v9541_v7  ;;  %v12811_v7 = vld [vmem:[#allocation28_spill] sm:$0xff] }
 0x536   : > { %v9549_v13 = vpop.f32.mrf.mxu2 }
 0x537   : > { %6277 = vmatmul.msk.f32.gmra.mxu2 %vm779_vm2, %v12805_v20 }
 0x538   : > { %v9545_v18 = vpop.xlane.xlu1 %1429 }
 0x539   : > { %12807 = vst [vmem:[#allocation19_spill] sm:$0xff] %v9545_v18  ;;  %v9553_v34 = vpop.xlane.xlu0 %1425 }
 0x53a   : > { %12810 = vst [vmem:[#allocation127_spill] sm:$0xff] %v9553_v34 }
 0x53b   : > { %6243 = vmatmul.msk.f32.gmra.mxu3 %vm779_vm2, %v12805_v20  ;;  %v9557_v45 = vpop.f32.mrf.mxu3  ;;  %v12812_v20 = vld [vmem:[#allocation147_spill] sm:$0xff] }
 0x53e   : > { %v9571_v34 = vpop.f32.mrf.mxu2 }
 0x53f   : > { %6278 = vmatmul.msk.f32.gmra.mxu2 %vm779_vm2, %v12808_v48  ;;  %12816 = vst [vmem:[#allocation134_spill] sm:$0xff] %v9571_v34  ;;  %v12825_v34 = vld [vmem:[#allocation36_spill] sm:$0xff] }
 0x540   : > { %v9551_v25 = vpop.xlane.xlu2 %1433  ;;  %v9563_v18 = vpop.xlane.xlu1 %2272 }
 0x541   : > { %12809 = vst [vmem:[#allocation107_spill] sm:$0xff] %v9551_v25  ;;  %v12815_v25 = vld [vmem:[#allocation33_spill] sm:$0xff] }
 0x542   : > { %12813 = vst [vmem:[#allocation128_spill] sm:$0xff] %v9563_v18  ;;  %v12818_v18 = vld [vmem:[#allocation148_spill] sm:$0xff] }
 0x543   : > { %6244 = vmatmul.msk.f32.gmra.mxu3 %vm779_vm2, %v12808_v48  ;;  %v9573_v48 = vpop.xlane.xlu0 %2264  ;;  %v9581_v47 = vpop.f32.mrf.mxu3 }
 0x544   : > { %12819 = vst [vmem:[#allocation138_spill] sm:$0xff] %v9581_v47 }
 0x546   : > { %4152 = vrot.lane.b32.xlu2 %v12811_v7, %s7353_s11  ;;  %v12817_v7 = vld [vmem:[#allocation86_spill] sm:$0xff] }
 0x547   : > { %6279 = vmatmul.msk.f32.gmra.mxu2 %vm779_vm2, %v12812_v20 }
 0x548   : > { %v9565_v46 = vpop.xlane.xlu2 %2268  ;;  %4156 = vrot.lane.b32.xlu0 %v12814_v32, %s7353_s11  ;;  %v12820_v32 = vld [vmem:[#allocation32_spill] sm:$0xff] }
 0x549   : > { %4154 = vrot.lane.b32.xlu1 %v12815_v25, %s7353_s11  ;;  %v9585_v28 = vpack.i.bf16 %v12821_v26, %v12820_v32  ;;  %v12828_v26 = vld [vmem:[#allocation68_spill] sm:$0xff]  ;;  %v12829_v32 = vld [vmem:[#allocation151_spill] sm:$0xff] }
 0x54b   : > { %6245 = vmatmul.msk.f32.gmra.mxu3 %vm779_vm2, %v12812_v20  ;;  %12822 = vst [vmem:[#allocation139_spill] sm:$0xff] %v9585_v28  ;;  %v9595_v20 = vpop.xlane.xlu0 %1437 }
 0x54c   : > { %12826 = vst [vmem:[#allocation143_spill] sm:$0xff] %v9595_v20  ;;  %v12832_v20 = vld [vmem:[#allocation137_spill] sm:$0xff] }
 0x54e   : > { %6615 = vrot.lane.b32.xlu2 %v12817_v7, %s7354_s12  ;;  %v9599_v7 = vpop.f32.mrf.mxu2 }
 0x54f   : > { %6280 = vmatmul.msk.f32.gmra.mxu2 %vm779_vm2, %v12818_v18  ;;  %12827 = vst [vmem:[#allocation28_spill] sm:$0xff] %v9599_v7 }
 0x550   : > { %v9587_v25 = vpop.xlane.xlu1 %1442  ;;  %v9589_v33 = vpop.xlane.xlu2 %2280  ;;  %4158 = vrot.lane.b32.xlu0 %v12825_v34, %s7353_s11 }
 0x551   : > { %12823 = vst [vmem:[#allocation141_spill] sm:$0xff] %v9587_v25  ;;  %6645 = vrot.lane.b32.xlu1 %v9585_v28, %s7354_s12  ;;  %v9607_v25 = vpack.i.bf16 %v12777_v19, %v12782_v59  ;;  %v9609_v28 = vpop.f32.mrf.mxu3  ;;  %v12833_v19 = vld [vmem:[#allocation66_spill] sm:$0xff]  ;;  %v12834_v59 = vld [vmem:[#allocation125_spill] sm:$0xff] }
 0x552   : > { %12824 = vst [vmem:[#allocation144_spill] sm:$0xff] %v9589_v33 }
 0x553   : > { %6246 = vmatmul.msk.f32.gmra.mxu3 %vm779_vm2, %v12818_v18  ;;  %12830 = vst [vmem:[#allocation147_spill] sm:$0xff] %v9607_v25  ;;  %v9617_v18 = vpop.xlane.xlu0 %2276 }
 0x554   : > { %12831 = vst [vmem:[#allocation34_spill] sm:$0xff] %v9609_v28 }
 0x556   : > { %6620 = vrot.lane.b32.xlu2 %v12828_v26, %s7354_s12  ;;  %v9619_v26 = vpop.f32.mrf.mxu2 }
 0x557   : > { %6281 = vmatmul.msk.f32.gmra.mxu2 %vm779_vm2, %v12829_v32 }
 0x558   : > { %v1346_v34 = vpop.xlane.xlu1 %1345  ;;  %v1350_v33 = vpop.xlane.xlu2 %1349  ;;  %3859 = vrot.lane.b32.xlu0 %v12832_v20, %s7354_s12  ;;  %v12835_v20 = vld [vmem:[#allocation37_spill] sm:$0xff] }
 0x559   : > { %6829 = vrcp.f32 %v1346_v34  ;;  %6670 = vrot.lane.b32.xlu1 %v9607_v25, %s7354_s12  ;;  %v12836_v34 = vld [vmem:[#allocation135_spill] sm:$0xff] }
 0x55a   : > { %6831 = vrcp.f32 %v1350_v33  ;;  %v9627_v28 = vpack.i.bf16 %v12836_v34, %v12835_v20  ;;  %v12842_v20 = vld [vmem:[#allocation130_spill] sm:$0xff]  ;;  %v12845_v34 = vld [vmem:[#allocation117_spill] sm:$0xff] }
 0x55b   : > { %6247 = vmatmul.msk.f32.gmra.mxu3 %vm779_vm2, %v12829_v32 }
 0x55c   : > { %12837 = vst [vmem:[#allocation33_spill] sm:$0xff] %v9627_v28 }
 0x55e   : > { %6625 = vrot.lane.b32.xlu2 %v12833_v19, %s7354_s12  ;;  %v9636_v19 = vpop.f32.mrf.mxu3 }
 0x55f   : > { %6282 = vmatmul.msk.f32.gmra.mxu2 %vm779_vm2, %v12834_v59  ;;  %v6830_v7 = vpop.eup %6829  ;;  %12839 = vst [vmem:[#allocation148_spill] sm:$0xff] %v9636_v19 }
 0x560   : > { %v1470_v25 = vmul.f32 %v6830_v7, %v9358_v43  ;;  %v4197_v47 = vpop.permute.xlu2 %4196  ;;  %v1469_v32 = vmul.f32 %v6830_v7, %v9363_v8  ;;  %6635 = vrot.lane.b32.xlu0 %v9627_v28, %s7354_s12  ;;  %v6832_v33 = vpop.eup %6831  ;;  %v12840_v8 = vld [vmem:[#allocation71_spill] sm:$0xff] }
 0x561   : > { %4164 = vrot.lane.b32.xlu1 %v12838_v3, %s7353_s11  ;;  %6324 = vmatpush.xpose.msk.msrb.mxu3 %vm779_vm2, %v4197_v47  ;;  %v12841_v7 = vld [vmem:[#allocation35_spill] sm:$0xff]  ;;  %v1471_v47 = vmul.f32 %v6832_v33, %v9365_v14  ;;  %v9659_v28 = vpop.f32.mrf.mxu2 }
 0x562   : > { %1686 = vmatmul.f32.vlgmr.msrb.gmra.mxu0 %v1469_v32  ;;  %6082 = vmatmul.msk.f32.vlgmr.msrb.gmra.mxu1 %vm1089_vm4, %v1470_v25  ;;  %v9646_v3 = vpack.i.bf16 %v12842_v20, %v12841_v7  ;;  %v1472_v25 = vmul.f32 %v6832_v33, %v9369_v35  ;;  %v12847_v7 = vld [vmem:[#allocation40_spill] sm:$0xff]  ;;  %v12848_v35 = vld [vmem:[#allocation26_spill] sm:$0xff]  ;;  %v12849_v33 = vld [vmem:[#allocation111_spill] sm:$0xff] }
 0x563   : > { %6248 = vmatmul.msk.f32.gmra.mxu3 %vm779_vm2, %v12834_v59  ;;  %v12844_v59 = vld [vmem:[#allocation30_spill] sm:$0xff]  ;;  %v9669_v20 = vpack.i.bf16 %v12849_v33, %v12848_v35  ;;  %v1205_v35 = vsub.f32 %v8684_v24, %v9460_v23  ;;  %v2294_v24 = vsel %vm1089_vm4, %v9389_v49, -inf }
 0x564   : > { %v4229_v43 = vpop.permute.xlu0 %4228  ;;  %12843 = vst [vmem:[#allocation32_spill] sm:$0xff] %v9646_v3  ;;  %v9655_v32 = vpack.i.bf16 %v12845_v34, %v12844_v59  ;;  %v12852_v59 = vld [vmem:[#allocation24_spill] sm:$0xff]  ;;  %v12853_v34 = vld [vmem:[#allocation106_spill] sm:$0xff] }
 0x565   : > { %6358 = vmatpush.xpose.msk.msra.mxu2 %vm779_vm2, %v4229_v43  ;;  %12850 = vst [vmem:[#allocation36_spill] sm:$0xff] %v9669_v20 }
 0x566   : > { %6630 = vrot.lane.b32.xlu2 %v12840_v8, %s7354_s12  ;;  %12846 = vst [vmem:[#allocation126_spill] sm:$0xff] %v9655_v32  ;;  %v9657_v43 = vpop.f32.mrf.mxu3  ;;  %v12860_v8 = vld [vmem:[#allocation97_spill] sm:$0xff] }
 0x568   : > { %6640 = vrot.lane.b32.xlu0 %v9646_v3, %s7354_s12 }
 0x569   : > { %v9679_v3 = vpop.f32.mrf.mxu2 }
 0x56a   : > { %1689 = vmatmul.f32.gmra.mxu0 %v1471_v47  ;;  %6083 = vmatmul.msk.f32.gmra.mxu1 %vm1089_vm4, %v1472_v25  ;;  %12855 = vst [vmem:[#allocation37_spill] sm:$0xff] %v9679_v3 }
 0x56c   : > { %v4149_v47 = vpop.permute.xlu0 %4148 }
 0x56e   : > { %6650 = vrot.lane.b32.xlu2 %v9655_v32, %s7354_s12  ;;  %v9673_v25 = vpop.f32.mrf.mxu3  ;;  %v9677_v32 = vpack.i.bf16 %v12853_v34, %v12852_v59 }
 0x56f   : > { %12851 = vst [vmem:[#allocation151_spill] sm:$0xff] %v9673_v25 }
 0x570   : > { %v4147_v14 = vpop.permute.xlu1 %4146  ;;  %4160 = vrot.lane.b32.xlu0 %v12847_v7, %s7353_s11  ;;  %12854 = vst [vmem:[#allocation125_spill] sm:$0xff] %v9677_v32  ;;  %v12856_v7 = vld [vmem:[#allocation43_spill] sm:$0xff] }
 0x571   : > { %6325 = vmatmul.msk.f32.vlgmr.msrb.gmra.mxu3 %vm779_vm2, %v4147_v14  ;;  %6359 = vmatmul.msk.f32.vlgmr.msra.gmra.mxu2 %vm779_vm2, %v4147_v14  ;;  %v1206_v14 = vsub.f32 %v9036_v15, %v9460_v23  ;;  %v2295_v23 = vmax.f32 %v9395_v57, %v2294_v24 }
 0x573   : > { %v1269_v59 = vmul.f32 1.442695, %v1206_v14 }
 0x574   : > { %v4151_v33 = vpop.permute.xlu0 %4150 }
 0x575   : > { %6833 = vpow2.f32 %v1269_v59 }
 0x576   : > { %6655 = vrot.lane.b32.xlu2 %v9669_v20, %s7354_s12  ;;  %v9691_v34 = vpop.f32.mrf.mxu3  ;;  %v9694_v20 = vpop.f32.mrf.mxu2 }
 0x577   : > { %12857 = vst [vmem:[#allocation135_spill] sm:$0xff] %v9691_v34 }
 0x578   : > { %6660 = vrot.lane.b32.xlu0 %v9677_v32, %s7354_s12  ;;  %12858 = vst [vmem:[#allocation48_spill] sm:$0xff] %v9694_v20  ;;  %v12859_v32 = vld [vmem:[#allocation21_spill] sm:$0xff] }
 0x579   : > { %6326 = vmatmul.msk.f32.gmra.mxu3 %vm779_vm2, %v4149_v47  ;;  %6360 = vmatmul.msk.f32.gmra.mxu2 %vm779_vm2, %v4149_v47  ;;  %v1267_v47 = vmul.f32 1.442695, %v1205_v35  ;;  %v9699_v15 = vpack.i.bf16 %v12860_v8, %v12859_v32  ;;  %v12862_v8 = vld [vmem:[#allocation53_spill] sm:$0xff] }
 0x57b   : > { %12861 = vst [vmem:[#allocation35_spill] sm:$0xff] %v9699_v15  ;;  %6835 = vpow2.f32 %v1267_v47  ;;  %v9706_v14 = vpop.eup %6833 }
 0x57c   : > { %v1367_v32 = vsel %vm1089_vm4, %v9706_v14, 0.0 }
 0x57e   : > { %4162 = vrot.lane.b32.xlu2 %v12856_v7, %s7353_s11  ;;  %v1204_v7 = vsub.f32 %v9011_v12, %v9447_v21  ;;  %v9736_v25 = vpop.f32.mrf.mxu2 }
 0x57f   : > { %12866 = vst [vmem:[#allocation30_spill] sm:$0xff] %v9736_v25 }
 0x580   : > { %v1265_v59 = vmul.f32 1.442695, %v1204_v7 }
 0x581   : > { %6327 = vmatmul.msk.f32.gmra.mxu3 %vm779_vm2, %v4151_v33  ;;  %6361 = vmatmul.msk.f32.gmra.mxu2 %vm779_vm2, %v4151_v33  ;;  %v9710_v35 = vpop.eup %6835  ;;  %v1203_v33 = vsub.f32 %v8674_v42, %v9447_v21  ;;  %v12865_v42 = vld [vmem:[#allocation129_spill] sm:$0xff] }
 0x582   : > { %v1368_v47 = vadd.f32 %v9710_v35, %v1367_v32  ;;  %6837 = vpow2.f32 %v1265_v59 }
 0x583   : > { %v1263_v24 = vmul.f32 1.442695, %v1203_v33 }
 0x585   : > { %6839 = vpow2.f32 %v1263_v24 }
 0x586   : > { %6665 = vrot.lane.b32.xlu2 %v9699_v15, %s7354_s12 }
 0x588   : > { %v9723_v15 = vpop.eup %6837 }
 0x589   : > { %v1363_v21 = vsel %vm1089_vm4, %v9723_v15, 0.0 }
 0x58b   : > { %2296 = vmax.xlane.f32.xlu1 %v2295_v23  ;;  %v12863_v23 = vld [vmem:[#allocation95_spill] sm:$0xff]  ;;  %v9727_v57 = vpop.eup %6839 }
 0x58c   : > { %v1364_v32 = vadd.f32 %v9727_v57, %v1363_v21  ;;  %v12868_v21 = vld [vmem:[#allocation57_spill] sm:$0xff] }
 0x58e   : > { %4168 = vrot.lane.b32.xlu2 %v12862_v8, %s7353_s11 }
 0x593   : > { %1369 = vadd.xlane.f32.xlu1 %v1368_v47 }
 0x596   : > { %4178 = vrot.lane.b32.xlu2 %v12863_v23, %s7353_s11 }
 0x599   : > { %v9721_v12 = vpop.xlane.xlu2 %2292 }
 0x59b   : > { %v9725_v8 = vpop.xlane.xlu1 %2284 }
 0x59c   : > { %12864 = vst [vmem:[#allocation130_spill] sm:$0xff] %v9725_v8 }
 0x59e   : > { %4188 = vrot.lane.b32.xlu2 %v12865_v42, %s7353_s11  ;;  %v9738_v42 = vpop.f32.mrf.mxu3 }
 0x59f   : > { %v1354_v7 = vpop.xlane.xlu0 %1353  ;;  %12867 = vst [vmem:[#allocation117_spill] sm:$0xff] %v9738_v42 }
 0x5a0   : > { %6841 = vrcp.f32 %v1354_v7 }
 0x5a1   : > { %v1362_v33 = vpop.xlane.xlu2 %1361 }
 0x5a2   : > { %1365 = vadd.xlane.f32.xlu0 %v1364_v32 }
 0x5a3   : > { %v1358_v59 = vpop.xlane.xlu1 %1357 }
 0x5a4   : > { %6843 = vrcp.f32 %v1358_v59 }
 0x5a5   : > { %6845 = vrcp.f32 %v1362_v33  ;;  %v12870_v33 = vld [vmem:[#allocation51_spill] sm:$0xff] }
 0x5a6   : > { %v6842_v47 = vpop.eup %6841 }
 0x5a7   : > { %v1473_v24 = vmul.f32 %v6842_v47, %v9493_v4  ;;  %v1474_v23 = vmul.f32 %v6842_v47, %v9480_v5  ;;  %v9747_v47 = vpop.xlane.xlu0 %2288 }
 0x5a9   : > { %v4153_v49 = vpop.permute.xlu2 %4152  ;;  %1692 = vmatmul.f32.gmra.mxu0 %v1473_v24  ;;  %6084 = vmatmul.msk.f32.gmra.mxu1 %vm1089_vm4, %v1474_v23  ;;  %v12869_v24 = vld [vmem:[#allocation63_spill] sm:$0xff] }
 0x5aa   : > { %6328 = vmatmul.msk.f32.gmra.mxu3 %vm779_vm2, %v4153_v49  ;;  %6362 = vmatmul.msk.f32.gmra.mxu2 %vm779_vm2, %v4153_v49  ;;  %v6844_v7 = vpop.eup %6843 }
 0x5ab   : > { %v1475_v4 = vmul.f32 %v6844_v7, %v9505_v50  ;;  %v1476_v5 = vmul.f32 %v6844_v7, %v9497_v31  ;;  %v6846_v23 = vpop.eup %6845  ;;  %v2340_v31 = vsub.f32 %v9061_v10, %v9484_v56  ;;  %v9756_v50 = vpop.f32.mrf.mxu3  ;;  %v12873_v10 = vld [vmem:[#allocation104_spill] sm:$0xff] }
 0x5ac   : > { %4170 = vrot.lane.b32.xlu1 %v12868_v21, %s7353_s11  ;;  %12871 = vst [vmem:[#allocation40_spill] sm:$0xff] %v9756_v50  ;;  %v1477_v21 = vmul.f32 %v6846_v23, %v9501_v55  ;;  %v1478_v7 = vmul.f32 %v6846_v23, %v9486_v61 }
 0x5ad   : > { %v2391_v55 = vmul.f32 1.442695, %v2340_v31  ;;  %v12876_v31 = vld [vmem:[#allocation108_spill] sm:$0xff] }
 0x5af   : > { %6847 = vpow2.f32 %v2391_v55 }
 0x5b1   : > { %v6616_v32 = vpop.permute.xlu2 %6615  ;;  %1695 = vmatmul.f32.gmra.mxu0 %v1475_v4  ;;  %6085 = vmatmul.msk.f32.gmra.mxu1 %vm1089_vm4, %v1476_v5  ;;  %v9760_v5 = vpop.f32.mrf.mxu2 }
 0x5b2   : > { %v6617_v59 = vunpack.i.l.bf16 %v6616_v32  ;;  %v6618_v49 = vunpack.i.h.bf16 %v6616_v32  ;;  %12872 = vst [vmem:[#allocation26_spill] sm:$0xff] %v9760_v5 }
 0x5b4   : > { %4172 = vrot.lane.b32.xlu1 %v12869_v24, %s7353_s11  ;;  %3962 = vmatpush.msrb.mxu0 %v6617_v59  ;;  %v2339_v24 = vsub.f32 %v9071_v53, %v9484_v56  ;;  %v2302_v53 = vsel %vm1089_vm4, %v9423_v51, -inf }
 0x5b6   : > { %3963 = vmatpush.msrb.mxu0 %v6618_v49  ;;  %4166 = vrot.lane.b32.xlu0 %v12870_v33, %s7353_s11  ;;  %v2389_v61 = vmul.f32 1.442695, %v2339_v24  ;;  %v2346_v24 = vsub.f32 %v9128_v38, %v9539_v29 }
 0x5b8   : > { %6849 = vpow2.f32 %v2389_v61 }
 0x5b9   : > { %v6621_v4 = vpop.permute.xlu2 %6620  ;;  %1698 = vmatmul.f32.gmra.mxu0 %v1477_v21  ;;  %6086 = vmatmul.msk.f32.gmra.mxu1 %vm1089_vm4, %v1478_v7  ;;  %v9769_v7 = vpop.f32.mrf.mxu3 }
 0x5ba   : > { %v6622_v32 = vunpack.i.l.bf16 %v6621_v4  ;;  %v4157_v59 = vpop.permute.xlu0 %4156  ;;  %v6623_v33 = vunpack.i.h.bf16 %v6621_v4  ;;  %12874 = vst [vmem:[#allocation111_spill] sm:$0xff] %v9769_v7  ;;  %v9773_v56 = vpop.f32.mrf.mxu2 }
 0x5bb   : > { %v4155_v49 = vpop.permute.xlu1 %4154  ;;  %12875 = vst [vmem:[#allocation24_spill] sm:$0xff] %v9773_v56 }
 0x5bc   : > { %4180 = vrot.lane.b32.xlu1 %v12873_v10, %s7353_s11  ;;  %3964 = vmatpush.msrb.mxu0 %v6622_v32  ;;  %v2303_v32 = vmax.f32 %v9429_v60, %v2302_v53  ;;  %v2403_v53 = vmul.f32 1.442695, %v2346_v24  ;;  %v2314_v24 = vsel %vm1089_vm4, %v9471_v22, -inf }
 0x5bd   : > { %6329 = vmatmul.msk.f32.gmra.mxu3 %vm779_vm2, %v4155_v49  ;;  %6363 = vmatmul.msk.f32.gmra.mxu2 %vm779_vm2, %v4155_v49  ;;  %v9780_v49 = vpop.eup %6847 }
 0x5be   : > { %3965 = vmatpush.msrb.mxu0 %v6623_v33  ;;  %12877 = vst [vmem:[#allocation106_spill] sm:$0xff] %v9780_v49  ;;  %v9784_v10 = vpop.eup %6849  ;;  %v2489_v61 = vsel %vm1089_vm4, %v9780_v49, 0.0  ;;  %6851 = vpow2.f32 %v2403_v53 }
 0x5bf   : > { %12878 = vst [vmem:[#allocation43_spill] sm:$0xff] %v9784_v10 }
 0x5c1   : > { %v6626_v23 = vpop.permute.xlu2 %6625 }
 0x5c2   : > { %v6627_v21 = vunpack.i.l.bf16 %v6626_v23  ;;  %v4159_v42 = vpop.permute.xlu0 %4158  ;;  %v6628_v4 = vunpack.i.h.bf16 %v6626_v23 }
 0x5c4   : > { %4182 = vrot.lane.b32.xlu1 %v12876_v31, %s7353_s11  ;;  %3966 = vmatpush.msrb.mxu0 %v6627_v21  ;;  %v2345_v21 = vsub.f32 %v9136_v62, %v9539_v29  ;;  %v2490_v31 = vadd.f32 %v9784_v10, %v2489_v61  ;;  %v9803_v61 = vpop.eup %6851 }
 0x5c5   : > { %6330 = vmatmul.msk.f32.gmra.mxu3 %vm779_vm2, %v4157_v59  ;;  %6364 = vmatmul.msk.f32.gmra.mxu2 %vm779_vm2, %v4157_v59  ;;  %v12879_v59 = vld [vmem:[#allocation133_spill] sm:$0xff]  ;;  %12882 = vst [vmem:[#allocation53_spill] sm:$0xff] %v9803_v61 }
 0x5c6   : > { %3967 = vmatpush.msrb.mxu0 %v6628_v4  ;;  %v9793_v4 = vpop.f32.mrf.mxu3  ;;  %v2401_v62 = vmul.f32 1.442695, %v2345_v21 }
 0x5c7   : > { %2304 = vmax.xlane.f32.xlu2 %v2303_v32  ;;  %12880 = vst [vmem:[#allocation21_spill] sm:$0xff] %v9793_v4  ;;  %v9797_v32 = vpop.f32.mrf.mxu2 }
 0x5c8   : > { %12881 = vst [vmem:[#allocation97_spill] sm:$0xff] %v9797_v32  ;;  %6853 = vpow2.f32 %v2401_v62 }
 0x5c9   : > { %v6631_v33 = vpop.permute.xlu2 %6630 }
 0x5ca   : > { %v6632_v55 = vunpack.i.l.bf16 %v6631_v33  ;;  %v3860_v23 = vpop.permute.xlu0 %3859  ;;  %v6633_v38 = vunpack.i.h.bf16 %v6631_v33 }
 0x5cb   : > { %6283 = vmatpush.msk.msrb.mxu1 %vm1186_vm3, %v3860_v23 }
 0x5cc   : > { %4190 = vrot.lane.b32.xlu1 %v12879_v59, %s7353_s11  ;;  %3968 = vmatpush.msrb.mxu0 %v6632_v55  ;;  %v2315_v59 = vmax.f32 %v9495_v36, %v2314_v24 }
 0x5cd   : > { %6331 = vmatmul.msk.f32.gmra.mxu3 %vm779_vm2, %v4159_v42  ;;  %6365 = vmatmul.msk.f32.gmra.mxu2 %vm779_vm2, %v4159_v42  ;;  %v2352_v42 = vsub.f32 %v9203_v58, %v9573_v48 }
 0x5ce   : > { %3969 = vmatpush.msrb.mxu0 %v6633_v38  ;;  %v9807_v53 = vpop.eup %6853  ;;  %v2501_v38 = vsel %vm1089_vm4, %v9803_v61, 0.0  ;;  %v9819_v8 = vpop.f32.mrf.mxu3 }
 0x5cf   : > { %2491 = vadd.xlane.f32.xlu2 %v2490_v31  ;;  %v6646_v31 = vpop.permute.xlu1 %6645  ;;  %v2502_v49 = vadd.f32 %v9807_v53, %v2501_v38  ;;  %v9817_v61 = vpop.f32.mrf.mxu2 }
 0x5d0   : > { %v6648_v58 = vunpack.i.h.bf16 %v6646_v31  ;;  %v6647_v10 = vunpack.i.l.bf16 %v6646_v31 }
 0x5d1   : > { %v6651_v29 = vpop.permute.xlu2 %6650 }
 0x5d2   : > { %v6636_v23 = vpop.permute.xlu0 %6635 }
 0x5d3   : > { %v6638_v33 = vunpack.i.h.bf16 %v6636_v23  ;;  %v6637_v55 = vunpack.i.l.bf16 %v6636_v23  ;;  %v2351_v23 = vsub.f32 %v9215_v41, %v9573_v48  ;;  %v6653_v41 = vunpack.i.h.bf16 %v6651_v29 }
 0x5d4   : > { %v6652_v48 = vunpack.i.l.bf16 %v6651_v29  ;;  %v2358_v29 = vsub.f32 %v9273_v54, %v9617_v18 }
 0x5d5   : > { %3970 = vmatpush.msrb.mxu0 %v6637_v55  ;;  %4062 = vmatpush.msrb.mxu1 %v6638_v33  ;;  %v2415_v33 = vmul.f32 1.442695, %v2352_v42  ;;  %v2413_v3 = vmul.f32 1.442695, %v2351_v23 }
 0x5d6   : > { %v9836_v23 = vpop.f32.mrf.mxu3 }
 0x5d7   : > { %2316 = vmax.xlane.f32.xlu2 %v2315_v59  ;;  %v2298_v59 = vsel %vm1089_vm4, %v9403_v0, -inf  ;;  %6855 = vpow2.f32 %v2415_v33  ;;  %12886 = vst [vmem:[#allocation63_spill] sm:$0xff] %v9836_v23 }
 0x5d8   : > { %v2299_v25 = vmax.f32 %v9415_v17, %v2298_v59  ;;  %6857 = vpow2.f32 %v2413_v3  ;;  %v2341_v59 = vsub.f32 %v9093_v40, %v9489_v1 }
 0x5d9   : > { %v6656_v21 = vpop.permute.xlu2 %6655 }
 0x5da   : > { %v6641_v62 = vpop.permute.xlu0 %6640  ;;  %v6658_v38 = vunpack.i.h.bf16 %v6656_v21  ;;  %v2393_v40 = vmul.f32 1.442695, %v2341_v59 }
 0x5db   : > { %v6643_v24 = vunpack.i.h.bf16 %v6641_v62  ;;  %v6642_v55 = vunpack.i.l.bf16 %v6641_v62  ;;  %v6657_v62 = vunpack.i.l.bf16 %v6656_v21  ;;  %v9832_v21 = vpop.f32.mrf.mxu2 }
 0x5dc   : > { %12884 = vst [vmem:[#allocation129_spill] sm:$0xff] %v9832_v21 }
 0x5dd   : > { %3971 = vmatpush.msrb.mxu0 %v6642_v55  ;;  %4063 = vmatpush.msrb.mxu1 %v6643_v24  ;;  %v2326_v24 = vsel %vm1089_vm4, %v9549_v13, -inf  ;;  %v6671_v55 = vpop.permute.xlu1 %6670 }
 0x5df   : > { %2503 = vadd.xlane.f32.xlu2 %v2502_v49  ;;  %3972 = vmatpush.msrb.mxu0 %v6647_v10  ;;  %v2327_v49 = vmax.f32 %v9557_v45, %v2326_v24  ;;  %v9826_v10 = vpop.eup %6855 }
 0x5e0   : > { %4064 = vmatpush.msrb.mxu1 %v6648_v58  ;;  %2300 = vmax.xlane.f32.xlu0 %v2299_v25  ;;  %12883 = vst [vmem:[#allocation95_spill] sm:$0xff] %v9826_v10  ;;  %v2342_v25 = vsub.f32 %v9081_v44, %v9489_v1  ;;  %v9834_v3 = vpop.eup %6857  ;;  %v2513_v33 = vsel %vm1089_vm4, %v9826_v10, 0.0  ;;  %v2357_v44 = vsub.f32 %v9285_v37, %v9617_v18  ;;  %v6672_v10 = vunpack.i.l.bf16 %v6671_v55 }
 0x5e1   : > { %v4163_v42 = vpop.permute.xlu2 %4162  ;;  %3973 = vmatpush.msrb.mxu0 %v6652_v48  ;;  %12885 = vst [vmem:[#allocation57_spill] sm:$0xff] %v9834_v3  ;;  %v2364_v37 = vsub.f32 %v9356_v6, %v9747_v47  ;;  %v2306_v18 = vsel %vm1089_vm4, %v9437_v9, -inf  ;;  %v9859_v6 = vpop.f32.mrf.mxu3 }
 0x5e2   : > { %4065 = vmatpush.msrb.mxu1 %v6653_v41  ;;  %v4161_v31 = vpop.permute.xlu0 %4160  ;;  %v2395_v48 = vmul.f32 1.442695, %v2342_v25  ;;  %v2425_v1 = vmul.f32 1.442695, %v2357_v44  ;;  %v6673_v25 = vunpack.i.h.bf16 %v6671_v55  ;;  %v2363_v55 = vsub.f32 %v9371_v52, %v9747_v47 }
 0x5e3   : > { %3974 = vmatpush.msrb.mxu0 %v6657_v62  ;;  %6332 = vmatmul.msk.f32.gmra.mxu3 %vm779_vm2, %v4161_v31  ;;  %v2427_v62 = vmul.f32 1.442695, %v2358_v29  ;;  %v3384_v29 = vsel %vm1089_vm4, %v9619_v26, -inf  ;;  %v2348_v52 = vsub.f32 %v9154_v30, %v9537_v39 }
 0x5e4   : > { %4066 = vmatpush.msrb.mxu1 %v6658_v38  ;;  %6366 = vmatmul.msk.f32.gmra.mxu2 %vm779_vm2, %v4161_v31  ;;  %v2514_v31 = vadd.f32 %v9834_v3, %v2513_v33  ;;  %6859 = vpow2.f32 %v2395_v48  ;;  %v3385_v59 = vmax.f32 %v9636_v19, %v3384_v29  ;;  %v12887_v48 = vld [vmem:[#allocation80_spill] sm:$0xff]  ;;  %v2437_v47 = vmul.f32 1.442695, %v2363_v55 }
 0x5e5   : > { %6861 = vpow2.f32 %v2427_v62  ;;  %v4165_v33 = vpop.permute.xlu1 %4164 }
 0x5e6   : > { %6863 = vpow2.f32 %v2393_v40 }
 0x5e7   : > { %2328 = vmax.xlane.f32.xlu2 %v2327_v49  ;;  %6865 = vpow2.f32 %v2425_v1  ;;  %v12890_v1 = vld [vmem:[#allocation92_spill] sm:$0xff] }
 0x5e9   : > { %v6666_v41 = vpop.permute.xlu2 %6665 }
 0x5ea   : > { %v6661_v58 = vpop.permute.xlu0 %6660  ;;  %v6668_v24 = vunpack.i.h.bf16 %v6666_v41  ;;  %v6667_v49 = vunpack.i.l.bf16 %v6666_v41  ;;  %v9863_v41 = vpop.eup %6859 }
 0x5eb   : > { %v6663_v54 = vunpack.i.h.bf16 %v6661_v58  ;;  %v6662_v38 = vunpack.i.l.bf16 %v6661_v58  ;;  %6333 = vmatmul.msk.f32.gmra.mxu3 %vm779_vm2, %v4163_v42  ;;  %v9857_v58 = vpop.f32.mrf.mxu2  ;;  %v9867_v44 = vpop.eup %6861 }
 0x5ec   : > { %6367 = vmatmul.msk.f32.gmra.mxu2 %vm779_vm2, %v4163_v42  ;;  %v2307_v42 = vmax.f32 %v9443_v63, %v2306_v18  ;;  %12888 = vst [vmem:[#allocation51_spill] sm:$0xff] %v9867_v44 }
 0x5ed   : > { %3975 = vmatpush.msrb.mxu0 %v6662_v38  ;;  %4067 = vmatpush.msrb.mxu1 %v6663_v54  ;;  %v9871_v54 = vpop.eup %6863  ;;  %v2493_v38 = vsel %vm1089_vm4, %v9863_v41, 0.0 }
 0x5ee   : > { %v9875_v62 = vpop.eup %6865  ;;  %v2494_v40 = vadd.f32 %v9871_v54, %v2493_v38 }
 0x5ef   : > { %2515 = vadd.xlane.f32.xlu2 %v2514_v31  ;;  %3976 = vmatpush.msrb.mxu0 %v6667_v49  ;;  %12889 = vst [vmem:[#allocation104_spill] sm:$0xff] %v9875_v62  ;;  %v2525_v31 = vsel %vm1089_vm4, %v9867_v44, 0.0  ;;  %v2407_v49 = vmul.f32 1.442695, %v2348_v52  ;;  %v12896_v52 = vld [vmem:[#allocation44_spill] sm:$0xff]  ;;  %v12917_v44 = vld [vmem:[#allocation101_spill] sm:$0xff] }
 0x5f0   : > { %4068 = vmatpush.msrb.mxu1 %v6668_v24  ;;  %v2347_v24 = vsub.f32 %v9164_v2, %v9537_v39  ;;  %v2526_v30 = vadd.f32 %v9875_v62, %v2525_v31  ;;  %v2318_v39 = vsel %vm1089_vm4, %v9512_v27, -inf  ;;  %v3408_v31 = vsel %vm1089_vm4, %v9773_v56, -inf }
 0x5f1   : > { %3977 = vmatpush.msrb.mxu0 %v6672_v10  ;;  %v2439_v10 = vmul.f32 1.442695, %v2364_v37 }
 0x5f2   : > { %4069 = vmatpush.msrb.mxu1 %v6673_v25  ;;  %v2405_v37 = vmul.f32 1.442695, %v2347_v24 }
 0x5f3   : > { %6334 = vmatmul.msk.f32.gmra.mxu3 %vm779_vm2, %v4165_v33  ;;  %6867 = vpow2.f32 %v2439_v10 }
 0x5f4   : > { %6368 = vmatmul.msk.f32.gmra.mxu2 %vm779_vm2, %v4165_v33  ;;  %4174 = vrot.lane.b32.xlu0 %v12887_v48, %s7353_s11  ;;  %6869 = vpow2.f32 %v2437_v47  ;;  %v12894_v33 = vld [vmem:[#allocation118_spill] sm:$0xff]  ;;  %v2353_v47 = vsub.f32 %v12896_v52, %v9565_v46 }
 0x5f5   : > { %6871 = vpow2.f32 %v2407_v49  ;;  %v3409_v49 = vmax.f32 %v9769_v7, %v3408_v31  ;;  %v12915_v7 = vld [vmem:[#allocation41_spill] sm:$0xff] }
 0x5f6   : > { %2308 = vmax.xlane.f32.xlu1 %v2307_v42  ;;  %6873 = vpow2.f32 %v2405_v37  ;;  %v2319_v42 = vmax.f32 %v9524_v16, %v2318_v39  ;;  %v12899_v37 = vld [vmem:[#allocation138_spill] sm:$0xff] }
 0x5f7   : > { %3386 = vmax.xlane.f32.xlu2 %v3385_v59  ;;  %v2354_v59 = vsub.f32 %v9225_v11, %v9565_v46  ;;  %v2417_v11 = vmul.f32 1.442695, %v2353_v47 }
 0x5f9   : > { %v9885_v25 = vpop.eup %6867  ;;  %v2419_v38 = vmul.f32 1.442695, %v2354_v59 }
 0x5fa   : > { %12891 = vst [vmem:[#allocation108_spill] sm:$0xff] %v9885_v25  ;;  %v9887_v18 = vpop.eup %6869  ;;  %v2537_v2 = vsel %vm1089_vm4, %v9885_v25, 0.0 }
 0x5fb   : > { %12892 = vst [vmem:[#allocation133_spill] sm:$0xff] %v9887_v18  ;;  %v2538_v29 = vadd.f32 %v9887_v18, %v2537_v2  ;;  %v9895_v55 = vpop.eup %6871  ;;  %6875 = vpow2.f32 %v2419_v38  ;;  %v12904_v38 = vld [vmem:[#allocation67_spill] sm:$0xff] }
 0x5fc   : > { %4176 = vrot.lane.b32.xlu0 %v12890_v1, %s7353_s11  ;;  %12893 = vst [vmem:[#allocation80_spill] sm:$0xff] %v9895_v55  ;;  %v9901_v10 = vpop.eup %6873  ;;  %v2505_v48 = vsel %vm1089_vm4, %v9895_v55, 0.0  ;;  %v12898_v1 = vld [vmem:[#allocation134_spill] sm:$0xff]  ;;  %6877 = vpow2.f32 %v2417_v11  ;;  %v4169_v11 = vpop.permute.xlu2 %4168 }
 0x5fd   : > { %12895 = vst [vmem:[#allocation92_spill] sm:$0xff] %v9901_v10  ;;  %v2506_v24 = vadd.f32 %v9901_v10, %v2505_v48  ;;  %v2330_v46 = vsel %vm1089_vm4, %v12898_v1, -inf }
 0x5fe   : > { %2495 = vadd.xlane.f32.xlu1 %v2494_v40  ;;  %v12897_v40 = vld [vmem:[#allocation122_spill] sm:$0xff]  ;;  %v2331_v2 = vmax.f32 %v12899_v37, %v2330_v46 }
 0x5ff   : > { %2527 = vadd.xlane.f32.xlu2 %v2526_v30  ;;  %v9913_v30 = vpop.xlane.xlu1 %2296 }
 0x601   : > { %v9918_v39 = vpop.eup %6875 }
 0x602   : > { %12900 = vst [vmem:[#allocation118_spill] sm:$0xff] %v9918_v39  ;;  %v9922_v48 = vpop.eup %6877  ;;  %v2517_v52 = vsel %vm1089_vm4, %v9918_v39, 0.0 }
 0x603   : > { %12903 = vst [vmem:[#allocation44_spill] sm:$0xff] %v9922_v48 }
 0x604   : > { %4184 = vrot.lane.b32.xlu0 %v12894_v33, %s7353_s11  ;;  %v12902_v33 = vld [vmem:[#allocation65_spill] sm:$0xff] }
 0x606   : > { %2320 = vmax.xlane.f32.xlu1 %v2319_v42 }
 0x607   : > { %2539 = vadd.xlane.f32.xlu2 %v2538_v29  ;;  %v12901_v29 = vld [vmem:[#allocation144_spill] sm:$0xff]  ;;  %v1370_v47 = vpop.xlane.xlu1 %1369 }
 0x608   : > { %v2360_v59 = vsub.f32 %v12902_v33, %v12901_v29  ;;  %v2359_v31 = vsub.f32 %v12904_v38, %v12901_v29  ;;  %v3388_v29 = vsel %vm1089_vm4, %v9659_v28, -inf  ;;  %v12907_v38 = vld [vmem:[#allocation115_spill] sm:$0xff] }
 0x60c   : > { %4186 = vrot.lane.b32.xlu0 %v12897_v40, %s7353_s11 }
 0x60e   : > { %2507 = vadd.xlane.f32.xlu1 %v2506_v24  ;;  %v2431_v24 = vmul.f32 1.442695, %v2360_v59  ;;  %v9934_v59 = vpop.f32.mrf.mxu2 }
 0x60f   : > { %3410 = vmax.xlane.f32.xlu2 %v3409_v49  ;;  %v2518_v49 = vadd.f32 %v9922_v48, %v2517_v52  ;;  %12905 = vst [vmem:[#allocation122_spill] sm:$0xff] %v9934_v59  ;;  %v3389_v52 = vmax.f32 %v9657_v43, %v3388_v29  ;;  %v12911_v29 = vld [vmem:[#allocation100_spill] sm:$0xff]  ;;  %v12931_v48 = vld [vmem:[#allocation79_spill] sm:$0xff] }
 0x610   : > { %v2343_v56 = vsub.f32 %v12915_v7, %v12911_v29 }
 0x615   : > { %v1366_v42 = vpop.xlane.xlu0 %1365 }
 0x616   : > { %2332 = vmax.xlane.f32.xlu1 %v2331_v2  ;;  %6879 = vrcp.f32 %v1366_v42  ;;  %v2429_v42 = vmul.f32 1.442695, %v2359_v31  ;;  %v9963_v25 = vpop.f32.mrf.mxu2 }
 0x617   : > { %6881 = vrcp.f32 %v1370_v47  ;;  %v9937_v47 = vpop.f32.mrf.mxu3 }
 0x618   : > { %6883 = vpow2.f32 %v2431_v24  ;;  %12906 = vst [vmem:[#allocation134_spill] sm:$0xff] %v9937_v47  ;;  %v12909_v24 = vld [vmem:[#allocation85_spill] sm:$0xff] }
 0x619   : > { %6885 = vpow2.f32 %v2429_v42 }
 0x61a   : > { %6887 = vrcp.f32 %v12907_v38 }
 0x61c   : > { %v6880_v40 = vpop.eup %6879 }
 0x61d   : > { %v1479_v46 = vmul.f32 %v6880_v40, %v9727_v57  ;;  %v1480_v2 = vmul.f32 %v6880_v40, %v9723_v15  ;;  %v6882_v33 = vpop.eup %6881  ;;  %v9946_v40 = vpop.permute.xlu2 %4178 }
 0x61e   : > { %2519 = vadd.xlane.f32.xlu1 %v2518_v49  ;;  %v9940_v57 = vpop.eup %6883  ;;  %v1481_v15 = vmul.f32 %v6882_v33, %v9710_v35  ;;  %v1482_v31 = vmul.f32 %v6882_v33, %v9706_v14  ;;  %v2366_v49 = vsub.f32 %v12909_v24, %v9721_v12  ;;  %v12913_v35 = vld [vmem:[#allocation102_spill] sm:$0xff] }
 0x61f   : > { %1701 = vmatmul.f32.gmra.mxu0 %v1479_v46  ;;  %6087 = vmatmul.msk.f32.gmra.mxu1 %vm1089_vm4, %v1480_v2  ;;  %12908 = vst [vmem:[#allocation138_spill] sm:$0xff] %v9940_v57  ;;  %v9949_v46 = vpop.eup %6885  ;;  %v2529_v42 = vsel %vm1089_vm4, %v9940_v57, 0.0  ;;  %v2365_v33 = vsub.f32 %v12913_v35, %v9721_v12  ;;  %v12914_v24 = vld [vmem:[#allocation142_spill] sm:$0xff]  ;;  %v2397_v12 = vmul.f32 1.442695, %v2343_v56  ;;  %v9984_v35 = vpop.f32.mrf.mxu2 }
 0x620   : > { %12910 = vst [vmem:[#allocation144_spill] sm:$0xff] %v9949_v46  ;;  %v6888_v14 = vpop.eup %6887  ;;  %6889 = vrcp.f32 %v12914_v24  ;;  %v12916_v57 = vld [vmem:[#allocation98_spill] sm:$0xff] }
 0x621   : > { %v1484_v62 = vmul.f32 %v6888_v14, %v12917_v44  ;;  %v2441_v39 = vmul.f32 1.442695, %v2365_v33  ;;  %12923 = vst [vmem:[#allocation67_spill] sm:$0xff] %v9984_v35  ;;  %v4171_v33 = vpop.permute.xlu1 %4170 }
 0x626   : > { %3390 = vmax.xlane.f32.xlu1 %v3389_v52  ;;  %v12912_v52 = vld [vmem:[#allocation42_spill] sm:$0xff]  ;;  %v6890_v7 = vpop.eup %6889 }
 0x627   : > { %1704 = vmatmul.f32.gmra.mxu0 %v1481_v15  ;;  %6088 = vmatmul.msk.f32.gmra.mxu1 %vm1089_vm4, %v1482_v31  ;;  %v2344_v38 = vsub.f32 %v12912_v52, %v12911_v29  ;;  %v2443_v15 = vmul.f32 1.442695, %v2366_v49  ;;  %v2530_v31 = vadd.f32 %v9949_v46, %v2529_v42  ;;  %v9965_v52 = vpop.f32.mrf.mxu3  ;;  %v9970_v49 = vpop.permute.xlu2 %4188  ;;  %v3396_v42 = vsel %vm1089_vm4, %v9694_v20, -inf  ;;  %v12919_v29 = vld [vmem:[#allocation55_spill] sm:$0xff] }
 0x628   : > { %v4167_v2 = vpop.permute.xlu0 %4166  ;;  %v3397_v44 = vmax.f32 %v9691_v34, %v3396_v42  ;;  %v12928_v42 = vld [vmem:[#allocation73_spill] sm:$0xff] }
 0x629   : > { %6335 = vmatmul.msk.f32.gmra.mxu3 %vm779_vm2, %v4167_v2  ;;  %6369 = vmatmul.msk.f32.gmra.mxu2 %vm779_vm2, %v4167_v2  ;;  %v2399_v18 = vmul.f32 1.442695, %v2344_v38  ;;  %v1483_v2 = vmul.f32 %v6888_v14, %v12916_v57  ;;  %6891 = vpow2.f32 %v2443_v15  ;;  %v12918_v57 = vld [vmem:[#allocation146_spill] sm:$0xff]  ;;  %v12922_v14 = vld [vmem:[#allocation84_spill] sm:$0xff] }
 0x62a   : > { %v12924_v15 = vld [vmem:[#allocation82_spill] sm:$0xff] }
 0x62b   : > { %6893 = vpow2.f32 %v2399_v18  ;;  %v12921_v18 = vld [vmem:[#allocation99_spill] sm:$0xff] }
 0x62c   : > { %6895 = vpow2.f32 %v2441_v39  ;;  %v1486_v39 = vmul.f32 %v6890_v7, %v12924_v15  ;;  %v12929_v15 = vld [vmem:[#allocation145_spill] sm:$0xff] }
 0x62d   : > { %6897 = vrcp.f32 %v12918_v57 }
 0x62e   : > { %2531 = vadd.xlane.f32.xlu1 %v2530_v31  ;;  %6899 = vpow2.f32 %v2397_v12  ;;  %v12927_v12 = vld [vmem:[#allocation90_spill] sm:$0xff] }
 0x62f   : > { %1707 = vmatmul.f32.gmra.mxu0 %v1483_v2  ;;  %6089 = vmatmul.msk.f32.gmra.mxu1 %vm1089_vm4, %v1484_v62  ;;  %v2310_v62 = vsel %vm1089_vm4, %v12919_v29, -inf  ;;  %v9980_v56 = vpop.eup %6891  ;;  %v9989_v24 = vpop.f32.mrf.mxu3  ;;  %v2350_v57 = vsub.f32 %v12928_v42, %v12927_v12  ;;  %6901 = vrcp.f32 %v12929_v15 }
 0x630   : > { %12920 = vst [vmem:[#allocation65_spill] sm:$0xff] %v9980_v56  ;;  %v2311_v38 = vmax.f32 %v12921_v18, %v2310_v62  ;;  %v4173_v15 = vpop.permute.xlu1 %4172 }
 0x631   : > { %6336 = vmatmul.msk.f32.gmra.mxu3 %vm779_vm2, %v4169_v11  ;;  %6370 = vmatmul.msk.f32.gmra.mxu2 %vm779_vm2, %v4169_v11  ;;  %v1485_v11 = vmul.f32 %v6890_v7, %v12922_v14  ;;  %v9987_v31 = vpop.eup %6893  ;;  %12925 = vst [vmem:[#allocation115_spill] sm:$0xff] %v9989_v24  ;;  %v2411_v46 = vmul.f32 1.442695, %v2350_v57 }
 0x632   : > { %v9991_v2 = vpop.eup %6895 }
 0x633   : > { %12926 = vst [vmem:[#allocation85_spill] sm:$0xff] %v9991_v2  ;;  %v6898_v62 = vpop.eup %6897  ;;  %6903 = vpow2.f32 %v2411_v46  ;;  %v12933_v46 = vld [vmem:[#allocation150_spill] sm:$0xff] }
 0x634   : > { %v10000_v14 = vpop.eup %6899  ;;  %v1487_v3 = vmul.f32 %v6898_v62, %v12931_v48  ;;  %6905 = vrcp.f32 %v12933_v46 }
 0x635   : > { %v6902_v57 = vpop.eup %6901 }
 0x636   : > { %3398 = vmax.xlane.f32.xlu1 %v3397_v44  ;;  %2312 = vmax.xlane.f32.xlu0 %v2311_v38  ;;  %v2541_v44 = vsel %vm1089_vm4, %v9980_v56, 0.0  ;;  %v2497_v38 = vsel %vm1089_vm4, %v9987_v31, 0.0 }
 0x637   : > { %1710 = vmatmul.f32.gmra.mxu0 %v1485_v11  ;;  %6090 = vmatmul.msk.f32.gmra.mxu1 %vm1089_vm4, %v1486_v39  ;;  %v2542_v11 = vadd.f32 %v9991_v2, %v2541_v44  ;;  %v12930_v39 = vld [vmem:[#allocation59_spill] sm:$0xff]  ;;  %v2498_v56 = vadd.f32 %v10000_v14, %v2497_v38  ;;  %v10012_v44 = vpop.f32.mrf.mxu2 }
 0x638   : > { %v2349_v42 = vsub.f32 %v12930_v39, %v12927_v12  ;;  %v10015_v12 = vpop.f32.mrf.mxu3 }
 0x639   : > { %6337 = vmatmul.msk.f32.gmra.mxu3 %vm779_vm2, %v4171_v33  ;;  %6371 = vmatmul.msk.f32.gmra.mxu2 %vm779_vm2, %v4171_v33  ;;  %v12932_v33 = vld [vmem:[#allocation70_spill] sm:$0xff] }
 0x63a   : > { %v2305_v7 = vpop.xlane.xlu2 %2304  ;;  %v1488_v55 = vmul.f32 %v6898_v62, %v12932_v33  ;;  %v2409_v10 = vmul.f32 1.442695, %v2349_v42  ;;  %v12936_v42 = vld [vmem:[#allocation75_spill] sm:$0xff] }
 0x63b   : > { %v2372_v34 = vsub.f32 %v9423_v51, %v2305_v7  ;;  %v3404_v51 = vsel %vm1089_vm4, %v9760_v5, -inf  ;;  %v1489_v33 = vmul.f32 %v6902_v57, %v12936_v42  ;;  %v12938_v5 = vld [vmem:[#allocation69_spill] sm:$0xff] }
 0x63c   : > { %6907 = vpow2.f32 %v2409_v10  ;;  %v1490_v20 = vmul.f32 %v6902_v57, %v12938_v5 }
 0x63d   : > { %v2455_v62 = vmul.f32 1.442695, %v2372_v34  ;;  %v12939_v34 = vld [vmem:[#allocation128_spill] sm:$0xff] }
 0x63e   : > { %2543 = vadd.xlane.f32.xlu1 %v2542_v11  ;;  %2499 = vadd.xlane.f32.xlu0 %v2498_v56  ;;  %v3405_v56 = vmax.f32 %v9756_v50, %v3404_v51  ;;  %v12935_v11 = vld [vmem:[#allocation109_spill] sm:$0xff] }
 0x63f   : > { %1713 = vmatmul.f32.gmra.mxu0 %v1487_v3  ;;  %6091 = vmatmul.msk.f32.gmra.mxu1 %vm1089_vm4, %v1488_v55  ;;  %v2371_v3 = vsub.f32 %v9429_v60, %v2305_v7  ;;  %v12934_v55 = vld [vmem:[#allocation123_spill] sm:$0xff]  ;;  %6909 = vpow2.f32 %v2455_v62  ;;  %v12940_v7 = vld [vmem:[#allocation124_spill] sm:$0xff]  ;;  %v12941_v62 = vld [vmem:[#allocation149_spill] sm:$0xff] }
 0x640   : > { %v2322_v38 = vsel %vm1089_vm4, %v12934_v55, -inf  ;;  %v2356_v51 = vsub.f32 %v12940_v7, %v12939_v34 }
 0x641   : > { %6338 = vmatmul.msk.f32.gmra.mxu3 %vm779_vm2, %v4173_v15  ;;  %6372 = vmatmul.msk.f32.gmra.mxu2 %vm779_vm2, %v4173_v15  ;;  %v2323_v39 = vmax.f32 %v12935_v11, %v2322_v38  ;;  %v10030_v15 = vpop.eup %6903  ;;  %v2453_v2 = vmul.f32 1.442695, %v2371_v3  ;;  %v3412_v3 = vsel %vm1089_vm4, %v9797_v32, -inf  ;;  %v12942_v38 = vld [vmem:[#allocation54_spill] sm:$0xff]  ;;  %v12944_v32 = vld [vmem:[#allocation56_spill] sm:$0xff] }
 0x642   : > { %v10019_v48 = vpop.xlane.xlu2 %2491  ;;  %12937 = vst [vmem:[#allocation100_spill] sm:$0xff] %v10030_v15  ;;  %v6906_v60 = vpop.eup %6905  ;;  %v2509_v46 = vsel %vm1089_vm4, %v10030_v15, 0.0  ;;  %v2423_v7 = vmul.f32 1.442695, %v2356_v51 }
 0x643   : > { %6911 = vpow2.f32 %v2453_v2  ;;  %v1491_v2 = vmul.f32 %v6906_v60, %v12944_v32 }
 0x644   : > { %6913 = vrcp.f32 %v12941_v62 }
 0x646   : > { %3406 = vmax.xlane.f32.xlu1 %v3405_v56  ;;  %2324 = vmax.xlane.f32.xlu0 %v2323_v39  ;;  %v10038_v56 = vpop.eup %6907  ;;  %v2355_v39 = vsub.f32 %v12942_v38, %v12939_v34 }
 0x647   : > { %1716 = vmatmul.f32.gmra.mxu0 %v1489_v33  ;;  %6092 = vmatmul.msk.f32.gmra.mxu1 %vm1089_vm4, %v1490_v20  ;;  %v3413_v20 = vmax.f32 %v9793_v4, %v3412_v3  ;;  %v10048_v33 = vpop.eup %6909  ;;  %v2510_v15 = vadd.f32 %v10038_v56, %v2509_v46  ;;  %v12947_v46 = vld [vmem:[#allocation34_spill] sm:$0xff] }
 0x648   : > { %12943 = vst [vmem:[#allocation42_spill] sm:$0xff] %v10048_v33  ;;  %v2553_v34 = vsel %vm1089_vm4, %v10048_v33, 0.0  ;;  %v2334_v3 = vsel %vm1186_vm3, %v12947_v46, -inf }
 0x64a   : > { %v2317_v10 = vpop.xlane.xlu2 %2316 }
 0x64b   : > { %v2377_v5 = vsub.f32 %v9495_v36, %v2317_v10  ;;  %v2378_v57 = vsub.f32 %v9471_v22, %v2317_v10  ;;  %v12945_v36 = vld [vmem:[#allocation64_spill] sm:$0xff]  ;;  %v10053_v22 = vpop.eup %6911  ;;  %v2421_v10 = vmul.f32 1.442695, %v2355_v39 }
 0x64c   : > { %v1492_v19 = vmul.f32 %v6906_v60, %v12945_v36  ;;  %12946 = vst [vmem:[#allocation102_spill] sm:$0xff] %v10053_v22  ;;  %v6914_v51 = vpop.eup %6913  ;;  %v12948_v60 = vld [vmem:[#allocation39_spill] sm:$0xff] }
 0x64d   : > { %v2467_v42 = vmul.f32 1.442695, %v2378_v57  ;;  %v2465_v50 = vmul.f32 1.442695, %v2377_v5  ;;  %v2554_v5 = vadd.f32 %v10053_v22, %v2553_v34  ;;  %v12949_v57 = vld [vmem:[#allocation28_spill] sm:$0xff]  ;;  %v10076_v22 = vpop.f32.mrf.mxu3 }
 0x64e   : > { %3414 = vmax.xlane.f32.xlu1 %v3413_v20  ;;  %2511 = vadd.xlane.f32.xlu0 %v2510_v15  ;;  %v2335_v20 = vsel %vm1188_vm5, %v12949_v57, -inf }
 0x64f   : > { %6915 = vpow2.f32 %v2467_v42  ;;  %1719 = vmatmul.f32.gmra.mxu0 %v1491_v2  ;;  %6093 = vmatmul.msk.f32.gmra.mxu1 %vm1089_vm4, %v1492_v19  ;;  %v2336_v39 = vmax.f32 %v2334_v3, %v2335_v20 }
 0x650   : > { %6917 = vpow2.f32 %v2423_v7  ;;  %v10071_v7 = vpop.f32.mrf.mxu2 }
 0x651   : > { %6919 = vpow2.f32 %v2465_v50  ;;  %v12951_v50 = vld [vmem:[#allocation58_spill] sm:$0xff] }
 0x652   : > { %v10060_v32 = vpop.xlane.xlu2 %2503  ;;  %6921 = vrcp.f32 %v12948_v60  ;;  %v1493_v42 = vmul.f32 %v6914_v51, %v12951_v50  ;;  %v12952_v60 = vld [vmem:[#allocation49_spill] sm:$0xff] }
 0x653   : > { %v2301_v15 = vpop.xlane.xlu0 %2300  ;;  %6923 = vpow2.f32 %v2421_v10  ;;  %v1494_v34 = vmul.f32 %v6914_v51, %v12952_v60 }
 0x654   : > { %v2369_v19 = vsub.f32 %v9415_v17, %v2301_v15  ;;  %v2370_v62 = vsub.f32 %v9403_v0, %v2301_v15 }
 0x655   : > { %v10068_v38 = vpop.eup %6915 }
 0x656   : > { %12950 = vst [vmem:[#allocation142_spill] sm:$0xff] %v10068_v38  ;;  %2555 = vadd.xlane.f32.xlu1 %v2554_v5  ;;  %v2449_v2 = vmul.f32 1.442695, %v2369_v19  ;;  %v2451_v36 = vmul.f32 1.442695, %v2370_v62  ;;  %v10074_v33 = vpop.eup %6917  ;;  %2337 = vmax.xlane.f32.xlu0 %v2336_v39  ;;  %v2565_v0 = vsel %vm1089_vm4, %v10068_v38, 0.0 }
 0x657   : > { %1722 = vmatmul.f32.gmra.mxu0 %v1493_v42  ;;  %v10078_v17 = vpop.eup %6919  ;;  %6094 = vmatmul.msk.f32.gmra.mxu1 %vm1089_vm4, %v1494_v34  ;;  %v2521_v51 = vsel %vm1089_vm4, %v10074_v33, 0.0  ;;  %v12954_v5 = vld [vmem:[#allocation52_spill] sm:$0xff]  ;;  %v12957_v42 = vld [vmem:[#allocation89_spill] sm:$0xff] }
 0x658   : > { %12953 = vst [vmem:[#allocation41_spill] sm:$0xff] %v10078_v17  ;;  %6925 = vpow2.f32 %v2449_v2  ;;  %v6922_v10 = vpop.eup %6921  ;;  %v2566_v15 = vadd.f32 %v10078_v17, %v2565_v0  ;;  %v12955_v62 = vld [vmem:[#allocation120_spill] sm:$0xff]  ;;  %v10097_v34 = vpop.f32.mrf.mxu2 }
 0x659   : > { %6927 = vpow2.f32 %v2451_v36  ;;  %v10083_v3 = vpop.eup %6923  ;;  %v1495_v39 = vmul.f32 %v6922_v10, %v12955_v62  ;;  %v1496_v2 = vmul.f32 %v6922_v10, %v12957_v42  ;;  %12959 = vst [vmem:[#allocation146_spill] sm:$0xff] %v10097_v34  ;;  %v3428_v62 = vsel %vm1089_vm4, %v9934_v59, -inf  ;;  %v12961_v42 = vld [vmem:[#allocation94_spill] sm:$0xff] }
 0x65a   : > { %6929 = vrcp.f32 %v12954_v5  ;;  %v2329_v20 = vpop.xlane.xlu2 %2328  ;;  %v2522_v19 = vadd.f32 %v10083_v3, %v2521_v51  ;;  %v10102_v51 = vpop.f32.mrf.mxu3  ;;  %v3420_v59 = vsel %vm1089_vm4, %v9832_v21, -inf }
 0x65b   : > { %v2384_v60 = vsub.f32 %v9549_v13, %v2329_v20  ;;  %12960 = vst [vmem:[#allocation55_spill] sm:$0xff] %v10102_v51  ;;  %v2383_v13 = vsub.f32 %v9557_v45, %v2329_v20  ;;  %6931 = vrcp.f32 %v12961_v42  ;;  %v3421_v45 = vmax.f32 %v9836_v23, %v3420_v59  ;;  %v12966_v59 = vld [vmem:[#allocation87_spill] sm:$0xff]  ;;  %v13001_v23 = vld [vmem:[#allocation112_spill] sm:$0xff] }
 0x65d   : > { %v2477_v17 = vmul.f32 1.442695, %v2383_v13  ;;  %v12964_v13 = vld [vmem:[#allocation105_spill] sm:$0xff] }
 0x65e   : > { %2567 = vadd.xlane.f32.xlu1 %v2566_v15  ;;  %v10091_v50 = vpop.eup %6925  ;;  %2523 = vadd.xlane.f32.xlu0 %v2522_v19  ;;  %v10104_v15 = vpop.permute.xlu1 %4180  ;;  %v3429_v19 = vmax.f32 %v9937_v47, %v3428_v62 }
 0x65f   : > { %12956 = vst [vmem:[#allocation98_spill] sm:$0xff] %v10091_v50  ;;  %v10094_v36 = vpop.eup %6927  ;;  %1725 = vmatmul.f32.gmra.mxu0 %v1495_v39  ;;  %6095 = vmatmul.msk.f32.gmra.mxu1 %vm1089_vm4, %v1496_v2  ;;  %v2479_v39 = vmul.f32 1.442695, %v2384_v60  ;;  %v12962_v2 = vld [vmem:[#allocation96_spill] sm:$0xff]  ;;  %v3436_v60 = vsel %vm1089_vm4, %v9984_v35, -inf }
 0x660   : > { %12958 = vst [vmem:[#allocation101_spill] sm:$0xff] %v10094_v36  ;;  %v2549_v0 = vsel %vm1089_vm4, %v10094_v36, 0.0  ;;  %v6930_v10 = vpop.eup %6929 }
 0x661   : > { %v2550_v5 = vadd.f32 %v10091_v50, %v2549_v0  ;;  %v1497_v38 = vmul.f32 %v6930_v10, %v12962_v2  ;;  %6933 = vpow2.f32 %v2479_v39  ;;  %v12963_v0 = vld [vmem:[#allocation93_spill] sm:$0xff]  ;;  %v6932_v20 = vpop.eup %6931  ;;  %v10133_v39 = vpop.f32.mrf.mxu1 }
 0x662   : > { %v1498_v50 = vmul.f32 %v6930_v10, %v12963_v0  ;;  %6935 = vpow2.f32 %v2477_v17  ;;  %v10125_v10 = vpop.f32.mrf.mxu3  ;;  %12968 = vst [vmem:[#allocation82_spill] sm:$0xff] %v10133_v39  ;;  %v12969_v17 = vld [vmem:[#allocation81_spill] sm:$0xff] }
 0x663   : > { %2551 = vadd.xlane.f32.xlu2 %v2550_v5  ;;  %v10122_v5 = vpop.f32.mrf.mxu2  ;;  %6937 = vrcp.f32 %v12964_v13  ;;  %v1500_v2 = vmul.f32 %v6932_v20, %v12969_v17 }
 0x666   : > { %3430 = vmax.xlane.f32.xlu1 %v3429_v19  ;;  %v4175_v36 = vpop.permute.xlu0 %4174  ;;  %v4183_v62 = vpop.permute.xlu1 %4182 }
 0x667   : > { %1728 = vmatmul.f32.gmra.mxu0 %v1497_v38  ;;  %6339 = vmatmul.msk.f32.gmra.mxu3 %vm779_vm2, %v4175_v36  ;;  %v3437_v38 = vmax.f32 %v9989_v24, %v3436_v60  ;;  %v10131_v19 = vpop.f32.mrf.mxu0 }
 0x668   : > { %6373 = vmatmul.msk.f32.gmra.mxu2 %vm779_vm2, %v4175_v36  ;;  %6096 = vmatmul.msk.f32.gmra.mxu1 %vm1089_vm4, %v1498_v50  ;;  %v10128_v36 = vpop.eup %6933  ;;  %v1499_v50 = vmul.f32 %v6932_v20, %v12966_v59  ;;  %12967 = vst [vmem:[#allocation84_spill] sm:$0xff] %v10131_v19  ;;  %v12972_v59 = vld [vmem:[#allocation103_spill] sm:$0xff]  ;;  %v12976_v19 = vld [vmem:[#allocation72_spill] sm:$0xff] }
 0x669   : > { %12965 = vst [vmem:[#allocation99_spill] sm:$0xff] %v10128_v36  ;;  %v10136_v0 = vpop.eup %6935  ;;  %6939 = vrcp.f32 %v12972_v59  ;;  %v10157_v24 = vpop.f32.mrf.mxu1 }
 0x66a   : > { %12970 = vst [vmem:[#allocation90_spill] sm:$0xff] %v10136_v0  ;;  %v6938_v60 = vpop.eup %6937 }
 0x66b   : > { %3422 = vmax.xlane.f32.xlu2 %v3421_v45  ;;  %v2577_v45 = vsel %vm1089_vm4, %v10128_v36, 0.0  ;;  %v10147_v20 = vpop.f32.mrf.mxu2  ;;  %12978 = vst [vmem:[#allocation79_spill] sm:$0xff] %v10157_v24 }
 0x66c   : > { %v2578_v13 = vadd.f32 %v10136_v0, %v2577_v45  ;;  %12973 = vst [vmem:[#allocation73_spill] sm:$0xff] %v10147_v20 }
 0x66e   : > { %3438 = vmax.xlane.f32.xlu1 %v3437_v38  ;;  %v4177_v42 = vpop.permute.xlu0 %4176  ;;  %v12971_v38 = vld [vmem:[#allocation136_spill] sm:$0xff]  ;;  %v10151_v17 = vpop.permute.xlu1 %4190 }
 0x66f   : > { %1731 = vmatmul.f32.gmra.mxu0 %v1499_v50  ;;  %6340 = vmatmul.msk.f32.gmra.mxu3 %vm779_vm2, %v4177_v42  ;;  %v10149_v50 = vpop.f32.mrf.mxu3  ;;  %v10155_v36 = vpop.f32.mrf.mxu0 }
 0x670   : > { %6374 = vmatmul.msk.f32.gmra.mxu2 %vm779_vm2, %v4177_v42  ;;  %6097 = vmatmul.msk.f32.gmra.mxu1 %vm1089_vm4, %v1500_v2  ;;  %12974 = vst [vmem:[#allocation145_spill] sm:$0xff] %v10149_v50  ;;  %v12975_v42 = vld [vmem:[#allocation74_spill] sm:$0xff]  ;;  %v1502_v2 = vmul.f32 %v6938_v60, %v12976_v19  ;;  %v6940_v45 = vpop.eup %6939 }
 0x671   : > { %v1501_v39 = vmul.f32 %v6938_v60, %v12975_v42  ;;  %12977 = vst [vmem:[#allocation59_spill] sm:$0xff] %v10155_v36  ;;  %v12980_v60 = vld [vmem:[#allocation61_spill] sm:$0xff]  ;;  %v10178_v0 = vpop.f32.mrf.mxu1 }
 0x672   : > { %4192 = vrot.lane.b32.xlu0 %v12971_v38, %s7353_s11  ;;  %v3448_v38 = vsel %vm1089_vm4, %v10097_v34, -inf  ;;  %v1503_v59 = vmul.f32 %v6940_v45, %v12980_v60  ;;  %12983 = vst [vmem:[#allocation150_spill] sm:$0xff] %v10178_v0  ;;  %v12984_v60 = vld [vmem:[#allocation119_spill] sm:$0xff]  ;;  %v12986_v0 = vld [vmem:[#allocation46_spill] sm:$0xff] }
 0x673   : > { %v10171_v42 = vpop.f32.mrf.mxu2 }
 0x676   : > { %2579 = vadd.xlane.f32.xlu1 %v2578_v13  ;;  %v12979_v13 = vld [vmem:[#allocation114_spill] sm:$0xff]  ;;  %v10168_v19 = vpop.xlane.xlu1 %2308 }
 0x677   : > { %1734 = vmatmul.f32.gmra.mxu0 %v1501_v39  ;;  %6341 = vmatmul.msk.f32.gmra.mxu3 %vm779_vm2, %v9946_v40  ;;  %v3449_v39 = vmax.f32 %v10102_v51, %v3448_v38  ;;  %6941 = vrcp.f32 %v12979_v13  ;;  %v10173_v24 = vpop.f32.mrf.mxu3  ;;  %v10176_v36 = vpop.f32.mrf.mxu0 }
 0x678   : > { %6375 = vmatmul.msk.f32.gmra.mxu2 %vm779_vm2, %v9946_v40  ;;  %6098 = vmatmul.msk.f32.gmra.mxu1 %vm1089_vm4, %v1502_v2  ;;  %v12981_v40 = vld [vmem:[#allocation60_spill] sm:$0xff]  ;;  %12982 = vst [vmem:[#allocation70_spill] sm:$0xff] %v10176_v36  ;;  %6943 = vrcp.f32 %v12984_v60 }
 0x679   : > { %v1504_v2 = vmul.f32 %v6940_v45, %v12981_v40  ;;  %v12985_v45 = vld [vmem:[#allocation45_spill] sm:$0xff] }
 0x67d   : > { %v6942_v38 = vpop.eup %6941 }
 0x67e   : > { %3450 = vmax.xlane.f32.xlu1 %v3449_v39  ;;  %v3456_v39 = vsel %vm1089_vm4, %v10147_v20, -inf  ;;  %v10190_v40 = vpop.xlane.xlu1 %2495  ;;  %v1506_v36 = vmul.f32 %v6942_v38, %v12986_v0  ;;  %v12992_v20 = vld [vmem:[#allocation76_spill] sm:$0xff] }
 0x67f   : > { %1737 = vmatmul.f32.gmra.mxu0 %v1503_v59  ;;  %6342 = vmatmul.msk.f32.gmra.mxu3 %vm779_vm2, %v10104_v15  ;;  %v3457_v13 = vmax.f32 %v10149_v50, %v3456_v39  ;;  %v1505_v59 = vmul.f32 %v6942_v38, %v12985_v45  ;;  %v6944_v39 = vpop.eup %6943  ;;  %v10200_v60 = vpop.f32.mrf.mxu0  ;;  %v12989_v45 = vld [vmem:[#allocation127_spill] sm:$0xff]  ;;  %v12990_v50 = vld [vmem:[#allocation38_spill] sm:$0xff] }
 0x680   : > { %6376 = vmatmul.msk.f32.gmra.mxu2 %vm779_vm2, %v10104_v15  ;;  %6099 = vmatmul.msk.f32.gmra.mxu1 %vm1089_vm4, %v1504_v2  ;;  %v10195_v15 = vpop.f32.mrf.mxu2  ;;  %v10197_v2 = vpop.f32.mrf.mxu3  ;;  %12987 = vst [vmem:[#allocation123_spill] sm:$0xff] %v10200_v60  ;;  %6945 = vrcp.f32 %v12989_v45  ;;  %v1507_v0 = vmul.f32 %v6944_v39, %v12990_v50  ;;  %v12991_v38 = vld [vmem:[#allocation130_spill] sm:$0xff]  ;;  %v12994_v45 = vld [vmem:[#allocation77_spill] sm:$0xff] }
 0x681   : > { %v2362_v51 = vsub.f32 %v12992_v20, %v12991_v38  ;;  %v2361_v60 = vsub.f32 %v12994_v45, %v12991_v38  ;;  %v12997_v20 = vld [vmem:[#allocation19_spill] sm:$0xff]  ;;  %v13002_v38 = vld [vmem:[#allocation37_spill] sm:$0xff] }
 0x682   : > { %6947 = vrcp.f32 %v12997_v20  ;;  %v3392_v45 = vsel %vm1089_vm4, %v13002_v38, -inf  ;;  %v13003_v20 = vld [vmem:[#allocation151_spill] sm:$0xff] }
 0x683   : > { %v2435_v35 = vmul.f32 1.442695, %v2362_v51  ;;  %v2433_v4 = vmul.f32 1.442695, %v2361_v60 }
 0x685   : > { %6949 = vpow2.f32 %v2435_v35  ;;  %v13004_v35 = vld [vmem:[#allocation107_spill] sm:$0xff] }
 0x686   : > { %3458 = vmax.xlane.f32.xlu1 %v3457_v13  ;;  %v10202_v13 = vpop.f32.mrf.mxu1  ;;  %6951 = vpow2.f32 %v2433_v4  ;;  %v13011_v4 = vld [vmem:[#allocation132_spill] sm:$0xff] }
 0x687   : > { %1740 = vmatmul.f32.gmra.mxu0 %v1505_v59  ;;  %6343 = vmatmul.msk.f32.gmra.mxu3 %vm779_vm2, %v4183_v62  ;;  %12988 = vst [vmem:[#allocation109_spill] sm:$0xff] %v10202_v13  ;;  %v4185_v59 = vpop.permute.xlu0 %4184  ;;  %v6946_v13 = vpop.eup %6945  ;;  %6953 = vrcp.f32 %v13004_v35 }
 0x688   : > { %6377 = vmatmul.msk.f32.gmra.mxu2 %vm779_vm2, %v4183_v62  ;;  %6100 = vmatmul.msk.f32.gmra.mxu1 %vm1089_vm4, %v1506_v36  ;;  %v12993_v62 = vld [vmem:[#allocation50_spill] sm:$0xff]  ;;  %v10211_v36 = vpop.xlane.xlu1 %2320  ;;  %v10216_v50 = vpop.f32.mrf.mxu2  ;;  %v1510_v21 = vmul.f32 %v6946_v13, %v13001_v23 }
 0x689   : > { %v1508_v34 = vmul.f32 %v6944_v39, %v12993_v62  ;;  %12995 = vst [vmem:[#allocation75_spill] sm:$0xff] %v10216_v50  ;;  %v10218_v47 = vpop.f32.mrf.mxu3  ;;  %v10221_v39 = vpop.f32.mrf.mxu0 }
 0x68a   : > { %12996 = vst [vmem:[#allocation69_spill] sm:$0xff] %v10218_v47  ;;  %v6948_v51 = vpop.eup %6947  ;;  %v13012_v47 = vld [vmem:[#allocation47_spill] sm:$0xff] }
 0x68b   : > { %12998 = vst [vmem:[#allocation128_spill] sm:$0xff] %v10221_v39  ;;  %v1512_v50 = vmul.f32 %v6948_v51, %v13012_v47 }
 0x68f   : > { %1743 = vmatmul.f32.gmra.mxu0 %v1507_v0  ;;  %6344 = vmatmul.msk.f32.gmra.mxu3 %vm779_vm2, %v4185_v59  ;;  %v10223_v0 = vpop.f32.mrf.mxu1 }
 0x690   : > { %6378 = vmatmul.msk.f32.gmra.mxu2 %vm779_vm2, %v4185_v59  ;;  %6101 = vmatmul.msk.f32.gmra.mxu1 %vm1089_vm4, %v1508_v34  ;;  %12999 = vst [vmem:[#allocation124_spill] sm:$0xff] %v10223_v0  ;;  %v13000_v59 = vld [vmem:[#allocation110_spill] sm:$0xff]  ;;  %v4187_v34 = vpop.permute.xlu0 %4186  ;;  %v3393_v0 = vmax.f32 %v13003_v20, %v3392_v45  ;;  %v2368_v45 = vsub.f32 %v13011_v4, %v9913_v30 }
 0x691   : > { %v1509_v62 = vmul.f32 %v6946_v13, %v13000_v59  ;;  %v10233_v59 = vpop.xlane.xlu1 %2507  ;;  %v10240_v13 = vpop.eup %6949 }
 0x692   : > { %13007 = vst [vmem:[#allocation56_spill] sm:$0xff] %v10240_v13  ;;  %v10245_v39 = vpop.f32.mrf.mxu3  ;;  %v10250_v35 = vpop.eup %6951 }
 0x693   : > { %13010 = vst [vmem:[#allocation34_spill] sm:$0xff] %v10245_v39 }
 0x697   : > { %1746 = vmatmul.f32.gmra.mxu0 %v1509_v62  ;;  %6345 = vmatmul.msk.f32.gmra.mxu3 %vm779_vm2, %v4187_v34  ;;  %v13008_v62 = vld [vmem:[#allocation113_spill] sm:$0xff] }
 0x698   : > { %6379 = vmatmul.msk.f32.gmra.mxu2 %vm779_vm2, %v4187_v34  ;;  %6102 = vmatmul.msk.f32.gmra.mxu1 %vm1089_vm4, %v1510_v21  ;;  %v1511_v21 = vmul.f32 %v6948_v51, %v13008_v62  ;;  %v10243_v34 = vpop.f32.mrf.mxu2  ;;  %v6954_v62 = vpop.eup %6953  ;;  %v13014_v51 = vld [vmem:[#allocation143_spill] sm:$0xff] }
 0x699   : > { %13009 = vst [vmem:[#allocation64_spill] sm:$0xff] %v10243_v34  ;;  %6955 = vrcp.f32 %v13014_v51  ;;  %v10267_v34 = vpop.xlane.xlu1 %2332 }
 0x69c   : > { %v10236_v60 = vpop.f32.mrf.mxu0  ;;  %v10238_v23 = vpop.f32.mrf.mxu1  ;;  %3394 = vmax.xlane.f32.xlu0 %v3393_v0  ;;  %v2533_v0 = vsel %vm1089_vm4, %v10240_v13, 0.0 }
 0x69d   : > { %13005 = vst [vmem:[#allocation149_spill] sm:$0xff] %v10236_v60  ;;  %v2534_v47 = vadd.f32 %v10250_v35, %v2533_v0  ;;  %v13021_v0 = vld [vmem:[#allocation30_spill] sm:$0xff] }
 0x69e   : > { %13006 = vst [vmem:[#allocation54_spill] sm:$0xff] %v10238_v23  ;;  %v13013_v23 = vld [vmem:[#allocation131_spill] sm:$0xff] }
 0x69f   : > { %1749 = vmatmul.f32.gmra.mxu0 %v1511_v21  ;;  %6346 = vmatmul.msk.f32.gmra.mxu3 %vm779_vm2, %v9970_v49  ;;  %v2367_v4 = vsub.f32 %v13013_v23, %v9913_v30  ;;  %v2447_v21 = vmul.f32 1.442695, %v2368_v45  ;;  %v10273_v23 = vpop.f32.mrf.mxu3  ;;  %v6956_v45 = vpop.eup %6955 }
 0x6a0   : > { %6380 = vmatmul.msk.f32.gmra.mxu2 %vm779_vm2, %v9970_v49  ;;  %6103 = vmatmul.msk.f32.gmra.mxu1 %vm1089_vm4, %v1512_v50  ;;  %v13017_v49 = vld [vmem:[#allocation116_spill] sm:$0xff]  ;;  %v13018_v50 = vld [vmem:[#allocation121_spill] sm:$0xff]  ;;  %v10271_v30 = vpop.f32.mrf.mxu2  ;;  %13020 = vst [vmem:[#allocation49_spill] sm:$0xff] %v10273_v23  ;;  %v13026_v23 = vld [vmem:[#allocation62_spill] sm:$0xff] }
 0x6a1   : > { %v1513_v13 = vmul.f32 %v6954_v62, %v13017_v49  ;;  %v2445_v38 = vmul.f32 1.442695, %v2367_v4  ;;  %6957 = vpow2.f32 %v2447_v21  ;;  %v1514_v20 = vmul.f32 %v6954_v62, %v13018_v50  ;;  %13019 = vst [vmem:[#allocation58_spill] sm:$0xff] %v10271_v30  ;;  %v13022_v21 = vld [vmem:[#allocation117_spill] sm:$0xff]  ;;  %v10295_v30 = vpop.xlane.xlu1 %2519 }
 0x6a2   : > { %v3400_v4 = vsel %vm1089_vm4, %v13021_v0, -inf  ;;  %v13023_v49 = vld [vmem:[#allocation141_spill] sm:$0xff] }
 0x6a3   : > { %6959 = vpow2.f32 %v2445_v38  ;;  %v3401_v62 = vmax.f32 %v13022_v21, %v3400_v4  ;;  %v1515_v38 = vmul.f32 %v6956_v45, %v13026_v23  ;;  %v2374_v4 = vsub.f32 %v9437_v9, %v10168_v19 }
 0x6a4   : > { %v10263_v60 = vpop.f32.mrf.mxu0  ;;  %v10265_v39 = vpop.f32.mrf.mxu1  ;;  %2535 = vadd.xlane.f32.xlu0 %v2534_v47  ;;  %6961 = vrcp.f32 %v13023_v49  ;;  %v2373_v23 = vsub.f32 %v9443_v63, %v10168_v19  ;;  %v2380_v63 = vsub.f32 %v9512_v27, %v10211_v36  ;;  %v13032_v19 = vld [vmem:[#allocation91_spill] sm:$0xff]  ;;  %v2379_v27 = vsub.f32 %v9524_v16, %v10211_v36 }
 0x6a5   : > { %13015 = vst [vmem:[#allocation39_spill] sm:$0xff] %v10263_v60  ;;  %v2459_v9 = vmul.f32 1.442695, %v2374_v4 }
 0x6a6   : > { %13016 = vst [vmem:[#allocation28_spill] sm:$0xff] %v10265_v39  ;;  %v2469_v36 = vmul.f32 1.442695, %v2379_v27 }
 0x6a7   : > { %1752 = vmatmul.f32.gmra.mxu0 %v1513_v13  ;;  %6347 = vmatmul.msk.f32.gmra.mxu3 %vm779_vm2, %v10151_v17 }
 0x6a8   : > { %6381 = vmatmul.msk.f32.gmra.mxu2 %vm779_vm2, %v10151_v17  ;;  %6104 = vmatmul.msk.f32.gmra.mxu1 %vm1089_vm4, %v1514_v20  ;;  %v10290_v17 = vpop.eup %6957 }
 0x6a9   : > { %v2313_v13 = vpop.xlane.xlu0 %2312  ;;  %v2545_v49 = vsel %vm1089_vm4, %v10290_v17, 0.0 }
 0x6aa   : > { %v2375_v47 = vsub.f32 %v12921_v18, %v2313_v13  ;;  %v2376_v51 = vsub.f32 %v12919_v29, %v2313_v13  ;;  %v13027_v29 = vld [vmem:[#allocation78_spill] sm:$0xff]  ;;  %v10298_v13 = vpop.eup %6959 }
 0x6ab   : > { %v1516_v18 = vmul.f32 %v6956_v45, %v13027_v29 }
 0x6ac   : > { %v10286_v50 = vpop.f32.mrf.mxu0  ;;  %v10288_v39 = vpop.f32.mrf.mxu1  ;;  %v2461_v20 = vmul.f32 1.442695, %v2375_v47  ;;  %v2463_v60 = vmul.f32 1.442695, %v2376_v51  ;;  %3402 = vmax.xlane.f32.xlu0 %v3401_v62  ;;  %v2546_v51 = vadd.f32 %v10298_v13, %v2545_v49 }
 0x6ad   : > { %13024 = vst [vmem:[#allocation52_spill] sm:$0xff] %v10286_v50  ;;  %v6962_v62 = vpop.eup %6961 }
 0x6ae   : > { %13025 = vst [vmem:[#allocation120_spill] sm:$0xff] %v10288_v39  ;;  %6963 = vpow2.f32 %v2461_v20  ;;  %v2457_v39 = vmul.f32 1.442695, %v2373_v23  ;;  %v1518_v4 = vmul.f32 %v6962_v62, %v13032_v19  ;;  %v3416_v23 = vsel %vm1089_vm4, %v9817_v61, -inf }
 0x6af   : > { %1755 = vmatmul.f32.gmra.mxu0 %v1515_v38  ;;  %6965 = vpow2.f32 %v2463_v60  ;;  %v13030_v38 = vld [vmem:[#allocation88_spill] sm:$0xff] }
 0x6b0   : > { %6105 = vmatmul.msk.f32.gmra.mxu1 %vm1089_vm4, %v1516_v18  ;;  %6967 = vrcp.f32 %v10019_v48  ;;  %v1517_v29 = vmul.f32 %v6962_v62, %v13030_v38 }
 0x6b1   : > { %v2500_v47 = vpop.xlane.xlu0 %2499  ;;  %6969 = vpow2.f32 %v2459_v9  ;;  %v2471_v9 = vmul.f32 1.442695, %v2380_v63  ;;  %v13036_v63 = vld [vmem:[#allocation106_spill] sm:$0xff] }
 0x6b2   : > { %6971 = vpow2.f32 %v2457_v39 }
 0x6b3   : > { %6973 = vrcp.f32 %v10190_v40 }
 0x6b4   : > { %v10307_v20 = vpop.f32.mrf.mxu0  ;;  %v10309_v45 = vpop.eup %6963  ;;  %2547 = vadd.xlane.f32.xlu0 %v2546_v51  ;;  %6975 = vpow2.f32 %v2471_v9 }
 0x6b5   : > { %13028 = vst [vmem:[#allocation89_spill] sm:$0xff] %v10307_v20  ;;  %v10311_v60 = vpop.f32.mrf.mxu1  ;;  %v10314_v18 = vpop.eup %6965  ;;  %v13034_v20 = vld [vmem:[#allocation43_spill] sm:$0xff] }
 0x6b6   : > { %13029 = vst [vmem:[#allocation94_spill] sm:$0xff] %v10311_v60  ;;  %v2561_v48 = vsel %vm1089_vm4, %v10314_v18, 0.0  ;;  %v10322_v51 = vpop.xlane.xlu1 %3390  ;;  %v6968_v38 = vpop.eup %6967 }
 0x6b7   : > { %13031 = vst [vmem:[#allocation96_spill] sm:$0xff] %v10314_v18  ;;  %1758 = vmatmul.f32.gmra.mxu0 %v1517_v29  ;;  %v2562_v49 = vadd.f32 %v10309_v45, %v2561_v48  ;;  %v3417_v29 = vmax.f32 %v9819_v8, %v3416_v23  ;;  %v10335_v60 = vpop.eup %6969  ;;  %v2615_v39 = vmul.f32 %v6968_v38, %v13034_v20 }
 0x6b8   : > { %6106 = vmatmul.msk.f32.gmra.mxu1 %vm1089_vm4, %v1518_v4  ;;  %v10343_v40 = vpop.eup %6971  ;;  %v2557_v20 = vsel %vm1089_vm4, %v10335_v60, 0.0 }
 0x6b9   : > { %2563 = vadd.xlane.f32.xlu2 %v2562_v49  ;;  %v2325_v62 = vpop.xlane.xlu0 %2324  ;;  %v6974_v23 = vpop.eup %6973 }
 0x6ba   : > { %v2381_v19 = vsub.f32 %v12935_v11, %v2325_v62  ;;  %v2382_v48 = vsub.f32 %v12934_v55, %v2325_v62  ;;  %v3424_v11 = vsel %vm1089_vm4, %v9857_v58, -inf  ;;  %v2616_v55 = vmul.f32 %v6968_v38, %v13036_v63  ;;  %v10354_v38 = vpop.eup %6975 }
 0x6bb   : > { %v3425_v49 = vmax.f32 %v9859_v6, %v3424_v11 }
 0x6bc   : > { %v10333_v4 = vpop.f32.mrf.mxu0  ;;  %v2473_v50 = vmul.f32 1.442695, %v2381_v19  ;;  %v2475_v18 = vmul.f32 1.442695, %v2382_v48  ;;  %3418 = vmax.xlane.f32.xlu0 %v3417_v29  ;;  %v2617_v19 = vmul.f32 %v6974_v23, %v9871_v54 }
 0x6bd   : > { %13033 = vst [vmem:[#allocation93_spill] sm:$0xff] %v10333_v4  ;;  %v10338_v16 = vpop.f32.mrf.mxu1 }
 0x6be   : > { %13035 = vst [vmem:[#allocation105_spill] sm:$0xff] %v10338_v16  ;;  %6977 = vpow2.f32 %v2473_v50  ;;  %v10351_v9 = vpop.xlane.xlu1 %2531  ;;  %v2558_v50 = vadd.f32 %v10343_v40, %v2557_v20 }
 0x6bf   : > { %2832 = vmatmul.f32.vlgmr.msra.gmra.mxu0 %v2615_v39  ;;  %6979 = vpow2.f32 %v2475_v18  ;;  %v2386_v39 = vsub.f32 %v12898_v1, %v10267_v34  ;;  %v2385_v1 = vsub.f32 %v12899_v37, %v10267_v34 }
 0x6c0   : > { %6183 = vmatmul.msk.f32.vlgmr.msra.gmra.mxu1 %vm1089_vm4, %v2616_v55  ;;  %6981 = vpow2.f32 %v2469_v36  ;;  %v2618_v36 = vmul.f32 %v6974_v23, %v9863_v41  ;;  %v2569_v55 = vsel %vm1089_vm4, %v10354_v38, 0.0 }
 0x6c1   : > { %3426 = vmax.xlane.f32.xlu2 %v3425_v49  ;;  %v10349_v27 = vpop.xlane.xlu0 %2511  ;;  %6983 = vrcp.f32 %v2500_v47  ;;  %v10376_v49 = vpop.xlane.xlu2 %2515  ;;  %v2483_v20 = vmul.f32 1.442695, %v2386_v39  ;;  %v2481_v39 = vmul.f32 1.442695, %v2385_v1 }
 0x6c2   : > { %6985 = vrcp.f32 %v10060_v32  ;;  %v3487_v32 = vsub.f32 %v9657_v43, %v10322_v51 }
 0x6c3   : > { %6987 = vpow2.f32 %v2483_v20 }
 0x6c4   : > { %v10356_v62 = vpop.f32.mrf.mxu0  ;;  %v10358_v18 = vpop.eup %6977  ;;  %2559 = vadd.xlane.f32.xlu0 %v2558_v50  ;;  %v3539_v43 = vmul.f32 1.442695, %v3487_v32 }
 0x6c5   : > { %13037 = vst [vmem:[#allocation87_spill] sm:$0xff] %v10356_v62  ;;  %v10360_v29 = vpop.f32.mrf.mxu1  ;;  %v10363_v48 = vpop.eup %6979 }
 0x6c6   : > { %13038 = vst [vmem:[#allocation81_spill] sm:$0xff] %v10360_v29  ;;  %v2573_v47 = vsel %vm1089_vm4, %v10363_v48, 0.0  ;;  %v10370_v11 = vpop.eup %6981  ;;  %v10388_v29 = vpop.xlane.xlu1 %3398 }
 0x6c7   : > { %2835 = vmatmul.f32.gmra.mxu0 %v2617_v19  ;;  %v2574_v63 = vadd.f32 %v10358_v18, %v2573_v47  ;;  %v6984_v54 = vpop.eup %6983  ;;  %v2570_v19 = vadd.f32 %v10370_v11, %v2569_v55 }
 0x6c8   : > { %6184 = vmatmul.msk.f32.gmra.mxu1 %vm1089_vm4, %v2618_v36  ;;  %v3488_v36 = vsub.f32 %v9659_v28, %v10322_v51  ;;  %v2620_v28 = vmul.f32 %v6984_v54, %v9987_v31 }
 0x6c9   : > { %2575 = vadd.xlane.f32.xlu2 %v2574_v63  ;;  %v2338_v41 = vpop.xlane.xlu0 %2337  ;;  %v3387_v31 = vpop.xlane.xlu2 %3386 }
 0x6ca   : > { %v2387_v23 = vsub.f32 %v12947_v46, %v2338_v41  ;;  %v2388_v50 = vsub.f32 %v12949_v57, %v2338_v41  ;;  %v2619_v46 = vmul.f32 %v6984_v54, %v10000_v14  ;;  %v3440_v57 = vsel %vm1089_vm4, %v10012_v44, -inf  ;;  %v6986_v41 = vpop.eup %6985 }
 0x6cb   : > { %v3441_v63 = vmax.f32 %v10015_v12, %v3440_v57  ;;  %v3541_v55 = vmul.f32 1.442695, %v3488_v36  ;;  %v3432_v14 = vsel %vm1089_vm4, %v9963_v25, -inf  ;;  %v10404_v51 = vpop.eup %6987 }
 0x6cc   : > { %v10386_v47 = vpop.f32.mrf.mxu0  ;;  %v2485_v62 = vmul.f32 1.442695, %v2387_v23  ;;  %v2487_v37 = vmul.f32 1.442695, %v2388_v50  ;;  %2571 = vadd.xlane.f32.xlu0 %v2570_v19  ;;  %v3433_v1 = vmax.f32 %v9965_v52, %v3432_v14  ;;  %v2621_v23 = vmul.f32 %v6986_v41, %v9807_v53 }
 0x6cd   : > { %13039 = vst [vmem:[#allocation136_spill] sm:$0xff] %v10386_v47  ;;  %v10390_v34 = vpop.f32.mrf.mxu1  ;;  %v2581_v53 = vsel %vm1089_vm4, %v10404_v51, 0.0 }
 0x6ce   : > { %13040 = vst [vmem:[#allocation103_spill] sm:$0xff] %v10390_v34  ;;  %6989 = vpow2.f32 %v2485_v62  ;;  %v10418_v36 = vpop.xlane.xlu1 %2543 }
 0x6cf   : > { %2838 = vmatmul.f32.gmra.mxu0 %v2619_v46  ;;  %6991 = vpow2.f32 %v2487_v37  ;;  %v13043_v37 = vld [vmem:[#allocation53_spill] sm:$0xff] }
 0x6d0   : > { %6185 = vmatmul.msk.f32.gmra.mxu1 %vm1089_vm4, %v2620_v28  ;;  %6993 = vpow2.f32 %v2481_v39  ;;  %v2622_v46 = vmul.f32 %v6986_v41, %v13043_v37 }
 0x6d1   : > { %3442 = vmax.xlane.f32.xlu2 %v3441_v63  ;;  %6995 = vrcp.f32 %v10233_v59  ;;  %v3486_v59 = vsub.f32 %v9619_v26, %v3387_v31  ;;  %v13044_v26 = vld [vmem:[#allocation148_spill] sm:$0xff]  ;;  %v10439_v37 = vpop.xlane.xlu0 %2523 }
 0x6d2   : > { %6997 = vpow2.f32 %v3541_v55  ;;  %v3485_v55 = vsub.f32 %v13044_v26, %v3387_v31 }
 0x6d3   : > { %6999 = vpow2.f32 %v3539_v43  ;;  %v3537_v14 = vmul.f32 1.442695, %v3486_v59 }
 0x6d4   : > { %v10406_v62 = vpop.f32.mrf.mxu0  ;;  %v10408_v54 = vpop.eup %6989  ;;  %3434 = vmax.xlane.f32.xlu0 %v3433_v1  ;;  %v13045_v1 = vld [vmem:[#allocation48_spill] sm:$0xff]  ;;  %7001 = vrcp.f32 %v10349_v27 }
 0x6d5   : > { %13041 = vst [vmem:[#allocation74_spill] sm:$0xff] %v10406_v62  ;;  %v10410_v20 = vpop.f32.mrf.mxu1  ;;  %v10413_v50 = vpop.eup %6991  ;;  %v2585_v19 = vsel %vm1186_vm3, %v10408_v54, 0.0  ;;  %v3492_v43 = vsub.f32 %v13045_v1, %v10388_v29  ;;  %7003 = vpow2.f32 %v3537_v14  ;;  %v13050_v27 = vld [vmem:[#allocation80_spill] sm:$0xff]  ;;  %v13051_v14 = vld [vmem:[#allocation26_spill] sm:$0xff] }
 0x6d6   : > { %13042 = vst [vmem:[#allocation72_spill] sm:$0xff] %v10410_v20  ;;  %v2586_v39 = vsel %vm1188_vm5, %v10413_v50, 0.0  ;;  %v10423_v57 = vpop.eup %6993  ;;  %v3407_v62 = vpop.xlane.xlu1 %3406 }
 0x6d7   : > { %2841 = vmatmul.f32.gmra.mxu0 %v2621_v23  ;;  %v2587_v32 = vadd.f32 %v2586_v39, %v2585_v19  ;;  %v6996_v28 = vpop.eup %6995  ;;  %v2582_v41 = vadd.f32 %v10423_v57, %v2581_v53  ;;  %v13048_v39 = vld [vmem:[#allocation92_spill] sm:$0xff]  ;;  %v13049_v53 = vld [vmem:[#allocation135_spill] sm:$0xff] }
 0x6d8   : > { %6186 = vmatmul.msk.f32.gmra.mxu1 %vm1089_vm4, %v2622_v46  ;;  %v10428_v63 = vpop.eup %6997  ;;  %v2623_v31 = vmul.f32 %v6996_v28, %v13048_v39  ;;  %v3491_v26 = vsub.f32 %v13049_v53, %v10388_v29  ;;  %v2624_v1 = vmul.f32 %v6996_v28, %v13050_v27  ;;  %v3444_v39 = vsel %vm1089_vm4, %v10071_v7, -inf }
 0x6d9   : > { %2588 = vadd.xlane.f32.xlu2 %v2587_v32  ;;  %v10437_v19 = vpop.eup %6999  ;;  %v3639_v59 = vsel %vm1089_vm4, %v10428_v63, 0.0  ;;  %v3535_v32 = vmul.f32 1.442695, %v3485_v55  ;;  %v3445_v55 = vmax.f32 %v10076_v22, %v3444_v39  ;;  %v3496_v28 = vsub.f32 %v13051_v14, %v3407_v62 }
 0x6da   : > { %v3640_v20 = vadd.f32 %v10437_v19, %v3639_v59  ;;  %v3547_v29 = vmul.f32 1.442695, %v3491_v26  ;;  %v10460_v59 = vpop.f32.mrf.mxu2 }
 0x6db   : > { %7005 = vpow2.f32 %v3535_v32  ;;  %13053 = vst [vmem:[#allocation119_spill] sm:$0xff] %v10460_v59  ;;  %v10463_v32 = vpop.f32.mrf.mxu3  ;;  %v3557_v14 = vmul.f32 1.442695, %v3496_v28  ;;  %v13061_v28 = vld [vmem:[#allocation57_spill] sm:$0xff] }
 0x6dc   : > { %v10435_v23 = vpop.f32.mrf.mxu0  ;;  %2583 = vadd.xlane.f32.xlu0 %v2582_v41  ;;  %v7002_v41 = vpop.eup %7001  ;;  %7007 = vrcp.f32 %v10376_v49  ;;  %13054 = vst [vmem:[#allocation45_spill] sm:$0xff] %v10463_v32  ;;  %v3460_v49 = vsel %vm1089_vm4, %v10171_v42, -inf }
 0x6dd   : > { %13046 = vst [vmem:[#allocation114_spill] sm:$0xff] %v10435_v23  ;;  %v10441_v46 = vpop.f32.mrf.mxu1  ;;  %v3549_v23 = vmul.f32 1.442695, %v3492_v43  ;;  %v2625_v27 = vmul.f32 %v7002_v41, %v10038_v56  ;;  %v3461_v56 = vmax.f32 %v10173_v24, %v3460_v49 }
 0x6de   : > { %13047 = vst [vmem:[#allocation61_spill] sm:$0xff] %v10441_v46 }
 0x6df   : > { %2844 = vmatmul.f32.gmra.mxu0 %v2623_v31  ;;  %7009 = vpow2.f32 %v3549_v23  ;;  %v10458_v31 = vpop.eup %7003  ;;  %v13056_v23 = vld [vmem:[#allocation40_spill] sm:$0xff] }
 0x6e0   : > { %6187 = vmatmul.msk.f32.gmra.mxu1 %vm1089_vm4, %v2624_v1  ;;  %7011 = vpow2.f32 %v3547_v29  ;;  %v3495_v26 = vsub.f32 %v13056_v23, %v3407_v62  ;;  %v13057_v1 = vld [vmem:[#allocation100_spill] sm:$0xff] }
 0x6e1   : > { %3641 = vadd.xlane.f32.xlu2 %v3640_v20  ;;  %v2626_v39 = vmul.f32 %v7002_v41, %v13057_v1  ;;  %7013 = vrcp.f32 %v10295_v30 }
 0x6e2   : > { %v3555_v62 = vmul.f32 1.442695, %v3495_v26  ;;  %7015 = vpow2.f32 %v3557_v14  ;;  %v3452_v14 = vsel %vm1089_vm4, %v10122_v5, -inf }
 0x6e4   : > { %v10456_v43 = vpop.f32.mrf.mxu0  ;;  %v4193_v53 = vpop.permute.xlu0 %4192  ;;  %3446 = vmax.xlane.f32.xlu0 %v3445_v55  ;;  %7017 = vpow2.f32 %v3555_v62 }
 0x6e5   : > { %13052 = vst [vmem:[#allocation60_spill] sm:$0xff] %v10456_v43  ;;  %v10465_v20 = vpop.f32.mrf.mxu1  ;;  %6348 = vmatmul.msk.f32.gmra.mxu3 %vm779_vm2, %v4193_v53  ;;  %6382 = vmatmul.msk.f32.gmra.mxu2 %vm779_vm2, %v4193_v53  ;;  %v10473_v55 = vpop.eup %7005  ;;  %7019 = vrcp.f32 %v10439_v37 }
 0x6e6   : > { %13055 = vst [vmem:[#allocation46_spill] sm:$0xff] %v10465_v20  ;;  %v3635_v20 = vsel %vm1089_vm4, %v10458_v31, 0.0  ;;  %v7008_v43 = vpop.eup %7007 }
 0x6e7   : > { %2847 = vmatmul.f32.gmra.mxu0 %v2625_v27  ;;  %v10479_v53 = vpop.eup %7009  ;;  %v3636_v29 = vadd.f32 %v10473_v55, %v3635_v20  ;;  %v2627_v49 = vmul.f32 %v7008_v43, %v13061_v28 }
 0x6e8   : > { %6188 = vmatmul.msk.f32.gmra.mxu1 %vm1089_vm4, %v2626_v39  ;;  %13058 = vst [vmem:[#allocation127_spill] sm:$0xff] %v10479_v53  ;;  %v10485_v27 = vpop.eup %7011  ;;  %v3647_v23 = vsel %vm1089_vm4, %v10479_v53, 0.0  ;;  %v13063_v39 = vld [vmem:[#allocation95_spill] sm:$0xff] }
 0x6e9   : > { %3462 = vmax.xlane.f32.xlu2 %v3461_v56  ;;  %13060 = vst [vmem:[#allocation130_spill] sm:$0xff] %v10485_v27  ;;  %v2628_v30 = vmul.f32 %v7008_v43, %v13063_v39  ;;  %v3648_v26 = vadd.f32 %v10485_v27, %v3647_v23  ;;  %v7014_v20 = vpop.eup %7013  ;;  %v13067_v43 = vld [vmem:[#allocation44_spill] sm:$0xff]  ;;  %v13094_v27 = vld [vmem:[#allocation63_spill] sm:$0xff] }
 0x6ea   : > { %v10495_v56 = vpop.eup %7015 }
 0x6eb   : > { %13064 = vst [vmem:[#allocation50_spill] sm:$0xff] %v10495_v56  ;;  %v10503_v62 = vpop.eup %7017  ;;  %v3655_v23 = vsel %vm1089_vm4, %v10495_v56, 0.0  ;;  %v13090_v56 = vld [vmem:[#allocation129_spill] sm:$0xff] }
 0x6ec   : > { %v10483_v41 = vpop.f32.mrf.mxu0  ;;  %3637 = vadd.xlane.f32.xlu0 %v3636_v29  ;;  %v3453_v29 = vmax.f32 %v10125_v10, %v3452_v14  ;;  %13066 = vst [vmem:[#allocation19_spill] sm:$0xff] %v10503_v62  ;;  %v2528_v14 = vpop.xlane.xlu2 %2527 }
 0x6ed   : > { %13059 = vst [vmem:[#allocation38_spill] sm:$0xff] %v10483_v41  ;;  %v10490_v1 = vpop.f32.mrf.mxu1  ;;  %v7020_v37 = vpop.eup %7019  ;;  %7021 = vrcp.f32 %v2528_v14  ;;  %v13080_v41 = vld [vmem:[#allocation151_spill] sm:$0xff] }
 0x6ee   : > { %13062 = vst [vmem:[#allocation76_spill] sm:$0xff] %v10490_v1  ;;  %7023 = vrcp.f32 %v10351_v9  ;;  %v13079_v9 = vld [vmem:[#allocation138_spill] sm:$0xff] }
 0x6ef   : > { %2850 = vmatmul.f32.gmra.mxu0 %v2627_v49  ;;  %v2629_v49 = vmul.f32 %v7014_v20, %v13067_v43 }
 0x6f0   : > { %6189 = vmatmul.msk.f32.gmra.mxu1 %vm1089_vm4, %v2628_v30  ;;  %v13069_v30 = vld [vmem:[#allocation118_spill] sm:$0xff] }
 0x6f1   : > { %3649 = vadd.xlane.f32.xlu2 %v3648_v26  ;;  %v2630_v1 = vmul.f32 %v7014_v20, %v13069_v30  ;;  %v3656_v26 = vadd.f32 %v10503_v62, %v3655_v23  ;;  %v2632_v20 = vmul.f32 %v7020_v37, %v10074_v33 }
 0x6f4   : > { %v10501_v28 = vpop.f32.mrf.mxu0  ;;  %3454 = vmax.xlane.f32.xlu0 %v3453_v29  ;;  %v2540_v23 = vpop.xlane.xlu2 %2539 }
 0x6f5   : > { %13065 = vst [vmem:[#allocation77_spill] sm:$0xff] %v10501_v28  ;;  %v10508_v39 = vpop.f32.mrf.mxu1  ;;  %v3464_v28 = vsel %vm1089_vm4, %v10195_v15, -inf }
 0x6f6   : > { %13068 = vst [vmem:[#allocation110_spill] sm:$0xff] %v10508_v39  ;;  %v3465_v29 = vmax.f32 %v10197_v2, %v3464_v28  ;;  %v13073_v28 = vld [vmem:[#allocation104_spill] sm:$0xff] }
 0x6f7   : > { %2853 = vmatmul.f32.gmra.mxu0 %v2629_v49  ;;  %v2631_v49 = vmul.f32 %v7020_v37, %v10083_v3  ;;  %v13077_v37 = vld [vmem:[#allocation144_spill] sm:$0xff] }
 0x6f8   : > { %6190 = vmatmul.msk.f32.gmra.mxu1 %vm1089_vm4, %v2630_v1  ;;  %v7022_v1 = vpop.eup %7021 }
 0x6f9   : > { %3657 = vadd.xlane.f32.xlu2 %v3656_v26  ;;  %v2633_v26 = vmul.f32 %v7022_v1, %v13073_v28 }
 0x6fc   : > { %v10516_v43 = vpop.f32.mrf.mxu0  ;;  %3466 = vmax.xlane.f32.xlu0 %v3465_v29  ;;  %v13075_v29 = vld [vmem:[#allocation51_spill] sm:$0xff]  ;;  %v10533_v33 = vpop.xlane.xlu2 %3410 }
 0x6fd   : > { %13070 = vst [vmem:[#allocation112_spill] sm:$0xff] %v10516_v43  ;;  %v10519_v39 = vpop.f32.mrf.mxu1  ;;  %v2634_v3 = vmul.f32 %v7022_v1, %v13075_v29  ;;  %v13082_v1 = vld [vmem:[#allocation140_spill] sm:$0xff] }
 0x6fe   : > { %13071 = vst [vmem:[#allocation107_spill] sm:$0xff] %v10519_v39 }
 0x6ff   : > { %2856 = vmatmul.f32.gmra.mxu0 %v2631_v49  ;;  %v7024_v49 = vpop.eup %7023 }
 0x700   : > { %6191 = vmatmul.msk.f32.gmra.mxu1 %vm1089_vm4, %v2632_v20  ;;  %v2635_v20 = vmul.f32 %v7024_v49, %v13077_v37 }
 0x704   : > { %v10524_v30 = vpop.f32.mrf.mxu0 }
 0x705   : > { %13072 = vst [vmem:[#allocation113_spill] sm:$0xff] %v10524_v30  ;;  %v10527_v14 = vpop.f32.mrf.mxu1  ;;  %v2636_v30 = vmul.f32 %v7024_v49, %v13079_v9 }
 0x706   : > { %13074 = vst [vmem:[#allocation132_spill] sm:$0xff] %v10527_v14 }
 0x707   : > { %2859 = vmatmul.f32.gmra.mxu0 %v2633_v26  ;;  %v13081_v26 = vld [vmem:[#allocation37_spill] sm:$0xff] }
 0x708   : > { %6192 = vmatmul.msk.f32.gmra.mxu1 %vm1089_vm4, %v2634_v3 }
 0x70c   : > { %v10531_v39 = vpop.f32.mrf.mxu0 }
 0x70d   : > { %13076 = vst [vmem:[#allocation47_spill] sm:$0xff] %v10531_v39  ;;  %v10536_v43 = vpop.f32.mrf.mxu1  ;;  %v10544_v39 = vpop.f32.mrf.mxu2 }
 0x70e   : > { %13078 = vst [vmem:[#allocation131_spill] sm:$0xff] %v10536_v43  ;;  %v10548_v43 = vpop.xlane.xlu2 %2551 }
 0x70f   : > { %2862 = vmatmul.f32.gmra.mxu0 %v2635_v20  ;;  %v3395_v28 = vpop.xlane.xlu0 %3394 }
 0x710   : > { %v3489_v14 = vsub.f32 %v13080_v41, %v3395_v28  ;;  %v3490_v46 = vsub.f32 %v13081_v26, %v3395_v28  ;;  %6193 = vmatmul.msk.f32.gmra.mxu1 %vm1089_vm4, %v2636_v30  ;;  %v10552_v41 = vpop.f32.mrf.mxu3 }
 0x711   : > { %4194 = vrot.lane.b32.xlu2 %v13082_v1, %s7353_s11 }
 0x712   : > { %v3543_v29 = vmul.f32 1.442695, %v3489_v14  ;;  %v3545_v3 = vmul.f32 1.442695, %v3490_v46 }
 0x714   : > { %v10546_v37 = vpop.f32.mrf.mxu0  ;;  %7025 = vpow2.f32 %v3543_v29 }
 0x715   : > { %13083 = vst [vmem:[#allocation143_spill] sm:$0xff] %v10546_v37  ;;  %7027 = vpow2.f32 %v3545_v3  ;;  %v10550_v49 = vpop.f32.mrf.mxu1  ;;  %v10562_v28 = vpop.f32.mrf.mxu2  ;;  %v13089_v37 = vld [vmem:[#allocation56_spill] sm:$0xff] }
 0x716   : > { %13084 = vst [vmem:[#allocation116_spill] sm:$0xff] %v10550_v49  ;;  %v3423_v3 = vpop.xlane.xlu2 %3422 }
 0x717   : > { %v2536_v20 = vpop.xlane.xlu0 %2535 }
 0x718   : > { %7029 = vrcp.f32 %v2536_v20  ;;  %v10569_v47 = vpop.f32.mrf.mxu3 }
 0x719   : > { %7031 = vrcp.f32 %v2540_v23 }
 0x71a   : > { %v10554_v30 = vpop.eup %7025 }
 0x71b   : > { %13085 = vst [vmem:[#allocation121_spill] sm:$0xff] %v10554_v30  ;;  %v10556_v9 = vpop.eup %7027 }
 0x71c   : > { %13086 = vst [vmem:[#allocation30_spill] sm:$0xff] %v10556_v9  ;;  %v10558_v14 = vpop.f32.mrf.mxu0  ;;  %v3643_v46 = vsel %vm1089_vm4, %v10556_v9, 0.0  ;;  %v3503_v9 = vsub.f32 %v13094_v27, %v3423_v3 }
 0x71d   : > { %13087 = vst [vmem:[#allocation117_spill] sm:$0xff] %v10558_v14  ;;  %v10564_v26 = vpop.f32.mrf.mxu1  ;;  %v3644_v1 = vadd.f32 %v10554_v30, %v3643_v46  ;;  %v3415_v14 = vpop.xlane.xlu1 %3414 }
 0x71e   : > { %13088 = vst [vmem:[#allocation141_spill] sm:$0xff] %v10564_v26  ;;  %v7030_v29 = vpop.eup %7029  ;;  %v3504_v26 = vsub.f32 %v13090_v56, %v3423_v3  ;;  %v3571_v3 = vmul.f32 1.442695, %v3503_v9 }
 0x71f   : > { %3645 = vadd.xlane.f32.xlu1 %v3644_v1  ;;  %v3403_v20 = vpop.xlane.xlu0 %3402  ;;  %v2637_v49 = vmul.f32 %v7030_v29, %v10250_v35  ;;  %v2638_v34 = vmul.f32 %v7030_v29, %v13089_v37  ;;  %v13091_v1 = vld [vmem:[#allocation97_spill] sm:$0xff]  ;;  %v7032_v35 = vpop.eup %7031  ;;  %v13093_v37 = vld [vmem:[#allocation75_spill] sm:$0xff] }
 0x720   : > { %v3493_v16 = vsub.f32 %v13022_v21, %v3403_v20  ;;  %v3494_v4 = vsub.f32 %v13021_v0, %v3403_v20  ;;  %v3500_v62 = vsub.f32 %v13091_v1, %v3415_v14  ;;  %v3468_v29 = vsel %vm1089_vm4, %v13093_v37, -inf  ;;  %v13095_v21 = vld [vmem:[#allocation69_spill] sm:$0xff]  ;;  %v13099_v37 = vld [vmem:[#allocation108_spill] sm:$0xff] }
 0x721   : > { %2865 = vmatmul.f32.gmra.mxu0 %v2637_v49  ;;  %6194 = vmatmul.msk.f32.gmra.mxu1 %vm1089_vm4, %v2638_v34  ;;  %v3469_v0 = vmax.f32 %v13095_v21, %v3468_v29  ;;  %v3573_v20 = vmul.f32 1.442695, %v3504_v26  ;;  %v2640_v27 = vmul.f32 %v7032_v35, %v13099_v37  ;;  %v13103_v29 = vld [vmem:[#allocation111_spill] sm:$0xff] }
 0x722   : > { %v3551_v23 = vmul.f32 1.442695, %v3493_v16  ;;  %v3553_v46 = vmul.f32 1.442695, %v3494_v4  ;;  %v10585_v4 = vpop.f32.mrf.mxu2  ;;  %v13097_v16 = vld [vmem:[#allocation21_spill] sm:$0xff] }
 0x723   : > { %v3499_v34 = vsub.f32 %v13097_v16, %v3415_v14  ;;  %v3565_v49 = vmul.f32 1.442695, %v3500_v62  ;;  %v3480_v14 = vsel %vm1186_vm3, %v10463_v32, -inf  ;;  %v10597_v62 = vpop.f32.mrf.mxu3 }
 0x724   : > { %v10576_v53 = vpop.f32.mrf.mxu0  ;;  %7033 = vpow2.f32 %v3551_v23  ;;  %v13100_v23 = vld [vmem:[#allocation24_spill] sm:$0xff] }
 0x725   : > { %13092 = vst [vmem:[#allocation62_spill] sm:$0xff] %v10576_v53  ;;  %7035 = vpow2.f32 %v3553_v46  ;;  %v10582_v56 = vpop.f32.mrf.mxu1  ;;  %v13098_v53 = vld [vmem:[#allocation133_spill] sm:$0xff]  ;;  %v3498_v26 = vsub.f32 %v13100_v23, %v10533_v33  ;;  %v10599_v46 = vpop.xlane.xlu1 %2555 }
 0x726   : > { %13096 = vst [vmem:[#allocation78_spill] sm:$0xff] %v10582_v56  ;;  %7037 = vrcp.f32 %v10418_v36  ;;  %v2639_v30 = vmul.f32 %v7032_v35, %v13098_v53  ;;  %v3563_v35 = vmul.f32 1.442695, %v3499_v34 }
 0x727   : > { %3470 = vmax.xlane.f32.xlu1 %v3469_v0  ;;  %v2548_v1 = vpop.xlane.xlu0 %2547  ;;  %7039 = vpow2.f32 %v3573_v20  ;;  %v3497_v0 = vsub.f32 %v13103_v29, %v10533_v33 }
 0x728   : > { %7041 = vpow2.f32 %v3565_v49 }
 0x729   : > { %2868 = vmatmul.f32.gmra.mxu0 %v2639_v30  ;;  %6195 = vmatmul.msk.f32.gmra.mxu1 %vm1089_vm4, %v2640_v27  ;;  %v3481_v30 = vsel %vm1188_vm5, %v10460_v59, -inf  ;;  %7043 = vpow2.f32 %v3571_v3  ;;  %v3561_v27 = vmul.f32 1.442695, %v3498_v26  ;;  %v13106_v3 = vld [vmem:[#allocation85_spill] sm:$0xff] }
 0x72a   : > { %v10593_v36 = vpop.eup %7033  ;;  %v3482_v34 = vmax.f32 %v3480_v14, %v3481_v30  ;;  %7045 = vrcp.f32 %v2548_v1  ;;  %v10618_v56 = vpop.f32.mrf.mxu2  ;;  %v13107_v59 = vld [vmem:[#allocation65_spill] sm:$0xff] }
 0x72b   : > { %v10601_v53 = vpop.eup %7035  ;;  %7047 = vpow2.f32 %v3563_v35  ;;  %v10629_v35 = vpop.f32.mrf.mxu3 }
 0x72c   : > { %13101 = vst [vmem:[#allocation88_spill] sm:$0xff] %v10601_v53  ;;  %v10603_v9 = vpop.f32.mrf.mxu0  ;;  %v7038_v37 = vpop.eup %7037  ;;  %v3651_v16 = vsel %vm1089_vm4, %v10601_v53, 0.0  ;;  %v3559_v53 = vmul.f32 1.442695, %v3497_v0  ;;  %7049 = vpow2.f32 %v3561_v27 }
 0x72d   : > { %13102 = vst [vmem:[#allocation91_spill] sm:$0xff] %v10603_v9  ;;  %v10609_v20 = vpop.xlane.xlu2 %2563  ;;  %v10613_v23 = vpop.f32.mrf.mxu1  ;;  %v3652_v49 = vadd.f32 %v10593_v36, %v3651_v16  ;;  %v2641_v29 = vmul.f32 %v7038_v37, %v13106_v3  ;;  %v2642_v32 = vmul.f32 %v7038_v37, %v13107_v59  ;;  %v13110_v59 = vld [vmem:[#allocation64_spill] sm:$0xff] }
 0x72e   : > { %13104 = vst [vmem:[#allocation43_spill] sm:$0xff] %v10613_v23  ;;  %v10616_v9 = vpop.eup %7039  ;;  %v3472_v37 = vsel %vm1089_vm4, %v13110_v59, -inf  ;;  %7051 = vpow2.f32 %v3559_v53 }
 0x72f   : > { %13105 = vst [vmem:[#allocation106_spill] sm:$0xff] %v10616_v9  ;;  %3483 = vmax.xlane.f32.xlu1 %v3482_v34  ;;  %3653 = vadd.xlane.f32.xlu0 %v3652_v49  ;;  %v3419_v33 = vpop.xlane.xlu0 %3418  ;;  %v10624_v30 = vpop.eup %7041  ;;  %v3671_v34 = vsel %vm1089_vm4, %v10616_v9, 0.0  ;;  %v13112_v49 = vld [vmem:[#allocation34_spill] sm:$0xff] }
 0x730   : > { %v3501_v26 = vsub.f32 %v9819_v8, %v3419_v33  ;;  %v3502_v14 = vsub.f32 %v9817_v61, %v3419_v33  ;;  %13108 = vst [vmem:[#allocation53_spill] sm:$0xff] %v10624_v30  ;;  %v10627_v1 = vpop.eup %7043  ;;  %v3473_v27 = vmax.f32 %v13112_v49, %v3472_v37  ;;  %v10638_v33 = vpop.xlane.xlu1 %2567 }
 0x731   : > { %2871 = vmatmul.f32.gmra.mxu0 %v2641_v29  ;;  %6196 = vmatmul.msk.f32.gmra.mxu1 %vm1089_vm4, %v2642_v32  ;;  %13109 = vst [vmem:[#allocation148_spill] sm:$0xff] %v10627_v1  ;;  %v7046_v61 = vpop.eup %7045  ;;  %v3672_v23 = vadd.f32 %v10627_v1, %v3671_v34 }
 0x732   : > { %v3569_v16 = vmul.f32 1.442695, %v3502_v14  ;;  %v3567_v8 = vmul.f32 1.442695, %v3501_v26  ;;  %v10640_v3 = vpop.eup %7047  ;;  %v3663_v26 = vsel %vm1089_vm4, %v10624_v30, 0.0  ;;  %v10651_v53 = vpop.f32.mrf.mxu2 }
 0x733   : > { %13113 = vst [vmem:[#allocation92_spill] sm:$0xff] %v10640_v3  ;;  %v3664_v9 = vadd.f32 %v10640_v3, %v3663_v26  ;;  %v10660_v1 = vpop.f32.mrf.mxu3 }
 0x734   : > { %v10635_v0 = vpop.f32.mrf.mxu0  ;;  %7053 = vpow2.f32 %v3569_v16  ;;  %13116 = vst [vmem:[#allocation26_spill] sm:$0xff] %v10651_v53 }
 0x735   : > { %13111 = vst [vmem:[#allocation48_spill] sm:$0xff] %v10635_v0  ;;  %v3427_v32 = vpop.xlane.xlu2 %3426  ;;  %v10643_v14 = vpop.f32.mrf.mxu1  ;;  %7055 = vrcp.f32 %v10548_v43 }
 0x736   : > { %v3506_v29 = vsub.f32 %v9857_v58, %v3427_v32  ;;  %13114 = vst [vmem:[#allocation135_spill] sm:$0xff] %v10643_v14  ;;  %v10649_v0 = vpop.eup %7049  ;;  %7057 = vpow2.f32 %v3567_v8  ;;  %v3505_v37 = vsub.f32 %v9859_v6, %v3427_v32  ;;  %v2643_v58 = vmul.f32 %v7046_v61, %v10298_v13 }
 0x737   : > { %13115 = vst [vmem:[#allocation80_spill] sm:$0xff] %v10649_v0  ;;  %3474 = vmax.xlane.f32.xlu0 %v3473_v27  ;;  %3673 = vadd.xlane.f32.xlu1 %v3672_v23  ;;  %v2560_v16 = vpop.xlane.xlu0 %2559  ;;  %v2644_v14 = vmul.f32 %v7046_v61, %v10290_v17  ;;  %v10658_v43 = vpop.eup %7051  ;;  %v4546_v6 = vsel %vm1089_vm4, %v10651_v53, -inf  ;;  %v3659_v23 = vsel %vm1089_vm4, %v10649_v0, 0.0  ;;  %v13124_v53 = vld [vmem:[#allocation101_spill] sm:$0xff] }
 0x738   : > { %v3577_v34 = vmul.f32 1.442695, %v3506_v29  ;;  %13117 = vst [vmem:[#allocation40_spill] sm:$0xff] %v10658_v43  ;;  %v3575_v17 = vmul.f32 1.442695, %v3505_v37  ;;  %v3431_v37 = vpop.xlane.xlu1 %3430 }
 0x739   : > { %2874 = vmatmul.f32.gmra.mxu0 %v2643_v58  ;;  %6197 = vmatmul.msk.f32.gmra.mxu1 %vm1089_vm4, %v2644_v14  ;;  %13118 = vst [vmem:[#allocation100_spill] sm:$0xff] %v10660_v1  ;;  %v3660_v14 = vadd.f32 %v10658_v43, %v3659_v23  ;;  %v13125_v23 = vld [vmem:[#allocation122_spill] sm:$0xff] }
 0x73a   : > { %3665 = vadd.xlane.f32.xlu2 %v3664_v9  ;;  %v10666_v13 = vpop.eup %7053  ;;  %7059 = vpow2.f32 %v3577_v34  ;;  %v4547_v9 = vmax.f32 %v10660_v1, %v4546_v6  ;;  %v13123_v34 = vld [vmem:[#allocation98_spill] sm:$0xff]  ;;  %v3508_v3 = vsub.f32 %v13125_v23, %v3431_v37 }
 0x73b   : > { %13119 = vst [vmem:[#allocation57_spill] sm:$0xff] %v10666_v13  ;;  %v7056_v61 = vpop.eup %7055  ;;  %v3667_v26 = vsel %vm1089_vm4, %v10666_v13, 0.0  ;;  %7061 = vrcp.f32 %v10599_v46  ;;  %v13128_v1 = vld [vmem:[#allocation134_spill] sm:$0xff] }
 0x73c   : > { %v10668_v8 = vpop.f32.mrf.mxu0  ;;  %v10672_v32 = vpop.eup %7057  ;;  %7063 = vpow2.f32 %v3575_v17  ;;  %v2646_v30 = vmul.f32 %v7056_v61, %v13124_v53 }
 0x73d   : > { %13120 = vst [vmem:[#allocation95_spill] sm:$0xff] %v10668_v8  ;;  %v10670_v27 = vpop.xlane.xlu2 %2575  ;;  %v10674_v29 = vpop.f32.mrf.mxu1  ;;  %v2645_v8 = vmul.f32 %v7056_v61, %v13123_v34  ;;  %v3507_v34 = vsub.f32 %v13128_v1, %v3431_v37  ;;  %v13129_v61 = vld [vmem:[#allocation49_spill] sm:$0xff]  ;;  %7065 = vrcp.f32 %v2560_v16  ;;  %v4530_v16 = vsel %vm1089_vm4, %v10544_v39, -inf }
 0x73e   : > { %13121 = vst [vmem:[#allocation44_spill] sm:$0xff] %v10672_v32 }
 0x73f   : > { %13122 = vst [vmem:[#allocation118_spill] sm:$0xff] %v10674_v29  ;;  %3661 = vadd.xlane.f32.xlu0 %v3660_v14  ;;  %4548 = vmax.xlane.f32.xlu1 %v4547_v9  ;;  %v10681_v58 = vpop.xlane.xlu0 %2571  ;;  %v3668_v29 = vadd.f32 %v10672_v32, %v3667_v26  ;;  %v13127_v14 = vld [vmem:[#allocation58_spill] sm:$0xff]  ;;  %v3579_v1 = vmul.f32 1.442695, %v3507_v34  ;;  %v4542_v34 = vsel %vm1089_vm4, %v10618_v56, -inf }
 0x740   : > { %v10688_v6 = vpop.eup %7059  ;;  %v3476_v9 = vsel %vm1089_vm4, %v13127_v14, -inf  ;;  %v13132_v14 = vld [vmem:[#allocation42_spill] sm:$0xff] }
 0x741   : > { %2877 = vmatmul.f32.gmra.mxu0 %v2645_v8  ;;  %6198 = vmatmul.msk.f32.gmra.mxu1 %vm1089_vm4, %v2646_v30  ;;  %v7062_v17 = vpop.eup %7061  ;;  %v3477_v26 = vmax.f32 %v13129_v61, %v3476_v9  ;;  %v3581_v8 = vmul.f32 1.442695, %v3508_v3  ;;  %v3675_v30 = vsel %vm1089_vm4, %v10688_v6, 0.0  ;;  %v3439_v3 = vpop.xlane.xlu1 %3438 }
 0x742   : > { %3669 = vadd.xlane.f32.xlu2 %v3668_v29  ;;  %v10697_v53 = vpop.eup %7063  ;;  %v2648_v0 = vmul.f32 %v7062_v17, %v13132_v14 }
 0x743   : > { %v3676_v9 = vadd.f32 %v10697_v53, %v3675_v30  ;;  %7067 = vpow2.f32 %v3581_v8  ;;  %v13136_v8 = vld [vmem:[#allocation115_spill] sm:$0xff] }
 0x744   : > { %v10690_v46 = vpop.f32.mrf.mxu0  ;;  %7069 = vpow2.f32 %v3579_v1  ;;  %v3511_v30 = vsub.f32 %v13136_v8, %v3439_v3  ;;  %v13139_v8 = vld [vmem:[#allocation96_spill] sm:$0xff] }
 0x745   : > { %13126 = vst [vmem:[#allocation104_spill] sm:$0xff] %v10690_v46  ;;  %v10695_v13 = vpop.xlane.xlu2 %3442  ;;  %v10700_v23 = vpop.f32.mrf.mxu1  ;;  %v13131_v46 = vld [vmem:[#allocation102_spill] sm:$0xff] }
 0x746   : > { %13130 = vst [vmem:[#allocation51_spill] sm:$0xff] %v10700_v23  ;;  %v2647_v32 = vmul.f32 %v7062_v17, %v13131_v46  ;;  %v7066_v17 = vpop.eup %7065 }
 0x747   : > { %3478 = vmax.xlane.f32.xlu0 %v3477_v26  ;;  %v3435_v29 = vpop.xlane.xlu0 %3434  ;;  %v2650_v1 = vmul.f32 %v7066_v17, %v10335_v60 }
 0x748   : > { %v3509_v37 = vsub.f32 %v9965_v52, %v3435_v29  ;;  %v3510_v43 = vsub.f32 %v9963_v25, %v3435_v29  ;;  %v13134_v52 = vld [vmem:[#allocation67_spill] sm:$0xff]  ;;  %v2649_v29 = vmul.f32 %v7066_v17, %v10343_v40 }
 0x749   : > { %2880 = vmatmul.f32.gmra.mxu0 %v2647_v32  ;;  %6199 = vmatmul.msk.f32.gmra.mxu1 %vm1089_vm4, %v2648_v0  ;;  %v3512_v14 = vsub.f32 %v13134_v52, %v3439_v3  ;;  %v4531_v0 = vmax.f32 %v10552_v41, %v4530_v16  ;;  %v3587_v3 = vmul.f32 1.442695, %v3511_v30 }
 0x74a   : > { %v3585_v26 = vmul.f32 1.442695, %v3510_v43  ;;  %3677 = vadd.xlane.f32.xlu2 %v3676_v9  ;;  %v3583_v46 = vmul.f32 1.442695, %v3509_v37  ;;  %v10723_v43 = vpop.eup %7067  ;;  %v4543_v9 = vmax.f32 %v10629_v35, %v4542_v34 }
 0x74b   : > { %v3589_v37 = vmul.f32 1.442695, %v3512_v14 }
 0x74c   : > { %v10712_v23 = vpop.f32.mrf.mxu0  ;;  %7071 = vpow2.f32 %v3585_v26  ;;  %v10730_v26 = vpop.eup %7069 }
 0x74d   : > { %13133 = vst [vmem:[#allocation144_spill] sm:$0xff] %v10712_v23  ;;  %v10715_v25 = vpop.xlane.xlu2 %2588  ;;  %v10719_v32 = vpop.f32.mrf.mxu1  ;;  %7073 = vrcp.f32 %v10609_v20  ;;  %v3679_v20 = vsel %vm1089_vm4, %v10723_v43, 0.0 }
 0x74e   : > { %13135 = vst [vmem:[#allocation138_spill] sm:$0xff] %v10719_v32  ;;  %7075 = vpow2.f32 %v3583_v46  ;;  %v3680_v14 = vadd.f32 %v10730_v26, %v3679_v20 }
 0x74f   : > { %4532 = vmax.xlane.f32.xlu0 %v4531_v0  ;;  %7077 = vpow2.f32 %v3589_v37 }
 0x750   : > { %7079 = vrcp.f32 %v10638_v33  ;;  %v4534_v33 = vsel %vm1089_vm4, %v10562_v28, -inf }
 0x751   : > { %2883 = vmatmul.f32.gmra.mxu0 %v2649_v29  ;;  %6200 = vmatmul.msk.f32.gmra.mxu1 %vm1089_vm4, %v2650_v1  ;;  %7081 = vpow2.f32 %v3587_v3  ;;  %v13140_v29 = vld [vmem:[#allocation66_spill] sm:$0xff] }
 0x752   : > { %4544 = vmax.xlane.f32.xlu2 %v4543_v9  ;;  %v10734_v16 = vpop.eup %7071  ;;  %7083 = vrcp.f32 %v10681_v58 }
 0x753   : > { %v7074_v40 = vpop.eup %7073  ;;  %v3683_v34 = vsel %vm1089_vm4, %v10734_v16, 0.0  ;;  %7085 = vrcp.f32 %v10670_v27 }
 0x754   : > { %v10736_v46 = vpop.f32.mrf.mxu0  ;;  %v10740_v17 = vpop.eup %7075  ;;  %v2651_v0 = vmul.f32 %v7074_v40, %v10309_v45  ;;  %v2652_v30 = vmul.f32 %v7074_v40, %v13139_v8 }
 0x755   : > { %13137 = vst [vmem:[#allocation151_spill] sm:$0xff] %v10736_v46  ;;  %v10738_v60 = vpop.xlane.xlu2 %3641  ;;  %v10742_v52 = vpop.f32.mrf.mxu1  ;;  %v3684_v1 = vadd.f32 %v10740_v17, %v3683_v34 }
 0x756   : > { %13138 = vst [vmem:[#allocation37_spill] sm:$0xff] %v10742_v52  ;;  %v10754_v37 = vpop.eup %7077 }
 0x757   : > { %3681 = vadd.xlane.f32.xlu0 %v3680_v14  ;;  %v7080_v45 = vpop.eup %7079  ;;  %v4535_v14 = vmax.f32 %v10569_v47, %v4534_v33  ;;  %v3687_v34 = vsel %vm1089_vm4, %v10754_v37, 0.0 }
 0x758   : > { %6685 = vrot.lane.b32.xlu1 %v13140_v29, %s7355_s13  ;;  %v10762_v3 = vpop.eup %7081 }
 0x759   : > { %2886 = vmatmul.f32.gmra.mxu0 %v2651_v0  ;;  %6201 = vmatmul.msk.f32.gmra.mxu1 %vm1089_vm4, %v2652_v30  ;;  %v13143_v0 = vld [vmem:[#allocation41_spill] sm:$0xff]  ;;  %v13144_v30 = vld [vmem:[#allocation142_spill] sm:$0xff]  ;;  %v7084_v33 = vpop.eup %7083 }
 0x75a   : > { %3685 = vadd.xlane.f32.xlu2 %v3684_v1  ;;  %v2653_v8 = vmul.f32 %v7080_v45, %v13143_v0  ;;  %v2654_v29 = vmul.f32 %v7080_v45, %v13144_v30  ;;  %v3688_v1 = vadd.f32 %v10762_v3, %v3687_v34  ;;  %v2655_v45 = vmul.f32 %v7084_v33, %v10370_v11  ;;  %v2584_v0 = vpop.xlane.xlu0 %2583  ;;  %v7086_v30 = vpop.eup %7085 }
 0x75b   : > { %v2656_v34 = vmul.f32 %v7084_v33, %v10354_v38  ;;  %v2657_v27 = vmul.f32 %v7086_v30, %v10358_v18  ;;  %v3514_v33 = vsub.f32 %v10012_v44, %v10695_v13  ;;  %v3513_v18 = vsub.f32 %v10015_v12, %v10695_v13  ;;  %v10811_v44 = vpop.f32.mrf.mxu2  ;;  %v13154_v12 = vld [vmem:[#allocation68_spill] sm:$0xff] }
 0x75c   : > { %v10758_v9 = vpop.f32.mrf.mxu0 }
 0x75d   : > { %13141 = vst [vmem:[#allocation140_spill] sm:$0xff] %v10758_v9  ;;  %v10760_v20 = vpop.xlane.xlu2 %3462  ;;  %v10764_v40 = vpop.f32.mrf.mxu1 }
 0x75e   : > { %13142 = vst [vmem:[#allocation56_spill] sm:$0xff] %v10764_v40  ;;  %v4538_v40 = vsel %vm1089_vm4, %v10585_v4, -inf }
 0x75f   : > { %4536 = vmax.xlane.f32.xlu0 %v4535_v14  ;;  %v4539_v14 = vmax.f32 %v10597_v62, %v4538_v40  ;;  %v2658_v40 = vmul.f32 %v7086_v30, %v10363_v48  ;;  %v13149_v48 = vld [vmem:[#allocation90_spill] sm:$0xff] }
 0x761   : > { %2889 = vmatmul.f32.gmra.mxu0 %v2653_v8  ;;  %6202 = vmatmul.msk.f32.gmra.mxu1 %vm1089_vm4, %v2654_v29  ;;  %v2580_v8 = vpop.xlane.xlu1 %2579 }
 0x762   : > { %3689 = vadd.xlane.f32.xlu2 %v3688_v1  ;;  %7087 = vrcp.f32 %v2580_v8  ;;  %v10796_v38 = vpop.xlane.xlu0 %3446  ;;  %v13150_v8 = vld [vmem:[#allocation99_spill] sm:$0xff] }
 0x763   : > { %7089 = vrcp.f32 %v2584_v0  ;;  %v13153_v0 = vld [vmem:[#allocation86_spill] sm:$0xff] }
 0x764   : > { %v10778_v52 = vpop.f32.mrf.mxu0 }
 0x765   : > { %v10776_v9 = vpop.xlane.xlu2 %3649  ;;  %13145 = vst [vmem:[#allocation129_spill] sm:$0xff] %v10778_v52  ;;  %v10780_v58 = vpop.f32.mrf.mxu1 }
 0x766   : > { %13146 = vst [vmem:[#allocation97_spill] sm:$0xff] %v10780_v58 }
 0x767   : > { %4540 = vmax.xlane.f32.xlu0 %v4539_v14 }
 0x768   : > { %v7088_v11 = vpop.eup %7087 }
 0x769   : > { %2892 = vmatmul.f32.gmra.mxu0 %v2655_v45  ;;  %6203 = vmatmul.msk.f32.gmra.mxu1 %vm1089_vm4, %v2656_v34  ;;  %v3451_v45 = vpop.xlane.xlu1 %3450  ;;  %v2659_v34 = vmul.f32 %v7088_v11, %v13149_v48  ;;  %v2660_v30 = vmul.f32 %v7088_v11, %v13150_v8  ;;  %v7090_v13 = vpop.eup %7089  ;;  %v13155_v48 = vld [vmem:[#allocation146_spill] sm:$0xff] }
 0x76a   : > { %v3518_v11 = vsub.f32 %v13155_v48, %v3451_v45  ;;  %v3638_v8 = vpop.xlane.xlu0 %3637 }
 0x76c   : > { %v10789_v1 = vpop.f32.mrf.mxu0 }
 0x76d   : > { %v10787_v29 = vpop.xlane.xlu2 %3657  ;;  %13147 = vst [vmem:[#allocation63_spill] sm:$0xff] %v10789_v1  ;;  %v10791_v58 = vpop.f32.mrf.mxu1 }
 0x76e   : > { %13148 = vst [vmem:[#allocation69_spill] sm:$0xff] %v10791_v58 }
 0x771   : > { %2895 = vmatmul.f32.gmra.mxu0 %v2657_v27  ;;  %6204 = vmatmul.msk.f32.gmra.mxu1 %vm1089_vm4, %v2658_v40  ;;  %v3593_v27 = vmul.f32 1.442695, %v3514_v33  ;;  %v10818_v33 = vpop.f32.mrf.mxu3  ;;  %v3459_v48 = vpop.xlane.xlu1 %3458 }
 0x773   : > { %7091 = vpow2.f32 %v3593_v27 }
 0x774   : > { %v10806_v40 = vpop.f32.mrf.mxu0  ;;  %7093 = vrcp.f32 %v10715_v25 }
 0x775   : > { %v4195_v14 = vpop.permute.xlu2 %4194  ;;  %13151 = vst [vmem:[#allocation21_spill] sm:$0xff] %v10806_v40  ;;  %v10808_v58 = vpop.f32.mrf.mxu1 }
 0x776   : > { %6349 = vmatmul.msk.f32.gmra.mxu3 %vm779_vm2, %v4195_v14  ;;  %6383 = vmatmul.msk.f32.gmra.mxu2 %vm779_vm2, %v4195_v14  ;;  %13152 = vst [vmem:[#allocation133_spill] sm:$0xff] %v10808_v58  ;;  %v3591_v14 = vmul.f32 1.442695, %v3513_v18  ;;  %v2661_v18 = vmul.f32 %v7090_v13, %v10423_v57 }
 0x778   : > { %7095 = vpow2.f32 %v3591_v14 }
 0x779   : > { %2898 = vmatmul.f32.gmra.mxu0 %v2659_v34  ;;  %6205 = vmatmul.msk.f32.gmra.mxu1 %vm1089_vm4, %v2660_v30  ;;  %v4550_v34 = vsel %vm1089_vm4, %v10811_v44, -inf  ;;  %v13156_v30 = vld [vmem:[#allocation55_spill] sm:$0xff]  ;;  %v10828_v27 = vpop.eup %7091 }
 0x77a   : > { %6675 = vrot.lane.b32.xlu2 %v13153_v0, %s7355_s13  ;;  %v3517_v58 = vsub.f32 %v13156_v30, %v3451_v45  ;;  %v2662_v0 = vmul.f32 %v7090_v13, %v10404_v51  ;;  %v4551_v40 = vmax.f32 %v10818_v33, %v4550_v34  ;;  %v13159_v45 = vld [vmem:[#allocation71_spill] sm:$0xff]  ;;  %v7094_v57 = vpop.eup %7093  ;;  %v13160_v51 = vld [vmem:[#allocation73_spill] sm:$0xff] }
 0x77b   : > { %6680 = vrot.lane.b32.xlu0 %v13154_v12, %s7355_s13  ;;  %v3601_v12 = vmul.f32 1.442695, %v3518_v11  ;;  %v3522_v14 = vsub.f32 %v13160_v51, %v3459_v48  ;;  %v3691_v11 = vsel %vm1089_vm4, %v10828_v27, 0.0  ;;  %v13161_v34 = vld [vmem:[#allocation145_spill] sm:$0xff] }
 0x77c   : > { %v10830_v1 = vpop.f32.mrf.mxu0  ;;  %v3599_v25 = vmul.f32 1.442695, %v3517_v58  ;;  %v3521_v30 = vsub.f32 %v13161_v34, %v3459_v48  ;;  %v2663_v58 = vmul.f32 %v7094_v57, %v10408_v54  ;;  %v3524_v54 = vsub.f32 %v10171_v42, %v10760_v20 }
 0x77d   : > { %13157 = vst [vmem:[#allocation108_spill] sm:$0xff] %v10830_v1  ;;  %v10832_v52 = vpop.f32.mrf.mxu1  ;;  %7097 = vpow2.f32 %v3601_v12  ;;  %v3523_v34 = vsub.f32 %v10173_v24, %v10760_v20 }
 0x77e   : > { %13158 = vst [vmem:[#allocation24_spill] sm:$0xff] %v10832_v52  ;;  %v10837_v13 = vpop.eup %7095  ;;  %7099 = vrcp.f32 %v3638_v8  ;;  %v3607_v51 = vmul.f32 1.442695, %v3521_v30  ;;  %v13162_v8 = vld [vmem:[#allocation137_spill] sm:$0xff] }
 0x77f   : > { %7101 = vpow2.f32 %v3599_v25  ;;  %v3692_v12 = vadd.f32 %v10837_v13, %v3691_v11  ;;  %v3611_v24 = vmul.f32 1.442695, %v3523_v34 }
 0x781   : > { %2901 = vmatmul.f32.gmra.mxu0 %v2661_v18  ;;  %6206 = vmatmul.msk.f32.gmra.mxu1 %vm1089_vm4, %v2662_v0  ;;  %v10842_v18 = vpop.xlane.xlu0 %3454  ;;  %v3609_v0 = vmul.f32 1.442695, %v3522_v14  ;;  %v3516_v14 = vsub.f32 %v10071_v7, %v10796_v38 }
 0x782   : > { %4552 = vmax.xlane.f32.xlu1 %v4551_v40  ;;  %v2664_v40 = vmul.f32 %v7094_v57, %v10413_v50  ;;  %v3519_v34 = vsub.f32 %v10125_v10, %v10842_v18 }
 0x783   : > { %6690 = vrot.lane.b32.xlu0 %v13159_v45, %s7355_s13  ;;  %v10848_v45 = vpop.eup %7097  ;;  %7103 = vpow2.f32 %v3609_v0  ;;  %v3597_v7 = vmul.f32 1.442695, %v3516_v14 }
 0x784   : > { %v7100_v48 = vpop.eup %7099  ;;  %v10854_v25 = vpop.f32.mrf.mxu0  ;;  %v3699_v11 = vsel %vm1089_vm4, %v10848_v45, 0.0  ;;  %7105 = vrcp.f32 %v10738_v60 }
 0x785   : > { %13163 = vst [vmem:[#allocation111_spill] sm:$0xff] %v10854_v25  ;;  %v10856_v50 = vpop.f32.mrf.mxu1  ;;  %v10858_v57 = vpop.eup %7101  ;;  %7107 = vpow2.f32 %v3607_v51  ;;  %v3761_v42 = vmul.f32 %v7100_v48, %v10473_v55  ;;  %v3762_v30 = vmul.f32 %v7100_v48, %v10458_v31 }
 0x786   : > { %13164 = vst [vmem:[#allocation85_spill] sm:$0xff] %v10856_v50  ;;  %v3700_v0 = vadd.f32 %v10858_v57, %v3699_v11 }
 0x789   : > { %2904 = vmatmul.f32.gmra.mxu0 %v2663_v58  ;;  %6207 = vmatmul.msk.f32.gmra.mxu1 %vm1089_vm4, %v2664_v40  ;;  %v3515_v58 = vsub.f32 %v10076_v22, %v10796_v38  ;;  %v3613_v40 = vmul.f32 1.442695, %v3524_v54  ;;  %v10873_v60 = vpop.eup %7103  ;;  %v3520_v22 = vsub.f32 %v10122_v5, %v10842_v18 }
 0x78a   : > { %3693 = vadd.xlane.f32.xlu1 %v3692_v12  ;;  %v3467_v12 = vpop.xlane.xlu0 %3466  ;;  %v7106_v20 = vpop.eup %7105  ;;  %v3707_v38 = vsel %vm1089_vm4, %v10873_v60, 0.0 }
 0x78b   : > { %5005 = vrot.lane.b32.xlu0 %v13162_v8, %s7355_s13  ;;  %v3595_v55 = vmul.f32 1.442695, %v3515_v58  ;;  %7109 = vpow2.f32 %v3613_v40  ;;  %v3526_v31 = vsub.f32 %v10195_v15, %v3467_v12  ;;  %v10876_v8 = vpop.eup %7107  ;;  %v3525_v14 = vsub.f32 %v10197_v2, %v3467_v12 }
 0x78c   : > { %7111 = vpow2.f32 %v3597_v7  ;;  %v10882_v48 = vpop.f32.mrf.mxu0  ;;  %v3763_v11 = vmul.f32 %v7106_v20, %v10437_v19  ;;  %v3764_v15 = vmul.f32 %v7106_v20, %v10428_v63  ;;  %v3603_v63 = vmul.f32 1.442695, %v3519_v34  ;;  %v13167_v7 = vld [vmem:[#allocation75_spill] sm:$0xff] }
 0x78d   : > { %13165 = vst [vmem:[#allocation65_spill] sm:$0xff] %v10882_v48  ;;  %v10884_v54 = vpop.f32.mrf.mxu1  ;;  %v3617_v5 = vmul.f32 1.442695, %v3526_v31  ;;  %v3615_v19 = vmul.f32 1.442695, %v3525_v14  ;;  %v13171_v14 = vld [vmem:[#allocation30_spill] sm:$0xff] }
 0x78e   : > { %13166 = vst [vmem:[#allocation64_spill] sm:$0xff] %v10884_v54 }
 0x791   : > { %3978 = vmatmul.f32.vlgmr.msrb.gmra.mxu0 %v3761_v42  ;;  %6284 = vmatmul.msk.f32.vlgmr.msrb.gmra.mxu1 %vm1089_vm4, %v3762_v30  ;;  %v3708_v42 = vadd.f32 %v10876_v8, %v3707_v38  ;;  %v3605_v30 = vmul.f32 1.442695, %v3520_v22  ;;  %v10893_v58 = vpop.eup %7109  ;;  %v13170_v22 = vld [vmem:[#allocation121_spill] sm:$0xff] }
 0x792   : > { %v3646_v51 = vpop.xlane.xlu1 %3645  ;;  %3701 = vadd.xlane.f32.xlu1 %v3700_v0  ;;  %v10895_v2 = vpop.eup %7111  ;;  %v3711_v18 = vsel %vm1089_vm4, %v10893_v58, 0.0 }
 0x793   : > { %7113 = vrcp.f32 %v3646_v51 }
 0x794   : > { %7115 = vpow2.f32 %v3611_v24 }
 0x795   : > { %7117 = vpow2.f32 %v3595_v55  ;;  %v3695_v55 = vsel %vm1089_vm4, %v10895_v2, 0.0 }
 0x796   : > { %7119 = vpow2.f32 %v3617_v5 }
 0x797   : > { %7121 = vpow2.f32 %v3605_v30 }
 0x798   : > { %7123 = vrcp.f32 %v10776_v9 }
 0x799   : > { %3981 = vmatmul.f32.gmra.mxu0 %v3763_v11  ;;  %6285 = vmatmul.msk.f32.gmra.mxu1 %vm1089_vm4, %v3764_v15  ;;  %v7114_v0 = vpop.eup %7113  ;;  %7125 = vpow2.f32 %v3615_v19 }
 0x79a   : > { %v3471_v40 = vpop.xlane.xlu1 %3470  ;;  %3709 = vadd.xlane.f32.xlu1 %v3708_v42  ;;  %v10898_v10 = vpop.eup %7115  ;;  %v3765_v38 = vmul.f32 %v7114_v0, %v13170_v22  ;;  %v3766_v11 = vmul.f32 %v7114_v0, %v13171_v14  ;;  %7127 = vpow2.f32 %v3603_v63  ;;  %v13172_v63 = vld [vmem:[#allocation45_spill] sm:$0xff] }
 0x79b   : > { %v3528_v12 = vsub.f32 %v13167_v7, %v3471_v40  ;;  %v10902_v51 = vpop.eup %7117  ;;  %v3527_v31 = vsub.f32 %v13095_v21, %v3471_v40  ;;  %v3712_v34 = vadd.f32 %v10898_v10, %v3711_v18  ;;  %v10921_v21 = vpop.f32.mrf.mxu2 }
 0x79c   : > { %v3696_v9 = vadd.f32 %v10902_v51, %v3695_v55  ;;  %v10917_v5 = vpop.eup %7119  ;;  %v10926_v18 = vpop.f32.mrf.mxu3  ;;  %v13173_v55 = vld [vmem:[#allocation119_spill] sm:$0xff]  ;;  %v4554_v25 = vsel %vm1089_vm4, %v10921_v21, -inf }
 0x79d   : > { %v3621_v15 = vmul.f32 1.442695, %v3528_v12  ;;  %v10919_v19 = vpop.eup %7121  ;;  %v3619_v40 = vmul.f32 1.442695, %v3527_v31 }
 0x79e   : > { %v10905_v24 = vpop.f32.mrf.mxu0  ;;  %v10907_v20 = vpop.f32.mrf.mxu1 }
 0x79f   : > { %13168 = vst [vmem:[#allocation34_spill] sm:$0xff] %v10905_v24  ;;  %v7124_v0 = vpop.eup %7123  ;;  %7129 = vpow2.f32 %v3621_v15  ;;  %v3703_v15 = vsel %vm1089_vm4, %v10919_v19, 0.0 }
 0x7a0   : > { %13169 = vst [vmem:[#allocation98_spill] sm:$0xff] %v10907_v20  ;;  %v10924_v12 = vpop.eup %7125 }
 0x7a1   : > { %3984 = vmatmul.f32.gmra.mxu0 %v3765_v38  ;;  %6286 = vmatmul.msk.f32.gmra.mxu1 %vm1089_vm4, %v3766_v11  ;;  %v3715_v38 = vsel %vm1089_vm4, %v10917_v5, 0.0  ;;  %v10931_v14 = vpop.eup %7127 }
 0x7a2   : > { %v3484_v42 = vpop.xlane.xlu1 %3483  ;;  %v3654_v30 = vpop.xlane.xlu0 %3653  ;;  %3713 = vadd.xlane.f32.xlu1 %v3712_v34  ;;  %v13176_v34 = vld [vmem:[#allocation130_spill] sm:$0xff] }
 0x7a3   : > { %3697 = vadd.xlane.f32.xlu2 %v3696_v9  ;;  %v3533_v7 = vsub.f32 %v13172_v63, %v3484_v42  ;;  %v3534_v22 = vsub.f32 %v13173_v55, %v3484_v42  ;;  %7131 = vrcp.f32 %v3654_v30  ;;  %v3767_v9 = vmul.f32 %v7124_v0, %v13176_v34  ;;  %v13177_v63 = vld [vmem:[#allocation127_spill] sm:$0xff]  ;;  %v10946_v54 = vpop.f32.mrf.mxu2 }
 0x7a4   : > { %7133 = vpow2.f32 %v3619_v40  ;;  %v3768_v20 = vmul.f32 %v7124_v0, %v13177_v63  ;;  %v3716_v42 = vadd.f32 %v10924_v12, %v3715_v38  ;;  %v3704_v30 = vadd.f32 %v10931_v14, %v3703_v15 }
 0x7a5   : > { %v3631_v24 = vmul.f32 1.442695, %v3533_v7  ;;  %v3633_v55 = vmul.f32 1.442695, %v3534_v22  ;;  %v10952_v22 = vpop.f32.mrf.mxu3  ;;  %v4558_v63 = vsel %vm1089_vm4, %v10946_v54, -inf }
 0x7a6   : > { %v10933_v11 = vpop.f32.mrf.mxu0  ;;  %v10935_v31 = vpop.f32.mrf.mxu1 }
 0x7a7   : > { %13174 = vst [vmem:[#allocation101_spill] sm:$0xff] %v10933_v11  ;;  %v10944_v11 = vpop.eup %7129  ;;  %7135 = vpow2.f32 %v3631_v24 }
 0x7a8   : > { %13175 = vst [vmem:[#allocation122_spill] sm:$0xff] %v10935_v31  ;;  %7137 = vpow2.f32 %v3633_v55 }
 0x7a9   : > { %3987 = vmatmul.f32.gmra.mxu0 %v3767_v9  ;;  %6287 = vmatmul.msk.f32.gmra.mxu1 %vm1089_vm4, %v3768_v20  ;;  %v7132_v0 = vpop.eup %7131  ;;  %v3719_v9 = vsel %vm1089_vm4, %v10944_v11, 0.0  ;;  %7139 = vrcp.f32 %v10787_v29 }
 0x7aa   : > { %v3475_v31 = vpop.xlane.xlu0 %3474  ;;  %3717 = vadd.xlane.f32.xlu1 %v3716_v42  ;;  %v10950_v7 = vpop.eup %7133  ;;  %v3769_v24 = vmul.f32 %v7132_v0, %v10593_v36 }
 0x7ab   : > { %v3529_v40 = vsub.f32 %v13112_v49, %v3475_v31  ;;  %v3530_v34 = vsub.f32 %v13110_v59, %v3475_v31  ;;  %3705 = vadd.xlane.f32.xlu2 %v3704_v30  ;;  %v13180_v31 = vld [vmem:[#allocation88_spill] sm:$0xff]  ;;  %v3720_v55 = vadd.f32 %v10950_v7, %v3719_v9  ;;  %v4559_v30 = vmax.f32 %v10952_v22, %v4558_v63 }
 0x7ac   : > { %v3770_v42 = vmul.f32 %v7132_v0, %v13180_v31  ;;  %v13182_v31 = vld [vmem:[#allocation19_spill] sm:$0xff] }
 0x7ad   : > { %v3623_v20 = vmul.f32 1.442695, %v3529_v40  ;;  %v3625_v38 = vmul.f32 1.442695, %v3530_v34  ;;  %v3666_v15 = vpop.xlane.xlu2 %3665  ;;  %v10968_v40 = vpop.eup %7135 }
 0x7ae   : > { %v10959_v59 = vpop.f32.mrf.mxu0  ;;  %v10961_v49 = vpop.f32.mrf.mxu1 }
 0x7af   : > { %13178 = vst [vmem:[#allocation134_spill] sm:$0xff] %v10959_v59  ;;  %7141 = vpow2.f32 %v3623_v20  ;;  %v10970_v34 = vpop.eup %7137 }
 0x7b0   : > { %13179 = vst [vmem:[#allocation49_spill] sm:$0xff] %v10961_v49  ;;  %7143 = vpow2.f32 %v3625_v38  ;;  %v7140_v20 = vpop.eup %7139  ;;  %v3731_v38 = vsel %vm1186_vm3, %v10968_v40, 0.0  ;;  %v3732_v9 = vsel %vm1188_vm5, %v10970_v34, 0.0 }
 0x7b1   : > { %3990 = vmatmul.f32.gmra.mxu0 %v3769_v24  ;;  %6288 = vmatmul.msk.f32.gmra.mxu1 %vm1089_vm4, %v3770_v42  ;;  %v3771_v42 = vmul.f32 %v7140_v20, %v13182_v31  ;;  %v13185_v31 = vld [vmem:[#allocation40_spill] sm:$0xff] }
 0x7b2   : > { %v3662_v29 = vpop.xlane.xlu0 %3661  ;;  %3721 = vadd.xlane.f32.xlu1 %v3720_v55  ;;  %v13183_v55 = vld [vmem:[#allocation50_spill] sm:$0xff] }
 0x7b3   : > { %4560 = vmax.xlane.f32.xlu2 %v4559_v30  ;;  %7145 = vrcp.f32 %v3662_v29  ;;  %v3772_v30 = vmul.f32 %v7140_v20, %v13183_v55  ;;  %v3733_v29 = vadd.f32 %v3732_v9, %v3731_v38  ;;  %v13186_v55 = vld [vmem:[#allocation80_spill] sm:$0xff] }
 0x7b4   : > { %7147 = vrcp.f32 %v3666_v15 }
 0x7b5   : > { %v10972_v49 = vpop.eup %7141  ;;  %v3670_v36 = vpop.xlane.xlu2 %3669 }
 0x7b6   : > { %v10974_v0 = vpop.eup %7143  ;;  %v10980_v63 = vpop.f32.mrf.mxu0  ;;  %7149 = vrcp.f32 %v3670_v36 }
 0x7b7   : > { %13181 = vst [vmem:[#allocation102_spill] sm:$0xff] %v10980_v63  ;;  %v3723_v24 = vsel %vm1089_vm4, %v10974_v0, 0.0  ;;  %v10986_v59 = vpop.f32.mrf.mxu1 }
 0x7b8   : > { %13184 = vst [vmem:[#allocation42_spill] sm:$0xff] %v10986_v59  ;;  %v3724_v48 = vadd.f32 %v10972_v49, %v3723_v24  ;;  %v4555_v24 = vmax.f32 %v10926_v18, %v4554_v25  ;;  %v13189_v25 = vld [vmem:[#allocation92_spill] sm:$0xff] }
 0x7b9   : > { %3993 = vmatmul.f32.gmra.mxu0 %v3771_v42  ;;  %6289 = vmatmul.msk.f32.gmra.mxu1 %vm1089_vm4, %v3772_v30  ;;  %v7146_v63 = vpop.eup %7145 }
 0x7ba   : > { %3725 = vadd.xlane.f32.xlu0 %v3724_v48  ;;  %v10990_v50 = vpop.xlane.xlu0 %3478  ;;  %v3773_v20 = vmul.f32 %v7146_v63, %v13185_v31  ;;  %v3774_v59 = vmul.f32 %v7146_v63, %v13186_v55  ;;  %v7148_v15 = vpop.eup %7147 }
 0x7bb   : > { %3734 = vadd.xlane.f32.xlu2 %v3733_v29  ;;  %v3775_v63 = vmul.f32 %v7148_v15, %v13189_v25  ;;  %v13195_v25 = vld [vmem:[#allocation57_spill] sm:$0xff] }
 0x7bd   : > { %v3678_v52 = vpop.xlane.xlu2 %3677 }
 0x7be   : > { %v10997_v42 = vpop.f32.mrf.mxu0 }
 0x7bf   : > { %13187 = vst [vmem:[#allocation67_spill] sm:$0xff] %v10997_v42  ;;  %v11000_v48 = vpop.f32.mrf.mxu1 }
 0x7c0   : > { %13188 = vst [vmem:[#allocation115_spill] sm:$0xff] %v11000_v48 }
 0x7c1   : > { %3996 = vmatmul.f32.gmra.mxu0 %v3773_v20  ;;  %6290 = vmatmul.msk.f32.gmra.mxu1 %vm1089_vm4, %v3774_v59  ;;  %v13190_v20 = vld [vmem:[#allocation53_spill] sm:$0xff]  ;;  %v3674_v59 = vpop.xlane.xlu1 %3673 }
 0x7c2   : > { %4556 = vmax.xlane.f32.xlu0 %v4555_v24  ;;  %v4533_v38 = vpop.xlane.xlu0 %4532  ;;  %v3776_v55 = vmul.f32 %v7148_v15, %v13190_v20 }
 0x7c3   : > { %v4631_v9 = vsub.f32 %v10552_v41, %v4533_v38  ;;  %v4632_v30 = vsub.f32 %v10544_v39, %v4533_v38  ;;  %v13191_v41 = vld [vmem:[#allocation33_spill] sm:$0xff]  ;;  %v7150_v39 = vpop.eup %7149 }
 0x7c5   : > { %v4681_v29 = vmul.f32 1.442695, %v4631_v9  ;;  %v4683_v31 = vmul.f32 1.442695, %v4632_v30  ;;  %v11004_v1 = vpop.xlane.xlu2 %4544 }
 0x7c6   : > { %v11011_v24 = vpop.f32.mrf.mxu0 }
 0x7c7   : > { %7151 = vpow2.f32 %v4681_v29  ;;  %13192 = vst [vmem:[#allocation96_spill] sm:$0xff] %v11011_v24  ;;  %v11013_v38 = vpop.f32.mrf.mxu1  ;;  %v13194_v29 = vld [vmem:[#allocation44_spill] sm:$0xff] }
 0x7c8   : > { %7153 = vpow2.f32 %v4683_v31  ;;  %13193 = vst [vmem:[#allocation66_spill] sm:$0xff] %v11013_v38  ;;  %v3777_v31 = vmul.f32 %v7150_v39, %v13194_v29  ;;  %v13199_v29 = vld [vmem:[#allocation125_spill] sm:$0xff] }
 0x7c9   : > { %3999 = vmatmul.f32.gmra.mxu0 %v3775_v63  ;;  %6291 = vmatmul.msk.f32.gmra.mxu1 %vm1089_vm4, %v3776_v55  ;;  %7155 = vrcp.f32 %v3674_v59  ;;  %v3778_v63 = vmul.f32 %v7150_v39, %v13195_v25  ;;  %v13200_v39 = vld [vmem:[#allocation148_spill] sm:$0xff]  ;;  %v13201_v25 = vld [vmem:[#allocation106_spill] sm:$0xff] }
 0x7ca   : > { %v3682_v55 = vpop.xlane.xlu0 %3681  ;;  %7157 = vrcp.f32 %v3678_v52 }
 0x7cb   : > { %6695 = vrot.lane.b32.xlu1 %v13191_v41, %s7355_s13  ;;  %v13196_v41 = vld [vmem:[#allocation32_spill] sm:$0xff]  ;;  %7159 = vrcp.f32 %v3682_v55  ;;  %v11055_v55 = vpop.xlane.xlu1 %4548 }
 0x7cd   : > { %v11015_v9 = vpop.eup %7151  ;;  %v3686_v36 = vpop.xlane.xlu2 %3685 }
 0x7ce   : > { %v11017_v30 = vpop.eup %7153  ;;  %v11027_v59 = vpop.f32.mrf.mxu0  ;;  %7161 = vrcp.f32 %v3686_v36 }
 0x7cf   : > { %v4781_v15 = vsel %vm1089_vm4, %v11017_v30, 0.0  ;;  %v7156_v38 = vpop.eup %7155  ;;  %13197 = vst [vmem:[#allocation41_spill] sm:$0xff] %v11027_v59  ;;  %v11029_v48 = vpop.f32.mrf.mxu1 }
 0x7d0   : > { %v4782_v20 = vadd.f32 %v11015_v9, %v4781_v15  ;;  %13198 = vst [vmem:[#allocation142_spill] sm:$0xff] %v11029_v48  ;;  %v3779_v15 = vmul.f32 %v7156_v38, %v13200_v39  ;;  %v7158_v52 = vpop.eup %7157  ;;  %v13203_v48 = vld [vmem:[#allocation147_spill] sm:$0xff] }
 0x7d1   : > { %4002 = vmatmul.f32.gmra.mxu0 %v3777_v31  ;;  %6292 = vmatmul.msk.f32.gmra.mxu1 %vm1089_vm4, %v3778_v63  ;;  %v3780_v31 = vmul.f32 %v7156_v38, %v13201_v25  ;;  %v3781_v39 = vmul.f32 %v7158_v52, %v10697_v53  ;;  %v3782_v38 = vmul.f32 %v7158_v52, %v10688_v6  ;;  %v7160_v53 = vpop.eup %7159 }
 0x7d2   : > { %4783 = vadd.xlane.f32.xlu2 %v4782_v20  ;;  %v11036_v63 = vpop.xlane.xlu0 %4536  ;;  %v13202_v20 = vld [vmem:[#allocation139_spill] sm:$0xff]  ;;  %v3783_v52 = vmul.f32 %v7160_v53, %v10730_v26 }
 0x7d3   : > { %6700 = vrot.lane.b32.xlu1 %v13196_v41, %s7355_s13  ;;  %v6686_v36 = vpop.permute.xlu1 %6685 }
 0x7d4   : > { %v6688_v42 = vunpack.i.h.bf16 %v6686_v36 }
 0x7d5   : > { %v3690_v24 = vpop.xlane.xlu2 %3689 }
 0x7d6   : > { %6720 = vrot.lane.b32.xlu0 %v13199_v29, %s7355_s13  ;;  %v11042_v29 = vpop.f32.mrf.mxu2  ;;  %7163 = vrcp.f32 %v3690_v24 }
 0x7d7   : > { %v11048_v25 = vpop.f32.mrf.mxu1 }
 0x7d8   : > { %13205 = vst [vmem:[#allocation99_spill] sm:$0xff] %v11048_v25  ;;  %v7162_v25 = vpop.eup %7161 }
 0x7d9   : > { %4005 = vmatmul.f32.gmra.mxu0 %v3779_v15  ;;  %6293 = vmatmul.msk.f32.gmra.mxu1 %vm1089_vm4, %v3780_v31  ;;  %v11046_v15 = vpop.f32.mrf.mxu0 }
 0x7da   : > { %13204 = vst [vmem:[#allocation90_spill] sm:$0xff] %v11046_v15  ;;  %v4541_v6 = vpop.xlane.xlu0 %4540 }
 0x7db   : > { %6705 = vrot.lane.b32.xlu1 %v13202_v20, %s7355_s13  ;;  %v11050_v20 = vpop.f32.mrf.mxu3 }
 0x7dc   : > { %v7164_v24 = vpop.eup %7163 }
 0x7dd   : > { %v6676_v41 = vpop.permute.xlu2 %6675  ;;  %v3787_v46 = vmul.f32 %v7164_v24, %v10762_v3 }
 0x7de   : > { %6730 = vrot.lane.b32.xlu0 %v13203_v48, %s7355_s13  ;;  %v6677_v59 = vunpack.i.l.bf16 %v6676_v41  ;;  %v6678_v31 = vunpack.i.h.bf16 %v6676_v41  ;;  %v13206_v48 = vld [vmem:[#allocation126_spill] sm:$0xff]  ;;  %v3784_v41 = vmul.f32 %v7160_v53, %v10723_v43  ;;  %v3785_v43 = vmul.f32 %v7162_v25, %v10740_v17 }
 0x7df   : > { %v3786_v53 = vmul.f32 %v7162_v25, %v10734_v16 }
 0x7e0   : > { %5108 = vmatpush.msra.mxu0 %v6677_v59  ;;  %6446 = vmatpush.msrb.mxu2 %v6677_v59  ;;  %v11059_v59 = vpop.f32.mrf.mxu2 }
 0x7e1   : > { %4008 = vmatmul.f32.gmra.mxu0 %v3781_v39  ;;  %6294 = vmatmul.msk.f32.gmra.mxu1 %vm1089_vm4, %v3782_v38  ;;  %v11062_v39 = vpop.f32.mrf.mxu0  ;;  %v11064_v38 = vpop.f32.mrf.mxu1 }
 0x7e2   : > { %5109 = vmatpush.msra.mxu0 %v6678_v31  ;;  %6447 = vmatpush.msrb.mxu2 %v6678_v31  ;;  %13207 = vst [vmem:[#allocation86_spill] sm:$0xff] %v11062_v39  ;;  %v13209_v31 = vld [vmem:[#allocation35_spill] sm:$0xff] }
 0x7e3   : > { %6710 = vrot.lane.b32.xlu1 %v13206_v48, %s7355_s13  ;;  %13208 = vst [vmem:[#allocation68_spill] sm:$0xff] %v11064_v38  ;;  %v11068_v48 = vpop.f32.mrf.mxu3  ;;  %v4636_v38 = vsub.f32 %v10585_v4, %v4541_v6  ;;  %v13212_v4 = vld [vmem:[#allocation58_spill] sm:$0xff] }
 0x7e9   : > { %4011 = vmatmul.f32.gmra.mxu0 %v3783_v52  ;;  %6295 = vmatmul.msk.f32.gmra.mxu1 %vm1089_vm4, %v3784_v41  ;;  %v11073_v41 = vpop.f32.mrf.mxu2  ;;  %v11078_v17 = vpop.f32.mrf.mxu0 }
 0x7ea   : > { %6725 = vrot.lane.b32.xlu2 %v13209_v31, %s7355_s13  ;;  %v6687_v31 = vunpack.i.l.bf16 %v6686_v36  ;;  %13210 = vst [vmem:[#allocation146_spill] sm:$0xff] %v11078_v17  ;;  %v11080_v16 = vpop.f32.mrf.mxu1  ;;  %v3788_v36 = vmul.f32 %v7164_v24, %v10754_v37 }
 0x7eb   : > { %v11076_v39 = vpop.f32.mrf.mxu3  ;;  %13211 = vst [vmem:[#allocation55_spill] sm:$0xff] %v11080_v16 }
 0x7ed   : > { %v6681_v15 = vpop.permute.xlu0 %6680 }
 0x7ee   : > { %v6682_v26 = vunpack.i.l.bf16 %v6681_v15  ;;  %v6683_v52 = vunpack.i.h.bf16 %v6681_v15  ;;  %v4635_v15 = vsub.f32 %v10597_v62, %v4541_v6 }
 0x7f0   : > { %5110 = vmatpush.msra.mxu0 %v6682_v26  ;;  %6448 = vmatpush.msrb.mxu2 %v6682_v26  ;;  %v4689_v62 = vmul.f32 1.442695, %v4635_v15 }
 0x7f1   : > { %4014 = vmatmul.f32.gmra.mxu0 %v3785_v43  ;;  %6296 = vmatmul.msk.f32.gmra.mxu1 %vm1089_vm4, %v3786_v53  ;;  %v4691_v43 = vmul.f32 1.442695, %v4636_v38  ;;  %v11091_v38 = vpop.f32.mrf.mxu2 }
 0x7f2   : > { %5111 = vmatpush.msra.mxu0 %v6683_v52  ;;  %6449 = vmatpush.msrb.mxu2 %v6683_v52  ;;  %v3532_v52 = vsub.f32 %v13212_v4, %v10990_v50  ;;  %v13215_v4 = vld [vmem:[#allocation26_spill] sm:$0xff] }
 0x7f3   : > { %7165 = vpow2.f32 %v4691_v43 }
 0x7f4   : > { %5112 = vmatpush.msra.mxu0 %v6687_v31  ;;  %6450 = vmatpush.msrb.mxu2 %v6687_v31  ;;  %v3531_v31 = vsub.f32 %v13129_v61, %v10990_v50  ;;  %v3629_v6 = vmul.f32 1.442695, %v3532_v52  ;;  %7167 = vpow2.f32 %v4689_v62  ;;  %v11096_v61 = vpop.f32.mrf.mxu0  ;;  %v11102_v50 = vpop.f32.mrf.mxu1  ;;  %v4640_v52 = vsub.f32 %v13215_v4, %v11055_v55 }
 0x7f5   : > { %v6691_v25 = vpop.permute.xlu0 %6690  ;;  %v4553_v26 = vpop.xlane.xlu1 %4552  ;;  %13213 = vst [vmem:[#allocation71_spill] sm:$0xff] %v11096_v61 }
 0x7f6   : > { %v6692_v53 = vunpack.i.l.bf16 %v6691_v25  ;;  %5113 = vmatpush.msra.mxu0 %v6688_v42  ;;  %6451 = vmatpush.msrb.mxu2 %v6688_v42  ;;  %v6693_v17 = vunpack.i.h.bf16 %v6691_v25  ;;  %v4642_v42 = vsub.f32 %v10811_v44, %v4553_v26  ;;  %v3627_v3 = vmul.f32 1.442695, %v3531_v31  ;;  %v11100_v44 = vpop.f32.mrf.mxu3  ;;  %13214 = vst [vmem:[#allocation73_spill] sm:$0xff] %v11102_v50 }
 0x7f7   : > { %v4641_v37 = vsub.f32 %v10818_v33, %v4553_v26 }
 0x7f8   : > { %5114 = vmatpush.msra.mxu0 %v6692_v53  ;;  %6452 = vmatpush.msrb.mxu2 %v6692_v53 }
 0x7f9   : > { %4017 = vmatmul.f32.gmra.mxu0 %v3787_v46  ;;  %6297 = vmatmul.msk.f32.gmra.mxu1 %vm1089_vm4, %v3788_v36  ;;  %v4703_v46 = vmul.f32 1.442695, %v4642_v42  ;;  %v4701_v15 = vmul.f32 1.442695, %v4641_v37  ;;  %v11116_v62 = vpop.f32.mrf.mxu2  ;;  %v13216_v37 = vld [vmem:[#allocation100_spill] sm:$0xff] }
 0x7fa   : > { %5115 = vmatpush.msra.mxu0 %v6693_v17  ;;  %6453 = vmatpush.msrb.mxu2 %v6693_v17  ;;  %v11104_v17 = vpop.eup %7165 }
 0x7fb   : > { %v11106_v33 = vpop.eup %7167  ;;  %v4789_v26 = vsel %vm1089_vm4, %v11104_v17, 0.0 }
 0x7fc   : > { %v4790_v42 = vadd.f32 %v11106_v33, %v4789_v26  ;;  %v11132_v26 = vpop.f32.mrf.mxu1 }
 0x7fd   : > { %v11094_v24 = vpop.permute.xlu0 %5005  ;;  %v3694_v25 = vpop.xlane.xlu1 %3693  ;;  %13218 = vst [vmem:[#allocation137_spill] sm:$0xff] %v11132_v26 }
 0x7fe   : > { %7169 = vrcp.f32 %v3694_v25  ;;  %6384 = vmatpush.msk.msra.mxu1 %vm1186_vm3, %v11094_v24  ;;  %v4639_v25 = vsub.f32 %v13216_v37, %v11055_v55 }
 0x7ff   : > { %7171 = vpow2.f32 %v3629_v6 }
 0x800   : > { %7173 = vpow2.f32 %v3627_v3 }
 0x801   : > { %7175 = vpow2.f32 %v4703_v46  ;;  %v11126_v46 = vpop.f32.mrf.mxu0 }
 0x802   : > { %7177 = vpow2.f32 %v4701_v15  ;;  %13217 = vst [vmem:[#allocation145_spill] sm:$0xff] %v11126_v46  ;;  %v4699_v15 = vmul.f32 1.442695, %v4640_v52  ;;  %v11142_v46 = vpop.f32.mrf.mxu2 }
 0x804   : > { %v7170_v43 = vpop.eup %7169  ;;  %7179 = vpow2.f32 %v4699_v15  ;;  %v11153_v15 = vpop.f32.mrf.mxu1 }
 0x805   : > { %v11110_v53 = vpop.eup %7171  ;;  %v3789_v36 = vmul.f32 %v7170_v43, %v10837_v13  ;;  %v3790_v31 = vmul.f32 %v7170_v43, %v10828_v27  ;;  %v11130_v13 = vpop.f32.mrf.mxu3  ;;  %13220 = vst [vmem:[#allocation121_spill] sm:$0xff] %v11153_v15 }
 0x806   : > { %v11119_v6 = vpop.eup %7173  ;;  %v3727_v27 = vsel %vm1089_vm4, %v11110_v53, 0.0  ;;  %v3702_v55 = vpop.xlane.xlu1 %3701 }
 0x807   : > { %4020 = vmatmul.f32.gmra.mxu0 %v3789_v36  ;;  %6298 = vmatmul.msk.f32.gmra.mxu1 %vm1089_vm4, %v3790_v31  ;;  %v11122_v3 = vpop.eup %7175  ;;  %v3728_v4 = vadd.f32 %v11119_v6, %v3727_v27  ;;  %v4697_v31 = vmul.f32 1.442695, %v4639_v25  ;;  %v4582_v25 = vsel %vm1089_vm4, %v11142_v46, -inf }
 0x808   : > { %4791 = vadd.xlane.f32.xlu0 %v4790_v42  ;;  %v11134_v43 = vpop.eup %7177  ;;  %v4801_v36 = vsel %vm1089_vm4, %v11122_v3, 0.0  ;;  %v4562_v42 = vsel %vm1089_vm4, %v11042_v29, -inf }
 0x809   : > { %v4802_v37 = vadd.f32 %v11134_v43, %v4801_v36  ;;  %7181 = vpow2.f32 %v4697_v31  ;;  %v4563_v52 = vmax.f32 %v11050_v20, %v4562_v42  ;;  %v11145_v26 = vpop.f32.mrf.mxu0 }
 0x80a   : > { %13219 = vst [vmem:[#allocation75_spill] sm:$0xff] %v11145_v26  ;;  %v11147_v27 = vpop.eup %7179 }
 0x80b   : > { %v4797_v42 = vsel %vm1089_vm4, %v11147_v27, 0.0 }
 0x80c   : > { %v11163_v15 = vpop.f32.mrf.mxu1 }
 0x80d   : > { %3729 = vadd.xlane.f32.xlu1 %v3728_v4  ;;  %v11149_v50 = vpop.f32.mrf.mxu3  ;;  %13222 = vst [vmem:[#allocation45_spill] sm:$0xff] %v11163_v15 }
 0x80e   : > { %v4583_v36 = vmax.f32 %v11149_v50, %v4582_v25 }
 0x80f   : > { %v11155_v4 = vpop.eup %7181 }
 0x810   : > { %4803 = vadd.xlane.f32.xlu0 %v4802_v37  ;;  %v3710_v37 = vpop.xlane.xlu1 %3709  ;;  %v4798_v26 = vadd.f32 %v11155_v4, %v4797_v42  ;;  %v13223_v42 = vld [vmem:[#allocation36_spill] sm:$0xff] }
 0x811   : > { %v11161_v61 = vpop.f32.mrf.mxu0 }
 0x812   : > { %13221 = vst [vmem:[#allocation30_spill] sm:$0xff] %v11161_v61 }
 0x813   : > { %4564 = vmax.xlane.f32.xlu2 %v4563_v52  ;;  %v4578_v52 = vsel %vm1089_vm4, %v11116_v62, -inf }
 0x816   : > { %v3698_v31 = vpop.xlane.xlu2 %3697 }
 0x817   : > { %7183 = vrcp.f32 %v3698_v31 }
 0x818   : > { %4584 = vmax.xlane.f32.xlu0 %v4583_v36  ;;  %7185 = vrcp.f32 %v3702_v55  ;;  %v4579_v36 = vmax.f32 %v11130_v13, %v4578_v52 }
 0x819   : > { %v11171_v55 = vpop.f32.mrf.mxu0 }
 0x81b   : > { %4799 = vadd.xlane.f32.xlu2 %v4798_v26  ;;  %v3714_v26 = vpop.xlane.xlu1 %3713 }
 0x81d   : > { %v7184_v16 = vpop.eup %7183 }
 0x81e   : > { %v3706_v25 = vpop.xlane.xlu2 %3705  ;;  %v3791_v32 = vmul.f32 %v7184_v16, %v10902_v51  ;;  %v3792_v23 = vmul.f32 %v7184_v16, %v10895_v2  ;;  %v7186_v31 = vpop.eup %7185 }
 0x81f   : > { %7187 = vrcp.f32 %v3706_v25  ;;  %v3793_v61 = vmul.f32 %v7186_v31, %v10858_v57  ;;  %v3794_v51 = vmul.f32 %v7186_v31, %v10848_v45  ;;  %v11177_v2 = vpop.f32.mrf.mxu1  ;;  %v11186_v31 = vpop.f32.mrf.mxu3 }
 0x820   : > { %4023 = vmatmul.f32.gmra.mxu0 %v3791_v32  ;;  %6299 = vmatmul.msk.f32.gmra.mxu1 %vm1089_vm4, %v3792_v23 }
 0x823   : > { %4580 = vmax.xlane.f32.xlu2 %v4579_v36  ;;  %v3718_v36 = vpop.xlane.xlu1 %3717 }
 0x825   : > { %v7188_v25 = vpop.eup %7187 }
 0x826   : > { %6715 = vrot.lane.b32.xlu1 %v13223_v42, %s7355_s13  ;;  %v4561_v15 = vpop.xlane.xlu2 %4560  ;;  %v11182_v42 = vpop.f32.mrf.mxu2  ;;  %v3795_v45 = vmul.f32 %v7188_v25, %v10931_v14  ;;  %v3796_v57 = vmul.f32 %v7188_v25, %v10919_v19 }
 0x827   : > { %v4645_v23 = vsub.f32 %v10952_v22, %v4561_v15  ;;  %v4646_v32 = vsub.f32 %v10946_v54, %v4561_v15  ;;  %v11188_v22 = vpop.f32.mrf.mxu0 }
 0x828   : > { %4026 = vmatmul.f32.gmra.mxu0 %v3793_v61  ;;  %6300 = vmatmul.msk.f32.gmra.mxu1 %vm1089_vm4, %v3794_v51  ;;  %v11193_v61 = vpop.f32.mrf.mxu1 }
 0x829   : > { %v4709_v16 = vmul.f32 1.442695, %v4645_v23  ;;  %v4711_v52 = vmul.f32 1.442695, %v4646_v32  ;;  %13224 = vst [vmem:[#allocation119_spill] sm:$0xff] %v11193_v61 }
 0x82b   : > { %7189 = vpow2.f32 %v4709_v16  ;;  %v3722_v19 = vpop.xlane.xlu1 %3721 }
 0x82c   : > { %7191 = vpow2.f32 %v4711_v52  ;;  %v11205_v52 = vpop.f32.mrf.mxu3 }
 0x82d   : > { %7193 = vrcp.f32 %v3710_v37 }
 0x82e   : > { %7195 = vrcp.f32 %v3714_v26  ;;  %v11200_v23 = vpop.f32.mrf.mxu2 }
 0x82f   : > { %v4590_v25 = vsel %vm1089_vm4, %v11200_v23, -inf  ;;  %v11211_v26 = vpop.f32.mrf.mxu0  ;;  %7197 = vrcp.f32 %v3718_v36 }
 0x830   : > { %4029 = vmatmul.f32.gmra.mxu0 %v3795_v45  ;;  %6301 = vmatmul.msk.f32.gmra.mxu1 %vm1089_vm4, %v3796_v57  ;;  %v4634_v45 = vsub.f32 %v10562_v28, %v11036_v63  ;;  %13225 = vst [vmem:[#allocation130_spill] sm:$0xff] %v11211_v26 }
 0x831   : > { %v11191_v54 = vpop.eup %7189 }
 0x832   : > { %v11195_v15 = vpop.eup %7191 }
 0x833   : > { %v7194_v51 = vpop.eup %7193  ;;  %v4809_v37 = vsel %vm1089_vm4, %v11195_v15, 0.0 }
 0x834   : > { %v4810_v14 = vadd.f32 %v11191_v54, %v4809_v37  ;;  %v3797_v32 = vmul.f32 %v7194_v51, %v10876_v8  ;;  %v3798_v16 = vmul.f32 %v7194_v51, %v10873_v60  ;;  %v7196_v57 = vpop.eup %7195  ;;  %v11213_v37 = vpop.f32.mrf.mxu1  ;;  %v4591_v8 = vmax.f32 %v11205_v52, %v4590_v25 }
 0x835   : > { %v4633_v60 = vsub.f32 %v10569_v47, %v11036_v63  ;;  %v4687_v51 = vmul.f32 1.442695, %v4634_v45  ;;  %v3799_v28 = vmul.f32 %v7196_v57, %v10898_v10  ;;  %v3800_v26 = vmul.f32 %v7196_v57, %v10893_v58  ;;  %v7198_v47 = vpop.eup %7197 }
 0x836   : > { %4811 = vadd.xlane.f32.xlu2 %v4810_v14  ;;  %v3801_v45 = vmul.f32 %v7198_v47, %v10924_v12  ;;  %v4637_v12 = vsub.f32 %v10629_v35, %v11004_v1 }
 0x837   : > { %v4685_v61 = vmul.f32 1.442695, %v4633_v60  ;;  %7199 = vpow2.f32 %v4687_v51  ;;  %v11227_v63 = vpop.f32.mrf.mxu0 }
 0x838   : > { %4032 = vmatmul.f32.gmra.mxu0 %v3797_v32  ;;  %6302 = vmatmul.msk.f32.gmra.mxu1 %vm1089_vm4, %v3798_v16  ;;  %v4693_v35 = vmul.f32 1.442695, %v4637_v12 }
 0x839   : > { %7201 = vpow2.f32 %v4685_v61  ;;  %v4638_v61 = vsub.f32 %v10618_v56, %v11004_v1 }
 0x83a   : > { %7203 = vrcp.f32 %v3722_v19 }
 0x83b   : > { %v4695_v51 = vmul.f32 1.442695, %v4638_v61  ;;  %v4566_v61 = vsel %vm1089_vm4, %v11059_v59, -inf }
 0x83c   : > { %v11229_v36 = vpop.f32.mrf.mxu1 }
 0x83d   : > { %v11218_v14 = vpop.permute.xlu1 %6695  ;;  %v11237_v57 = vpop.eup %7199 }
 0x83e   : > { %v12498_v32 = vunpack.i.h.bf16 %v11218_v14  ;;  %v6697_v16 = vunpack.i.l.bf16 %v11218_v14  ;;  %4592 = vmax.xlane.f32.xlu2 %v4591_v8  ;;  %v3726_v8 = vpop.xlane.xlu0 %3725 }
 0x83f   : > { %v11242_v19 = vpop.eup %7201  ;;  %7205 = vrcp.f32 %v3726_v8  ;;  %v11252_v56 = vpop.f32.mrf.mxu0 }
 0x840   : > { %4035 = vmatmul.f32.gmra.mxu0 %v3799_v28  ;;  %6303 = vmatmul.msk.f32.gmra.mxu1 %vm1089_vm4, %v3800_v26  ;;  %v3802_v26 = vmul.f32 %v7198_v47, %v10917_v5  ;;  %v7204_v60 = vpop.eup %7203  ;;  %v4785_v5 = vsel %vm1089_vm4, %v11237_v57, 0.0  ;;  %7207 = vpow2.f32 %v4695_v51 }
 0x841   : > { %5116 = vmatpush.msra.mxu0 %v6697_v16  ;;  %6454 = vmatpush.msrb.mxu2 %v6697_v16  ;;  %7209 = vpow2.f32 %v4693_v35 }
 0x842   : > { %5208 = vmatpush.msra.mxu1 %v12498_v32 }
 0x845   : > { %v11231_v10 = vpop.permute.xlu1 %6700  ;;  %v7206_v1 = vpop.eup %7205 }
 0x846   : > { %v12495_v58 = vunpack.i.h.bf16 %v11231_v10  ;;  %v6702_v25 = vunpack.i.l.bf16 %v11231_v10  ;;  %v11273_v12 = vpop.eup %7207 }
 0x847   : > { %v11275_v51 = vpop.f32.mrf.mxu0 }
 0x848   : > { %4038 = vmatmul.f32.gmra.mxu0 %v3801_v45  ;;  %6304 = vmatmul.msk.f32.gmra.mxu1 %vm1089_vm4, %v3802_v26  ;;  %v3803_v45 = vmul.f32 %v7204_v60, %v10950_v7  ;;  %v11258_v26 = vpop.f32.mrf.mxu1  ;;  %13227 = vst [vmem:[#allocation88_spill] sm:$0xff] %v11275_v51 }
 0x849   : > { %5117 = vmatpush.msra.mxu0 %v6702_v25  ;;  %6455 = vmatpush.msrb.mxu2 %v6702_v25  ;;  %v4786_v25 = vadd.f32 %v11242_v19, %v4785_v5  ;;  %13226 = vst [vmem:[#allocation127_spill] sm:$0xff] %v11258_v26  ;;  %v3806_v5 = vmul.f32 %v7206_v1, %v10974_v0 }
 0x84a   : > { %5209 = vmatpush.msra.mxu1 %v12495_v58  ;;  %v3804_v58 = vmul.f32 %v7204_v60, %v10944_v11  ;;  %v4567_v11 = vmax.f32 %v11068_v48, %v4566_v61  ;;  %v4570_v61 = vsel %vm1089_vm4, %v11073_v41, -inf }
 0x84d   : > { %v11250_v16 = vpop.permute.xlu1 %6705 }
 0x84e   : > { %v12497_v28 = vunpack.i.h.bf16 %v11250_v16  ;;  %v6707_v47 = vunpack.i.l.bf16 %v11250_v16 }
 0x850   : > { %4787 = vadd.xlane.f32.xlu1 %v4786_v25  ;;  %4041 = vmatmul.f32.gmra.mxu0 %v3803_v45  ;;  %v11282_v25 = vpop.eup %7209  ;;  %v4557_v45 = vpop.xlane.xlu0 %4556 }
 0x851   : > { %6305 = vmatmul.msk.f32.gmra.mxu1 %vm1089_vm4, %v3804_v58  ;;  %5118 = vmatpush.msra.mxu0 %v6707_v47  ;;  %v3805_v58 = vmul.f32 %v7206_v1, %v10972_v49  ;;  %v4793_v49 = vsel %vm1089_vm4, %v11273_v12, 0.0  ;;  %v4644_v35 = vsub.f32 %v10921_v21, %v4557_v45  ;;  %v11288_v1 = vpop.f32.mrf.mxu0 }
 0x852   : > { %6456 = vmatpush.msrb.mxu2 %v6707_v47  ;;  %5210 = vmatpush.msra.mxu1 %v12497_v28  ;;  %v11277_v47 = vpop.f32.mrf.mxu1  ;;  %v4794_v0 = vadd.f32 %v11282_v25, %v4793_v49  ;;  %13229 = vst [vmem:[#allocation50_spill] sm:$0xff] %v11288_v1  ;;  %v4574_v49 = vsel %vm1089_vm4, %v11091_v38, -inf }
 0x853   : > { %13228 = vst [vmem:[#allocation19_spill] sm:$0xff] %v11277_v47  ;;  %v4575_v32 = vmax.f32 %v11100_v44, %v4574_v49 }
 0x855   : > { %v11266_v7 = vpop.permute.xlu1 %6710 }
 0x856   : > { %v12496_v8 = vunpack.i.h.bf16 %v11266_v7  ;;  %v6712_v60 = vunpack.i.l.bf16 %v11266_v7 }
 0x858   : > { %4568 = vmax.xlane.f32.xlu1 %v4567_v11  ;;  %4044 = vmatmul.f32.gmra.mxu0 %v3805_v58  ;;  %v4571_v58 = vmax.f32 %v11076_v39, %v4570_v61 }
 0x859   : > { %6306 = vmatmul.msk.f32.gmra.mxu1 %vm1089_vm4, %v3806_v5  ;;  %5119 = vmatpush.msra.mxu0 %v6712_v60  ;;  %v4707_v5 = vmul.f32 1.442695, %v4644_v35  ;;  %v11298_v21 = vpop.f32.mrf.mxu0 }
 0x85a   : > { %6457 = vmatpush.msrb.mxu2 %v6712_v60  ;;  %5211 = vmatpush.msra.mxu1 %v12496_v8  ;;  %v11292_v11 = vpop.f32.mrf.mxu1  ;;  %v4643_v60 = vsub.f32 %v10926_v18, %v4557_v45  ;;  %13231 = vst [vmem:[#allocation80_spill] sm:$0xff] %v11298_v21 }
 0x85b   : > { %13230 = vst [vmem:[#allocation40_spill] sm:$0xff] %v11292_v11  ;;  %7211 = vpow2.f32 %v4707_v5 }
 0x85c   : > { %v4705_v8 = vmul.f32 1.442695, %v4643_v60 }
 0x85e   : > { %7213 = vpow2.f32 %v4705_v8  ;;  %v4586_v8 = vsel %vm1089_vm4, %v11182_v42, -inf }
 0x85f   : > { %v4587_v5 = vmax.f32 %v11186_v31, %v4586_v8 }
 0x860   : > { %4795 = vadd.xlane.f32.xlu1 %v4794_v0  ;;  %v3735_v0 = vpop.xlane.xlu2 %3734 }
 0x861   : > { %v11303_v11 = vpop.eup %7211  ;;  %v11309_v61 = vpop.f32.mrf.mxu0 }
 0x862   : > { %v11300_v28 = vpop.f32.mrf.mxu1  ;;  %v4805_v45 = vsel %vm1089_vm4, %v11303_v11, 0.0  ;;  %13233 = vst [vmem:[#allocation53_spill] sm:$0xff] %v11309_v61 }
 0x863   : > { %13232 = vst [vmem:[#allocation92_spill] sm:$0xff] %v11300_v28 }
 0x864   : > { %v11305_v18 = vpop.eup %7213 }
 0x865   : > { %v4806_v60 = vadd.f32 %v11305_v18, %v4805_v45 }
 0x868   : > { %4572 = vmax.xlane.f32.xlu1 %v4571_v58  ;;  %v4784_v35 = vpop.xlane.xlu2 %4783 }
 0x86a   : > { %v11312_v58 = vpop.f32.mrf.mxu1 }
 0x86b   : > { %13234 = vst [vmem:[#allocation33_spill] sm:$0xff] %v11312_v58 }
 0x870   : > { %4576 = vmax.xlane.f32.xlu1 %v4575_v32  ;;  %v11317_v49 = vpop.permute.xlu2 %6725  ;;  %v11319_v32 = vpop.f32.mrf.mxu0 }
 0x872   : > { %v11321_v21 = vpop.f32.mrf.mxu1 }
 0x878   : > { %4807 = vadd.xlane.f32.xlu1 %v4806_v60  ;;  %v11327_v26 = vpop.f32.mrf.mxu0 }
 0x880   : > { %v3730_v28 = vpop.xlane.xlu1 %3729  ;;  %4588 = vmax.xlane.f32.xlu1 %v4587_v5  ;;  %v11330_v5 = vpop.f32.mrf.mxu1 }
 0x881   : > { %7215 = vrcp.f32 %v3730_v28  ;;  %13235 = vst [vmem:[#allocation44_spill] sm:$0xff] %v11330_v5 }
 0x882   : > { %7217 = vrcp.f32 %v3735_v0 }
 0x886   : > { %v4565_v61 = vpop.xlane.xlu2 %4564 }
 0x887   : > { %v7216_v1 = vpop.eup %7215  ;;  %v4647_v45 = vsub.f32 %v11050_v20, %v4565_v61  ;;  %v4648_v60 = vsub.f32 %v11042_v29, %v4565_v61  ;;  %v11341_v61 = vpop.f32.mrf.mxu0 }
 0x888   : > { %v3807_v58 = vmul.f32 %v7216_v1, %v11119_v6  ;;  %v3808_v8 = vmul.f32 %v7216_v1, %v11110_v53  ;;  %v7218_v28 = vpop.eup %7217  ;;  %v6721_v53 = vpop.permute.xlu0 %6720  ;;  %13236 = vst [vmem:[#allocation57_spill] sm:$0xff] %v11341_v61 }
 0x889   : > { %v4713_v47 = vmul.f32 1.442695, %v4647_v45  ;;  %v4715_v51 = vmul.f32 1.442695, %v4648_v60  ;;  %v3809_v20 = vmul.f32 %v7218_v28, %v10968_v40  ;;  %v3810_v29 = vmul.f32 %v7218_v28, %v10970_v34  ;;  %v11346_v40 = vpop.f32.mrf.mxu2 }
 0x88a   : > { %4047 = vmatmul.f32.gmra.mxu0 %v3807_v58  ;;  %6307 = vmatmul.msk.f32.gmra.mxu1 %vm1089_vm4, %v3808_v8  ;;  %v11348_v58 = vpop.f32.mrf.mxu3  ;;  %v4594_v45 = vsel %vm1089_vm4, %v11346_v40, -inf  ;;  %v6722_v28 = vunpack.i.l.bf16 %v6721_v53 }
 0x88b   : > { %7219 = vpow2.f32 %v4713_v47  ;;  %v11344_v47 = vpop.f32.mrf.mxu1 }
 0x88c   : > { %7221 = vpow2.f32 %v4715_v51  ;;  %13237 = vst [vmem:[#allocation32_spill] sm:$0xff] %v11344_v47 }
 0x88d   : > { %7223 = vrcp.f32 %v4784_v35  ;;  %v6728_v35 = vunpack.i.h.bf16 %v11317_v49 }
 0x88f   : > { %v11355_v61 = vpop.f32.mrf.mxu0 }
 0x891   : > { %v11334_v0 = vpop.eup %7219 }
 0x892   : > { %v11336_v6 = vpop.eup %7221  ;;  %4050 = vmatmul.f32.gmra.mxu0 %v3809_v20  ;;  %6308 = vmatmul.msk.f32.gmra.mxu1 %vm1089_vm4, %v3810_v29  ;;  %v4595_v20 = vmax.f32 %v11348_v58, %v4594_v45  ;;  %v6723_v29 = vunpack.i.h.bf16 %v6721_v53 }
 0x893   : > { %v4813_v1 = vsel %vm1089_vm4, %v11336_v6, 0.0  ;;  %v7224_v47 = vpop.eup %7223  ;;  %v11357_v5 = vpop.f32.mrf.mxu1 }
 0x894   : > { %v4814_v51 = vadd.f32 %v11334_v0, %v4813_v1  ;;  %v6731_v1 = vpop.permute.xlu0 %6730  ;;  %v4907_v53 = vmul.f32 %v7224_v47, %v11015_v9 }
 0x895   : > { %v6733_v45 = vunpack.i.h.bf16 %v6731_v1 }
 0x896   : > { %4815 = vadd.xlane.f32.xlu0 %v4814_v51  ;;  %v6727_v51 = vunpack.i.l.bf16 %v11317_v49  ;;  %v13238_v49 = vunpack.i.h.bf16 %v11218_v14 }
 0x897   : > { %v11368_v9 = vpop.f32.mrf.mxu0 }
 0x898   : > { %v6716_v34 = vpop.permute.xlu1 %6715  ;;  %13240 = vst [vmem:[#allocation125_spill] sm:$0xff] %v11368_v9 }
 0x899   : > { %v6718_v60 = vunpack.i.h.bf16 %v6716_v34  ;;  %v6717_v8 = vunpack.i.l.bf16 %v6716_v34  ;;  %v6732_v34 = vunpack.i.l.bf16 %v6731_v1  ;;  %v11376_v1 = vpop.f32.mrf.mxu3 }
 0x89b   : > { %5120 = vmatpush.msra.mxu0 %v6717_v8  ;;  %6458 = vmatpush.msrb.mxu2 %v6717_v8  ;;  %v4908_v8 = vmul.f32 %v7224_v47, %v11017_v30  ;;  %v13242_v30 = vunpack.i.h.bf16 %v11250_v16  ;;  %v13243_v47 = vunpack.i.h.bf16 %v11266_v7 }
 0x89c   : > { %5212 = vmatpush.msra.mxu1 %v6718_v60 }
 0x89d   : > { %5121 = vmatpush.msra.mxu0 %v6722_v28  ;;  %6459 = vmatpush.msrb.mxu2 %v6722_v28  ;;  %v13239_v28 = vunpack.i.h.bf16 %v11231_v10 }
 0x89e   : > { %4596 = vmax.xlane.f32.xlu0 %v4595_v20  ;;  %5213 = vmatpush.msra.mxu1 %v6723_v29  ;;  %v11370_v20 = vpop.f32.mrf.mxu1 }
 0x89f   : > { %5122 = vmatpush.msra.mxu0 %v6727_v51  ;;  %6460 = vmatpush.msrb.mxu2 %v6727_v51  ;;  %13241 = vst [vmem:[#allocation148_spill] sm:$0xff] %v11370_v20  ;;  %v11380_v14 = vpop.f32.mrf.mxu0 }
 0x8a0   : > { %5214 = vmatpush.msra.mxu1 %v6728_v35  ;;  %13244 = vst [vmem:[#allocation106_spill] sm:$0xff] %v11380_v14 }
 0x8a1   : > { %5123 = vmatpush.msra.mxu0 %v6732_v34  ;;  %6461 = vmatpush.msrb.mxu2 %v6732_v34  ;;  %v11384_v51 = vpop.f32.mrf.mxu3 }
 0x8a2   : > { %5215 = vmatpush.msra.mxu1 %v6733_v45  ;;  %5124 = vmatmul.f32.vlgmr.msra.gmra.mxu0 %v4907_v53 }
 0x8a3   : > { %6462 = vmatpush.msk.msra.mxu2 %vm1186_vm3, %v11094_v24  ;;  %6385 = vmatmul.msk.f32.vlgmr.msra.gmra.mxu1 %vm1089_vm4, %v4908_v8  ;;  %v11378_v24 = vpop.f32.mrf.mxu2 }
 0x8a5   : > { %6463 = vmatpush.msra.mxu2 %v13238_v49 }
 0x8a6   : > { %v11382_v10 = vpop.f32.mrf.mxu1 }
 0x8a7   : > { %6464 = vmatpush.msra.mxu2 %v13239_v28  ;;  %13245 = vst [vmem:[#allocation139_spill] sm:$0xff] %v11382_v10  ;;  %v11388_v16 = vpop.f32.mrf.mxu0 }
 0x8a8   : > { %13246 = vst [vmem:[#allocation147_spill] sm:$0xff] %v11388_v16 }
 0x8a9   : > { %6465 = vmatpush.msra.mxu2 %v13242_v30  ;;  %v11392_v53 = vpop.f32.mrf.mxu3 }
 0x8ab   : > { %6466 = vmatpush.msra.mxu2 %v13243_v47  ;;  %v11386_v34 = vpop.f32.mrf.mxu2 }
 0x8ad   : > { %6467 = vmatpush.msra.mxu2 %v6718_v60 }
 0x8ae   : > { %v11390_v7 = vpop.f32.mrf.mxu1 }
 0x8af   : > { %6468 = vmatpush.msra.mxu2 %v6723_v29  ;;  %13247 = vst [vmem:[#allocation126_spill] sm:$0xff] %v11390_v7  ;;  %v11396_v8 = vpop.f32.mrf.mxu0 }
 0x8b0   : > { %13248 = vst [vmem:[#allocation35_spill] sm:$0xff] %v11396_v8 }
 0x8b1   : > { %6469 = vmatpush.msra.mxu2 %v6728_v35  ;;  %v4792_v35 = vpop.xlane.xlu0 %4791  ;;  %v11400_v28 = vpop.f32.mrf.mxu3 }
 0x8b3   : > { %6470 = vmatpush.msra.mxu2 %v6733_v45  ;;  %v11394_v60 = vpop.f32.mrf.mxu2 }
 0x8b6   : > { %v11398_v29 = vpop.f32.mrf.mxu1 }
 0x8b7   : > { %13249 = vst [vmem:[#allocation58_spill] sm:$0xff] %v11398_v29  ;;  %v11404_v16 = vpop.f32.mrf.mxu0 }
 0x8b8   : > { %13250 = vst [vmem:[#allocation26_spill] sm:$0xff] %v11404_v16 }
 0x8bb   : > { %v11408_v14 = vpop.f32.mrf.mxu2 }
 0x8be   : > { %v11410_v29 = vpop.f32.mrf.mxu1 }
 0x8bf   : > { %13251 = vst [vmem:[#allocation100_spill] sm:$0xff] %v11410_v29 }
 0x8c3   : > { %v4788_v49 = vpop.xlane.xlu1 %4787 }
 0x8c4   : > { %7225 = vrcp.f32 %v4788_v49  ;;  %v4800_v49 = vpop.xlane.xlu2 %4799 }
 0x8c5   : > { %7227 = vrcp.f32 %v4792_v35 }
 0x8ca   : > { %v7226_v45 = vpop.eup %7225 }
 0x8cb   : > { %v4569_v30 = vpop.xlane.xlu1 %4568  ;;  %v4909_v47 = vmul.f32 %v7226_v45, %v11242_v19  ;;  %v4910_v7 = vmul.f32 %v7226_v45, %v11237_v57  ;;  %v7228_v9 = vpop.eup %7227 }
 0x8cc   : > { %v4649_v10 = vsub.f32 %v11068_v48, %v4569_v30  ;;  %v4650_v8 = vsub.f32 %v11059_v59, %v4569_v30  ;;  %v4911_v19 = vmul.f32 %v7228_v9, %v11106_v33  ;;  %v4912_v48 = vmul.f32 %v7228_v9, %v11104_v17  ;;  %v11415_v59 = vpop.f32.mrf.mxu3  ;;  %v11428_v30 = vpop.xlane.xlu2 %4580 }
 0x8cd   : > { %5127 = vmatmul.f32.gmra.mxu0 %v4909_v47  ;;  %6386 = vmatmul.msk.f32.gmra.mxu1 %vm1089_vm4, %v4910_v7  ;;  %v11420_v7 = vpop.f32.mrf.mxu0 }
 0x8ce   : > { %v4717_v35 = vmul.f32 1.442695, %v4649_v10  ;;  %v4719_v20 = vmul.f32 1.442695, %v4650_v8  ;;  %13252 = vst [vmem:[#allocation36_spill] sm:$0xff] %v11420_v7  ;;  %v11424_v8 = vpop.f32.mrf.mxu2 }
 0x8d0   : > { %7229 = vpow2.f32 %v4717_v35 }
 0x8d1   : > { %7231 = vpow2.f32 %v4719_v20  ;;  %v11426_v20 = vpop.f32.mrf.mxu1 }
 0x8d2   : > { %13253 = vst [vmem:[#allocation152_spill] sm:$0xff] %v11426_v20  ;;  %v4598_v20 = vsel %vm1089_vm4, %v11378_v24, -inf }
 0x8d3   : > { %v4796_v57 = vpop.xlane.xlu1 %4795 }
 0x8d4   : > { %7233 = vrcp.f32 %v4796_v57  ;;  %v11440_v29 = vpop.f32.mrf.mxu3  ;;  %v4812_v16 = vpop.xlane.xlu2 %4811 }
 0x8d5   : > { %5130 = vmatmul.f32.gmra.mxu0 %v4911_v19  ;;  %6387 = vmatmul.msk.f32.gmra.mxu1 %vm1089_vm4, %v4912_v48  ;;  %7235 = vrcp.f32 %v4800_v49  ;;  %v4804_v49 = vpop.xlane.xlu0 %4803 }
 0x8d6   : > { %v11418_v45 = vpop.eup %7229 }
 0x8d7   : > { %v11422_v10 = vpop.eup %7231 }
 0x8d8   : > { %v4817_v17 = vsel %vm1089_vm4, %v11422_v10, 0.0 }
 0x8d9   : > { %v4818_v33 = vadd.f32 %v11418_v45, %v4817_v17 }
 0x8da   : > { %v7234_v9 = vpop.eup %7233 }
 0x8db   : > { %4819 = vadd.xlane.f32.xlu1 %v4818_v33  ;;  %v4573_v47 = vpop.xlane.xlu1 %4572  ;;  %v4913_v35 = vmul.f32 %v7234_v9, %v11282_v25  ;;  %v4914_v57 = vmul.f32 %v7234_v9, %v11273_v12  ;;  %v7236_v33 = vpop.eup %7235 }
 0x8dc   : > { %v4651_v19 = vsub.f32 %v11076_v39, %v4573_v47  ;;  %v4652_v48 = vsub.f32 %v11073_v41, %v4573_v47  ;;  %v11442_v25 = vpop.f32.mrf.mxu0  ;;  %v4599_v39 = vmax.f32 %v11376_v1, %v4598_v20  ;;  %v11445_v12 = vpop.f32.mrf.mxu2  ;;  %v4915_v47 = vmul.f32 %v7236_v33, %v11155_v4 }
 0x8dd   : > { %5133 = vmatmul.f32.gmra.mxu0 %v4913_v35  ;;  %6388 = vmatmul.msk.f32.gmra.mxu1 %vm1089_vm4, %v4914_v57  ;;  %13254 = vst [vmem:[#allocation153_spill] sm:$0xff] %v11442_v25  ;;  %v11447_v41 = vpop.f32.mrf.mxu1  ;;  %v4916_v35 = vmul.f32 %v7236_v33, %v11147_v27  ;;  %v4618_v20 = vsel %vm1089_vm4, %v11445_v12, -inf  ;;  %v11462_v33 = vpop.f32.mrf.mxu3 }
 0x8de   : > { %v4721_v7 = vmul.f32 1.442695, %v4651_v19  ;;  %v4723_v17 = vmul.f32 1.442695, %v4652_v48  ;;  %13255 = vst [vmem:[#allocation154_spill] sm:$0xff] %v11447_v41  ;;  %v4656_v48 = vsub.f32 %v11116_v62, %v11428_v30 }
 0x8e0   : > { %7237 = vpow2.f32 %v4721_v7 }
 0x8e1   : > { %7239 = vpow2.f32 %v4723_v17 }
 0x8e2   : > { %7241 = vrcp.f32 %v4804_v49 }
 0x8e3   : > { %4600 = vmax.xlane.f32.xlu1 %v4599_v39  ;;  %v4577_v9 = vpop.xlane.xlu1 %4576 }
 0x8e4   : > { %v4653_v57 = vsub.f32 %v11100_v44, %v4577_v9  ;;  %v4654_v19 = vsub.f32 %v11091_v38, %v4577_v9  ;;  %v4619_v44 = vmax.f32 %v11440_v29, %v4618_v20  ;;  %v11467_v39 = vpop.f32.mrf.mxu2  ;;  %v4585_v9 = vpop.xlane.xlu0 %4584 }
 0x8e5   : > { %5136 = vmatmul.f32.gmra.mxu0 %v4915_v47  ;;  %6389 = vmatmul.msk.f32.gmra.mxu1 %vm1089_vm4, %v4916_v35  ;;  %v4655_v47 = vsub.f32 %v11130_v13, %v11428_v30  ;;  %v4731_v35 = vmul.f32 1.442695, %v4656_v48  ;;  %v11474_v41 = vpop.f32.mrf.mxu1  ;;  %v4602_v13 = vsel %vm1089_vm4, %v11386_v34, -inf  ;;  %v4622_v30 = vsel %vm1089_vm4, %v11467_v39, -inf }
 0x8e6   : > { %v11454_v7 = vpop.eup %7237  ;;  %v4725_v17 = vmul.f32 1.442695, %v4653_v57  ;;  %v4727_v49 = vmul.f32 1.442695, %v4654_v19  ;;  %v4593_v57 = vpop.xlane.xlu2 %4592  ;;  %13256 = vst [vmem:[#allocation155_spill] sm:$0xff] %v11474_v41 }
 0x8e7   : > { %v11460_v4 = vpop.eup %7239  ;;  %v11472_v19 = vpop.f32.mrf.mxu0  ;;  %v4729_v48 = vmul.f32 1.442695, %v4655_v47 }
 0x8e8   : > { %v7242_v27 = vpop.eup %7241  ;;  %7243 = vpow2.f32 %v4725_v17  ;;  %v4821_v38 = vsel %vm1089_vm4, %v11460_v4, 0.0 }
 0x8e9   : > { %7245 = vpow2.f32 %v4727_v49  ;;  %v4822_v62 = vadd.f32 %v11454_v7, %v4821_v38  ;;  %v4917_v20 = vmul.f32 %v7242_v27, %v11134_v43  ;;  %v4918_v25 = vmul.f32 %v7242_v27, %v11122_v3 }
 0x8ea   : > { %v4662_v49 = vsub.f32 %v11200_v23, %v4593_v57  ;;  %v4603_v3 = vmax.f32 %v11384_v51, %v4602_v13  ;;  %v4623_v27 = vmax.f32 %v11462_v33, %v4622_v30  ;;  %v4657_v23 = vsub.f32 %v11149_v50, %v4585_v9 }
 0x8eb   : > { %4620 = vmax.xlane.f32.xlu1 %v4619_v44  ;;  %4823 = vadd.xlane.f32.xlu2 %v4822_v62  ;;  %v4808_v17 = vpop.xlane.xlu1 %4807  ;;  %v4658_v44 = vsub.f32 %v11142_v46, %v4585_v9  ;;  %v4661_v62 = vsub.f32 %v11205_v52, %v4593_v57  ;;  %v11496_v46 = vpop.f32.mrf.mxu3  ;;  %v4606_v9 = vsel %vm1089_vm4, %v11394_v60, -inf }
 0x8ec   : > { %7247 = vrcp.f32 %v4808_v17  ;;  %v11498_v41 = vpop.f32.mrf.mxu2 }
 0x8ed   : > { %5139 = vmatmul.f32.gmra.mxu0 %v4917_v20  ;;  %6390 = vmatmul.msk.f32.gmra.mxu1 %vm1089_vm4, %v4918_v25  ;;  %7249 = vpow2.f32 %v4731_v35  ;;  %v4743_v25 = vmul.f32 1.442695, %v4662_v49  ;;  %v4735_v35 = vmul.f32 1.442695, %v4658_v44  ;;  %v4741_v50 = vmul.f32 1.442695, %v4661_v62 }
 0x8ee   : > { %v11484_v38 = vpop.eup %7243  ;;  %7251 = vpow2.f32 %v4729_v48  ;;  %v4733_v48 = vmul.f32 1.442695, %v4657_v23 }
 0x8ef   : > { %v11487_v43 = vpop.eup %7245  ;;  %7253 = vrcp.f32 %v4812_v16  ;;  %v11506_v49 = vpop.f32.mrf.mxu0 }
 0x8f0   : > { %v4825_v47 = vsel %vm1089_vm4, %v11487_v43, 0.0  ;;  %7255 = vpow2.f32 %v4743_v25  ;;  %v11508_v16 = vpop.f32.mrf.mxu1 }
 0x8f1   : > { %v4826_v17 = vadd.f32 %v11484_v38, %v4825_v47  ;;  %7257 = vpow2.f32 %v4735_v35  ;;  %v4607_v47 = vmax.f32 %v11392_v53, %v4606_v9 }
 0x8f2   : > { %v7248_v20 = vpop.eup %7247  ;;  %7259 = vpow2.f32 %v4741_v50 }
 0x8f3   : > { %4624 = vmax.xlane.f32.xlu1 %v4623_v27  ;;  %4604 = vmax.xlane.f32.xlu2 %v4603_v3  ;;  %v4589_v13 = vpop.xlane.xlu1 %4588  ;;  %v4919_v52 = vmul.f32 %v7248_v20, %v11305_v18  ;;  %v4920_v57 = vmul.f32 %v7248_v20, %v11303_v11  ;;  %v11502_v30 = vpop.eup %7249  ;;  %v4626_v18 = vsel %vm1186_vm3, %v11496_v46, -inf  ;;  %v4627_v11 = vsel %vm1188_vm5, %v11498_v41, -inf }
 0x8f4   : > { %4827 = vadd.xlane.f32.xlu0 %v4826_v17  ;;  %v4660_v44 = vsub.f32 %v11182_v42, %v4589_v13  ;;  %v11516_v3 = vpop.eup %7251  ;;  %v4829_v27 = vsel %vm1089_vm4, %v11502_v30, 0.0  ;;  %v4628_v23 = vmax.f32 %v4626_v18, %v4627_v11  ;;  %7261 = vpow2.f32 %v4733_v48 }
 0x8f5   : > { %5142 = vmatmul.f32.gmra.mxu0 %v4919_v52  ;;  %6391 = vmatmul.msk.f32.gmra.mxu1 %vm1089_vm4, %v4920_v57  ;;  %v7254_v62 = vpop.eup %7253  ;;  %v4659_v25 = vsub.f32 %v11186_v31, %v4589_v13  ;;  %v4830_v20 = vadd.f32 %v11516_v3, %v4829_v27  ;;  %v4610_v31 = vsel %vm1089_vm4, %v11408_v14, -inf }
 0x8f6   : > { %v4739_v17 = vmul.f32 1.442695, %v4660_v44  ;;  %v11523_v52 = vpop.eup %7255  ;;  %v4921_v42 = vmul.f32 %v7254_v62, %v11191_v54  ;;  %v4922_v35 = vmul.f32 %v7254_v62, %v11195_v15  ;;  %v4611_v11 = vmax.f32 %v11400_v28, %v4610_v31 }
 0x8f7   : > { %v11527_v57 = vpop.eup %7257  ;;  %v4737_v50 = vmul.f32 1.442695, %v4659_v25  ;;  %v4841_v13 = vsel %vm1089_vm4, %v11523_v52, 0.0  ;;  %v11538_v54 = vpop.f32.mrf.mxu0 }
 0x8f8   : > { %v11530_v9 = vpop.eup %7259  ;;  %7263 = vpow2.f32 %v4739_v17  ;;  %13257 = vst [vmem:[#allocation156_spill] sm:$0xff] %v11538_v54  ;;  %v11540_v15 = vpop.f32.mrf.mxu1  ;;  %v4833_v18 = vsel %vm1089_vm4, %v11527_v57, 0.0 }
 0x8f9   : > { %13258 = vst [vmem:[#allocation157_spill] sm:$0xff] %v11540_v15  ;;  %7265 = vpow2.f32 %v4737_v50  ;;  %v4842_v44 = vadd.f32 %v11530_v9, %v4841_v13 }
 0x8fa   : > { %v11536_v48 = vpop.eup %7261 }
 0x8fb   : > { %4629 = vmax.xlane.f32.xlu1 %v4628_v23  ;;  %4608 = vmax.xlane.f32.xlu2 %v4607_v47  ;;  %v4834_v27 = vadd.f32 %v11536_v48, %v4833_v18  ;;  %v4614_v47 = vsel %vm1089_vm4, %v11424_v8, -inf }
 0x8fc   : > { %4831 = vadd.xlane.f32.xlu0 %v4830_v20 }
 0x8fd   : > { %5145 = vmatmul.f32.gmra.mxu0 %v4921_v42  ;;  %6392 = vmatmul.msk.f32.gmra.mxu1 %vm1089_vm4, %v4922_v35  ;;  %v4615_v35 = vmax.f32 %v11415_v59, %v4614_v47 }
 0x8fe   : > { %v11547_v62 = vpop.eup %7263 }
 0x8ff   : > { %v11551_v23 = vpop.eup %7265  ;;  %v4837_v20 = vsel %vm1089_vm4, %v11547_v62, 0.0 }
 0x900   : > { %v4838_v31 = vadd.f32 %v11551_v23, %v4837_v20 }
 0x903   : > { %4612 = vmax.xlane.f32.xlu2 %v4611_v11  ;;  %4843 = vadd.xlane.f32.xlu1 %v4842_v44 }
 0x904   : > { %4835 = vadd.xlane.f32.xlu0 %v4834_v27 }
 0x907   : > { %v4048_v25 = vpop.f32.mrf.mxu0  ;;  %v4140_v17 = vpop.f32.mrf.mxu1 }
 0x908   : > { %v11555_v42 = vadd.f32 %v4140_v17, %v4048_v25 }
 0x909   : > { %v4816_v50 = vpop.xlane.xlu0 %4815 }
 0x90a   : > { %7267 = vrcp.f32 %v4816_v50 }
 0x90b   : > { %4616 = vmax.xlane.f32.xlu2 %v4615_v35 }
 0x90c   : > { %4839 = vadd.xlane.f32.xlu0 %v4838_v31  ;;  %v13260_v31 = vld [vmem:[#allocation118_spill] sm:$0xff] }
 0x90f   : > { %v4051_v13 = vpop.f32.mrf.mxu0  ;;  %v4143_v18 = vpop.f32.mrf.mxu1 }
 0x910   : > { %v7268_v11 = vpop.eup %7267  ;;  %v11559_v44 = vadd.f32 %v4143_v18, %v4051_v13 }
 0x911   : > { %v4597_v27 = vpop.xlane.xlu0 %4596  ;;  %v4923_v15 = vmul.f32 %v7268_v11, %v11334_v0  ;;  %v4924_v54 = vmul.f32 %v7268_v11, %v11336_v6 }
 0x912   : > { %v4663_v25 = vsub.f32 %v11348_v58, %v4597_v27  ;;  %v4664_v47 = vsub.f32 %v11346_v40, %v4597_v27  ;;  %v13259_v58 = vld [vmem:[#allocation95_spill] sm:$0xff] }
 0x913   : > { %5148 = vmatmul.f32.gmra.mxu0 %v4923_v15  ;;  %6393 = vmatmul.msk.f32.gmra.mxu1 %vm1089_vm4, %v4924_v54  ;;  %v2926_v40 = vadd.f32 %v13260_v31, %v13259_v58 }
 0x914   : > { %v4745_v17 = vmul.f32 1.442695, %v4663_v25  ;;  %v4747_v20 = vmul.f32 1.442695, %v4664_v47 }
 0x916   : > { %7269 = vpow2.f32 %v4745_v17 }
 0x917   : > { %7271 = vpow2.f32 %v4747_v20 }
 0x91c   : > { %v11566_v35 = vpop.eup %7269 }
 0x91d   : > { %v11568_v50 = vpop.eup %7271 }
 0x91e   : > { %v4845_v0 = vsel %vm1089_vm4, %v11568_v50, 0.0 }
 0x91f   : > { %v4846_v6 = vadd.f32 %v11566_v35, %v4845_v0 }
 0x921   : > { %4847 = vadd.xlane.f32.xlu0 %v4846_v6 }
 0x935   : > { %5317 = vrot.lane.b32.xlu0 %v2926_v40, %s7356_s14 }
 0x94e   : > { %v4820_v54 = vpop.xlane.xlu1 %4819 }
 0x94f   : > { %7273 = vrcp.f32 %v4820_v54 }
 0x955   : > { %v7274_v15 = vpop.eup %7273 }
 0x956   : > { %v4601_v13 = vpop.xlane.xlu1 %4600  ;;  %v4925_v18 = vmul.f32 %v7274_v15, %v11418_v45  ;;  %v4926_v11 = vmul.f32 %v7274_v15, %v11422_v10 }
 0x957   : > { %v4665_v27 = vsub.f32 %v11376_v1, %v4601_v13  ;;  %v4666_v25 = vsub.f32 %v11378_v24, %v4601_v13 }
 0x958   : > { %5151 = vmatmul.f32.gmra.mxu0 %v4925_v18  ;;  %6394 = vmatmul.msk.f32.gmra.mxu1 %vm1089_vm4, %v4926_v11 }
 0x959   : > { %v4749_v47 = vmul.f32 1.442695, %v4665_v27  ;;  %v4751_v17 = vmul.f32 1.442695, %v4666_v25 }
 0x95b   : > { %7275 = vpow2.f32 %v4749_v47 }
 0x95c   : > { %7277 = vpow2.f32 %v4751_v17 }
 0x95e   : > { %v11581_v20 = vpop.xlane.xlu1 %4620  ;;  %v4824_v0 = vpop.xlane.xlu2 %4823 }
 0x95f   : > { %7279 = vrcp.f32 %v4824_v0 }
 0x961   : > { %v11583_v6 = vpop.eup %7275 }
 0x962   : > { %v11585_v45 = vpop.eup %7277 }
 0x963   : > { %v4849_v1 = vsel %vm1089_vm4, %v11585_v45, 0.0 }
 0x964   : > { %v4850_v24 = vadd.f32 %v11583_v6, %v4849_v1 }
 0x965   : > { %v7280_v10 = vpop.eup %7279 }
 0x966   : > { %4851 = vadd.xlane.f32.xlu2 %v4850_v24  ;;  %v11590_v58 = vpop.xlane.xlu1 %4624  ;;  %v4605_v31 = vpop.xlane.xlu2 %4604  ;;  %v4927_v40 = vmul.f32 %v7280_v10, %v11454_v7  ;;  %v4928_v54 = vmul.f32 %v7280_v10, %v11460_v4 }
 0x967   : > { %v4828_v15 = vpop.xlane.xlu0 %4827  ;;  %v4667_v13 = vsub.f32 %v11384_v51, %v4605_v31  ;;  %v4668_v18 = vsub.f32 %v11386_v34, %v4605_v31 }
 0x968   : > { %7281 = vrcp.f32 %v4828_v15  ;;  %5154 = vmatmul.f32.gmra.mxu0 %v4927_v40  ;;  %6395 = vmatmul.msk.f32.gmra.mxu1 %vm1089_vm4, %v4928_v54 }
 0x969   : > { %v4753_v11 = vmul.f32 1.442695, %v4667_v13  ;;  %v4755_v27 = vmul.f32 1.442695, %v4668_v18 }
 0x96b   : > { %7283 = vpow2.f32 %v4753_v11 }
 0x96c   : > { %7285 = vpow2.f32 %v4755_v27 }
 0x96e   : > { %v7282_v25 = vpop.eup %7281  ;;  %v4630_v47 = vpop.xlane.xlu1 %4629 }
 0x96f   : > { %v4609_v17 = vpop.xlane.xlu2 %4608  ;;  %v4832_v0 = vpop.xlane.xlu0 %4831  ;;  %v4929_v51 = vmul.f32 %v7282_v25, %v11484_v38  ;;  %v4930_v34 = vmul.f32 %v7282_v25, %v11487_v43  ;;  %v4679_v1 = vsub.f32 %v11496_v46, %v4630_v47  ;;  %v4680_v10 = vsub.f32 %v11498_v41, %v4630_v47 }
 0x970   : > { %v4669_v7 = vsub.f32 %v11392_v53, %v4609_v17  ;;  %v4670_v4 = vsub.f32 %v11394_v60, %v4609_v17  ;;  %7287 = vrcp.f32 %v4832_v0  ;;  %v4676_v43 = vsub.f32 %v11445_v12, %v11581_v20 }
 0x971   : > { %5157 = vmatmul.f32.gmra.mxu0 %v4929_v51  ;;  %6396 = vmatmul.msk.f32.gmra.mxu1 %vm1089_vm4, %v4930_v34  ;;  %v11604_v40 = vpop.eup %7283  ;;  %v4777_v53 = vmul.f32 1.442695, %v4679_v1  ;;  %v4779_v46 = vmul.f32 1.442695, %v4680_v10  ;;  %v4675_v12 = vsub.f32 %v11440_v29, %v11581_v20 }
 0x972   : > { %v4757_v24 = vmul.f32 1.442695, %v4669_v7  ;;  %v4759_v31 = vmul.f32 1.442695, %v4670_v4  ;;  %v11606_v54 = vpop.eup %7285  ;;  %v4771_v0 = vmul.f32 1.442695, %v4676_v43 }
 0x973   : > { %v4853_v60 = vsel %vm1089_vm4, %v11606_v54, 0.0  ;;  %v4769_v7 = vmul.f32 1.442695, %v4675_v12  ;;  %v5125_v12 = vpop.f32.mrf.mxu0 }
 0x974   : > { %7289 = vpow2.f32 %v4757_v24  ;;  %v4854_v41 = vadd.f32 %v11604_v40, %v4853_v60 }
 0x975   : > { %7291 = vpow2.f32 %v4759_v31 }
 0x976   : > { %v7288_v38 = vpop.eup %7287  ;;  %4855 = vadd.xlane.f32.xlu1 %v4854_v41 }
 0x977   : > { %v4613_v15 = vpop.xlane.xlu2 %4612  ;;  %v4836_v13 = vpop.xlane.xlu0 %4835  ;;  %v4931_v27 = vmul.f32 %v7288_v38, %v11516_v3  ;;  %v4932_v25 = vmul.f32 %v7288_v38, %v11502_v30 }
 0x978   : > { %v4671_v18 = vsub.f32 %v11400_v28, %v4613_v15  ;;  %v4672_v11 = vsub.f32 %v11408_v14, %v4613_v15  ;;  %7293 = vrcp.f32 %v4836_v13  ;;  %v4844_v15 = vpop.xlane.xlu1 %4843 }
 0x979   : > { %7295 = vpow2.f32 %v4777_v53  ;;  %5160 = vmatmul.f32.gmra.mxu0 %v4931_v27  ;;  %6397 = vmatmul.msk.f32.gmra.mxu1 %vm1089_vm4, %v4932_v25  ;;  %v4678_v53 = vsub.f32 %v11467_v39, %v11590_v58 }
 0x97a   : > { %v4761_v47 = vmul.f32 1.442695, %v4671_v18  ;;  %v4763_v17 = vmul.f32 1.442695, %v4672_v11  ;;  %7297 = vpow2.f32 %v4779_v46  ;;  %v11620_v28 = vpop.eup %7289 }
 0x97b   : > { %v11622_v14 = vpop.eup %7291  ;;  %v4775_v41 = vmul.f32 1.442695, %v4678_v53 }
 0x97c   : > { %7299 = vpow2.f32 %v4761_v47  ;;  %v4857_v30 = vsel %vm1089_vm4, %v11622_v14, 0.0  ;;  %v5671_v47 = vld [vmem:[%s12184_s5 + $0x18] sm:$0xff] }
 0x97d   : > { %7301 = vpow2.f32 %v4763_v17  ;;  %v4858_v4 = vadd.f32 %v11620_v28, %v4857_v30  ;;  %5763 = vmatpush.msra.mxu3 %v5671_v47  ;;  %v13264_v47 = vld [vmem:[#allocation130_spill] sm:$0xff] }
 0x97e   : > { %v7294_v3 = vpop.eup %7293  ;;  %7303 = vpow2.f32 %v4771_v0  ;;  %v5217_v0 = vpop.f32.mrf.mxu1 }
 0x97f   : > { %v4617_v29 = vpop.xlane.xlu2 %4616  ;;  %v11627_v20 = vpop.eup %7295  ;;  %v4933_v24 = vmul.f32 %v7294_v3, %v11536_v48  ;;  %v4934_v10 = vmul.f32 %v7294_v3, %v11527_v57  ;;  %4859 = vadd.xlane.f32.xlu2 %v4858_v4 }
 0x980   : > { %v4840_v51 = vpop.xlane.xlu0 %4839  ;;  %v4673_v34 = vsub.f32 %v11415_v59, %v4617_v29  ;;  %v4674_v1 = vsub.f32 %v11424_v8, %v4617_v29  ;;  %v11633_v31 = vpop.eup %7297  ;;  %v4677_v59 = vsub.f32 %v11462_v33, %v11590_v58  ;;  %v4877_v8 = vsel %vm1186_vm3, %v11627_v20, 0.0 }
 0x981   : > { %7305 = vrcp.f32 %v4840_v51  ;;  %5163 = vmatmul.f32.gmra.mxu0 %v4933_v24  ;;  %6398 = vmatmul.msk.f32.gmra.mxu1 %vm1089_vm4, %v4934_v10  ;;  %v4878_v39 = vsel %vm1188_vm5, %v11633_v31, 0.0  ;;  %v5128_v24 = vpop.f32.mrf.mxu0 }
 0x982   : > { %v11637_v60 = vpop.eup %7299  ;;  %v4765_v38 = vmul.f32 1.442695, %v4673_v34  ;;  %v4767_v43 = vmul.f32 1.442695, %v4674_v1  ;;  %7307 = vpow2.f32 %v4769_v7  ;;  %v4879_v13 = vadd.f32 %v4878_v39, %v4877_v8 }
 0x983   : > { %v11639_v46 = vpop.eup %7301  ;;  %v4773_v18 = vmul.f32 1.442695, %v4677_v59 }
 0x984   : > { %7309 = vpow2.f32 %v4765_v38  ;;  %v4861_v57 = vsel %vm1089_vm4, %v11639_v46, 0.0  ;;  %v11650_v48 = vpop.eup %7303 }
 0x985   : > { %7311 = vpow2.f32 %v4767_v43  ;;  %v4862_v33 = vadd.f32 %v11637_v60, %v4861_v57  ;;  %v4869_v30 = vsel %vm1089_vm4, %v11650_v48, 0.0  ;;  %v4072_v57 = vadd.f32 %v11177_v2, %v11171_v55 }
 0x986   : > { %7313 = vrcp.f32 %v4844_v15  ;;  %v5220_v10 = vpop.f32.mrf.mxu1  ;;  %v13262_v15 = vld [vmem:[#allocation51_spill] sm:$0xff]  ;;  %v5218_v55 = vadd.f32 %v5217_v0, %v5125_v12  ;;  %v4081_v12 = vadd.f32 %v11229_v36, %v11227_v63 }
 0x987   : > { %v7306_v58 = vpop.eup %7305  ;;  %4863 = vadd.xlane.f32.xlu0 %v4862_v33  ;;  %7315 = vpow2.f32 %v4775_v41  ;;  %4880 = vadd.xlane.f32.xlu2 %v4879_v13  ;;  %v13261_v41 = vld [vmem:[#allocation104_spill] sm:$0xff] }
 0x988   : > { %v4935_v11 = vmul.f32 %v7306_v58, %v11551_v23  ;;  %v4936_v27 = vmul.f32 %v7306_v58, %v11547_v62  ;;  %v11655_v25 = vpop.eup %7307  ;;  %7317 = vpow2.f32 %v4773_v18  ;;  %v2929_v33 = vadd.f32 %v13262_v15, %v13261_v41  ;;  %v13275_v41 = vld [vmem:[#allocation97_spill] sm:$0xff] }
 0x989   : > { %v4870_v7 = vadd.f32 %v11655_v25, %v4869_v30  ;;  %v5131_v8 = vpop.f32.mrf.mxu0  ;;  %v5221_v18 = vadd.f32 %v5220_v10, %v5128_v24  ;;  %v4078_v30 = vadd.f32 %v11213_v37, %v13264_v47  ;;  %v5670_v37 = vld [vmem:[%s12184_s5 + $0x10] sm:$0xff] }
 0x98a   : > { %v11660_v17 = vpop.eup %7309  ;;  %5166 = vmatmul.f32.gmra.mxu0 %v4935_v11  ;;  %6399 = vmatmul.msk.f32.gmra.mxu1 %vm1089_vm4, %v4936_v27 }
 0x98b   : > { %v11664_v3 = vpop.eup %7311  ;;  %5764 = vmatpush.msra.mxu3 %v5670_v37 }
 0x98c   : > { %v4865_v62 = vsel %vm1089_vm4, %v11664_v3, 0.0  ;;  %v7314_v4 = vpop.eup %7313 }
 0x98d   : > { %v4866_v23 = vadd.f32 %v11660_v17, %v4865_v62  ;;  %v11671_v29 = vpop.eup %7315  ;;  %v4937_v51 = vmul.f32 %v7314_v4, %v11530_v9  ;;  %v4938_v34 = vmul.f32 %v7314_v4, %v11523_v52  ;;  %v13265_v62 = vld [vmem:[#allocation144_spill] sm:$0xff] }
 0x98e   : > { %v11675_v1 = vpop.eup %7317  ;;  %v4873_v53 = vsel %vm1089_vm4, %v11671_v29, 0.0  ;;  %v5223_v9 = vpop.f32.mrf.mxu1 }
 0x98f   : > { %4867 = vadd.xlane.f32.xlu1 %v4866_v23  ;;  %4871 = vadd.xlane.f32.xlu0 %v4870_v7  ;;  %v4874_v43 = vadd.f32 %v11675_v1, %v4873_v53  ;;  %v5224_v2 = vadd.f32 %v5223_v9, %v5131_v8  ;;  %v13269_v53 = vld [vmem:[#allocation127_spill] sm:$0xff] }
 0x990   : > { %v4084_v63 = vadd.f32 %v13269_v53, %v11252_v56  ;;  %v13274_v56 = vld [vmem:[#allocation129_spill] sm:$0xff] }
 0x991   : > { %v5134_v58 = vpop.f32.mrf.mxu0  ;;  %v2941_v15 = vadd.f32 %v13275_v41, %v13274_v56  ;;  %v13285_v53 = vld [vmem:[#allocation33_spill] sm:$0xff] }
 0x992   : > { %5169 = vmatmul.f32.gmra.mxu0 %v4937_v51  ;;  %6400 = vmatmul.msk.f32.gmra.mxu1 %vm1089_vm4, %v4938_v34  ;;  %v13267_v51 = vld [vmem:[#allocation151_spill] sm:$0xff]  ;;  %v13268_v34 = vld [vmem:[#allocation37_spill] sm:$0xff] }
 0x993   : > { %v2935_v24 = vadd.f32 %v13268_v34, %v13267_v51  ;;  %v13289_v56 = vld [vmem:[#allocation85_spill] sm:$0xff] }
 0x994   : > { %v4848_v38 = vpop.xlane.xlu0 %4847 }
 0x995   : > { %7319 = vrcp.f32 %v4848_v38 }
 0x996   : > { %v5226_v13 = vpop.f32.mrf.mxu1 }
 0x997   : > { %4875 = vadd.xlane.f32.xlu1 %v4874_v43  ;;  %v5227_v7 = vadd.f32 %v5226_v13, %v5134_v58  ;;  %v13270_v43 = vld [vmem:[#allocation140_spill] sm:$0xff] }
 0x999   : > { %v5137_v11 = vpop.f32.mrf.mxu0 }
 0x99b   : > { %v7320_v59 = vpop.eup %7319 }
 0x99c   : > { %v4939_v52 = vmul.f32 %v7320_v59, %v11566_v35  ;;  %v4940_v39 = vmul.f32 %v7320_v59, %v11568_v50  ;;  %v13263_v35 = vld [vmem:[#allocation119_spill] sm:$0xff]  ;;  %v13271_v59 = vld [vmem:[#allocation56_spill] sm:$0xff] }
 0x99d   : > { %v4075_v50 = vadd.f32 %v13263_v35, %v11188_v22  ;;  %v13266_v22 = vld [vmem:[#allocation138_spill] sm:$0xff]  ;;  %v2938_v8 = vadd.f32 %v13271_v59, %v13270_v43  ;;  %v13277_v35 = vld [vmem:[#allocation40_spill] sm:$0xff] }
 0x99e   : > { %5172 = vmatmul.f32.gmra.mxu0 %v4939_v52  ;;  %6401 = vmatmul.msk.f32.gmra.mxu1 %vm1089_vm4, %v4940_v39  ;;  %v5229_v27 = vpop.f32.mrf.mxu1  ;;  %v2932_v23 = vadd.f32 %v13266_v22, %v13265_v62  ;;  %v13272_v52 = vld [vmem:[#allocation88_spill] sm:$0xff]  ;;  %v13273_v39 = vld [vmem:[#allocation19_spill] sm:$0xff] }
 0x99f   : > { %5417 = vrot.lane.b32.xlu2 %v4072_v57, %s7357_s17  ;;  %v5230_v10 = vadd.f32 %v5229_v27, %v5137_v11  ;;  %v4087_v57 = vadd.f32 %v13273_v39, %v13272_v52  ;;  %v13280_v62 = vld [vmem:[#allocation80_spill] sm:$0xff] }
 0x9a0   : > { %v13281_v22 = vld [vmem:[#allocation92_spill] sm:$0xff] }
 0x9a1   : > { %v5140_v0 = vpop.f32.mrf.mxu0  ;;  %v13286_v43 = vld [vmem:[#allocation108_spill] sm:$0xff] }
 0x9a2   : > { %v13287_v59 = vld [vmem:[#allocation24_spill] sm:$0xff] }
 0x9a3   : > { %5319 = vrot.lane.b32.xlu0 %v2929_v33, %s7356_s14 }
 0x9a6   : > { %v5232_v4 = vpop.f32.mrf.mxu1 }
 0x9a7   : > { %5519 = vrot.lane.b32.xlu2 %v5221_v18, %s7358_s18  ;;  %v5233_v9 = vadd.f32 %v5232_v4, %v5140_v0  ;;  %v13276_v18 = vld [vmem:[#allocation50_spill] sm:$0xff]  ;;  %v13283_v0 = vld [vmem:[#allocation133_spill] sm:$0xff] }
 0x9a9   : > { %v5143_v36 = vpop.f32.mrf.mxu0 }
 0x9ab   : > { %5419 = vrot.lane.b32.xlu0 %v4075_v50, %s7357_s17  ;;  %v4090_v50 = vadd.f32 %v13277_v35, %v13276_v18  ;;  %v11763_v18 = vpop.permute.xlu0 %5317 }
 0x9ae   : > { %v5235_v38 = vpop.f32.mrf.mxu1 }
 0x9af   : > { %5521 = vrot.lane.b32.xlu2 %v5224_v2, %s7358_s18  ;;  %v5236_v13 = vadd.f32 %v5235_v38, %v5143_v36  ;;  %v13279_v2 = vld [vmem:[#allocation69_spill] sm:$0xff] }
 0x9b0   : > { %5517 = vrot.lane.b32.xlu1 %v5218_v55, %s7358_s18  ;;  %v13278_v55 = vld [vmem:[#allocation63_spill] sm:$0xff] }
 0x9b1   : > { %v5146_v33 = vpop.f32.mrf.mxu0  ;;  %v2944_v11 = vadd.f32 %v13279_v2, %v13278_v55 }
 0x9b3   : > { %5421 = vrot.lane.b32.xlu0 %v4078_v30, %s7357_s17 }
 0x9b6   : > { %v5238_v58 = vpop.f32.mrf.mxu1 }
 0x9b7   : > { %5523 = vrot.lane.b32.xlu2 %v5227_v7, %s7358_s18  ;;  %v5239_v30 = vadd.f32 %v5238_v58, %v5146_v33 }
 0x9b8   : > { %5321 = vrot.lane.b32.xlu1 %v2932_v23, %s7356_s14  ;;  %v4093_v23 = vadd.f32 %v13281_v22, %v13280_v62  ;;  %v13293_v22 = vld [vmem:[#allocation57_spill] sm:$0xff] }
 0x9b9   : > { %v5149_v27 = vpop.f32.mrf.mxu0 }
 0x9bb   : > { %5423 = vrot.lane.b32.xlu0 %v4081_v12, %s7357_s17  ;;  %v13282_v12 = vld [vmem:[#allocation21_spill] sm:$0xff] }
 0x9bc   : > { %v2947_v4 = vadd.f32 %v13283_v0, %v13282_v12 }
 0x9be   : > { %v5241_v47 = vpop.f32.mrf.mxu1 }
 0x9bf   : > { %5525 = vrot.lane.b32.xlu2 %v5230_v10, %s7358_s18  ;;  %v5242_v34 = vadd.f32 %v5241_v47, %v5149_v27  ;;  %v13284_v10 = vld [vmem:[#allocation53_spill] sm:$0xff]  ;;  %v13292_v27 = vld [vmem:[#allocation64_spill] sm:$0xff] }
 0x9c0   : > { %5323 = vrot.lane.b32.xlu1 %v2935_v24, %s7356_s14 }
 0x9c3   : > { %5425 = vrot.lane.b32.xlu0 %v4084_v63, %s7357_s17  ;;  %v4096_v63 = vadd.f32 %v13285_v53, %v13284_v10 }
 0x9c7   : > { %5527 = vrot.lane.b32.xlu2 %v5233_v9, %s7358_s18 }
 0x9c8   : > { %5325 = vrot.lane.b32.xlu1 %v2938_v8, %s7356_s14  ;;  %v2950_v8 = vadd.f32 %v13287_v59, %v13286_v43 }
 0x9cb   : > { %5427 = vrot.lane.b32.xlu0 %v4087_v57, %s7357_s17  ;;  %v4099_v57 = vadd.f32 %v11321_v21, %v11319_v32  ;;  %v13290_v21 = vld [vmem:[#allocation44_spill] sm:$0xff] }
 0x9cc   : > { %v4102_v32 = vadd.f32 %v13290_v21, %v11327_v26  ;;  %v13301_v21 = vld [vmem:[#allocation134_spill] sm:$0xff] }
 0x9cf   : > { %5529 = vrot.lane.b32.xlu2 %v5236_v13, %s7358_s18 }
 0x9d0   : > { %5327 = vrot.lane.b32.xlu1 %v2941_v15, %s7356_s14  ;;  %v5669_v15 = vld [vmem:[%s12184_s5 + $0x8] sm:$0xff] }
 0x9d1   : > { %5765 = vmatpush.msra.mxu3 %v5669_v15 }
 0x9d3   : > { %5429 = vrot.lane.b32.xlu0 %v4090_v50, %s7357_s17 }
 0x9d5   : > { %v5244_v37 = vpop.f32.mrf.mxu1  ;;  %v5152_v51 = vpop.f32.mrf.mxu0 }
 0x9d6   : > { %v5245_v39 = vadd.f32 %v5244_v37, %v5152_v51  ;;  %v13295_v37 = vld [vmem:[#allocation34_spill] sm:$0xff] }
 0x9d7   : > { %5531 = vrot.lane.b32.xlu2 %v5239_v30, %s7358_s18  ;;  %v13296_v51 = vld [vmem:[#allocation98_spill] sm:$0xff] }
 0x9d8   : > { %5329 = vrot.lane.b32.xlu1 %v2944_v11, %s7356_s14  ;;  %v13291_v11 = vld [vmem:[#allocation65_spill] sm:$0xff] }
 0x9d9   : > { %v4852_v7 = vpop.xlane.xlu2 %4851  ;;  %v2956_v47 = vadd.f32 %v13292_v27, %v13291_v11 }
 0x9da   : > { %7321 = vrcp.f32 %v4852_v7 }
 0x9db   : > { %5431 = vrot.lane.b32.xlu0 %v4093_v23, %s7357_s17  ;;  %v13294_v23 = vld [vmem:[#allocation32_spill] sm:$0xff] }
 0x9dc   : > { %v4105_v7 = vadd.f32 %v13294_v23, %v13293_v22 }
 0x9df   : > { %5533 = vrot.lane.b32.xlu2 %v5242_v34, %s7358_s18  ;;  %v2959_v34 = vadd.f32 %v13296_v51, %v13295_v37  ;;  %v13309_v51 = vld [vmem:[#allocation67_spill] sm:$0xff] }
 0x9e0   : > { %5331 = vrot.lane.b32.xlu1 %v2947_v4, %s7356_s14  ;;  %v7322_v24 = vpop.eup %7321 }
 0x9e1   : > { %v4941_v36 = vmul.f32 %v7322_v24, %v11583_v6  ;;  %v4942_v38 = vmul.f32 %v7322_v24, %v11585_v45  ;;  %v13288_v45 = vld [vmem:[#allocation111_spill] sm:$0xff] }
 0x9e2   : > { %v2953_v41 = vadd.f32 %v13289_v56, %v13288_v45 }
 0x9e3   : > { %5433 = vrot.lane.b32.xlu0 %v4096_v63, %s7357_s17  ;;  %5175 = vmatmul.f32.gmra.mxu0 %v4941_v36  ;;  %v4108_v36 = vadd.f32 %v11357_v5, %v11355_v61  ;;  %v13298_v5 = vld [vmem:[#allocation122_spill] sm:$0xff] }
 0x9e4   : > { %6402 = vmatmul.msk.f32.gmra.mxu1 %vm1089_vm4, %v4942_v38 }
 0x9e5   : > { %v5247_v9 = vpop.f32.mrf.mxu1  ;;  %v5155_v52 = vpop.f32.mrf.mxu0 }
 0x9e6   : > { %v5248_v33 = vadd.f32 %v5247_v9, %v5155_v52  ;;  %v13297_v9 = vld [vmem:[#allocation101_spill] sm:$0xff] }
 0x9e7   : > { %5535 = vrot.lane.b32.xlu2 %v5245_v39, %s7358_s18  ;;  %v2962_v61 = vadd.f32 %v13298_v5, %v13297_v9  ;;  %v13300_v39 = vld [vmem:[#allocation148_spill] sm:$0xff] }
 0x9e8   : > { %5333 = vrot.lane.b32.xlu1 %v2950_v8, %s7356_s14  ;;  %v5668_v8 = vld [vmem:[%s12184_s5] sm:$0xff] }
 0x9e9   : > { %v4856_v6 = vpop.xlane.xlu1 %4855  ;;  %5766 = vmatpush.msra.mxu3 %v5668_v8 }
 0x9ea   : > { %7323 = vrcp.f32 %v4856_v6 }
 0x9eb   : > { %5435 = vrot.lane.b32.xlu0 %v4099_v57, %s7357_s17 }
 0x9ee   : > { %v5250_v58 = vpop.f32.mrf.mxu1  ;;  %v5158_v13 = vpop.f32.mrf.mxu0 }
 0x9ef   : > { %5537 = vrot.lane.b32.xlu2 %v5248_v33, %s7358_s18  ;;  %v5251_v26 = vadd.f32 %v5250_v58, %v5158_v13 }
 0x9f0   : > { %5335 = vrot.lane.b32.xlu1 %v2953_v41, %s7356_s14  ;;  %v7324_v35 = vpop.eup %7323 }
 0x9f1   : > { %v4943_v55 = vmul.f32 %v7324_v35, %v11604_v40  ;;  %v4944_v2 = vmul.f32 %v7324_v35, %v11606_v54 }
 0x9f2   : > { %v4860_v50 = vpop.xlane.xlu2 %4859 }
 0x9f3   : > { %5437 = vrot.lane.b32.xlu0 %v4102_v32, %s7357_s17  ;;  %7325 = vrcp.f32 %v4860_v50  ;;  %5178 = vmatmul.f32.gmra.mxu0 %v4943_v55  ;;  %v13302_v32 = vld [vmem:[#allocation49_spill] sm:$0xff] }
 0x9f4   : > { %6403 = vmatmul.msk.f32.gmra.mxu1 %vm1089_vm4, %v4944_v2  ;;  %v2965_v35 = vadd.f32 %v13302_v32, %v13301_v21  ;;  %v13304_v2 = vld [vmem:[#allocation139_spill] sm:$0xff]  ;;  %v13322_v21 = vld [vmem:[#allocation150_spill] sm:$0xff] }
 0x9f6   : > { %v5253_v30 = vpop.f32.mrf.mxu1  ;;  %v5161_v62 = vpop.f32.mrf.mxu0 }
 0x9f7   : > { %5539 = vrot.lane.b32.xlu2 %v5251_v26, %s7358_s18  ;;  %v5254_v24 = vadd.f32 %v5253_v30, %v5161_v62  ;;  %v13305_v26 = vld [vmem:[#allocation102_spill] sm:$0xff] }
 0x9f8   : > { %5337 = vrot.lane.b32.xlu1 %v2956_v47, %s7356_s14  ;;  %v13306_v30 = vld [vmem:[#allocation42_spill] sm:$0xff] }
 0x9f9   : > { %v7326_v12 = vpop.eup %7325  ;;  %v2968_v62 = vadd.f32 %v13306_v30, %v13305_v26  ;;  %v13326_v26 = vld [vmem:[#allocation152_spill] sm:$0xff] }
 0x9fa   : > { %v4864_v40 = vpop.xlane.xlu0 %4863  ;;  %v4881_v54 = vpop.xlane.xlu2 %4880  ;;  %v4945_v0 = vmul.f32 %v7326_v12, %v11620_v28  ;;  %v4946_v4 = vmul.f32 %v7326_v12, %v11622_v14  ;;  %v13308_v12 = vld [vmem:[#allocation126_spill] sm:$0xff] }
 0x9fb   : > { %7327 = vrcp.f32 %v4864_v40  ;;  %5439 = vrot.lane.b32.xlu0 %v4105_v7, %s7357_s17  ;;  %v13307_v40 = vld [vmem:[#allocation147_spill] sm:$0xff] }
 0x9fc   : > { %5181 = vmatmul.f32.gmra.mxu0 %v4945_v0  ;;  %6404 = vmatmul.msk.f32.gmra.mxu1 %vm1089_vm4, %v4946_v4  ;;  %v4117_v0 = vadd.f32 %v13308_v12, %v13307_v40 }
 0x9fe   : > { %v5256_v10 = vpop.f32.mrf.mxu1  ;;  %v5164_v53 = vpop.f32.mrf.mxu0 }
 0x9ff   : > { %5541 = vrot.lane.b32.xlu2 %v5254_v24, %s7358_s18  ;;  %v5257_v52 = vadd.f32 %v5256_v10, %v5164_v53  ;;  %v13311_v53 = vld [vmem:[#allocation84_spill] sm:$0xff] }
 0xa00   : > { %5339 = vrot.lane.b32.xlu1 %v2959_v34, %s7356_s14  ;;  %v13310_v34 = vld [vmem:[#allocation115_spill] sm:$0xff] }
 0xa01   : > { %v7328_v63 = vpop.eup %7327  ;;  %v2971_v24 = vadd.f32 %v13310_v34, %v13309_v51  ;;  %v13331_v34 = vld [vmem:[#allocation153_spill] sm:$0xff] }
 0xa02   : > { %v4868_v28 = vpop.xlane.xlu1 %4867  ;;  %v4872_v38 = vpop.xlane.xlu0 %4871  ;;  %v4947_v14 = vmul.f32 %v7328_v63, %v11637_v60  ;;  %v4948_v43 = vmul.f32 %v7328_v63, %v11639_v46  ;;  %v13299_v46 = vld [vmem:[#allocation125_spill] sm:$0xff]  ;;  %v13312_v63 = vld [vmem:[#allocation82_spill] sm:$0xff] }
 0xa03   : > { %7329 = vrcp.f32 %v4868_v28  ;;  %5441 = vrot.lane.b32.xlu0 %v4108_v36, %s7357_s17  ;;  %v5418_v59 = vpop.permute.xlu2 %5417  ;;  %v4111_v57 = vadd.f32 %v13300_v39, %v13299_v46  ;;  %v1780_v36 = vadd.f32 %v13312_v63, %v13311_v53  ;;  %v13317_v39 = vld [vmem:[#allocation96_spill] sm:$0xff] }
 0xa04   : > { %7331 = vrcp.f32 %v4872_v38  ;;  %5184 = vmatmul.f32.gmra.mxu0 %v4947_v14  ;;  %6405 = vmatmul.msk.f32.gmra.mxu1 %vm1089_vm4, %v4948_v43  ;;  %v13313_v38 = vld [vmem:[#allocation35_spill] sm:$0xff]  ;;  %v13314_v14 = vld [vmem:[#allocation58_spill] sm:$0xff] }
 0xa05   : > { %v4120_v43 = vadd.f32 %v13314_v14, %v13313_v38  ;;  %v13335_v14 = vld [vmem:[#allocation86_spill] sm:$0xff] }
 0xa07   : > { %v5259_v6 = vpop.f32.mrf.mxu1  ;;  %5543 = vrot.lane.b32.xlu2 %v5257_v52, %s7358_s18  ;;  %v5167_v56 = vpop.f32.mrf.mxu0  ;;  %v13315_v52 = vld [vmem:[#allocation59_spill] sm:$0xff] }
 0xa08   : > { %5341 = vrot.lane.b32.xlu1 %v2962_v61, %s7356_s14  ;;  %v5260_v50 = vadd.f32 %v5259_v6, %v5167_v56 }
 0xa09   : > { %v7330_v60 = vpop.eup %7329 }
 0xa0a   : > { %v7332_v45 = vpop.eup %7331  ;;  %v4876_v41 = vpop.xlane.xlu1 %4875  ;;  %v4949_v15 = vmul.f32 %v7330_v60, %v11660_v17  ;;  %v4950_v33 = vmul.f32 %v7330_v60, %v11664_v3  ;;  %v13303_v17 = vld [vmem:[#allocation106_spill] sm:$0xff]  ;;  %v13316_v60 = vld [vmem:[#allocation79_spill] sm:$0xff] }
 0xa0b   : > { %v4951_v58 = vmul.f32 %v7332_v45, %v11655_v25  ;;  %7333 = vrcp.f32 %v4876_v41  ;;  %5443 = vrot.lane.b32.xlu0 %v4111_v57, %s7357_s17  ;;  %v5520_v13 = vpop.permute.xlu2 %5519  ;;  %v4114_v3 = vadd.f32 %v13304_v2, %v13303_v17  ;;  %v4952_v5 = vmul.f32 %v7332_v45, %v11650_v48  ;;  %v13318_v57 = vld [vmem:[#allocation66_spill] sm:$0xff]  ;;  %v13320_v45 = vld [vmem:[#allocation100_spill] sm:$0xff] }
 0xa0c   : > { %5187 = vmatmul.f32.gmra.mxu0 %v4949_v15  ;;  %6406 = vmatmul.msk.f32.gmra.mxu1 %vm1089_vm4, %v4950_v33  ;;  %7335 = vrcp.f32 %v4881_v54  ;;  %v1783_v46 = vadd.f32 %v13316_v60, %v13315_v52  ;;  %v2974_v6 = vadd.f32 %v13318_v57, %v13317_v39  ;;  %v13319_v48 = vld [vmem:[#allocation26_spill] sm:$0xff]  ;;  %v13338_v60 = vld [vmem:[#allocation149_spill] sm:$0xff] }
 0xa0d   : > { %5190 = vmatmul.f32.vlgmr.msrb.gmra.mxu2 %v4951_v58  ;;  %v4123_v41 = vadd.f32 %v13320_v45, %v13319_v48  ;;  %v13321_v58 = vld [vmem:[#allocation70_spill] sm:$0xff] }
 0xa0e   : > { %v1786_v32 = vadd.f32 %v13322_v21, %v13321_v58  ;;  %v13343_v58 = vld [vmem:[#allocation28_spill] sm:$0xff] }
 0xa0f   : > { %5545 = vrot.lane.b32.xlu2 %v5260_v50, %s7358_s18  ;;  %v5262_v11 = vpop.f32.mrf.mxu1  ;;  %v5170_v27 = vpop.f32.mrf.mxu0 }
 0xa10   : > { %5343 = vrot.lane.b32.xlu1 %v2965_v35, %s7356_s14  ;;  %v5263_v23 = vadd.f32 %v5262_v11, %v5170_v27 }
 0xa11   : > { %v7334_v55 = vpop.eup %7333 }
 0xa12   : > { %v4953_v25 = vmul.f32 %v7334_v55, %v11675_v1  ;;  %v7336_v7 = vpop.eup %7335  ;;  %v4954_v35 = vmul.f32 %v7334_v55, %v11671_v29  ;;  %v13327_v55 = vld [vmem:[#allocation123_spill] sm:$0xff] }
 0xa13   : > { %5445 = vrot.lane.b32.xlu0 %v4114_v3, %s7357_s17  ;;  %v5522_v22 = vpop.permute.xlu2 %5521  ;;  %v4955_v1 = vmul.f32 %v7336_v7, %v11627_v20  ;;  %v5592_v20 = vsel %vm779_vm2, %v1780_v36, %v11763_v18  ;;  %v13323_v3 = vld [vmem:[#allocation41_spill] sm:$0xff] }
 0xa14   : > { %v5617_v8 = vsel %vm310_vm0, %v5592_v20, %v5418_v59 }
 0xa15   : > { %5193 = vmatmul.f32.gmra.mxu2 %v4953_v25  ;;  %v5320_v47 = vpop.permute.xlu0 %5319  ;;  %v13324_v25 = vld [vmem:[#allocation142_spill] sm:$0xff] }
 0xa16   : > { %v5593_v59 = vsel %vm779_vm2, %v1783_v46, %v5320_v47  ;;  %v2977_v11 = vadd.f32 %v13324_v25, %v13323_v3  ;;  %v13325_v47 = vld [vmem:[#allocation36_spill] sm:$0xff]  ;;  %v13339_v46 = vld [vmem:[#allocation54_spill] sm:$0xff] }
 0xa17   : > { %5547 = vrot.lane.b32.xlu2 %v5263_v23, %s7358_s18  ;;  %v4126_v30 = vadd.f32 %v13326_v26, %v13325_v47  ;;  %v4956_v23 = vmul.f32 %v7336_v7, %v11633_v31  ;;  %v13348_v47 = vld [vmem:[#allocation52_spill] sm:$0xff] }
 0xa18   : > { %5345 = vrot.lane.b32.xlu1 %v2968_v62, %s7356_s14  ;;  %v13349_v26 = vld [vmem:[#allocation120_spill] sm:$0xff] }
 0xa1b   : > { %5447 = vrot.lane.b32.xlu0 %v4117_v0, %s7357_s17  ;;  %v5265_v54 = vpop.f32.mrf.mxu1  ;;  %v5173_v4 = vpop.f32.mrf.mxu0 }
 0xa1c   : > { %v5266_v10 = vadd.f32 %v5265_v54, %v5173_v4  ;;  %v5524_v28 = vpop.permute.xlu2 %5523  ;;  %v13329_v54 = vld [vmem:[#allocation90_spill] sm:$0xff]  ;;  %v13330_v4 = vld [vmem:[#allocation99_spill] sm:$0xff] }
 0xa1d   : > { %5196 = vmatmul.f32.gmra.mxu2 %v4955_v1  ;;  %v5420_v37 = vpop.permute.xlu0 %5419 }
 0xa1e   : > { %v5618_v56 = vsel %vm310_vm0, %v5593_v59, %v5420_v37  ;;  %v2980_v37 = vadd.f32 %v13330_v4, %v13329_v54  ;;  %v13341_v59 = vld [vmem:[#allocation55_spill] sm:$0xff]  ;;  %v13353_v54 = vld [vmem:[#allocation94_spill] sm:$0xff] }
 0xa1f   : > { %5549 = vrot.lane.b32.xlu2 %v5266_v10, %s7358_s18  ;;  %v5644_v50 = vsel %vm5642_vm6, %v5618_v56, %v5520_v13  ;;  %v13328_v13 = vld [vmem:[#allocation109_spill] sm:$0xff]  ;;  %v13334_v10 = vld [vmem:[#allocation124_spill] sm:$0xff] }
 0xa20   : > { %5347 = vrot.lane.b32.xlu1 %v2971_v24, %s7356_s14  ;;  %v1789_v62 = vadd.f32 %v13328_v13, %v13327_v55  ;;  %v13332_v24 = vld [vmem:[#allocation154_spill] sm:$0xff] }
 0xa21   : > { %v4129_v31 = vadd.f32 %v13332_v24, %v13331_v34 }
 0xa22   : > { %v5518_v9 = vpop.permute.xlu1 %5517 }
 0xa23   : > { %v5643_v61 = vsel %vm5642_vm6, %v5617_v8, %v5518_v9  ;;  %5449 = vrot.lane.b32.xlu0 %v4120_v43, %s7357_s17  ;;  %v13336_v43 = vld [vmem:[#allocation68_spill] sm:$0xff] }
 0xa24   : > { %6410 = vmatmul.msk.f32.vlgmr.msra.gmra.mxu3 %vm511_vm1, %v5643_v61  ;;  %v5526_v15 = vpop.permute.xlu2 %5525  ;;  %v2983_v20 = vadd.f32 %v13336_v43, %v13335_v14  ;;  %v13357_v14 = vld [vmem:[#allocation105_spill] sm:$0xff] }
 0xa25   : > { %6407 = vmatmul.msk.f32.vlgmr.msra.gmra.mxu2 %vm1089_vm4, %v4952_v5  ;;  %v5422_v18 = vpop.permute.xlu0 %5421  ;;  %v13337_v5 = vld [vmem:[#allocation155_spill] sm:$0xff] }
 0xa26   : > { %v4132_v61 = vadd.f32 %v13337_v5, %v11472_v19  ;;  %v4135_v19 = vadd.f32 %v11508_v16, %v11506_v49  ;;  %v13346_v49 = vld [vmem:[#allocation156_spill] sm:$0xff]  ;;  %v13347_v16 = vld [vmem:[#allocation157_spill] sm:$0xff]  ;;  %v13358_v5 = vld [vmem:[#allocation30_spill] sm:$0xff] }
 0xa27   : > { %v4138_v25 = vadd.f32 %v13347_v16, %v13346_v49  ;;  %v13364_v49 = vld [vmem:[#allocation74_spill] sm:$0xff]  ;;  %v13365_v16 = vld [vmem:[#allocation72_spill] sm:$0xff] }
 0xa28   : > { %5349 = vrot.lane.b32.xlu1 %v2974_v6, %s7356_s14  ;;  %v13340_v6 = vld [vmem:[#allocation146_spill] sm:$0xff] }
 0xa29   : > { %v2986_v56 = vadd.f32 %v13341_v59, %v13340_v6 }
 0xa2a   : > { %v5322_v33 = vpop.permute.xlu1 %5321 }
 0xa2b   : > { %5451 = vrot.lane.b32.xlu0 %v4123_v41, %s7357_s17  ;;  %v5594_v17 = vsel %vm779_vm2, %v1786_v32, %v5322_v33  ;;  %v13342_v33 = vld [vmem:[#allocation39_spill] sm:$0xff] }
 0xa2c   : > { %6411 = vmatmul.msk.f32.gmra.mxu3 %vm511_vm1, %v5644_v50  ;;  %v5619_v27 = vsel %vm310_vm0, %v5594_v17, %v5422_v18  ;;  %v5528_v12 = vpop.permute.xlu2 %5527  ;;  %v13344_v50 = vld [vmem:[#allocation71_spill] sm:$0xff]  ;;  %v13345_v17 = vld [vmem:[#allocation73_spill] sm:$0xff] }
 0xa2d   : > { %6408 = vmatmul.msk.f32.gmra.mxu2 %vm1089_vm4, %v4954_v35  ;;  %v5424_v2 = vpop.permute.xlu0 %5423  ;;  %v5645_v40 = vsel %vm5642_vm6, %v5619_v27, %v5522_v22  ;;  %v13333_v22 = vld [vmem:[#allocation128_spill] sm:$0xff] }
 0xa2e   : > { %v1792_v53 = vadd.f32 %v13334_v10, %v13333_v22 }
 0xa30   : > { %5351 = vrot.lane.b32.xlu1 %v2977_v11, %s7356_s14 }
 0xa32   : > { %v5324_v29 = vpop.permute.xlu1 %5323 }
 0xa33   : > { %5453 = vrot.lane.b32.xlu0 %v4126_v30, %s7357_s17  ;;  %v5595_v0 = vsel %vm779_vm2, %v1789_v62, %v5324_v29  ;;  %v1801_v30 = vadd.f32 %v13349_v26, %v13348_v47  ;;  %v13350_v62 = vld [vmem:[#allocation145_spill] sm:$0xff] }
 0xa34   : > { %6412 = vmatmul.msk.f32.gmra.mxu3 %vm511_vm1, %v5645_v40  ;;  %v5620_v51 = vsel %vm310_vm0, %v5595_v0, %v5424_v2  ;;  %v5530_v8 = vpop.permute.xlu2 %5529  ;;  %v2989_v2 = vadd.f32 %v13345_v17, %v13344_v50 }
 0xa35   : > { %6409 = vmatmul.msk.f32.gmra.mxu2 %vm1089_vm4, %v4956_v23  ;;  %v5426_v1 = vpop.permute.xlu0 %5425  ;;  %v5646_v63 = vsel %vm5642_vm6, %v5620_v51, %v5524_v28  ;;  %v1795_v28 = vadd.f32 %v13339_v46, %v13338_v60  ;;  %v13351_v23 = vld [vmem:[#allocation137_spill] sm:$0xff] }
 0xa36   : > { %v2992_v40 = vadd.f32 %v13351_v23, %v13350_v62  ;;  %v13366_v62 = vld [vmem:[#allocation114_spill] sm:$0xff]  ;;  %v13367_v23 = vld [vmem:[#allocation61_spill] sm:$0xff] }
 0xa38   : > { %5353 = vrot.lane.b32.xlu1 %v2980_v37, %s7356_s14 }
 0xa3a   : > { %v5326_v7 = vpop.permute.xlu1 %5325 }
 0xa3b   : > { %5455 = vrot.lane.b32.xlu0 %v4129_v31, %s7357_s17  ;;  %v5596_v36 = vsel %vm779_vm2, %v1792_v53, %v5326_v7  ;;  %v13354_v31 = vld [vmem:[#allocation75_spill] sm:$0xff]  ;;  %v13355_v7 = vld [vmem:[#allocation121_spill] sm:$0xff] }
 0xa3c   : > { %6413 = vmatmul.msk.f32.gmra.mxu3 %vm511_vm1, %v5646_v63  ;;  %v5621_v9 = vsel %vm310_vm0, %v5596_v36, %v5426_v1  ;;  %v5532_v48 = vpop.permute.xlu2 %5531  ;;  %v13352_v1 = vld [vmem:[#allocation89_spill] sm:$0xff]  ;;  %v2995_v22 = vadd.f32 %v13355_v7, %v13354_v31  ;;  %v13368_v31 = vld [vmem:[#allocation60_spill] sm:$0xff]  ;;  %v13369_v7 = vld [vmem:[#allocation46_spill] sm:$0xff] }
 0xa3d   : > { %v5428_v38 = vpop.permute.xlu0 %5427  ;;  %v5647_v18 = vsel %vm5642_vm6, %v5621_v9, %v5526_v15  ;;  %v1798_v15 = vadd.f32 %v13343_v58, %v13342_v33  ;;  %v1804_v4 = vadd.f32 %v13353_v54, %v13352_v1 }
 0xa40   : > { %5355 = vrot.lane.b32.xlu1 %v2983_v20, %s7356_s14 }
 0xa42   : > { %v5328_v52 = vpop.permute.xlu1 %5327 }
 0xa43   : > { %5457 = vrot.lane.b32.xlu0 %v4132_v61, %s7357_s17  ;;  %v5597_v39 = vsel %vm779_vm2, %v1795_v28, %v5328_v52  ;;  %v13359_v61 = vld [vmem:[#allocation45_spill] sm:$0xff] }
 0xa44   : > { %6414 = vmatmul.msk.f32.gmra.mxu3 %vm511_vm1, %v5647_v18  ;;  %v5622_v45 = vsel %vm310_vm0, %v5597_v39, %v5428_v38  ;;  %v5534_v11 = vpop.permute.xlu2 %5533  ;;  %v2998_v52 = vadd.f32 %v13359_v61, %v13358_v5  ;;  %v13360_v18 = vld [vmem:[#allocation87_spill] sm:$0xff] }
 0xa45   : > { %v5430_v57 = vpop.permute.xlu0 %5429  ;;  %v5648_v21 = vsel %vm5642_vm6, %v5622_v45, %v5528_v12 }
 0xa48   : > { %5357 = vrot.lane.b32.xlu1 %v2986_v56, %s7356_s14 }
 0xa4a   : > { %v5330_v41 = vpop.permute.xlu1 %5329 }
 0xa4b   : > { %5459 = vrot.lane.b32.xlu0 %v4135_v19, %s7357_s17  ;;  %v5598_v32 = vsel %vm779_vm2, %v1798_v15, %v5330_v41  ;;  %v13362_v19 = vld [vmem:[#allocation136_spill] sm:$0xff]  ;;  %v13363_v41 = vld [vmem:[#allocation103_spill] sm:$0xff] }
 0xa4c   : > { %6415 = vmatmul.msk.f32.gmra.mxu3 %vm511_vm1, %v5648_v21  ;;  %v5623_v3 = vsel %vm310_vm0, %v5598_v32, %v5430_v57  ;;  %v5536_v51 = vpop.permute.xlu2 %5535  ;;  %v1813_v33 = vadd.f32 %v13363_v41, %v13362_v19 }
 0xa4d   : > { %v5432_v35 = vpop.permute.xlu0 %5431  ;;  %v5649_v29 = vsel %vm5642_vm6, %v5623_v3, %v5530_v8 }
 0xa50   : > { %5359 = vrot.lane.b32.xlu1 %v2989_v2, %s7356_s14 }
 0xa52   : > { %v5332_v27 = vpop.permute.xlu1 %5331 }
 0xa53   : > { %5461 = vrot.lane.b32.xlu0 %v4138_v25, %s7357_s17  ;;  %v5599_v55 = vsel %vm779_vm2, %v1801_v30, %v5332_v27  ;;  %v1816_v25 = vadd.f32 %v13365_v16, %v13364_v49 }
 0xa54   : > { %6416 = vmatmul.msk.f32.gmra.mxu3 %vm511_vm1, %v5649_v29  ;;  %v5624_v12 = vsel %vm310_vm0, %v5599_v55, %v5432_v35  ;;  %v5538_v60 = vpop.permute.xlu2 %5537 }
 0xa55   : > { %v5434_v13 = vpop.permute.xlu0 %5433  ;;  %v5650_v37 = vsel %vm5642_vm6, %v5624_v12, %v5532_v48 }
 0xa58   : > { %5361 = vrot.lane.b32.xlu1 %v2992_v40, %s7356_s14  ;;  %v1819_v40 = vadd.f32 %v13367_v23, %v13366_v62  ;;  %v13379_v62 = vld [vmem:[#allocation107_spill] sm:$0xff] }
 0xa5a   : > { %v5334_v0 = vpop.permute.xlu1 %5333 }
 0xa5b   : > { %5463 = vrot.lane.b32.xlu0 %v11555_v42, %s7357_s17  ;;  %v5600_v34 = vsel %vm779_vm2, %v1804_v4, %v5334_v0  ;;  %v13356_v42 = vld [vmem:[#allocation93_spill] sm:$0xff] }
 0xa5c   : > { %6417 = vmatmul.msk.f32.gmra.mxu3 %vm511_vm1, %v5650_v37  ;;  %v5625_v10 = vsel %vm310_vm0, %v5600_v34, %v5434_v13  ;;  %v1807_v43 = vadd.f32 %v13357_v14, %v13356_v42  ;;  %v5540_v56 = vpop.permute.xlu2 %5539 }
 0xa5d   : > { %v5436_v24 = vpop.permute.xlu0 %5435  ;;  %v5651_v20 = vsel %vm5642_vm6, %v5625_v10, %v5534_v11 }
 0xa60   : > { %5363 = vrot.lane.b32.xlu1 %v2995_v22, %s7356_s14  ;;  %v5176_v53 = vpop.f32.mrf.mxu0  ;;  %v1822_v22 = vadd.f32 %v13369_v7, %v13368_v31  ;;  %v13382_v7 = vld [vmem:[#allocation5_spill] sm:$0xff] }
 0xa61   : > { %v5268_v63 = vpop.f32.mrf.mxu1 }
 0xa62   : > { %v5269_v36 = vadd.f32 %v5268_v63, %v5176_v53  ;;  %v5336_v38 = vpop.permute.xlu1 %5335 }
 0xa63   : > { %5465 = vrot.lane.b32.xlu0 %v11559_v44, %s7357_s17  ;;  %v5601_v8 = vsel %vm779_vm2, %v1807_v43, %v5336_v38  ;;  %v13361_v44 = vld [vmem:[#allocation81_spill] sm:$0xff] }
 0xa64   : > { %6418 = vmatmul.msk.f32.gmra.mxu3 %vm511_vm1, %v5651_v20  ;;  %5551 = vrot.lane.b32.xlu2 %v5269_v36, %s7358_s18  ;;  %v5626_v46 = vsel %vm310_vm0, %v5601_v8, %v5436_v24  ;;  %v1810_v39 = vadd.f32 %v13361_v44, %v13360_v18  ;;  %v5542_v2 = vpop.permute.xlu2 %5541  ;;  %v13370_v8 = vld [vmem:[#allocation38_spill] sm:$0xff] }
 0xa65   : > { %v5438_v9 = vpop.permute.xlu0 %5437  ;;  %v5652_v57 = vsel %vm5642_vm6, %v5626_v46, %v5536_v51 }
 0xa68   : > { %5365 = vrot.lane.b32.xlu1 %v2998_v52, %s7356_s14 }
 0xa6a   : > { %v5338_v28 = vpop.permute.xlu1 %5337 }
 0xa6b   : > { %v5602_v6 = vsel %vm779_vm2, %v1810_v39, %v5338_v28  ;;  %v13372_v39 = vld [vmem:[#allocation77_spill] sm:$0xff] }
 0xa6c   : > { %6419 = vmatmul.msk.f32.gmra.mxu3 %vm511_vm1, %v5652_v57  ;;  %v5627_v48 = vsel %vm310_vm0, %v5602_v6, %v5438_v9  ;;  %v5544_v54 = vpop.permute.xlu2 %5543  ;;  %v13371_v9 = vld [vmem:[#allocation76_spill] sm:$0xff]  ;;  %v13373_v57 = vld [vmem:[#allocation110_spill] sm:$0xff] }
 0xa6d   : > { %v5440_v59 = vpop.permute.xlu0 %5439  ;;  %v5653_v21 = vsel %vm5642_vm6, %v5627_v48, %v5538_v60  ;;  %v1825_v5 = vadd.f32 %v13371_v9, %v13370_v8  ;;  %v1828_v6 = vadd.f32 %v13373_v57, %v13372_v39  ;;  %v13387_v8 = vld [vmem:[#allocation132_spill] sm:$0xff] }
 0xa70   : > { %v5179_v58 = vpop.f32.mrf.mxu0 }
 0xa71   : > { %v5271_v15 = vpop.f32.mrf.mxu1 }
 0xa72   : > { %v5340_v45 = vpop.permute.xlu1 %5339  ;;  %v5272_v32 = vadd.f32 %v5271_v15, %v5179_v58  ;;  %v11992_v58 = vld [vmem:[%s12185_s6] ss:$0 sm:$0xff] }
 0xa73   : > { %v5603_v35 = vsel %vm779_vm2, %v1813_v33, %v5340_v45 }
 0xa74   : > { %6420 = vmatmul.msk.f32.gmra.mxu3 %vm511_vm1, %v5653_v21  ;;  %5553 = vrot.lane.b32.xlu2 %v5272_v32, %s7358_s18  ;;  %v5628_v17 = vsel %vm310_vm0, %v5603_v35, %v5440_v59  ;;  %v5546_v42 = vpop.permute.xlu2 %5545 }
 0xa75   : > { %v5442_v50 = vpop.permute.xlu0 %5441  ;;  %v5654_v47 = vsel %vm5642_vm6, %v5628_v17, %v5540_v56 }
 0xa79   : > { %v5182_v11 = vpop.f32.mrf.mxu0  ;;  %v5274_v27 = vpop.f32.mrf.mxu1 }
 0xa7a   : > { %v5342_v3 = vpop.permute.xlu1 %5341  ;;  %v5275_v26 = vadd.f32 %v5274_v27, %v5182_v11  ;;  %v13376_v11 = vld [vmem:[#allocation3_spill] sm:$0xff] }
 0xa7b   : > { %v5604_v30 = vsel %vm779_vm2, %v1816_v25, %v5342_v3  ;;  %v13377_v27 = vmax.f32 %v13376_v11, 0.0 }
 0xa7c   : > { %6421 = vmatmul.msk.f32.gmra.mxu3 %vm511_vm1, %v5654_v47  ;;  %5555 = vrot.lane.b32.xlu2 %v5275_v26, %s7358_s18  ;;  %v5629_v29 = vsel %vm310_vm0, %v5604_v30, %v5442_v50  ;;  %v5548_v46 = vpop.permute.xlu2 %5547  ;;  %v13374_v50 = vld [vmem:[#allocation2_spill] sm:$0xff] }
 0xa7d   : > { %v5444_v55 = vpop.permute.xlu0 %5443  ;;  %v5655_v1 = vsel %vm5642_vm6, %v5629_v29, %v5542_v2  ;;  %v13375_v17 = vmax.f32 %v13374_v50, 0.0 }
 0xa81   : > { %v5185_v12 = vpop.f32.mrf.mxu0  ;;  %v5277_v0 = vpop.f32.mrf.mxu1 }
 0xa82   : > { %v5344_v13 = vpop.permute.xlu1 %5343  ;;  %v5278_v4 = vadd.f32 %v5277_v0, %v5185_v12  ;;  %v13380_v12 = vld [vmem:[#allocation4_spill] sm:$0xff] }
 0xa83   : > { %v5605_v37 = vsel %vm779_vm2, %v1819_v40, %v5344_v13  ;;  %v13378_v13 = vld [vmem:[#allocation112_spill] sm:$0xff]  ;;  %v13381_v0 = vmax.f32 %v13380_v12, 0.0 }
 0xa84   : > { %6422 = vmatmul.msk.f32.gmra.mxu3 %vm511_vm1, %v5655_v1  ;;  %5557 = vrot.lane.b32.xlu2 %v5278_v4, %s7358_s18  ;;  %v5630_v51 = vsel %vm310_vm0, %v5605_v37, %v5444_v55  ;;  %v5550_v41 = vpop.permute.xlu2 %5549  ;;  %v1831_v23 = vadd.f32 %v13379_v62, %v13378_v13 }
 0xa85   : > { %v5446_v34 = vpop.permute.xlu0 %5445  ;;  %v5656_v63 = vsel %vm5642_vm6, %v5630_v51, %v5544_v54 }
 0xa89   : > { %v5188_v10 = vpop.f32.mrf.mxu0  ;;  %v5280_v53 = vpop.f32.mrf.mxu1 }
 0xa8a   : > { %v5346_v24 = vpop.permute.xlu1 %5345  ;;  %v5281_v36 = vadd.f32 %v5280_v53, %v5188_v10 }
 0xa8b   : > { %v5606_v38 = vsel %vm779_vm2, %v1822_v22, %v5346_v24  ;;  %v13383_v22 = vmax.f32 %v13382_v7, 0.0 }
 0xa8c   : > { %6423 = vmatmul.msk.f32.gmra.mxu3 %vm511_vm1, %v5656_v63  ;;  %5559 = vrot.lane.b32.xlu2 %v5281_v36, %s7358_s18  ;;  %v5631_v14 = vsel %vm310_vm0, %v5606_v38, %v5446_v34 }
 0xa8d   : > { %v5657_v61 = vsel %vm5642_vm6, %v5631_v14, %v5546_v42  ;;  %v5448_v52 = vpop.permute.xlu0 %5447  ;;  %v13384_v42 = vld [vmem:[#allocation6_spill] sm:$0xff] }
 0xa8e   : > { %v13385_v14 = vmax.f32 %v13384_v42, 0.0 }
 0xa90   : > { %v5191_v43 = vpop.f32.mrf.mxu2 }
 0xa92   : > { %v5348_v20 = vpop.permute.xlu1 %5347 }
 0xa93   : > { %v5607_v60 = vsel %vm779_vm2, %v1825_v5, %v5348_v20  ;;  %v13386_v20 = vld [vmem:[#allocation113_spill] sm:$0xff] }
 0xa94   : > { %6424 = vmatmul.msk.f32.gmra.mxu3 %vm511_vm1, %v5657_v61  ;;  %v5632_v28 = vsel %vm310_vm0, %v5607_v60, %v5448_v52  ;;  %v1834_v9 = vadd.f32 %v13387_v8, %v13386_v20 }
 0xa95   : > { %v5658_v59 = vsel %vm5642_vm6, %v5632_v28, %v5548_v46  ;;  %v5450_v48 = vpop.permute.xlu0 %5449 }
 0xa98   : > { %v5194_v18 = vpop.f32.mrf.mxu2 }
 0xa9a   : > { %v5350_v44 = vpop.permute.xlu1 %5349 }
 0xa9b   : > { %v5608_v56 = vsel %vm779_vm2, %v1828_v6, %v5350_v44  ;;  %v13388_v44 = vld [vmem:[#allocation7_spill] sm:$0xff] }
 0xa9c   : > { %6425 = vmatmul.msk.f32.gmra.mxu3 %vm511_vm1, %v5658_v59  ;;  %v5633_v45 = vsel %vm310_vm0, %v5608_v56, %v5450_v48  ;;  %v13389_v39 = vmax.f32 %v13388_v44, 0.0  ;;  %v13390_v6 = vld [vmem:[#allocation47_spill] sm:$0xff] }
 0xa9d   : > { %v5659_v33 = vsel %vm5642_vm6, %v5633_v45, %v5550_v41  ;;  %v5452_v4 = vpop.permute.xlu0 %5451  ;;  %v13391_v59 = vld [vmem:[#allocation131_spill] sm:$0xff] }
 0xa9e   : > { %v1837_v56 = vadd.f32 %v13391_v59, %v13390_v6 }
 0xaa0   : > { %v5197_v19 = vpop.f32.mrf.mxu2 }
 0xaa2   : > { %v5352_v30 = vpop.permute.xlu1 %5351 }
 0xaa3   : > { %v5609_v54 = vsel %vm779_vm2, %v1831_v23, %v5352_v30  ;;  %v13398_v23 = vld [vmem:[#allocation117_spill] sm:$0xff] }
 0xaa4   : > { %6426 = vmatmul.msk.f32.gmra.mxu3 %vm511_vm1, %v5659_v33  ;;  %v5634_v37 = vsel %vm310_vm0, %v5609_v54, %v5452_v4 }
 0xaa5   : > { %v5454_v38 = vpop.permute.xlu0 %5453 }
 0xaa7   : > { %v5768_v15 = vpop.f32.mrf.mxu3 }
 0xaa8   : > { %v5283_v21 = vpop.f32.mrf.mxu2  ;;  %v5769_v32 = vadd.f32 %v11992_v58, %v5768_v15 }
 0xaa9   : > { %v5284_v35 = vadd.f32 %v5283_v21, %v5191_v43 }
 0xaaa   : > { %v5843_v2 = vadd.f32 %v5769_v32, %v13375_v17  ;;  %v5354_v53 = vpop.permute.xlu1 %5353 }
 0xaab   : > { %5561 = vrot.lane.b32.xlu2 %v5284_v35, %s7358_s18  ;;  %v5610_v5 = vsel %vm779_vm2, %v1834_v9, %v5354_v53  ;;  %v13392_v35 = vld [vmem:[#allocation8_spill] sm:$0xff]  ;;  %v13402_v53 = vld [vmem:[#allocation11_spill] sm:$0xff] }
 0xaac   : > { %5868 = vst.msk [vmem:[%s12000_s9] sm:$0xff] %vm511_vm1, %v5843_v2  ;;  %v5635_v60 = vsel %vm310_vm0, %v5610_v5, %v5454_v38  ;;  %v13393_v50 = vmax.f32 %v13392_v35, 0.0  ;;  %v13394_v2 = vld [vmem:[#allocation143_spill] sm:$0xff]  ;;  %v13406_v5 = vld [vmem:[#allocation62_spill] sm:$0xff] }
 0xaad   : > { %v5456_v48 = vpop.permute.xlu0 %5455 }
 0xaaf   : > { %v5771_v3 = vpop.f32.mrf.mxu3 }
 0xab0   : > { %v5286_v49 = vpop.f32.mrf.mxu2  ;;  %v5772_v16 = vadd.f32 %v11992_v58, %v5771_v3  ;;  %v13395_v3 = vld [vmem:[#allocation116_spill] sm:$0xff] }
 0xab1   : > { %v5287_v25 = vadd.f32 %v5286_v49, %v5194_v18  ;;  %v1840_v49 = vadd.f32 %v13395_v3, %v13394_v2 }
 0xab2   : > { %v5844_v47 = vadd.f32 %v5772_v16, %v13377_v27  ;;  %v5356_v61 = vpop.permute.xlu1 %5355 }
 0xab3   : > { %5563 = vrot.lane.b32.xlu2 %v5287_v25, %s7358_s18  ;;  %v5611_v45 = vsel %vm779_vm2, %v1837_v56, %v5356_v61  ;;  %v13407_v61 = vld [vmem:[#allocation78_spill] sm:$0xff] }
 0xab4   : > { %5869 = vst.msk [vmem:[%s12000_s9 + $0x8] sm:$0xff] %vm511_vm1, %v5844_v47  ;;  %v5636_v33 = vsel %vm310_vm0, %v5611_v45, %v5456_v48  ;;  %v13410_v45 = vld [vmem:[#allocation91_spill] sm:$0xff] }
 0xab5   : > { %v5458_v16 = vpop.permute.xlu0 %5457 }
 0xab7   : > { %v5774_v26 = vpop.f32.mrf.mxu3 }
 0xab8   : > { %v5289_v29 = vpop.f32.mrf.mxu2  ;;  %v5775_v55 = vadd.f32 %v11992_v58, %v5774_v26 }
 0xab9   : > { %v5290_v40 = vadd.f32 %v5289_v29, %v5197_v19 }
 0xaba   : > { %v5845_v1 = vadd.f32 %v5775_v55, %v13381_v0  ;;  %v5358_v41 = vpop.permute.xlu1 %5357  ;;  %v13396_v55 = vld [vmem:[#allocation9_spill] sm:$0xff] }
 0xabb   : > { %5565 = vrot.lane.b32.xlu2 %v5290_v40, %s7358_s18  ;;  %v5612_v25 = vsel %vm779_vm2, %v1840_v49, %v5358_v41  ;;  %v13397_v13 = vmax.f32 %v13396_v55, 0.0  ;;  %v13399_v40 = vld [vmem:[#allocation141_spill] sm:$0xff] }
 0xabc   : > { %5870 = vst.msk [vmem:[%s12000_s9 + $0x10] sm:$0xff] %vm511_vm1, %v5845_v1  ;;  %v5637_v27 = vsel %vm310_vm0, %v5612_v25, %v5458_v16  ;;  %v1843_v12 = vadd.f32 %v13399_v40, %v13398_v23  ;;  %v13414_v25 = vld [vmem:[#allocation48_spill] sm:$0xff] }
 0xabd   : > { %v5460_v1 = vpop.permute.xlu0 %5459 }
 0xabe   : > { %v5552_v51 = vpop.permute.xlu2 %5551 }
 0xabf   : > { %v5660_v34 = vsel %vm5642_vm6, %v5634_v37, %v5552_v51  ;;  %v5777_v24 = vpop.f32.mrf.mxu3 }
 0xac0   : > { %v5778_v31 = vadd.f32 %v11992_v58, %v5777_v24  ;;  %6427 = vmatmul.msk.f32.gmra.mxu3 %vm511_vm1, %v5660_v34  ;;  %v13400_v24 = vld [vmem:[#allocation10_spill] sm:$0xff] }
 0xac2   : > { %v5846_v10 = vadd.f32 %v5778_v31, %v13383_v22  ;;  %v5360_v29 = vpop.permute.xlu1 %5359  ;;  %v13401_v31 = vmax.f32 %v13400_v24, 0.0 }
 0xac3   : > { %v5613_v0 = vsel %vm779_vm2, %v1843_v12, %v5360_v29 }
 0xac4   : > { %5871 = vst.msk [vmem:[%s12000_s9 + $0x18] sm:$0xff] %vm511_vm1, %v5846_v10  ;;  %v5638_v4 = vsel %vm310_vm0, %v5613_v0, %v5460_v1  ;;  %v13418_v1 = vld [vmem:[#allocation16_spill] sm:$0xff] }
 0xac7   : > { %v5780_v63 = vpop.f32.mrf.mxu3 }
 0xac8   : > { %v5781_v36 = vadd.f32 %v11992_v58, %v5780_v63  ;;  %v13403_v63 = vmax.f32 %v13402_v53, 0.0 }
 0xaca   : > { %v5847_v43 = vadd.f32 %v5781_v36, %v13385_v14  ;;  %v13404_v14 = vld [vmem:[#allocation12_spill] sm:$0xff]  ;;  %v5362_v8 = vpop.permute.xlu1 %5361 }
 0xacc   : > { %5872 = vst.msk [vmem:[%s12000_s9 + $0x20] sm:$0xff] %vm511_vm1, %v5847_v43  ;;  %v13405_v43 = vmax.f32 %v13404_v14, 0.0 }
 0xace   : > { %v5554_v46 = vpop.permute.xlu2 %5553 }
 0xacf   : > { %v5783_v52 = vpop.f32.mrf.mxu3  ;;  %v5661_v18 = vsel %vm5642_vm6, %v5635_v60, %v5554_v46  ;;  %v5462_v60 = vpop.permute.xlu0 %5461 }
 0xad0   : > { %v5784_v28 = vadd.f32 %v11992_v58, %v5783_v52  ;;  %6428 = vmatmul.msk.f32.gmra.mxu3 %vm511_vm1, %v5661_v18  ;;  %v1846_v52 = vadd.f32 %v13407_v61, %v13406_v5  ;;  %v13408_v18 = vld [vmem:[#allocation13_spill] sm:$0xff] }
 0xad1   : > { %v13409_v44 = vmax.f32 %v13408_v18, 0.0 }
 0xad2   : > { %v5848_v57 = vadd.f32 %v5784_v28, %v13389_v39  ;;  %v5614_v28 = vsel %vm779_vm2, %v1846_v52, %v5362_v8 }
 0xad3   : > { %v5639_v6 = vsel %vm310_vm0, %v5614_v28, %v5462_v60 }
 0xad4   : > { %5873 = vst.msk [vmem:[%s12000_s9 + $0x28] sm:$0xff] %vm511_vm1, %v5848_v57  ;;  %v5364_v57 = vpop.permute.xlu1 %5363 }
 0xad6   : > { %v5556_v15 = vpop.permute.xlu2 %5555 }
 0xad7   : > { %v5786_v19 = vpop.f32.mrf.mxu3  ;;  %v5662_v32 = vsel %vm5642_vm6, %v5636_v33, %v5556_v15  ;;  %v5464_v15 = vpop.permute.xlu0 %5463 }
 0xad8   : > { %v5787_v21 = vadd.f32 %v11992_v58, %v5786_v19  ;;  %6429 = vmatmul.msk.f32.gmra.mxu3 %vm511_vm1, %v5662_v32  ;;  %v13411_v19 = vld [vmem:[#allocation43_spill] sm:$0xff]  ;;  %v13412_v32 = vld [vmem:[#allocation14_spill] sm:$0xff] }
 0xad9   : > { %v1849_v41 = vadd.f32 %v13411_v19, %v13410_v45  ;;  %v13413_v35 = vmax.f32 %v13412_v32, 0.0  ;;  %v13432_v45 = vld [vmem:[#allocation27_spill] sm:$0xff] }
 0xada   : > { %v5849_v17 = vadd.f32 %v5787_v21, %v13393_v50  ;;  %v13433_v19 = vmax.f32 %v13432_v45, 0.0 }
 0xadb   : > { %v5615_v21 = vsel %vm779_vm2, %v1849_v41, %v5364_v57  ;;  %v13430_v57 = vld [vmem:[#allocation25_spill] sm:$0xff] }
 0xadc   : > { %5874 = vst.msk [vmem:[%s12000_s9 + $0x30] sm:$0xff] %vm511_vm1, %v5849_v17  ;;  %v5640_v17 = vsel %vm310_vm0, %v5615_v21, %v5464_v15  ;;  %v5366_v49 = vpop.permute.xlu1 %5365  ;;  %v13434_v21 = vld [vmem:[#allocation29_spill] sm:$0xff] }
 0xadd   : > { %v13435_v32 = vmax.f32 %v13434_v21, 0.0 }
 0xade   : > { %v5558_v47 = vpop.permute.xlu2 %5557 }
 0xadf   : > { %v5789_v11 = vpop.f32.mrf.mxu3  ;;  %v5663_v30 = vsel %vm5642_vm6, %v5637_v27, %v5558_v47 }
 0xae0   : > { %v5790_v26 = vadd.f32 %v11992_v58, %v5789_v11  ;;  %6430 = vmatmul.msk.f32.gmra.mxu3 %vm511_vm1, %v5663_v30  ;;  %v13415_v11 = vld [vmem:[#allocation135_spill] sm:$0xff] }
 0xae1   : > { %v1852_v27 = vadd.f32 %v13415_v11, %v13414_v25  ;;  %v13416_v30 = vld [vmem:[#allocation15_spill] sm:$0xff] }
 0xae2   : > { %v5850_v62 = vadd.f32 %v5790_v26, %v13397_v13  ;;  %v13417_v29 = vmax.f32 %v13416_v30, 0.0  ;;  %v5466_v13 = vpop.permute.xlu0 %5465  ;;  %v13438_v11 = vld [vmem:[#allocation83_spill] sm:$0xff] }
 0xae3   : > { %v5616_v26 = vsel %vm779_vm2, %v1852_v27, %v5366_v49  ;;  %v13439_v27 = vmax.f32 %v13438_v11, 0.0 }
 0xae4   : > { %5875 = vst.msk [vmem:[%s12000_s9 + $0x38] sm:$0xff] %vm511_vm1, %v5850_v62  ;;  %v5641_v23 = vsel %vm310_vm0, %v5616_v26, %v5466_v13 }
 0xae6   : > { %v5560_v37 = vpop.permute.xlu2 %5559 }
 0xae7   : > { %v5792_v54 = vpop.f32.mrf.mxu3  ;;  %v5664_v34 = vsel %vm5642_vm6, %v5638_v4, %v5560_v37 }
 0xae8   : > { %v5793_v51 = vadd.f32 %v11992_v58, %v5792_v54  ;;  %6431 = vmatmul.msk.f32.gmra.mxu3 %vm511_vm1, %v5664_v34  ;;  %v13419_v54 = vmax.f32 %v13418_v1, 0.0  ;;  %v13420_v34 = vld [vmem:[#allocation17_spill] sm:$0xff] }
 0xae9   : > { %v13421_v24 = vmax.f32 %v13420_v34, 0.0 }
 0xaea   : > { %v5851_v7 = vadd.f32 %v5793_v51, %v13401_v31 }
 0xaec   : > { %5876 = vst.msk [vmem:[%s12000_s9 + $0x40] sm:$0xff] %vm511_vm1, %v5851_v7 }
 0xaef   : > { %v5795_v22 = vpop.f32.mrf.mxu3 }
 0xaf0   : > { %v5796_v10 = vadd.f32 %v11992_v58, %v5795_v22 }
 0xaf2   : > { %v5852_v36 = vadd.f32 %v5796_v10, %v13403_v63  ;;  %v13422_v10 = vld [vmem:[#allocation18_spill] sm:$0xff] }
 0xaf3   : > { %v13423_v53 = vmax.f32 %v13422_v10, 0.0 }
 0xaf4   : > { %5877 = vst.msk [vmem:[%s12000_s9 + $0x48] sm:$0xff] %vm511_vm1, %v5852_v36 }
 0xaf7   : > { %v5798_v38 = vpop.f32.mrf.mxu3 }
 0xaf8   : > { %v5799_v42 = vadd.f32 %v11992_v58, %v5798_v38 }
 0xafa   : > { %v5853_v20 = vadd.f32 %v5799_v42, %v13405_v43  ;;  %v13424_v42 = vld [vmem:[#allocation20_spill] sm:$0xff] }
 0xafb   : > { %v13425_v14 = vmax.f32 %v13424_v42, 0.0 }
 0xafc   : > { %5878 = vst.msk [vmem:[%s12000_s9 + $0x50] sm:$0xff] %vm511_vm1, %v5853_v20 }
 0xaff   : > { %v5801_v9 = vpop.f32.mrf.mxu3 }
 0xb00   : > { %v5802_v46 = vadd.f32 %v11992_v58, %v5801_v9  ;;  %v13426_v9 = vld [vmem:[#allocation22_spill] sm:$0xff] }
 0xb01   : > { %v13427_v5 = vmax.f32 %v13426_v9, 0.0 }
 0xb02   : > { %v5854_v39 = vadd.f32 %v5802_v46, %v13409_v44  ;;  %v13428_v46 = vld [vmem:[#allocation23_spill] sm:$0xff] }
 0xb03   : > { %v13429_v28 = vmax.f32 %v13428_v46, 0.0 }
 0xb04   : > { %5879 = vst.msk [vmem:[%s12000_s9 + $0x58] sm:$0xff] %vm511_vm1, %v5854_v39 }
 0xb05   : > { %v5562_v59 = vpop.permute.xlu2 %5561 }
 0xb06   : > { %v5665_v56 = vsel %vm5642_vm6, %v5639_v6, %v5562_v59  ;;  %v13431_v6 = vmax.f32 %v13430_v57, 0.0 }
 0xb07   : > { %6432 = vmatmul.msk.f32.gmra.mxu3 %vm511_vm1, %v5665_v56  ;;  %v5804_v48 = vpop.f32.mrf.mxu3 }
 0xb08   : > { %v5805_v33 = vadd.f32 %v11992_v58, %v5804_v48 }
 0xb0a   : > { %v5855_v50 = vadd.f32 %v5805_v33, %v13413_v35 }
 0xb0c   : > { %5880 = vst.msk [vmem:[%s12000_s9 + $0x60] sm:$0xff] %vm511_vm1, %v5855_v50 }
 0xb0d   : > { %v5564_v2 = vpop.permute.xlu2 %5563 }
 0xb0e   : > { %v5666_v3 = vsel %vm5642_vm6, %v5640_v17, %v5564_v2  ;;  %v13436_v2 = vld [vmem:[#allocation31_spill] sm:$0xff] }
 0xb0f   : > { %6433 = vmatmul.msk.f32.gmra.mxu3 %vm511_vm1, %v5666_v3  ;;  %v5807_v16 = vpop.f32.mrf.mxu3  ;;  %v13437_v3 = vmax.f32 %v13436_v2, 0.0 }
 0xb10   : > { %v5808_v47 = vadd.f32 %v11992_v58, %v5807_v16 }
 0xb12   : > { %v5856_v55 = vadd.f32 %v5808_v47, %v13417_v29 }
 0xb14   : > { %5881 = vst.msk [vmem:[%s12000_s9 + $0x68] sm:$0xff] %vm511_vm1, %v5856_v55 }
 0xb15   : > { %v5566_v62 = vpop.permute.xlu2 %5565 }
 0xb16   : > { %v5667_v40 = vsel %vm5642_vm6, %v5641_v23, %v5566_v62 }
 0xb17   : > { %6434 = vmatmul.msk.f32.gmra.mxu3 %vm511_vm1, %v5667_v40  ;;  %v5810_v12 = vpop.f32.mrf.mxu3 }
 0xb18   : > { %v5811_v0 = vadd.f32 %v11992_v58, %v5810_v12 }
 0xb1a   : > { %v5857_v4 = vadd.f32 %v5811_v0, %v13419_v54 }
 0xb1c   : > { %5882 = vst.msk [vmem:[%s12000_s9 + $0x70] sm:$0xff] %vm511_vm1, %v5857_v4 }
 0xb1f   : > { %v5813_v37 = vpop.f32.mrf.mxu3 }
 0xb20   : > { %v5814_v51 = vadd.f32 %v11992_v58, %v5813_v37 }
 0xb22   : > { %v5858_v31 = vadd.f32 %v5814_v51, %v13421_v24 }
 0xb24   : > { %5883 = vst.msk [vmem:[%s12000_s9 + $0x78] sm:$0xff] %vm511_vm1, %v5858_v31 }
 0xb27   : > { %v5816_v7 = vpop.f32.mrf.mxu3 }
 0xb28   : > { %v5817_v22 = vadd.f32 %v11992_v58, %v5816_v7 }
 0xb2a   : > { %v5859_v63 = vadd.f32 %v5817_v22, %v13423_v53 }
 0xb2c   : > { %5884 = vst.msk [vmem:[%s12000_s9 + $0x80] sm:$0xff] %vm511_vm1, %v5859_v63 }
 0xb43   : > { %v5819_v36 = vpop.f32.mrf.mxu3 }
 0xb44   : > { %v5820_v38 = vadd.f32 %v11992_v58, %v5819_v36 }
 0xb46   : > { %v5860_v43 = vadd.f32 %v5820_v38, %v13425_v14 }
 0xb48   : > { %5885 = vst.msk [vmem:[%s12000_s9 + $0x88] sm:$0xff] %vm511_vm1, %v5860_v43 }
 0xb53   : > { %v5822_v20 = vpop.f32.mrf.mxu3 }
 0xb54   : > { %v5823_v8 = vadd.f32 %v11992_v58, %v5822_v20 }
 0xb56   : > { %v5861_v61 = vadd.f32 %v5823_v8, %v13427_v5 }
 0xb58   : > { %5886 = vst.msk [vmem:[%s12000_s9 + $0x90] sm:$0xff] %vm511_vm1, %v5861_v61 }
 0xb5b   : > { %v5825_v52 = vpop.f32.mrf.mxu3 }
 0xb5c   : > { %v5826_v60 = vadd.f32 %v11992_v58, %v5825_v52 }
 0xb5e   : > { %v5862_v18 = vadd.f32 %v5826_v60, %v13429_v28 }
 0xb60   : > { %5887 = vst.msk [vmem:[%s12000_s9 + $0x98] sm:$0xff] %vm511_vm1, %v5862_v18 }
 0xb63   : > { %v5828_v44 = vpop.f32.mrf.mxu3 }
 0xb64   : > { %v5829_v39 = vadd.f32 %v11992_v58, %v5828_v44 }
 0xb66   : > { %v5863_v59 = vadd.f32 %v5829_v39, %v13431_v6 }
 0xb68   : > { %5888 = vst.msk [vmem:[%s12000_s9 + $0xa0] sm:$0xff] %vm511_vm1, %v5863_v59 }
 0xb6b   : > { %v5831_v56 = vpop.f32.mrf.mxu3 }
 0xb6c   : > { %v5832_v48 = vadd.f32 %v11992_v58, %v5831_v56 }
 0xb6e   : > { %v5864_v41 = vadd.f32 %v5832_v48, %v13433_v19 }
 0xb70   : > { %5889 = vst.msk [vmem:[%s12000_s9 + $0xa8] sm:$0xff] %vm511_vm1, %v5864_v41 }
 0xb8a   : > { %v5834_v33 = vpop.f32.mrf.mxu3 }
 0xb8b   : > { %v5835_v15 = vadd.f32 %v11992_v58, %v5834_v33 }
 0xb8d   : > { %v5865_v35 = vadd.f32 %v5835_v15, %v13435_v32 }
 0xb8f   : > { %5890 = vst.msk [vmem:[%s12000_s9 + $0xb0] sm:$0xff] %vm511_vm1, %v5865_v35 }
 0xb92   : > { %v5837_v50 = vpop.f32.mrf.mxu3 }
 0xb93   : > { %v5838_v17 = vadd.f32 %v11992_v58, %v5837_v50 }
 0xb95   : > { %v5866_v49 = vadd.f32 %v5838_v17, %v13437_v3 }
 0xb97   : > { %5891 = vst.msk [vmem:[%s12000_s9 + $0xb8] sm:$0xff] %vm511_vm1, %v5866_v49 }
 0xb9a   : > { %v5840_v16 = vpop.f32.mrf.mxu3 }
 0xb9b   : > { %v5841_v25 = vadd.f32 %v11992_v58, %v5840_v16 }
 0xb9d   : > { %v5867_v47 = vadd.f32 %v5841_v25, %v13439_v27 }
 0xb9f   : > { %5893 = vst.msk [vmem:[%s12000_s9 + $0xc0] sm:$0xf] %vm5892_vm7, %v5867_v47 }
 0xba0 PF: > { %s17_s24 = sadd.s32 1, %s7343_s24  }
 0xba1   : > { %p14_p4 = scmp.ge.s32.totalorder %s17_s24, 4  }
 0xba3   :  { %16 = sbr.rel (!%p14_p4) target bundleno = 1 (0x1), region = 78 }

// kernel: encoder_pallas.5
= control target key start
LH: loop header
LB: loop body
LE: loop exit
PB: predicated region body
PF: predicated region fallthrough
CT: control target
= control target key end

     0   :  { %vm481_vm0 = vcmask 523264   ;;  %vm984_vm1 = vcmask 254976   ;;  %s2263_s1 = inlined_call_operand.vmem [shape: f32[3136,32], index: 1, kind: input, shape index: {}]   ;;  %s2264_s0 = inlined_call_operand.vmem [shape: f32[2,3136], index: 0, kind: input, shape index: {}]   ;;  %s2265_s2 = inlined_call_operand.vmem [shape: f32[1,32], index: 2, kind: input, shape index: {}]   ;;  %s2266_s3 = inlined_call_operand.vmem [shape: f32[2,32], index: 3, kind: output, shape index: {}]  }
   0x1   :  { %v36_v0 = vld [vmem:[%s2263_s1 + $0x78] sm:$0xff]  ;;  %v35_v2 = vld [vmem:[%s2263_s1 + $0x70] sm:$0xff]  ;;  %v34_v6 = vld [vmem:[%s2263_s1 + $0x68] sm:$0xff] }
   0x2   :  { %v68_v1 = vld [vmem:[%s2263_s1 + $0x178] sm:$0xff]  ;;  %484 = vmatpush.msra.mxu0 %v36_v0  ;;  %v67_v4 = vld [vmem:[%s2263_s1 + $0x170] sm:$0xff]  ;;  %v66_v8 = vld [vmem:[%s2263_s1 + $0x168] sm:$0xff] }
   0x3   :  { %524 = vmatpush.msra.mxu2 %v68_v1  ;;  %v52_v3 = vld [vmem:[%s2263_s1 + $0xf8] sm:$0xff]  ;;  %v51_v7 = vld [vmem:[%s2263_s1 + $0xf0] sm:$0xff]  ;;  %v50_v10 = vld [vmem:[%s2263_s1 + $0xe8] sm:$0xff] }
   0x4   :  { %v84_v5 = vld [vmem:[%s2263_s1 + $0x1f8] sm:$0xff]  ;;  %504 = vmatpush.msra.mxu1 %v52_v3  ;;  %485 = vmatpush.msra.mxu0 %v35_v2  ;;  %v83_v9 = vld [vmem:[%s2263_s1 + $0x1f0] sm:$0xff]  ;;  %v33_v11 = vld [vmem:[%s2263_s1 + $0x60] sm:$0xff] }
   0x5   :  { %544 = vmatpush.msra.mxu3 %v84_v5  ;;  %525 = vmatpush.msra.mxu2 %v67_v4  ;;  %v65_v12 = vld [vmem:[%s2263_s1 + $0x160] sm:$0xff]  ;;  %v82_v13 = vld [vmem:[%s2263_s1 + $0x1e8] sm:$0xff]  ;;  %v32_v16 = vld [vmem:[%s2263_s1 + $0x58] sm:$0xff] }
   0x6   :  { %505 = vmatpush.msra.mxu1 %v51_v7  ;;  %486 = vmatpush.msra.mxu0 %v34_v6  ;;  %v49_v14 = vld [vmem:[%s2263_s1 + $0xe0] sm:$0xff]  ;;  %v64_v17 = vld [vmem:[%s2263_s1 + $0x158] sm:$0xff]  ;;  %v31_v20 = vld [vmem:[%s2263_s1 + $0x50] sm:$0xff] }
   0x7   :  { %545 = vmatpush.msra.mxu3 %v83_v9  ;;  %526 = vmatpush.msra.mxu2 %v66_v8  ;;  %v81_v15 = vld [vmem:[%s2263_s1 + $0x1e0] sm:$0xff]  ;;  %v48_v18 = vld [vmem:[%s2263_s1 + $0xd8] sm:$0xff]  ;;  %v63_v21 = vld [vmem:[%s2263_s1 + $0x150] sm:$0xff] }
   0x8   :  { %506 = vmatpush.msra.mxu1 %v50_v10  ;;  %487 = vmatpush.msra.mxu0 %v33_v11  ;;  %v80_v19 = vld [vmem:[%s2263_s1 + $0x1d8] sm:$0xff]  ;;  %v47_v22 = vld [vmem:[%s2263_s1 + $0xd0] sm:$0xff]  ;;  %v30_v24 = vld [vmem:[%s2263_s1 + $0x48] sm:$0xff] }
   0x9   :  { %546 = vmatpush.msra.mxu3 %v82_v13  ;;  %527 = vmatpush.msra.mxu2 %v65_v12  ;;  %v79_v23 = vld [vmem:[%s2263_s1 + $0x1d0] sm:$0xff]  ;;  %v62_v25 = vld [vmem:[%s2263_s1 + $0x148] sm:$0xff]  ;;  %v29_v28 = vld [vmem:[%s2263_s1 + $0x40] sm:$0xff] }
   0xa   :  { %507 = vmatpush.msra.mxu1 %v49_v14  ;;  %488 = vmatpush.msra.mxu0 %v32_v16  ;;  %v46_v26 = vld [vmem:[%s2263_s1 + $0xc8] sm:$0xff]  ;;  %v61_v29 = vld [vmem:[%s2263_s1 + $0x140] sm:$0xff]  ;;  %v28_v32 = vld [vmem:[%s2263_s1 + $0x38] sm:$0xff] }
   0xb   :  { %547 = vmatpush.msra.mxu3 %v81_v15  ;;  %528 = vmatpush.msra.mxu2 %v64_v17  ;;  %v78_v27 = vld [vmem:[%s2263_s1 + $0x1c8] sm:$0xff]  ;;  %v45_v30 = vld [vmem:[%s2263_s1 + $0xc0] sm:$0xff]  ;;  %v60_v33 = vld [vmem:[%s2263_s1 + $0x138] sm:$0xff] }
   0xc   :  { %508 = vmatpush.msra.mxu1 %v48_v18  ;;  %489 = vmatpush.msra.mxu0 %v31_v20  ;;  %v77_v31 = vld [vmem:[%s2263_s1 + $0x1c0] sm:$0xff]  ;;  %v44_v34 = vld [vmem:[%s2263_s1 + $0xb8] sm:$0xff]  ;;  %v27_v36 = vld [vmem:[%s2263_s1 + $0x30] sm:$0xff] }
   0xd   :  { %548 = vmatpush.msra.mxu3 %v80_v19  ;;  %529 = vmatpush.msra.mxu2 %v63_v21  ;;  %v76_v35 = vld [vmem:[%s2263_s1 + $0x1b8] sm:$0xff]  ;;  %v59_v37 = vld [vmem:[%s2263_s1 + $0x130] sm:$0xff]  ;;  %v26_v40 = vld [vmem:[%s2263_s1 + $0x28] sm:$0xff] }
   0xe   :  { %509 = vmatpush.msra.mxu1 %v47_v22  ;;  %490 = vmatpush.msra.mxu0 %v30_v24  ;;  %v43_v38 = vld [vmem:[%s2263_s1 + $0xb0] sm:$0xff]  ;;  %v58_v41 = vld [vmem:[%s2263_s1 + $0x128] sm:$0xff]  ;;  %v25_v44 = vld [vmem:[%s2263_s1 + $0x20] sm:$0xff] }
   0xf   :  { %549 = vmatpush.msra.mxu3 %v79_v23  ;;  %530 = vmatpush.msra.mxu2 %v62_v25  ;;  %v75_v39 = vld [vmem:[%s2263_s1 + $0x1b0] sm:$0xff]  ;;  %v42_v42 = vld [vmem:[%s2263_s1 + $0xa8] sm:$0xff]  ;;  %v57_v45 = vld [vmem:[%s2263_s1 + $0x120] sm:$0xff] }
  0x10   :  { %510 = vmatpush.msra.mxu1 %v46_v26  ;;  %491 = vmatpush.msra.mxu0 %v29_v28  ;;  %v74_v43 = vld [vmem:[%s2263_s1 + $0x1a8] sm:$0xff]  ;;  %v41_v46 = vld [vmem:[%s2263_s1 + $0xa0] sm:$0xff]  ;;  %v24_v48 = vld [vmem:[%s2263_s1 + $0x18] sm:$0xff] }
  0x11   :  { %550 = vmatpush.msra.mxu3 %v78_v27  ;;  %531 = vmatpush.msra.mxu2 %v61_v29  ;;  %v73_v47 = vld [vmem:[%s2263_s1 + $0x1a0] sm:$0xff]  ;;  %v56_v49 = vld [vmem:[%s2263_s1 + $0x118] sm:$0xff]  ;;  %v23_v52 = vld [vmem:[%s2263_s1 + $0x10] sm:$0xff] }
  0x12   :  { %511 = vmatpush.msra.mxu1 %v45_v30  ;;  %492 = vmatpush.msra.mxu0 %v28_v32  ;;  %v40_v50 = vld [vmem:[%s2263_s1 + $0x98] sm:$0xff]  ;;  %v55_v53 = vld [vmem:[%s2263_s1 + $0x110] sm:$0xff]  ;;  %v22_v56 = vld [vmem:[%s2263_s1 + $0x8] sm:$0xff] }
  0x13   :  { %551 = vmatpush.msra.mxu3 %v77_v31  ;;  %532 = vmatpush.msra.mxu2 %v60_v33  ;;  %v72_v51 = vld [vmem:[%s2263_s1 + $0x198] sm:$0xff]  ;;  %v39_v54 = vld [vmem:[%s2263_s1 + $0x90] sm:$0xff]  ;;  %v54_v57 = vld [vmem:[%s2263_s1 + $0x108] sm:$0xff] }
  0x14   :  { %512 = vmatpush.msra.mxu1 %v44_v34  ;;  %493 = vmatpush.msra.mxu0 %v27_v36  ;;  %v71_v55 = vld [vmem:[%s2263_s1 + $0x190] sm:$0xff]  ;;  %v38_v58 = vld [vmem:[%s2263_s1 + $0x88] sm:$0xff]  ;;  %v21_v60 = vld [vmem:[%s2263_s1] sm:$0xff] }
  0x15   :  { %552 = vmatpush.msra.mxu3 %v76_v35  ;;  %533 = vmatpush.msra.mxu2 %v59_v37  ;;  %v70_v59 = vld [vmem:[%s2263_s1 + $0x188] sm:$0xff]  ;;  %v53_v61 = vld [vmem:[%s2263_s1 + $0x100] sm:$0xff]  ;;  %v100_v62 = vld [vmem:[%s2263_s1 + $0x278] sm:$0xff] }
  0x16   :  { %513 = vmatpush.msra.mxu1 %v43_v38  ;;  %494 = vmatpush.msra.mxu0 %v26_v40  ;;  %v132_v63 = vld [vmem:[%s2263_s1 + $0x378] sm:$0xff]  ;;  %v37_v0 = vld [vmem:[%s2263_s1 + $0x80] sm:$0xff]  ;;  %v99_v2 = vld [vmem:[%s2263_s1 + $0x270] sm:$0xff] }
  0x17   :  { %553 = vmatpush.msra.mxu3 %v75_v39  ;;  %534 = vmatpush.msra.mxu2 %v58_v41  ;;  %v69_v1 = vld [vmem:[%s2263_s1 + $0x180] sm:$0xff]  ;;  %v116_v3 = vld [vmem:[%s2263_s1 + $0x2f8] sm:$0xff]  ;;  %v131_v4 = vld [vmem:[%s2263_s1 + $0x370] sm:$0xff] }
  0x18   :  { %514 = vmatpush.msra.mxu1 %v42_v42  ;;  %495 = vmatpush.msra.mxu0 %v25_v44  ;;  %v148_v5 = vld [vmem:[%s2263_s1 + $0x3f8] sm:$0xff]  ;;  %v98_v6 = vld [vmem:[%s2263_s1 + $0x268] sm:$0xff]  ;;  %v115_v7 = vld [vmem:[%s2263_s1 + $0x2f0] sm:$0xff] }
  0x19   :  { %554 = vmatpush.msra.mxu3 %v74_v43  ;;  %535 = vmatpush.msra.mxu2 %v57_v45  ;;  %v130_v8 = vld [vmem:[%s2263_s1 + $0x368] sm:$0xff]  ;;  %v147_v9 = vld [vmem:[%s2263_s1 + $0x3f0] sm:$0xff]  ;;  %v97_v10 = vld [vmem:[%s2263_s1 + $0x260] sm:$0xff] }
  0x1a   :  { %515 = vmatpush.msra.mxu1 %v41_v46  ;;  %496 = vmatpush.msra.mxu0 %v24_v48  ;;  %v114_v11 = vld [vmem:[%s2263_s1 + $0x2e8] sm:$0xff]  ;;  %v129_v12 = vld [vmem:[%s2263_s1 + $0x360] sm:$0xff]  ;;  %v96_v14 = vld [vmem:[%s2263_s1 + $0x258] sm:$0xff] }
  0x1b   :  { %555 = vmatpush.msra.mxu3 %v73_v47  ;;  %536 = vmatpush.msra.mxu2 %v56_v49  ;;  %v146_v13 = vld [vmem:[%s2263_s1 + $0x3e8] sm:$0xff]  ;;  %v113_v15 = vld [vmem:[%s2263_s1 + $0x2e0] sm:$0xff]  ;;  %v128_v16 = vld [vmem:[%s2263_s1 + $0x358] sm:$0xff] }
  0x1c   :  { %516 = vmatpush.msra.mxu1 %v40_v50  ;;  %497 = vmatpush.msra.mxu0 %v23_v52  ;;  %v145_v17 = vld [vmem:[%s2263_s1 + $0x3e0] sm:$0xff]  ;;  %v95_v18 = vld [vmem:[%s2263_s1 + $0x250] sm:$0xff]  ;;  %v112_v19 = vld [vmem:[%s2263_s1 + $0x2d8] sm:$0xff] }
  0x1d   :  { %556 = vmatpush.msra.mxu3 %v72_v51  ;;  %537 = vmatpush.msra.mxu2 %v55_v53  ;;  %v127_v20 = vld [vmem:[%s2263_s1 + $0x350] sm:$0xff]  ;;  %v144_v21 = vld [vmem:[%s2263_s1 + $0x3d8] sm:$0xff]  ;;  %v14_v22 = vld [vmem:[%s2264_s0] sm:$0xff] }
  0x1e   :  { %517 = vmatpush.msra.mxu1 %v39_v54  ;;  %498 = vmatpush.msra.mxu0 %v22_v56  ;;  %v94_v23 = vld [vmem:[%s2263_s1 + $0x248] sm:$0xff]  ;;  %v111_v24 = vld [vmem:[%s2263_s1 + $0x2d0] sm:$0xff]  ;;  %424 = vst [vmem:[#allocation1] ss:$4 sm:$0xff] %v14_v22  ;;  %v93_v27 = vld [vmem:[%s2263_s1 + $0x240] sm:$0xff] }
  0x1f   :  { %557 = vmatpush.msra.mxu3 %v71_v55  ;;  %538 = vmatpush.msra.mxu2 %v54_v57  ;;  %v126_v25 = vld [vmem:[%s2263_s1 + $0x348] sm:$0xff]  ;;  %v143_v26 = vld [vmem:[%s2263_s1 + $0x3d0] sm:$0xff]  ;;  %v125_v29 = vld [vmem:[%s2263_s1 + $0x340] sm:$0xff] }
  0x20   :  { %518 = vmatpush.msra.mxu1 %v38_v58  ;;  %499 = vmatpush.msra.mxu0 %v21_v60  ;;  %v110_v28 = vld [vmem:[%s2263_s1 + $0x2c8] sm:$0xff]  ;;  %v92_v31 = vld [vmem:[%s2263_s1 + $0x238] sm:$0xff]  ;;  %v109_v32 = vld [vmem:[%s2263_s1 + $0x2c0] sm:$0xff] }
  0x21   :  { %558 = vmatpush.msra.mxu3 %v70_v59  ;;  %539 = vmatpush.msra.mxu2 %v53_v61  ;;  %v142_v30 = vld [vmem:[%s2263_s1 + $0x3c8] sm:$0xff]  ;;  %v124_v33 = vld [vmem:[%s2263_s1 + $0x338] sm:$0xff]  ;;  %v141_v34 = vld [vmem:[%s2263_s1 + $0x3c0] sm:$0xff] }
  0x22   :  { %564 = vmatpush.msrb.mxu0 %v100_v62  ;;  %519 = vmatpush.msra.mxu1 %v37_v0  ;;  %v91_v35 = vld [vmem:[%s2263_s1 + $0x230] sm:$0xff]  ;;  %v108_v36 = vld [vmem:[%s2263_s1 + $0x2b8] sm:$0xff]  ;;  %v90_v39 = vld [vmem:[%s2263_s1 + $0x228] sm:$0xff] }
  0x23   :  { %604 = vmatpush.msrb.mxu2 %v132_v63  ;;  %559 = vmatpush.msra.mxu3 %v69_v1  ;;  %v123_v37 = vld [vmem:[%s2263_s1 + $0x330] sm:$0xff]  ;;  %v140_v38 = vld [vmem:[%s2263_s1 + $0x3b8] sm:$0xff]  ;;  %v15_v42 = vld [vmem:[%s2264_s0 + $0x8] sm:$0xff] }
  0x24   :  { %565 = vmatpush.msrb.mxu0 %v99_v2  ;;  %584 = vmatpush.msrb.mxu1 %v116_v3  ;;  %v107_v40 = vld [vmem:[%s2263_s1 + $0x2b0] sm:$0xff]  ;;  %v122_v47 = vld [vmem:[%s2263_s1 + $0x328] sm:$0xff]  ;;  %v89_v49 = vld [vmem:[%s2263_s1 + $0x220] sm:$0xff]  ;;  %426 = vst [vmem:[#allocation1 + $0x20] ss:$4 sm:$0xff] %v15_v42 }
  0x25   :  { %605 = vmatpush.msrb.mxu2 %v131_v4  ;;  %624 = vmatpush.msrb.mxu3 %v148_v5  ;;  %v16_v41 = vld [vmem:[%s2264_s0 + $0x10] sm:$0xff]  ;;  %v1333_v44 = vld.sshfl [vmem:[#allocation1] sm:$0xff pattern:$0x73625140]  ;;  %v106_v50 = vld [vmem:[%s2263_s1 + $0x2a8] sm:$0xff] }
  0x26   :  { %566 = vmatpush.msrb.mxu0 %v98_v6  ;;  %585 = vmatpush.msrb.mxu1 %v115_v7  ;;  %v429_v43 = vld.sshfl [vmem:[#allocation1 + $0x10] sm:$0xff pattern:$0x73625140]  ;;  %v1335_v45 = vld.sshfl [vmem:[#allocation1 + $0x18] sm:$0xff pattern:$0x73625140] }
  0x27   :  { %606 = vmatpush.msrb.mxu2 %v130_v8  ;;  %625 = vmatpush.msrb.mxu3 %v147_v9  ;;  %v1337_v46 = vld.sshfl [vmem:[#allocation1 + $0x8] sm:$0xff pattern:$0x73625140]  ;;  %v139_v48 = vld [vmem:[%s2263_s1 + $0x3b0] sm:$0xff]  ;;  %v121_v51 = vld [vmem:[%s2263_s1 + $0x320] sm:$0xff] }
  0x28   :  { %567 = vmatpush.msrb.mxu0 %v97_v10  ;;  %586 = vmatpush.msrb.mxu1 %v114_v11  ;;  %435 = vst [vmem:[#allocation1] ss:$4 sm:$0xff] %v16_v41  ;;  %v138_v52 = vld [vmem:[%s2263_s1 + $0x3a8] sm:$0xff]  ;;  %v88_v53 = vld [vmem:[%s2263_s1 + $0x218] sm:$0xff]  ;;  %v105_v54 = vld [vmem:[%s2263_s1 + $0x2a0] sm:$0xff] }
  0x29   :  { %607 = vmatpush.msrb.mxu2 %v129_v12  ;;  %626 = vmatpush.msrb.mxu3 %v146_v13  ;;  %v120_v55 = vld [vmem:[%s2263_s1 + $0x318] sm:$0xff]  ;;  %v137_v56 = vld [vmem:[%s2263_s1 + $0x3a0] sm:$0xff]  ;;  %v87_v57 = vld [vmem:[%s2263_s1 + $0x210] sm:$0xff] }
  0x2a   :  { %568 = vmatpush.msrb.mxu0 %v96_v14  ;;  %587 = vmatpush.msrb.mxu1 %v113_v15  ;;  %v104_v58 = vld [vmem:[%s2263_s1 + $0x298] sm:$0xff]  ;;  %v119_v59 = vld [vmem:[%s2263_s1 + $0x310] sm:$0xff]  ;;  %v86_v61 = vld [vmem:[%s2263_s1 + $0x208] sm:$0xff] }
  0x2b   :  { %608 = vmatpush.msrb.mxu2 %v128_v16  ;;  %627 = vmatpush.msrb.mxu3 %v145_v17  ;;  %v136_v60 = vld [vmem:[%s2263_s1 + $0x398] sm:$0xff]  ;;  %v103_v62 = vld [vmem:[%s2263_s1 + $0x290] sm:$0xff]  ;;  %v118_v63 = vld [vmem:[%s2263_s1 + $0x308] sm:$0xff] }
  0x2c   :  { %569 = vmatpush.msrb.mxu0 %v95_v18  ;;  %588 = vmatpush.msrb.mxu1 %v112_v19  ;;  %v135_v0 = vld [vmem:[%s2263_s1 + $0x390] sm:$0xff]  ;;  %v85_v1 = vld [vmem:[%s2263_s1 + $0x200] sm:$0xff]  ;;  %v17_v2 = vld [vmem:[%s2264_s0 + $0x18] sm:$0xff] }
  0x2d   :  { %609 = vmatpush.msrb.mxu2 %v127_v20  ;;  %628 = vmatpush.msrb.mxu3 %v144_v21  ;;  %v433_v3 = vld.sshfl [vmem:[#allocation1 + $0x30] sm:$0xff pattern:$0x73625140]  ;;  %v431_v4 = vld.sshfl [vmem:[#allocation1 + $0x20] sm:$0xff pattern:$0x73625140] }
  0x2e   :  { %570 = vmatpush.msrb.mxu0 %v94_v23  ;;  %589 = vmatpush.msrb.mxu1 %v111_v24  ;;  %v434_v5 = vld.sshfl [vmem:[#allocation1 + $0x38] sm:$0xff pattern:$0x73625140]  ;;  %v1399_v6 = vld.sshfl [vmem:[#allocation1 + $0x28] sm:$0xff pattern:$0x73625140] }
  0x2f   :  { %610 = vmatpush.msrb.mxu2 %v126_v25  ;;  %629 = vmatpush.msrb.mxu3 %v143_v26  ;;  %v102_v7 = vld [vmem:[%s2263_s1 + $0x288] sm:$0xff]  ;;  %v117_v8 = vld [vmem:[%s2263_s1 + $0x300] sm:$0xff]  ;;  %436 = vst [vmem:[#allocation1 + $0x20] ss:$4 sm:$0xff] %v17_v2  ;;  %v164_v10 = vld [vmem:[%s2263_s1 + $0x478] sm:$0xff] }
  0x30   :  { %571 = vmatpush.msrb.mxu0 %v93_v27  ;;  %590 = vmatpush.msrb.mxu1 %v110_v28  ;;  %v134_v9 = vld [vmem:[%s2263_s1 + $0x388] sm:$0xff]  ;;  %v196_v11 = vld [vmem:[%s2263_s1 + $0x578] sm:$0xff]  ;;  %v101_v12 = vld [vmem:[%s2263_s1 + $0x280] sm:$0xff] }
  0x31   :  { %611 = vmatpush.msrb.mxu2 %v125_v29  ;;  %630 = vmatpush.msrb.mxu3 %v142_v30  ;;  %v133_v13 = vld [vmem:[%s2263_s1 + $0x380] sm:$0xff]  ;;  %v163_v14 = vld [vmem:[%s2263_s1 + $0x470] sm:$0xff]  ;;  %v180_v15 = vld [vmem:[%s2263_s1 + $0x4f8] sm:$0xff] }
  0x32   :  { %572 = vmatpush.msrb.mxu0 %v92_v31  ;;  %591 = vmatpush.msrb.mxu1 %v109_v32  ;;  %v195_v16 = vld [vmem:[%s2263_s1 + $0x570] sm:$0xff]  ;;  %v212_v17 = vld [vmem:[%s2263_s1 + $0x5f8] sm:$0xff]  ;;  %v162_v18 = vld [vmem:[%s2263_s1 + $0x468] sm:$0xff] }
  0x33   :  { %612 = vmatpush.msrb.mxu2 %v124_v33  ;;  %631 = vmatpush.msrb.mxu3 %v141_v34  ;;  %v179_v19 = vld [vmem:[%s2263_s1 + $0x4f0] sm:$0xff]  ;;  %v194_v20 = vld [vmem:[%s2263_s1 + $0x568] sm:$0xff]  ;;  %v161_v22 = vld [vmem:[%s2263_s1 + $0x460] sm:$0xff] }
  0x34   :  { %573 = vmatpush.msrb.mxu0 %v91_v35  ;;  %592 = vmatpush.msrb.mxu1 %v108_v36  ;;  %v211_v21 = vld [vmem:[%s2263_s1 + $0x5f0] sm:$0xff]  ;;  %v178_v23 = vld [vmem:[%s2263_s1 + $0x4e8] sm:$0xff]  ;;  %v193_v24 = vld [vmem:[%s2263_s1 + $0x560] sm:$0xff] }
  0x35   :  { %613 = vmatpush.msrb.mxu2 %v123_v37  ;;  %632 = vmatpush.msrb.mxu3 %v140_v38  ;;  %v210_v25 = vld [vmem:[%s2263_s1 + $0x5e8] sm:$0xff]  ;;  %v1461_v26 = vld.sshfl [vmem:[#allocation1] sm:$0xff pattern:$0x73625140]  ;;  %v160_v27 = vld [vmem:[%s2263_s1 + $0x458] sm:$0xff] }
  0x36   :  { %574 = vmatpush.msrb.mxu0 %v90_v39  ;;  %593 = vmatpush.msrb.mxu1 %v107_v40  ;;  %v1466_v28 = vld.sshfl [vmem:[#allocation1 + $0x10] sm:$0xff pattern:$0x73625140]  ;;  %v18_v29 = vld [vmem:[%s2264_s0 + $0x20] sm:$0xff]  ;;  %v192_v33 = vld [vmem:[%s2263_s1 + $0x558] sm:$0xff] }
  0x37   :  { %614 = vmatpush.msrb.mxu2 %v122_v47  ;;  %633 = vmatpush.msrb.mxu3 %v139_v48  ;;  %v1471_v30 = vld.sshfl [vmem:[#allocation1 + $0x8] sm:$0xff pattern:$0x73625140]  ;;  %v1473_v31 = vld.sshfl [vmem:[#allocation1 + $0x18] sm:$0xff pattern:$0x73625140] }
  0x38   :  { %575 = vmatpush.msrb.mxu0 %v89_v49  ;;  %594 = vmatpush.msrb.mxu1 %v106_v50  ;;  %v177_v32 = vld [vmem:[%s2263_s1 + $0x4e0] sm:$0xff]  ;;  %445 = vst [vmem:[#allocation1] ss:$4 sm:$0xff] %v18_v29  ;;  %v159_v35 = vld [vmem:[%s2263_s1 + $0x450] sm:$0xff]  ;;  %v176_v36 = vld [vmem:[%s2263_s1 + $0x4d8] sm:$0xff] }
  0x39   :  { %615 = vmatpush.msrb.mxu2 %v121_v51  ;;  %634 = vmatpush.msrb.mxu3 %v138_v52  ;;  %v209_v34 = vld [vmem:[%s2263_s1 + $0x5e0] sm:$0xff]  ;;  %v191_v37 = vld [vmem:[%s2263_s1 + $0x550] sm:$0xff]  ;;  %v208_v38 = vld [vmem:[%s2263_s1 + $0x5d8] sm:$0xff] }
  0x3a   :  { %576 = vmatpush.msrb.mxu0 %v88_v53  ;;  %595 = vmatpush.msrb.mxu1 %v105_v54  ;;  %v158_v39 = vld [vmem:[%s2263_s1 + $0x448] sm:$0xff]  ;;  %v175_v40 = vld [vmem:[%s2263_s1 + $0x4d0] sm:$0xff]  ;;  %v156_v47 = vld [vmem:[%s2263_s1 + $0x438] sm:$0xff] }
  0x3b   :  { %616 = vmatpush.msrb.mxu2 %v120_v55  ;;  %635 = vmatpush.msrb.mxu3 %v137_v56  ;;  %v190_v41 = vld [vmem:[%s2263_s1 + $0x548] sm:$0xff]  ;;  %v207_v42 = vld [vmem:[%s2263_s1 + $0x5d0] sm:$0xff]  ;;  %v173_v48 = vld [vmem:[%s2263_s1 + $0x4c0] sm:$0xff] }
  0x3c   :  { %577 = vmatpush.msrb.mxu0 %v87_v57  ;;  %596 = vmatpush.msrb.mxu1 %v104_v58  ;;  %v188_v49 = vld [vmem:[%s2263_s1 + $0x538] sm:$0xff]  ;;  %v205_v50 = vld [vmem:[%s2263_s1 + $0x5c0] sm:$0xff]  ;;  %v155_v51 = vld [vmem:[%s2263_s1 + $0x430] sm:$0xff] }
  0x3d   :  { %617 = vmatpush.msrb.mxu2 %v119_v59  ;;  %636 = vmatpush.msrb.mxu3 %v136_v60  ;;  %v172_v52 = vld [vmem:[%s2263_s1 + $0x4b8] sm:$0xff]  ;;  %v187_v53 = vld [vmem:[%s2263_s1 + $0x530] sm:$0xff]  ;;  %v154_v55 = vld [vmem:[%s2263_s1 + $0x428] sm:$0xff] }
  0x3e   :  { %578 = vmatpush.msrb.mxu0 %v86_v61  ;;  %597 = vmatpush.msrb.mxu1 %v103_v62  ;;  %v204_v54 = vld [vmem:[%s2263_s1 + $0x5b8] sm:$0xff]  ;;  %v171_v56 = vld [vmem:[%s2263_s1 + $0x4b0] sm:$0xff]  ;;  %v186_v57 = vld [vmem:[%s2263_s1 + $0x528] sm:$0xff] }
  0x3f   :  { %618 = vmatpush.msrb.mxu2 %v118_v63  ;;  %637 = vmatpush.msrb.mxu3 %v135_v0  ;;  %v203_v58 = vld [vmem:[%s2263_s1 + $0x5b0] sm:$0xff]  ;;  %v153_v59 = vld [vmem:[%s2263_s1 + $0x420] sm:$0xff]  ;;  %v170_v60 = vld [vmem:[%s2263_s1 + $0x4a8] sm:$0xff] }
  0x40   :  { %540 = vmatmul.f32.vlgmr.msra.gmra.mxu2 %v429_v43  ;;  %579 = vmatpush.msrb.mxu0 %v85_v1  ;;  %v157_v43 = vld [vmem:[%s2263_s1 + $0x440] sm:$0xff]  ;;  %v202_v62 = vld [vmem:[%s2263_s1 + $0x5a8] sm:$0xff]  ;;  %v152_v63 = vld [vmem:[%s2263_s1 + $0x418] sm:$0xff] }
  0x41   :  { %598 = vmatpush.msrb.mxu1 %v102_v7  ;;  %619 = vmatpush.msrb.mxu2 %v117_v8  ;;  %v185_v61 = vld [vmem:[%s2263_s1 + $0x520] sm:$0xff]  ;;  %v184_v1 = vld [vmem:[%s2263_s1 + $0x518] sm:$0xff]  ;;  %v150_v7 = vld [vmem:[%s2263_s1 + $0x408] sm:$0xff] }
  0x42   :  { %638 = vmatpush.msrb.mxu3 %v134_v9  ;;  %500 = vmatmul.f32.vlgmr.msra.gmra.mxu0 %v1333_v44  ;;  %v174_v44 = vld [vmem:[%s2263_s1 + $0x4c8] sm:$0xff]  ;;  %v169_v0 = vld [vmem:[%s2263_s1 + $0x4a0] sm:$0xff]  ;;  %v167_v8 = vld [vmem:[%s2263_s1 + $0x490] sm:$0xff] }
  0x43   :  { %560 = vmatmul.f32.vlgmr.msra.gmra.mxu3 %v1335_v45  ;;  %644 = vmatpush.msra.mxu0 %v164_v10  ;;  %v189_v45 = vld [vmem:[%s2263_s1 + $0x540] sm:$0xff]  ;;  %v182_v9 = vld [vmem:[%s2263_s1 + $0x508] sm:$0xff]  ;;  %v199_v10 = vld [vmem:[%s2263_s1 + $0x590] sm:$0xff] }
  0x44   :  { %684 = vmatpush.msra.mxu2 %v196_v11  ;;  %599 = vmatpush.msrb.mxu1 %v101_v12  ;;  %v201_v2 = vld [vmem:[%s2263_s1 + $0x5a0] sm:$0xff]  ;;  %v166_v12 = vld [vmem:[%s2263_s1 + $0x488] sm:$0xff]  ;;  %v1662_v29 = vld.sshfl [vmem:[#allocation1 + $0x30] sm:$0xff pattern:$0x73625140] }
  0x45   :  { %639 = vmatpush.msrb.mxu3 %v133_v13  ;;  %520 = vmatmul.f32.vlgmr.msra.gmra.mxu1 %v1337_v46  ;;  %v206_v46 = vld [vmem:[%s2263_s1 + $0x5c8] sm:$0xff]  ;;  %v149_v11 = vld [vmem:[%s2263_s1 + $0x400] sm:$0xff] }
  0x46   :  { %645 = vmatpush.msra.mxu0 %v163_v14  ;;  %664 = vmatpush.msra.mxu1 %v180_v15  ;;  %v181_v13 = vld [vmem:[%s2263_s1 + $0x500] sm:$0xff]  ;;  %v198_v14 = vld [vmem:[%s2263_s1 + $0x588] sm:$0xff]  ;;  %v228_v15 = vld [vmem:[%s2263_s1 + $0x678] sm:$0xff] }
  0x47   :  { %685 = vmatpush.msra.mxu2 %v195_v16  ;;  %704 = vmatpush.msra.mxu3 %v212_v17  ;;  %v260_v16 = vld [vmem:[%s2263_s1 + $0x778] sm:$0xff]  ;;  %v165_v17 = vld [vmem:[%s2263_s1 + $0x480] sm:$0xff] }
  0x48   :  { %646 = vmatpush.msra.mxu0 %v162_v18  ;;  %665 = vmatpush.msra.mxu1 %v179_v19  ;;  %v197_v18 = vld [vmem:[%s2263_s1 + $0x580] sm:$0xff]  ;;  %v227_v19 = vld [vmem:[%s2263_s1 + $0x670] sm:$0xff] }
  0x49   :  { %686 = vmatpush.msra.mxu2 %v194_v20  ;;  %705 = vmatpush.msra.mxu3 %v211_v21  ;;  %v244_v20 = vld [vmem:[%s2263_s1 + $0x6f8] sm:$0xff]  ;;  %v259_v21 = vld [vmem:[%s2263_s1 + $0x770] sm:$0xff] }
  0x4a   :  { %620 = vmatmul.f32.vlgmr.msrb.gmra.mxu2 %v433_v3  ;;  %647 = vmatpush.msra.mxu0 %v161_v22  ;;  %v151_v3 = vld [vmem:[%s2263_s1 + $0x410] sm:$0xff]  ;;  %v276_v22 = vld [vmem:[%s2263_s1 + $0x7f8] sm:$0xff] }
  0x4b   :  { %666 = vmatpush.msra.mxu1 %v178_v23  ;;  %687 = vmatpush.msra.mxu2 %v193_v24  ;;  %v226_v23 = vld [vmem:[%s2263_s1 + $0x668] sm:$0xff]  ;;  %v243_v24 = vld [vmem:[%s2263_s1 + $0x6f0] sm:$0xff] }
  0x4c   :  { %706 = vmatpush.msra.mxu3 %v210_v25  ;;  %580 = vmatmul.f32.vlgmr.msrb.gmra.mxu0 %v431_v4  ;;  %v168_v4 = vld [vmem:[%s2263_s1 + $0x498] sm:$0xff]  ;;  %v258_v25 = vld [vmem:[%s2263_s1 + $0x768] sm:$0xff] }
  0x4d   :  { %640 = vmatmul.f32.vlgmr.msrb.gmra.mxu3 %v434_v5  ;;  %648 = vmatpush.msra.mxu0 %v160_v27  ;;  %v183_v5 = vld [vmem:[%s2263_s1 + $0x510] sm:$0xff]  ;;  %v225_v27 = vld [vmem:[%s2263_s1 + $0x660] sm:$0xff] }
  0x4e   :  { %667 = vmatpush.msra.mxu1 %v177_v32  ;;  %688 = vmatpush.msra.mxu2 %v192_v33  ;;  %v1664_v32 = vld.sshfl [vmem:[#allocation1 + $0x28] sm:$0xff pattern:$0x73625140]  ;;  %v1672_v33 = vld.sshfl [vmem:[#allocation1 + $0x38] sm:$0xff pattern:$0x73625140] }
  0x4f   :  { %707 = vmatpush.msra.mxu3 %v209_v34  ;;  %600 = vmatmul.f32.vlgmr.msrb.gmra.mxu1 %v1399_v6  ;;  %v200_v6 = vld [vmem:[%s2263_s1 + $0x598] sm:$0xff]  ;;  %v257_v34 = vld [vmem:[%s2263_s1 + $0x760] sm:$0xff] }
  0x50   :  { %649 = vmatpush.msra.mxu0 %v159_v35  ;;  %668 = vmatpush.msra.mxu1 %v176_v36  ;;  %v274_v35 = vld [vmem:[%s2263_s1 + $0x7e8] sm:$0xff]  ;;  %v224_v36 = vld [vmem:[%s2263_s1 + $0x658] sm:$0xff] }
  0x51   :  { %689 = vmatpush.msra.mxu2 %v191_v37  ;;  %708 = vmatpush.msra.mxu3 %v208_v38  ;;  %v241_v37 = vld [vmem:[%s2263_s1 + $0x6e0] sm:$0xff]  ;;  %v256_v38 = vld [vmem:[%s2263_s1 + $0x758] sm:$0xff] }
  0x52   :  { %650 = vmatpush.msra.mxu0 %v158_v39  ;;  %669 = vmatpush.msra.mxu1 %v175_v40  ;;  %v273_v39 = vld [vmem:[%s2263_s1 + $0x7e0] sm:$0xff]  ;;  %v223_v40 = vld [vmem:[%s2263_s1 + $0x650] sm:$0xff] }
  0x53   :  { %690 = vmatpush.msra.mxu2 %v190_v41  ;;  %709 = vmatpush.msra.mxu3 %v207_v42  ;;  %v240_v41 = vld [vmem:[%s2263_s1 + $0x6d8] sm:$0xff]  ;;  %v255_v42 = vld [vmem:[%s2263_s1 + $0x750] sm:$0xff] }
  0x54   :  { %651 = vmatpush.msra.mxu0 %v157_v43  ;;  %670 = vmatpush.msra.mxu1 %v174_v44  ;;  %v272_v43 = vld [vmem:[%s2263_s1 + $0x7d8] sm:$0xff]  ;;  %v222_v44 = vld [vmem:[%s2263_s1 + $0x648] sm:$0xff] }
  0x55   :  { %691 = vmatpush.msra.mxu2 %v189_v45  ;;  %710 = vmatpush.msra.mxu3 %v206_v46  ;;  %v239_v45 = vld [vmem:[%s2263_s1 + $0x6d0] sm:$0xff]  ;;  %v254_v46 = vld [vmem:[%s2263_s1 + $0x748] sm:$0xff] }
  0x56   :  { %652 = vmatpush.msra.mxu0 %v156_v47  ;;  %671 = vmatpush.msra.mxu1 %v173_v48  ;;  %v271_v47 = vld [vmem:[%s2263_s1 + $0x7d0] sm:$0xff]  ;;  %v221_v48 = vld [vmem:[%s2263_s1 + $0x640] sm:$0xff] }
  0x57   :  { %692 = vmatpush.msra.mxu2 %v188_v49  ;;  %711 = vmatpush.msra.mxu3 %v205_v50  ;;  %v238_v49 = vld [vmem:[%s2263_s1 + $0x6c8] sm:$0xff]  ;;  %v253_v50 = vld [vmem:[%s2263_s1 + $0x740] sm:$0xff] }
  0x58   :  { %653 = vmatpush.msra.mxu0 %v155_v51  ;;  %672 = vmatpush.msra.mxu1 %v172_v52  ;;  %v270_v51 = vld [vmem:[%s2263_s1 + $0x7c8] sm:$0xff]  ;;  %v220_v52 = vld [vmem:[%s2263_s1 + $0x638] sm:$0xff] }
  0x59   :  { %693 = vmatpush.msra.mxu2 %v187_v53  ;;  %712 = vmatpush.msra.mxu3 %v204_v54  ;;  %v237_v53 = vld [vmem:[%s2263_s1 + $0x6c0] sm:$0xff]  ;;  %v252_v54 = vld [vmem:[%s2263_s1 + $0x738] sm:$0xff] }
  0x5a   :  { %654 = vmatpush.msra.mxu0 %v154_v55  ;;  %673 = vmatpush.msra.mxu1 %v171_v56  ;;  %v269_v55 = vld [vmem:[%s2263_s1 + $0x7c0] sm:$0xff]  ;;  %v219_v56 = vld [vmem:[%s2263_s1 + $0x630] sm:$0xff] }
  0x5b   :  { %694 = vmatpush.msra.mxu2 %v186_v57  ;;  %713 = vmatpush.msra.mxu3 %v203_v58  ;;  %v236_v57 = vld [vmem:[%s2263_s1 + $0x6b8] sm:$0xff]  ;;  %v251_v58 = vld [vmem:[%s2263_s1 + $0x730] sm:$0xff] }
  0x5c   :  { %655 = vmatpush.msra.mxu0 %v153_v59  ;;  %674 = vmatpush.msra.mxu1 %v170_v60  ;;  %v268_v59 = vld [vmem:[%s2263_s1 + $0x7b8] sm:$0xff]  ;;  %v218_v60 = vld [vmem:[%s2263_s1 + $0x628] sm:$0xff] }
  0x5d   :  { %695 = vmatpush.msra.mxu2 %v185_v61  ;;  %714 = vmatpush.msra.mxu3 %v202_v62  ;;  %v235_v61 = vld [vmem:[%s2263_s1 + $0x6b0] sm:$0xff]  ;;  %v250_v62 = vld [vmem:[%s2263_s1 + $0x728] sm:$0xff] }
  0x5e   :  { %656 = vmatpush.msra.mxu0 %v152_v63  ;;  %675 = vmatpush.msra.mxu1 %v169_v0  ;;  %v267_v63 = vld [vmem:[%s2263_s1 + $0x7b0] sm:$0xff]  ;;  %v217_v0 = vld [vmem:[%s2263_s1 + $0x620] sm:$0xff] }
  0x5f   :  { %696 = vmatpush.msra.mxu2 %v184_v1  ;;  %715 = vmatpush.msra.mxu3 %v201_v2  ;;  %v234_v1 = vld [vmem:[%s2263_s1 + $0x6a8] sm:$0xff]  ;;  %v249_v2 = vld [vmem:[%s2263_s1 + $0x720] sm:$0xff] }
  0x60   :  { %657 = vmatpush.msra.mxu0 %v151_v3  ;;  %676 = vmatpush.msra.mxu1 %v168_v4  ;;  %v266_v3 = vld [vmem:[%s2263_s1 + $0x7a8] sm:$0xff]  ;;  %v216_v4 = vld [vmem:[%s2263_s1 + $0x618] sm:$0xff] }
  0x61   :  { %697 = vmatpush.msra.mxu2 %v183_v5  ;;  %716 = vmatpush.msra.mxu3 %v200_v6  ;;  %v233_v5 = vld [vmem:[%s2263_s1 + $0x6a0] sm:$0xff]  ;;  %v248_v6 = vld [vmem:[%s2263_s1 + $0x718] sm:$0xff] }
  0x62   :  { %658 = vmatpush.msra.mxu0 %v150_v7  ;;  %677 = vmatpush.msra.mxu1 %v167_v8  ;;  %v265_v7 = vld [vmem:[%s2263_s1 + $0x7a0] sm:$0xff]  ;;  %v215_v8 = vld [vmem:[%s2263_s1 + $0x610] sm:$0xff] }
  0x63   :  { %698 = vmatpush.msra.mxu2 %v182_v9  ;;  %717 = vmatpush.msra.mxu3 %v199_v10  ;;  %v232_v9 = vld [vmem:[%s2263_s1 + $0x698] sm:$0xff]  ;;  %v247_v10 = vld [vmem:[%s2263_s1 + $0x710] sm:$0xff] }
  0x64   :  { %659 = vmatpush.msra.mxu0 %v149_v11  ;;  %678 = vmatpush.msra.mxu1 %v166_v12  ;;  %v264_v11 = vld [vmem:[%s2263_s1 + $0x798] sm:$0xff]  ;;  %v214_v12 = vld [vmem:[%s2263_s1 + $0x608] sm:$0xff] }
  0x65   :  { %699 = vmatpush.msra.mxu2 %v181_v13  ;;  %718 = vmatpush.msra.mxu3 %v198_v14  ;;  %v231_v13 = vld [vmem:[%s2263_s1 + $0x690] sm:$0xff]  ;;  %v246_v14 = vld [vmem:[%s2263_s1 + $0x708] sm:$0xff] }
  0x66   :  { %660 = vmatmul.f32.vlgmr.msra.gmra.mxu0 %v1461_v26  ;;  %700 = vmatmul.f32.vlgmr.msra.gmra.mxu2 %v1466_v28  ;;  %v275_v26 = vld [vmem:[%s2263_s1 + $0x7f0] sm:$0xff]  ;;  %v1660_v28 = vld.sshfl [vmem:[#allocation1 + $0x20] sm:$0xff pattern:$0x73625140] }
  0x67   :  { %724 = vmatpush.msrb.mxu0 %v228_v15  ;;  %764 = vmatpush.msrb.mxu2 %v260_v16  ;;  %v263_v15 = vld [vmem:[%s2263_s1 + $0x790] sm:$0xff]  ;;  %v213_v16 = vld [vmem:[%s2263_s1 + $0x600] sm:$0xff] }
  0x68   :  { %679 = vmatpush.msra.mxu1 %v165_v17  ;;  %719 = vmatpush.msra.mxu3 %v197_v18  ;;  %v230_v17 = vld [vmem:[%s2263_s1 + $0x688] sm:$0xff]  ;;  %v245_v18 = vld [vmem:[%s2263_s1 + $0x700] sm:$0xff] }
  0x69   :  { %680 = vmatmul.f32.vlgmr.msra.gmra.mxu1 %v1471_v30  ;;  %720 = vmatmul.f32.vlgmr.msra.gmra.mxu3 %v1473_v31  ;;  %v242_v30 = vld [vmem:[%s2263_s1 + $0x6e8] sm:$0xff] }
  0x6a   :  { %725 = vmatpush.msrb.mxu0 %v227_v19  ;;  %744 = vmatpush.msrb.mxu1 %v244_v20  ;;  %v19_v31 = vld [vmem:[%s2264_s0 + $0x28] sm:$0xff]  ;;  %v292_v20 = vld [vmem:[%s2263_s1 + $0x878] sm:$0xff] }
  0x6b   :  { %765 = vmatpush.msrb.mxu2 %v259_v21  ;;  %784 = vmatpush.msrb.mxu3 %v276_v22  ;;  %446 = vst [vmem:[#allocation1 + $0x20] ss:$4 sm:$0xff] %v19_v31  ;;  %v262_v19 = vld [vmem:[%s2263_s1 + $0x788] sm:$0xff]  ;;  %v324_v21 = vld [vmem:[%s2263_s1 + $0x978] sm:$0xff]  ;;  %v229_v22 = vld [vmem:[%s2263_s1 + $0x680] sm:$0xff] }
  0x6c   :  { %726 = vmatpush.msrb.mxu0 %v226_v23  ;;  %745 = vmatpush.msrb.mxu1 %v243_v24  ;;  %v261_v23 = vld [vmem:[%s2263_s1 + $0x780] sm:$0xff]  ;;  %v20_v24 = vld [vmem:[%s2264_s0 + $0x30] sm:$0x3]  ;;  %v322_v31 = vld [vmem:[%s2263_s1 + $0x968] sm:$0xff] }
  0x6d   :  { %766 = vmatpush.msrb.mxu2 %v258_v25  ;;  %785 = vmatpush.msrb.mxu3 %v275_v26  ;;  %v291_v25 = vld [vmem:[%s2263_s1 + $0x870] sm:$0xff]  ;;  %v308_v26 = vld [vmem:[%s2263_s1 + $0x8f8] sm:$0xff] }
  0x6e   :  { %727 = vmatpush.msrb.mxu0 %v225_v27  ;;  %746 = vmatpush.msrb.mxu1 %v242_v30  ;;  %v323_v27 = vld [vmem:[%s2263_s1 + $0x970] sm:$0xff] }
  0x6f   :  { %767 = vmatpush.msrb.mxu2 %v257_v34  ;;  %786 = vmatpush.msrb.mxu3 %v274_v35  ;;  %v307_v30 = vld [vmem:[%s2263_s1 + $0x8f0] sm:$0xff]  ;;  %v1867_v35 = vld.sshfl [vmem:[#allocation1] sm:$0xff pattern:$0x73625140] }
  0x70   :  { %728 = vmatpush.msrb.mxu0 %v224_v36  ;;  %747 = vmatpush.msrb.mxu1 %v241_v37  ;;  %v339_v34 = vld [vmem:[%s2263_s1 + $0x9f0] sm:$0xff]  ;;  %v1871_v37 = vld.sshfl [vmem:[#allocation1 + $0x8] sm:$0xff pattern:$0x73625140] }
  0x71   :  { %768 = vmatpush.msrb.mxu2 %v256_v38  ;;  %787 = vmatpush.msrb.mxu3 %v273_v39  ;;  %v1869_v36 = vld.sshfl [vmem:[#allocation1 + $0x10] sm:$0xff pattern:$0x73625140]  ;;  %v1873_v38 = vld.sshfl [vmem:[#allocation1 + $0x18] sm:$0xff pattern:$0x73625140] }
  0x72   :  { %729 = vmatpush.msrb.mxu0 %v223_v40  ;;  %748 = vmatpush.msrb.mxu1 %v240_v41  ;;  %v289_v39 = vld [vmem:[%s2263_s1 + $0x860] sm:$0xff]  ;;  %455 = vst [vmem:[#allocation1] ss:$4 sm:$0xff] %v20_v24  ;;  %v338_v40 = vld [vmem:[%s2263_s1 + $0x9e8] sm:$0xff]  ;;  %v288_v41 = vld [vmem:[%s2263_s1 + $0x858] sm:$0xff] }
  0x73   :  { %769 = vmatpush.msrb.mxu2 %v255_v42  ;;  %788 = vmatpush.msrb.mxu3 %v272_v43  ;;  %v305_v42 = vld [vmem:[%s2263_s1 + $0x8e0] sm:$0xff]  ;;  %v320_v43 = vld [vmem:[%s2263_s1 + $0x958] sm:$0xff]  ;;  %v326_v24 = vld [vmem:[%s2263_s1 + $0x988] sm:$0xff] }
  0x74   :  { %730 = vmatpush.msrb.mxu0 %v222_v44  ;;  %749 = vmatpush.msrb.mxu1 %v239_v45  ;;  %v337_v44 = vld [vmem:[%s2263_s1 + $0x9e0] sm:$0xff]  ;;  %v287_v45 = vld [vmem:[%s2263_s1 + $0x850] sm:$0xff] }
  0x75   :  { %770 = vmatpush.msrb.mxu2 %v254_v46  ;;  %789 = vmatpush.msrb.mxu3 %v271_v47  ;;  %v304_v46 = vld [vmem:[%s2263_s1 + $0x8d8] sm:$0xff]  ;;  %v319_v47 = vld [vmem:[%s2263_s1 + $0x950] sm:$0xff] }
  0x76   :  { %731 = vmatpush.msrb.mxu0 %v221_v48  ;;  %750 = vmatpush.msrb.mxu1 %v238_v49  ;;  %v336_v48 = vld [vmem:[%s2263_s1 + $0x9d8] sm:$0xff]  ;;  %v286_v49 = vld [vmem:[%s2263_s1 + $0x848] sm:$0xff] }
  0x77   :  { %771 = vmatpush.msrb.mxu2 %v253_v50  ;;  %790 = vmatpush.msrb.mxu3 %v270_v51  ;;  %v303_v50 = vld [vmem:[%s2263_s1 + $0x8d0] sm:$0xff]  ;;  %v318_v51 = vld [vmem:[%s2263_s1 + $0x948] sm:$0xff] }
  0x78   :  { %732 = vmatpush.msrb.mxu0 %v220_v52  ;;  %751 = vmatpush.msrb.mxu1 %v237_v53  ;;  %v335_v52 = vld [vmem:[%s2263_s1 + $0x9d0] sm:$0xff]  ;;  %v285_v53 = vld [vmem:[%s2263_s1 + $0x840] sm:$0xff] }
  0x79   :  { %772 = vmatpush.msrb.mxu2 %v252_v54  ;;  %791 = vmatpush.msrb.mxu3 %v269_v55  ;;  %v302_v54 = vld [vmem:[%s2263_s1 + $0x8c8] sm:$0xff]  ;;  %v317_v55 = vld [vmem:[%s2263_s1 + $0x940] sm:$0xff] }
  0x7a   :  { %733 = vmatpush.msrb.mxu0 %v219_v56  ;;  %752 = vmatpush.msrb.mxu1 %v236_v57  ;;  %v334_v56 = vld [vmem:[%s2263_s1 + $0x9c8] sm:$0xff]  ;;  %v284_v57 = vld [vmem:[%s2263_s1 + $0x838] sm:$0xff] }
  0x7b   :  { %773 = vmatpush.msrb.mxu2 %v251_v58  ;;  %792 = vmatpush.msrb.mxu3 %v268_v59  ;;  %v301_v58 = vld [vmem:[%s2263_s1 + $0x8c0] sm:$0xff]  ;;  %v316_v59 = vld [vmem:[%s2263_s1 + $0x938] sm:$0xff] }
  0x7c   :  { %734 = vmatpush.msrb.mxu0 %v218_v60  ;;  %753 = vmatpush.msrb.mxu1 %v235_v61  ;;  %v333_v60 = vld [vmem:[%s2263_s1 + $0x9c0] sm:$0xff]  ;;  %v283_v61 = vld [vmem:[%s2263_s1 + $0x830] sm:$0xff] }
  0x7d   :  { %774 = vmatpush.msrb.mxu2 %v250_v62  ;;  %793 = vmatpush.msrb.mxu3 %v267_v63  ;;  %v300_v62 = vld [vmem:[%s2263_s1 + $0x8b8] sm:$0xff]  ;;  %v315_v63 = vld [vmem:[%s2263_s1 + $0x930] sm:$0xff] }
  0x7e   :  { %735 = vmatpush.msrb.mxu0 %v217_v0  ;;  %754 = vmatpush.msrb.mxu1 %v234_v1  ;;  %v332_v0 = vld [vmem:[%s2263_s1 + $0x9b8] sm:$0xff]  ;;  %v282_v1 = vld [vmem:[%s2263_s1 + $0x828] sm:$0xff] }
  0x7f   :  { %775 = vmatpush.msrb.mxu2 %v249_v2  ;;  %794 = vmatpush.msrb.mxu3 %v266_v3  ;;  %v299_v2 = vld [vmem:[%s2263_s1 + $0x8b0] sm:$0xff]  ;;  %v314_v3 = vld [vmem:[%s2263_s1 + $0x928] sm:$0xff] }
  0x80   :  { %736 = vmatpush.msrb.mxu0 %v216_v4  ;;  %755 = vmatpush.msrb.mxu1 %v233_v5  ;;  %v331_v4 = vld [vmem:[%s2263_s1 + $0x9b0] sm:$0xff]  ;;  %v281_v5 = vld [vmem:[%s2263_s1 + $0x820] sm:$0xff] }
  0x81   :  { %776 = vmatpush.msrb.mxu2 %v248_v6  ;;  %795 = vmatpush.msrb.mxu3 %v265_v7  ;;  %v298_v6 = vld [vmem:[%s2263_s1 + $0x8a8] sm:$0xff]  ;;  %v313_v7 = vld [vmem:[%s2263_s1 + $0x920] sm:$0xff] }
  0x82   :  { %737 = vmatpush.msrb.mxu0 %v215_v8  ;;  %756 = vmatpush.msrb.mxu1 %v232_v9  ;;  %v330_v8 = vld [vmem:[%s2263_s1 + $0x9a8] sm:$0xff]  ;;  %v280_v9 = vld [vmem:[%s2263_s1 + $0x818] sm:$0xff] }
  0x83   :  { %777 = vmatpush.msrb.mxu2 %v247_v10  ;;  %796 = vmatpush.msrb.mxu3 %v264_v11  ;;  %v297_v10 = vld [vmem:[%s2263_s1 + $0x8a0] sm:$0xff]  ;;  %v312_v11 = vld [vmem:[%s2263_s1 + $0x918] sm:$0xff] }
  0x84   :  { %738 = vmatpush.msrb.mxu0 %v214_v12  ;;  %757 = vmatpush.msrb.mxu1 %v231_v13  ;;  %v329_v12 = vld [vmem:[%s2263_s1 + $0x9a0] sm:$0xff]  ;;  %v279_v13 = vld [vmem:[%s2263_s1 + $0x810] sm:$0xff] }
  0x85   :  { %778 = vmatpush.msrb.mxu2 %v246_v14  ;;  %797 = vmatpush.msrb.mxu3 %v263_v15  ;;  %v296_v14 = vld [vmem:[%s2263_s1 + $0x898] sm:$0xff]  ;;  %v311_v15 = vld [vmem:[%s2263_s1 + $0x910] sm:$0xff] }
  0x86   :  { %739 = vmatpush.msrb.mxu0 %v213_v16  ;;  %758 = vmatpush.msrb.mxu1 %v230_v17  ;;  %v328_v16 = vld [vmem:[%s2263_s1 + $0x998] sm:$0xff]  ;;  %v278_v17 = vld [vmem:[%s2263_s1 + $0x808] sm:$0xff] }
  0x87   :  { %779 = vmatpush.msrb.mxu2 %v245_v18  ;;  %798 = vmatpush.msrb.mxu3 %v262_v19  ;;  %v295_v18 = vld [vmem:[%s2263_s1 + $0x890] sm:$0xff]  ;;  %v310_v19 = vld [vmem:[%s2263_s1 + $0x908] sm:$0xff] }
  0x88   :  { %740 = vmatmul.f32.vlgmr.msrb.gmra.mxu0 %v1660_v28  ;;  %780 = vmatmul.f32.vlgmr.msrb.gmra.mxu2 %v1662_v29  ;;  %v340_v28 = vld [vmem:[%s2263_s1 + $0x9f8] sm:$0xff]  ;;  %v290_v29 = vld [vmem:[%s2263_s1 + $0x868] sm:$0xff] }
  0x89   :  { %804 = vmatpush.msra.mxu0 %v292_v20  ;;  %844 = vmatpush.msra.mxu2 %v324_v21  ;;  %v327_v20 = vld [vmem:[%s2263_s1 + $0x990] sm:$0xff]  ;;  %v277_v21 = vld [vmem:[%s2263_s1 + $0x800] sm:$0xff] }
  0x8a   :  { %759 = vmatpush.msrb.mxu1 %v229_v22  ;;  %799 = vmatpush.msrb.mxu3 %v261_v23  ;;  %v294_v22 = vld [vmem:[%s2263_s1 + $0x888] sm:$0xff]  ;;  %v309_v23 = vld [vmem:[%s2263_s1 + $0x900] sm:$0xff] }
  0x8b   :  { %760 = vmatmul.f32.vlgmr.msrb.gmra.mxu1 %v1664_v32  ;;  %800 = vmatmul.f32.vlgmr.msrb.gmra.mxu3 %v1672_v33  ;;  %v306_v32 = vld [vmem:[%s2263_s1 + $0x8e8] sm:$0xff]  ;;  %v321_v33 = vld [vmem:[%s2263_s1 + $0x960] sm:$0xff] }
  0x8c   :  { %805 = vmatpush.msra.mxu0 %v291_v25  ;;  %824 = vmatpush.msra.mxu1 %v308_v26  ;;  %v356_v25 = vld [vmem:[%s2263_s1 + $0xa78] sm:$0xff] }
  0x8d   :  { %845 = vmatpush.msra.mxu2 %v323_v27  ;;  %864 = vmatpush.msra.mxu3 %v340_v28  ;;  %v388_v26 = vld [vmem:[%s2263_s1 + $0xb78] sm:$0xff]  ;;  %v293_v27 = vld [vmem:[%s2263_s1 + $0x880] sm:$0xff] }
  0x8e   :  { %806 = vmatpush.msra.mxu0 %v290_v29  ;;  %825 = vmatpush.msra.mxu1 %v307_v30  ;;  %v325_v28 = vld [vmem:[%s2263_s1 + $0x980] sm:$0xff]  ;;  %v355_v29 = vld [vmem:[%s2263_s1 + $0xa70] sm:$0xff]  ;;  %v372_v30 = vld [vmem:[%s2263_s1 + $0xaf8] sm:$0xff] }
  0x8f   :  { %846 = vmatpush.msra.mxu2 %v322_v31  ;;  %865 = vmatpush.msra.mxu3 %v339_v34  ;;  %v387_v31 = vld [vmem:[%s2263_s1 + $0xb70] sm:$0xff]  ;;  %v404_v34 = vld [vmem:[%s2263_s1 + $0xbf8] sm:$0xff] }
  0x90   :  { %807 = vmatpush.msra.mxu0 %v289_v39  ;;  %826 = vmatpush.msra.mxu1 %v306_v32  ;;  %v386_v39 = vld [vmem:[%s2263_s1 + $0xb68] sm:$0xff] }
  0x91   :  { %847 = vmatpush.msra.mxu2 %v321_v33  ;;  %866 = vmatpush.msra.mxu3 %v338_v40  ;;  %v370_v32 = vld [vmem:[%s2263_s1 + $0xae8] sm:$0xff]  ;;  %v385_v33 = vld [vmem:[%s2263_s1 + $0xb60] sm:$0xff] }
  0x92   :  { %808 = vmatpush.msra.mxu0 %v288_v41  ;;  %827 = vmatpush.msra.mxu1 %v305_v42  ;;  %v402_v40 = vld [vmem:[%s2263_s1 + $0xbe8] sm:$0xff]  ;;  %v352_v41 = vld [vmem:[%s2263_s1 + $0xa58] sm:$0xff]  ;;  %v369_v42 = vld [vmem:[%s2263_s1 + $0xae0] sm:$0xff] }
  0x93   :  { %848 = vmatpush.msra.mxu2 %v320_v43  ;;  %867 = vmatpush.msra.mxu3 %v337_v44  ;;  %v384_v43 = vld [vmem:[%s2263_s1 + $0xb58] sm:$0xff]  ;;  %v401_v44 = vld [vmem:[%s2263_s1 + $0xbe0] sm:$0xff] }
  0x94   :  { %809 = vmatpush.msra.mxu0 %v287_v45  ;;  %828 = vmatpush.msra.mxu1 %v304_v46  ;;  %v351_v45 = vld [vmem:[%s2263_s1 + $0xa50] sm:$0xff]  ;;  %v368_v46 = vld [vmem:[%s2263_s1 + $0xad8] sm:$0xff] }
  0x95   :  { %849 = vmatpush.msra.mxu2 %v319_v47  ;;  %868 = vmatpush.msra.mxu3 %v336_v48  ;;  %v383_v47 = vld [vmem:[%s2263_s1 + $0xb50] sm:$0xff]  ;;  %v400_v48 = vld [vmem:[%s2263_s1 + $0xbd8] sm:$0xff] }
  0x96   :  { %810 = vmatpush.msra.mxu0 %v286_v49  ;;  %829 = vmatpush.msra.mxu1 %v303_v50  ;;  %v350_v49 = vld [vmem:[%s2263_s1 + $0xa48] sm:$0xff]  ;;  %v367_v50 = vld [vmem:[%s2263_s1 + $0xad0] sm:$0xff] }
  0x97   :  { %850 = vmatpush.msra.mxu2 %v318_v51  ;;  %869 = vmatpush.msra.mxu3 %v335_v52  ;;  %v382_v51 = vld [vmem:[%s2263_s1 + $0xb48] sm:$0xff]  ;;  %v399_v52 = vld [vmem:[%s2263_s1 + $0xbd0] sm:$0xff] }
  0x98   :  { %811 = vmatpush.msra.mxu0 %v285_v53  ;;  %830 = vmatpush.msra.mxu1 %v302_v54  ;;  %v349_v53 = vld [vmem:[%s2263_s1 + $0xa40] sm:$0xff]  ;;  %v366_v54 = vld [vmem:[%s2263_s1 + $0xac8] sm:$0xff] }
  0x99   :  { %851 = vmatpush.msra.mxu2 %v317_v55  ;;  %870 = vmatpush.msra.mxu3 %v334_v56  ;;  %v381_v55 = vld [vmem:[%s2263_s1 + $0xb40] sm:$0xff]  ;;  %v398_v56 = vld [vmem:[%s2263_s1 + $0xbc8] sm:$0xff] }
  0x9a   :  { %812 = vmatpush.msra.mxu0 %v284_v57  ;;  %831 = vmatpush.msra.mxu1 %v301_v58  ;;  %v348_v57 = vld [vmem:[%s2263_s1 + $0xa38] sm:$0xff]  ;;  %v365_v58 = vld [vmem:[%s2263_s1 + $0xac0] sm:$0xff] }
  0x9b   :  { %852 = vmatpush.msra.mxu2 %v316_v59  ;;  %871 = vmatpush.msra.mxu3 %v333_v60  ;;  %v380_v59 = vld [vmem:[%s2263_s1 + $0xb38] sm:$0xff]  ;;  %v397_v60 = vld [vmem:[%s2263_s1 + $0xbc0] sm:$0xff] }
  0x9c   :  { %813 = vmatpush.msra.mxu0 %v283_v61  ;;  %832 = vmatpush.msra.mxu1 %v300_v62  ;;  %v347_v61 = vld [vmem:[%s2263_s1 + $0xa30] sm:$0xff]  ;;  %v364_v62 = vld [vmem:[%s2263_s1 + $0xab8] sm:$0xff] }
  0x9d   :  { %853 = vmatpush.msra.mxu2 %v315_v63  ;;  %872 = vmatpush.msra.mxu3 %v332_v0  ;;  %v379_v63 = vld [vmem:[%s2263_s1 + $0xb30] sm:$0xff]  ;;  %v396_v0 = vld [vmem:[%s2263_s1 + $0xbb8] sm:$0xff] }
  0x9e   :  { %814 = vmatpush.msra.mxu0 %v282_v1  ;;  %833 = vmatpush.msra.mxu1 %v299_v2  ;;  %v346_v1 = vld [vmem:[%s2263_s1 + $0xa28] sm:$0xff]  ;;  %v363_v2 = vld [vmem:[%s2263_s1 + $0xab0] sm:$0xff] }
  0x9f   :  { %854 = vmatpush.msra.mxu2 %v314_v3  ;;  %873 = vmatpush.msra.mxu3 %v331_v4  ;;  %v378_v3 = vld [vmem:[%s2263_s1 + $0xb28] sm:$0xff]  ;;  %v395_v4 = vld [vmem:[%s2263_s1 + $0xbb0] sm:$0xff] }
  0xa0   :  { %815 = vmatpush.msra.mxu0 %v281_v5  ;;  %834 = vmatpush.msra.mxu1 %v298_v6  ;;  %v345_v5 = vld [vmem:[%s2263_s1 + $0xa20] sm:$0xff]  ;;  %v362_v6 = vld [vmem:[%s2263_s1 + $0xaa8] sm:$0xff] }
  0xa1   :  { %855 = vmatpush.msra.mxu2 %v313_v7  ;;  %874 = vmatpush.msra.mxu3 %v330_v8  ;;  %v377_v7 = vld [vmem:[%s2263_s1 + $0xb20] sm:$0xff]  ;;  %v394_v8 = vld [vmem:[%s2263_s1 + $0xba8] sm:$0xff] }
  0xa2   :  { %816 = vmatpush.msra.mxu0 %v280_v9  ;;  %835 = vmatpush.msra.mxu1 %v297_v10  ;;  %v344_v9 = vld [vmem:[%s2263_s1 + $0xa18] sm:$0xff]  ;;  %v361_v10 = vld [vmem:[%s2263_s1 + $0xaa0] sm:$0xff] }
  0xa3   :  { %856 = vmatpush.msra.mxu2 %v312_v11  ;;  %875 = vmatpush.msra.mxu3 %v329_v12  ;;  %v376_v11 = vld [vmem:[%s2263_s1 + $0xb18] sm:$0xff]  ;;  %v393_v12 = vld [vmem:[%s2263_s1 + $0xba0] sm:$0xff] }
  0xa4   :  { %817 = vmatpush.msra.mxu0 %v279_v13  ;;  %836 = vmatpush.msra.mxu1 %v296_v14  ;;  %v343_v13 = vld [vmem:[%s2263_s1 + $0xa10] sm:$0xff]  ;;  %v360_v14 = vld [vmem:[%s2263_s1 + $0xa98] sm:$0xff] }
  0xa5   :  { %857 = vmatpush.msra.mxu2 %v311_v15  ;;  %876 = vmatpush.msra.mxu3 %v328_v16  ;;  %v375_v15 = vld [vmem:[%s2263_s1 + $0xb10] sm:$0xff]  ;;  %v392_v16 = vld [vmem:[%s2263_s1 + $0xb98] sm:$0xff] }
  0xa6   :  { %818 = vmatpush.msra.mxu0 %v278_v17  ;;  %837 = vmatpush.msra.mxu1 %v295_v18  ;;  %v342_v17 = vld [vmem:[%s2263_s1 + $0xa08] sm:$0xff]  ;;  %v359_v18 = vld [vmem:[%s2263_s1 + $0xa90] sm:$0xff] }
  0xa7   :  { %858 = vmatpush.msra.mxu2 %v310_v19  ;;  %877 = vmatpush.msra.mxu3 %v327_v20  ;;  %v374_v19 = vld [vmem:[%s2263_s1 + $0xb08] sm:$0xff]  ;;  %v391_v20 = vld [vmem:[%s2263_s1 + $0xb90] sm:$0xff] }
  0xa8   :  { %819 = vmatpush.msra.mxu0 %v277_v21  ;;  %838 = vmatpush.msra.mxu1 %v294_v22  ;;  %v341_v21 = vld [vmem:[%s2263_s1 + $0xa00] sm:$0xff]  ;;  %v358_v22 = vld [vmem:[%s2263_s1 + $0xa88] sm:$0xff] }
  0xa9   :  { %859 = vmatpush.msra.mxu2 %v309_v23  ;;  %878 = vmatpush.msra.mxu3 %v326_v24  ;;  %v373_v23 = vld [vmem:[%s2263_s1 + $0xb00] sm:$0xff]  ;;  %v390_v24 = vld [vmem:[%s2263_s1 + $0xb88] sm:$0xff] }
  0xaa   :  { %820 = vmatmul.f32.vlgmr.msra.gmra.mxu0 %v1867_v35  ;;  %860 = vmatmul.f32.vlgmr.msra.gmra.mxu2 %v1869_v36  ;;  %v354_v35 = vld [vmem:[%s2263_s1 + $0xa68] sm:$0xff]  ;;  %v371_v36 = vld [vmem:[%s2263_s1 + $0xaf0] sm:$0xff] }
  0xab   :  { %884 = vmatpush.msrb.mxu0 %v356_v25  ;;  %924 = vmatpush.msrb.mxu2 %v388_v26  ;;  %v451_v25 = vld.sshfl [vmem:[#allocation1 + $0x20] sm:$0xff pattern:$0x73625140]  ;;  %v453_v26 = vld.sshfl [vmem:[#allocation1 + $0x30] sm:$0xff pattern:$0x73625140] }
  0xac   :  { %839 = vmatpush.msra.mxu1 %v293_v27  ;;  %879 = vmatpush.msra.mxu3 %v325_v28  ;;  %v412_v27 = vld [vmem:[%s2263_s1 + $0xc38] sm:$0xff]  ;;  %v357_v28 = vld [vmem:[%s2263_s1 + $0xa80] sm:$0xff] }
  0xad   :  { %840 = vmatmul.f32.vlgmr.msra.gmra.mxu1 %v1871_v37  ;;  %880 = vmatmul.f32.vlgmr.msra.gmra.mxu3 %v1873_v38  ;;  %v403_v37 = vld [vmem:[%s2263_s1 + $0xbf0] sm:$0xff]  ;;  %v353_v38 = vld [vmem:[%s2263_s1 + $0xa60] sm:$0xff] }
  0xae   :  { %885 = vmatpush.msrb.mxu0 %v355_v29  ;;  %904 = vmatpush.msrb.mxu1 %v372_v30  ;;  %v389_v29 = vld [vmem:[%s2263_s1 + $0xb80] sm:$0xff]  ;;  %v452_v30 = vld.sshfl [vmem:[#allocation1 + $0x28] sm:$0xff pattern:$0x73625140] }
  0xaf   :  { %925 = vmatpush.msrb.mxu2 %v387_v31  ;;  %944 = vmatpush.msrb.mxu3 %v404_v34  ;;  %v454_v31 = vld.sshfl [vmem:[#allocation1 + $0x38] sm:$0xff pattern:$0x73625140]  ;;  %v411_v34 = vld [vmem:[%s2263_s1 + $0xc30] sm:$0xff] }
  0xb0   :  { %886 = vmatpush.msrb.mxu0 %v354_v35  ;;  %905 = vmatpush.msrb.mxu1 %v371_v36  ;;  %v410_v35 = vld [vmem:[%s2263_s1 + $0xc28] sm:$0xff]  ;;  %v409_v36 = vld [vmem:[%s2263_s1 + $0xc20] sm:$0xff] }
  0xb1   :  { %926 = vmatpush.msrb.mxu2 %v386_v39  ;;  %945 = vmatpush.msrb.mxu3 %v403_v37  ;;  %v408_v39 = vld [vmem:[%s2263_s1 + $0xc18] sm:$0xff]  ;;  %v407_v37 = vld [vmem:[%s2263_s1 + $0xc10] sm:$0xff] }
  0xb2   :  { %887 = vmatpush.msrb.mxu0 %v353_v38  ;;  %906 = vmatpush.msrb.mxu1 %v370_v32  ;;  %v406_v38 = vld [vmem:[%s2263_s1 + $0xc08] sm:$0xff]  ;;  %v405_v32 = vld [vmem:[%s2263_s1 + $0xc00] sm:$0xff] }
  0xb3   :  { %927 = vmatpush.msrb.mxu2 %v385_v33  ;;  %946 = vmatpush.msrb.mxu3 %v402_v40  ;;  %v456_v33 = vld.sshfl [vmem:[#allocation1] sm:$0xff pattern:$0x73625140] }
  0xb4   :  { %888 = vmatpush.msrb.mxu0 %v352_v41  ;;  %907 = vmatpush.msrb.mxu1 %v369_v42  ;;  %v991_v40 = vld [vmem:[%s2265_s2] ss:$0 sm:$0xff] }
  0xb5   :  { %928 = vmatpush.msrb.mxu2 %v384_v43  ;;  %947 = vmatpush.msrb.mxu3 %v401_v44 }
  0xb6   :  { %889 = vmatpush.msrb.mxu0 %v351_v45  ;;  %908 = vmatpush.msrb.mxu1 %v368_v46 }
  0xb7   :  { %929 = vmatpush.msrb.mxu2 %v383_v47  ;;  %948 = vmatpush.msrb.mxu3 %v400_v48 }
  0xb8   :  { %890 = vmatpush.msrb.mxu0 %v350_v49  ;;  %909 = vmatpush.msrb.mxu1 %v367_v50 }
  0xb9   :  { %930 = vmatpush.msrb.mxu2 %v382_v51  ;;  %949 = vmatpush.msrb.mxu3 %v399_v52 }
  0xba   :  { %891 = vmatpush.msrb.mxu0 %v349_v53  ;;  %910 = vmatpush.msrb.mxu1 %v366_v54 }
  0xbb   :  { %931 = vmatpush.msrb.mxu2 %v381_v55  ;;  %950 = vmatpush.msrb.mxu3 %v398_v56 }
  0xbc   :  { %892 = vmatpush.msrb.mxu0 %v348_v57  ;;  %911 = vmatpush.msrb.mxu1 %v365_v58 }
  0xbd   :  { %932 = vmatpush.msrb.mxu2 %v380_v59  ;;  %951 = vmatpush.msrb.mxu3 %v397_v60 }
  0xbe   :  { %893 = vmatpush.msrb.mxu0 %v347_v61  ;;  %912 = vmatpush.msrb.mxu1 %v364_v62 }
  0xbf   :  { %933 = vmatpush.msrb.mxu2 %v379_v63  ;;  %952 = vmatpush.msrb.mxu3 %v396_v0  ;;  %v501_v41 = vpop.f32.mrf.mxu0 }
  0xc0   :  { %894 = vmatpush.msrb.mxu0 %v346_v1  ;;  %913 = vmatpush.msrb.mxu1 %v363_v2  ;;  %v502_v42 = vadd.f32 %v991_v40, %v501_v41 }
  0xc1   :  { %934 = vmatpush.msrb.mxu2 %v378_v3  ;;  %953 = vmatpush.msrb.mxu3 %v395_v4 }
  0xc2   :  { %895 = vmatpush.msrb.mxu0 %v345_v5  ;;  %914 = vmatpush.msrb.mxu1 %v362_v6  ;;  %v521_v43 = vpop.f32.mrf.mxu1 }
  0xc3   :  { %935 = vmatpush.msrb.mxu2 %v377_v7  ;;  %954 = vmatpush.msrb.mxu3 %v394_v8  ;;  %v522_v44 = vadd.f32 %v521_v43, %v502_v42  ;;  %v541_v45 = vpop.f32.mrf.mxu2 }
  0xc4   :  { %896 = vmatpush.msrb.mxu0 %v344_v9  ;;  %915 = vmatpush.msrb.mxu1 %v361_v10 }
  0xc5   :  { %936 = vmatpush.msrb.mxu2 %v376_v11  ;;  %955 = vmatpush.msrb.mxu3 %v393_v12  ;;  %v542_v46 = vadd.f32 %v541_v45, %v522_v44 }
  0xc6   :  { %897 = vmatpush.msrb.mxu0 %v343_v13  ;;  %916 = vmatpush.msrb.mxu1 %v360_v14  ;;  %v561_v47 = vpop.f32.mrf.mxu3 }
  0xc7   :  { %937 = vmatpush.msrb.mxu2 %v375_v15  ;;  %956 = vmatpush.msrb.mxu3 %v392_v16  ;;  %v562_v48 = vadd.f32 %v561_v47, %v542_v46 }
  0xc8   :  { %898 = vmatpush.msrb.mxu0 %v342_v17  ;;  %917 = vmatpush.msrb.mxu1 %v359_v18 }
  0xc9   :  { %938 = vmatpush.msrb.mxu2 %v374_v19  ;;  %957 = vmatpush.msrb.mxu3 %v391_v20  ;;  %v581_v49 = vpop.f32.mrf.mxu0 }
  0xca   :  { %899 = vmatpush.msrb.mxu0 %v341_v21  ;;  %918 = vmatpush.msrb.mxu1 %v358_v22  ;;  %v582_v50 = vadd.f32 %v581_v49, %v562_v48 }
  0xcb   :  { %939 = vmatpush.msrb.mxu2 %v373_v23  ;;  %958 = vmatpush.msrb.mxu3 %v390_v24 }
  0xcc   :  { %900 = vmatmul.f32.vlgmr.msrb.gmra.mxu0 %v451_v25  ;;  %940 = vmatmul.f32.vlgmr.msrb.gmra.mxu2 %v453_v26  ;;  %v601_v51 = vpop.f32.mrf.mxu1 }
  0xcd   :  { %972 = vmatpush.msra.mxu0 %v412_v27  ;;  %919 = vmatpush.msrb.mxu1 %v357_v28  ;;  %v602_v52 = vadd.f32 %v601_v51, %v582_v50  ;;  %v621_v53 = vpop.f32.mrf.mxu2 }
  0xce   :  { %959 = vmatpush.msrb.mxu3 %v389_v29  ;;  %920 = vmatmul.f32.vlgmr.msrb.gmra.mxu1 %v452_v30 }
  0xcf   :  { %960 = vmatmul.f32.vlgmr.msrb.gmra.mxu3 %v454_v31  ;;  %973 = vmatpush.msra.mxu0 %v411_v34  ;;  %v622_v54 = vadd.f32 %v621_v53, %v602_v52 }
  0xd0   :  { %v641_v55 = vpop.f32.mrf.mxu3 }
  0xd1   :  { %974 = vmatpush.msra.mxu0 %v410_v35  ;;  %v642_v57 = vadd.f32 %v641_v55, %v622_v54 }
  0xd3   :  { %975 = vmatpush.msra.mxu0 %v409_v36 }
  0xd5   :  { %976 = vmatpush.msra.mxu0 %v408_v39 }
  0xd7   :  { %977 = vmatpush.msra.mxu0 %v407_v37 }
  0xd9   :  { %978 = vmatpush.msra.mxu0 %v406_v38 }
  0xdb   :  { %979 = vmatpush.msra.mxu0 %v405_v32 }
  0xdc   :  { %990 = vmatmul.msk.f32.vlgmr.msra.gmra.mxu0 %vm481_vm0, %v456_v33 }
  0xe3   :  { %v661_v56 = vpop.f32.mrf.mxu0 }
  0xe4   :  { %v662_v58 = vadd.f32 %v661_v56, %v642_v57 }
  0xe6   :  { %v681_v59 = vpop.f32.mrf.mxu1 }
  0xe7   :  { %v682_v61 = vadd.f32 %v681_v59, %v662_v58 }
  0xe9   :  { %v701_v60 = vpop.f32.mrf.mxu2 }
  0xea   :  { %v702_v62 = vadd.f32 %v701_v60, %v682_v61 }
  0xec   :  { %v721_v63 = vpop.f32.mrf.mxu3 }
  0xed   :  { %v722_v1 = vadd.f32 %v721_v63, %v702_v62 }
 0x105   :  { %v741_v0 = vpop.f32.mrf.mxu0 }
 0x106   :  { %v742_v2 = vadd.f32 %v741_v0, %v722_v1 }
 0x108   :  { %v761_v3 = vpop.f32.mrf.mxu1 }
 0x109   :  { %v762_v5 = vadd.f32 %v761_v3, %v742_v2 }
 0x10b   :  { %v781_v4 = vpop.f32.mrf.mxu2 }
 0x10c   :  { %v782_v6 = vadd.f32 %v781_v4, %v762_v5 }
 0x10e   :  { %v801_v7 = vpop.f32.mrf.mxu3 }
 0x10f   :  { %v802_v9 = vadd.f32 %v801_v7, %v782_v6 }
 0x127   :  { %v821_v8 = vpop.f32.mrf.mxu0 }
 0x128   :  { %v822_v10 = vadd.f32 %v821_v8, %v802_v9 }
 0x12a   :  { %v841_v11 = vpop.f32.mrf.mxu1 }
 0x12b   :  { %v842_v13 = vadd.f32 %v841_v11, %v822_v10 }
 0x12d   :  { %v861_v12 = vpop.f32.mrf.mxu2 }
 0x12e   :  { %v862_v14 = vadd.f32 %v861_v12, %v842_v13 }
 0x130   :  { %v881_v15 = vpop.f32.mrf.mxu3 }
 0x131   :  { %v882_v17 = vadd.f32 %v881_v15, %v862_v14 }
 0x149   :  { %v901_v16 = vpop.f32.mrf.mxu0 }
 0x14a   :  { %v902_v18 = vadd.f32 %v901_v16, %v882_v17 }
 0x14b   :  { %v921_v19 = vpop.f32.mrf.mxu1 }
 0x14c   :  { %v922_v21 = vadd.f32 %v921_v19, %v902_v18 }
 0x14f   :  { %v941_v20 = vpop.f32.mrf.mxu2 }
 0x150   :  { %v942_v22 = vadd.f32 %v941_v20, %v922_v21 }
 0x152   :  { %v961_v23 = vpop.f32.mrf.mxu3 }
 0x153   :  { %v962_v24 = vadd.f32 %v961_v23, %v942_v22 }
 0x159   :  { %v981_v25 = vpop.f32.mrf.mxu0 }
 0x15a   :  { %v982_v26 = vadd.f32 %v981_v25, %v962_v24 }
 0x15c   :  { %985 = vst.msk [vmem:[%s2266_s3] sm:$0x3] %vm984_vm1, %v982_v26 }

</bundles_post_ra>
